<compile_context>
chip_gen: v5e
topology: v5e:2x2
jax: 0.10.0
libtpu: 0.0.40
codegen_flags: <defaults>
</compile_context>

<pallas_src>
import jax
import jax.numpy as jnp
import numpy as np
from jax.experimental import pallas as pl
from jax.experimental.pallas import tpu as pltpu


# ----------------------------------------------------------------------------
# Synthetic cfg (what parse_cfg would have produced for a tiny yolo network).
# ----------------------------------------------------------------------------
CFG_BLOCKS = [
    {"type": "net", "height": "16", "width": "16", "channels": "3"},
    {"type": "convolutional", "batch_normalize": "1", "filters": "8",
     "size": "3", "stride": "1", "pad": "1", "activation": "leaky"},      # 0
    {"type": "convolutional", "batch_normalize": "1", "filters": "8",
     "size": "3", "stride": "2", "pad": "1", "activation": "leaky"},      # 1
    {"type": "convolutional", "batch_normalize": "1", "filters": "8",
     "size": "1", "stride": "1", "pad": "1", "activation": "leaky"},      # 2
    {"type": "shortcut", "from": "-2", "activation": "linear"},           # 3
    {"type": "convolutional", "filters": "21", "size": "1", "stride": "1",
     "pad": "1", "activation": "linear"},                                 # 4
    {"type": "yolo", "mask": "0,1,2",
     "anchors": "2,3, 4,5, 6,8, 9,10, 12,14, 16,18",
     "classes": "2", "num": "6"},                                         # 5
    {"type": "route", "layers": "-4"},                                    # 6
    {"type": "upsample", "stride": "2"},                                  # 7
    {"type": "route", "layers": "-1,-8"},                                 # 8
    {"type": "convolutional", "filters": "21", "size": "1", "stride": "1",
     "pad": "1", "activation": "linear"},                                 # 9
    {"type": "yolo", "mask": "3,4,5",
     "anchors": "2,3, 4,5, 6,8, 9,10, 12,14, 16,18",
     "classes": "2", "num": "6"},                                         # 10
]

C = 128  # lane-padded channel width used for every matrix inside the kernel


# ----------------------------------------------------------------------------
# Fused whole-network Pallas kernel (one grid step per batch element)
# ----------------------------------------------------------------------------
def _leaky(v):
    return jnp.where(v > 0, v, 0.1 * v)


def _mdot(a, b):
    """bf16 x bf16 matmul with f32 accumulation on the MXU."""
    return jnp.dot(a.astype(jnp.bfloat16), b, preferred_element_type=jnp.float32)


def _darknet_fused_kernel(xp00_ref, xp01_ref, xp10_ref, xp11_ref,   # inputs
                          w0_ref, w1_ref, w1x1_ref, vec_ref,
                          add1_ref, add2_ref,
                          h1_ref, h2_ref,                            # outputs
                          pp_ref):                                   # scratch
    xp = ((xp00_ref, xp01_ref), (xp10_ref, xp11_ref))
    shift0 = vec_ref[0:1, :]
    shift1 = vec_ref[1:2, :]
    shift2 = vec_ref[2:3, :]
    bias4 = vec_ref[3:4, :]
    bias9 = vec_ref[4:5, :]
    mul1 = vec_ref[5:6, :]
    mul2 = vec_ref[6:7, :]
    isexp = vec_ref[7:8, :] > 0.0

    # ---- conv0: 3x3 s1 p1 (BN folded + leaky), computed as the four 2x2
    # spatial parity planes of its 16x16 output.  Patches are formed in VMEM
    # from contiguous static slices of the parity-split padded input.
    pp_ref[...] = jnp.zeros(pp_ref.shape, pp_ref.dtype)
    y0_planes = []
    for a in range(2):
        for b in range(2):
            acc = jnp.zeros((64, C), jnp.float32)
            for di in range(3):
                for dj in range(3):
                    q, ro = (a + di) % 2, (a + di) // 2
                    s, co = (b + dj) % 2, (b + dj) // 2
                    patch = xp[q][s][0, ro:ro + 8, co:co + 8, :]      # (8,8,8)
                    acc = acc + _mdot(patch.reshape(64, 8),
                                      w0_ref[di * 3 + dj])
            y0 = _leaky(acc + shift0)                                 # (64,C)
            y0_planes.append(y0)
            # zero-bordered parity plane (border supplies the conv1 padding)
            pp_ref[a * 2 + b, 1:9, 1:9, :] = y0.reshape(8, 8, C)

    # ---- conv1: 3x3 s2 p1 (BN folded + leaky).  With parity planes the
    # stride-2 window gather is just contiguous 8x8 slices of pp_ref.
    acc = jnp.zeros((64, C), jnp.float32)
    for di in range(3):
        ap = (di + 1) % 2
        r0 = 0 if di == 0 else 1
        for dj in range(3):
            bp = (dj + 1) % 2
            c0 = 0 if dj == 0 else 1
            patch = pp_ref[ap * 2 + bp, r0:r0 + 8, c0:c0 + 8, :]      # (8,8,C)
            acc = acc + _mdot(patch.reshape(64, C), w1_ref[di * 3 + dj])
    y1 = _leaky(acc + shift1)                                         # 8x8 grid

    # ---- head 1: conv2 (1x1 BN+leaky) -> shortcut(+conv1) -> conv4 (1x1
    # bias, linear) -> fused YOLO transform (sigmoid/exp, anchors, offsets).
    y2 = _leaky(_mdot(y1, w1x1_ref[0]) + shift2)      # conv2 output (route -4)
    x3 = y2 + y1                                      # shortcut, linear act
    y4 = _mdot(x3, w1x1_ref[1]) + bias4               # conv4
    h1 = jnp.where(isexp, jnp.exp(y4), jax.nn.sigmoid(y4)) * mul1 + add1_ref[...]
    h1_ref[0, :, :] = h1

    # ---- head 2: route(conv2 out) -> 2x nearest upsample -> concat(conv0
    # out) -> conv9 (1x1 bias) -> fused YOLO transform.  In parity space the
    # upsample is the identity, so its contribution is one matmul shared by
    # all four parity planes; the channel concat becomes a second matmul
    # against the matching conv0 parity plane.
    up = _mdot(y2, w1x1_ref[2]) + bias9
    for p in range(4):
        o9 = up + _mdot(y0_planes[p], w1x1_ref[3])
        det = jnp.where(isexp, jnp.exp(o9), jax.nn.sigmoid(o9)) * mul2 + add2_ref[p]
        h2_ref[0, p, :, :] = det


# ----------------------------------------------------------------------------
# Darknet module (JAX/Pallas version)
# ----------------------------------------------------------------------------
class DarknetPallas:
    def __init__(self, blocks, key):
        self.blocks = blocks
        self.net_info = blocks[0]
        self.inp_dim = int(self.net_info["height"])

        # -- synthetic per-layer parameters (mirrors create_modules/load_weights)
        raw = []
        prev_filters = int(self.net_info.get("channels", 3))
        filters = prev_filters
        output_filters = []
        for index, b in enumerate(blocks[1:]):
            p = None
            if b["type"] == "convolutional":
                bn = int(b.get("batch_normalize", 0))
                filters = int(b["filters"])
                ksize = int(b["size"])
                stride = int(b["stride"])
                pad = (ksize - 1) // 2 if int(b["pad"]) else 0
                kdim = ksize * ksize * prev_filters
                key, k1, k2, k3, k4, k5 = jax.random.split(key, 6)
                w = 0.1 * jax.random.normal(k1, (kdim, filters), jnp.float32)
                if bn:
                    gamma = 1.0 + 0.1 * jax.random.normal(k2, (filters,), jnp.float32)
                    beta = 0.1 * jax.random.normal(k3, (filters,), jnp.float32)
                    rmean = 0.1 * jax.random.normal(k4, (filters,), jnp.float32)
                    rvar = jnp.abs(jax.random.normal(k5, (filters,), jnp.float32)) + 0.5
                    scale = gamma / jnp.sqrt(rvar + 1e-5)
                    shift = beta - rmean * scale
                else:
                    bias = 0.1 * jax.random.normal(k2, (filters,), jnp.float32)
                    scale = jnp.ones((filters,), jnp.float32)
                    shift = bias
                # fold the BN scale directly into the weights (perf review #4)
                p = dict(w=w * scale[None, :], shift=shift, ksize=ksize,
                         stride=stride, pad=pad, cin=prev_filters,
                         leaky=(b["activation"] == "leaky"))
            elif b["type"] == "route":
                layers = [int(a) for a in b["layers"].split(",")]
                start = layers[0]
                end = layers[1] if len(layers) > 1 else 0
                if start > 0:
                    start -= index
                if end > 0:
                    end -= index
                if end < 0:
                    filters = output_filters[index + start] + output_filters[index + end]
                else:
                    filters = output_filters[index + start]
            elif b["type"] == "yolo":
                mask = [int(m) for m in b["mask"].split(",")]
                anc = [int(a) for a in b["anchors"].split(",")]
                anc = [(anc[i], anc[i + 1]) for i in range(0, len(anc), 2)]
                p = dict(anchors=[anc[m] for m in mask], classes=int(b["classes"]))
            # shortcut / upsample: no params, filters unchanged
            raw.append(p)
            prev_filters = filters
            output_filters.append(filters)
        self.raw = raw
        self._pack()

    # -- pack the per-layer parameters into the lane-padded fused-kernel form.
    #    (Specialized to the CFG_BLOCKS topology above.)
    def _pack(self):
        r = self.raw
        self.na = len(r[5]["anchors"])                  # anchors per head (3)
        self.attrs = 5 + r[5]["classes"]                # 7
        na, attrs = self.na, self.attrs
        self.g1, self.g2 = self.inp_dim // 2, self.inp_dim        # 8, 16
        s1, s2 = self.inp_dim // self.g1, self.inp_dim // self.g2  # 2, 1

        # conv0 / conv1 weights: (offset, cin_pad, cout_pad)
        w0 = r[0]["w"].reshape(3, 3, 3, 8).reshape(9, 3, 8)
        w0p = jnp.zeros((9, 8, C), jnp.float32).at[:, :3, :8].set(w0)
        w1 = r[1]["w"].reshape(3, 3, 8, 8).reshape(9, 8, 8)
        w1p = jnp.zeros((9, C, C), jnp.float32).at[:, :8, :8].set(w1)

        def pad_sq(w2d):
            return jnp.zeros((C, C), jnp.float32).at[
                :w2d.shape[0], :w2d.shape[1]].set(w2d)

        w9 = r[9]["w"]                                   # (16, 21)
        self.w0 = w0p.astype(jnp.bfloat16)
        self.w1 = w1p.astype(jnp.bfloat16)
        # [conv2, conv4, conv9(upsampled half), conv9(conv0 half)]
        self.w1x1 = jnp.stack([pad_sq(r[2]["w"]), pad_sq(r[4]["w"]),
                               pad_sq(w9[:8]), pad_sq(w9[8:])]).astype(jnp.bfloat16)

        def row(v):
            return jnp.zeros((C,), jnp.float32).at[:v.shape[0]].set(v)

        def head_mul(stride, anchors):
            m = np.ones((C,), np.float32)
            for a in range(na):
                m[a * attrs + 0] = stride
                m[a * attrs + 1] = stride
                m[a * attrs + 2] = anchors[a][0]
                m[a * attrs + 3] = anchors[a][1]
            return jnp.asarray(m)

        isexp = np.zeros((C,), np.float32)
        for a in range(na):
            isexp[a * attrs + 2] = 1.0
            isexp[a * attrs + 3] = 1.0

        self.vecs = jnp.stack([
            row(r[0]["shift"]), row(r[1]["shift"]), row(r[2]["shift"]),
            row(r[4]["shift"]), row(r[9]["shift"]),
            head_mul(s1, r[5]["anchors"]), head_mul(s2, r[10]["anchors"]),
            jnp.asarray(isexp)]).astype(jnp.float32)               # (8, 128)

        # head-1 grid offsets (natural 8x8 cell order)
        add1 = np.zeros((self.g1 * self.g1, C), np.float32)
        for oh in range(self.g1):
            for ow in range(self.g1):
                for a in range(na):
                    add1[oh * self.g1 + ow, a * attrs + 0] = ow * s1
                    add1[oh * self.g1 + ow, a * attrs + 1] = oh * s1
        self.add1 = jnp.asarray(add1)

        # head-2 grid offsets, one (64, 128) block per 2x2 spatial parity plane
        add2 = np.zeros((4, 64, C), np.float32)
        for ap in range(2):
            for bp in range(2):
                for oh in range(8):
                    for ow in range(8):
                        cell = oh * 8 + ow
                        for a in range(na):
                            add2[ap * 2 + bp, cell, a * attrs + 0] = (2 * ow + bp) * s2
                            add2[ap * 2 + bp, cell, a * attrs + 1] = (2 * oh + ap) * s2
        self.add2 = jnp.asarray(add2)

        # permutation mapping plane-major head-2 cells back to row-major (h,w)
        perm = np.zeros((self.g2 * self.g2,), np.int32)
        for h in range(self.g2):
            for w in range(self.g2):
                perm[h * self.g2 + w] = ((h % 2) * 2 + (w % 2)) * 64 + (h // 2) * 8 + (w // 2)
        self.perm = jnp.asarray(perm)

    def forward(self, x_nchw):
        n, cin, hh, ww = x_nchw.shape
        assert (hh, ww) == (self.inp_dim, self.inp_dim) and cin == 3

        # NCHW -> NHWC, spatial pad 1, channel pad 3 -> 8, split into the four
        # 2x2 spatial parity planes consumed by the fused kernel.
        x = jnp.transpose(x_nchw, (0, 2, 3, 1)).astype(jnp.float32)
        xpad = jnp.pad(x, ((0, 0), (1, 1), (1, 1), (0, 8 - cin)))
        planes = [xpad[:, a::2, b::2, :] for a in (0, 1) for b in (0, 1)]

        grid_spec = pltpu.PrefetchScalarGridSpec(
            num_scalar_prefetch=0,
            grid=(n,),
            in_specs=[pl.BlockSpec((1, 9, 9, 8), lambda b: (b, 0, 0, 0))] * 4 + [
                pl.BlockSpec((9, 8, C), lambda b: (0, 0, 0)),       # w0
                pl.BlockSpec((9, C, C), lambda b: (0, 0, 0)),       # w1
                pl.BlockSpec((4, C, C), lambda b: (0, 0, 0)),       # 1x1 convs
                pl.BlockSpec((8, C), lambda b: (0, 0)),             # shifts/mul/isexp
                pl.BlockSpec((64, C), lambda b: (0, 0)),            # yolo-1 offsets
                pl.BlockSpec((4, 64, C), lambda b: (0, 0, 0)),      # yolo-2 offsets
            ],
            out_specs=(pl.BlockSpec((1, 64, C), lambda b: (b, 0, 0)),
                       pl.BlockSpec((1, 4, 64, C), lambda b: (b, 0, 0, 0))),
            scratch_shapes=[pltpu.VMEM((4, 9, 9, C), jnp.float32)],
        )
        h1, h2 = pl.pallas_call(
            _darknet_fused_kernel,
            out_shape=(jax.ShapeDtypeStruct((n, 64, C), jnp.float32),
                       jax.ShapeDtypeStruct((n, 4, 64, C), jnp.float32)),
            grid_spec=grid_spec,
            compiler_params=pltpu.CompilerParams(
                dimension_semantics=("parallel",),
                vmem_limit_bytes=32 * 1024 * 1024),
        )(planes[0], planes[1], planes[2], planes[3],
          self.w0, self.w1, self.w1x1, self.vecs, self.add1, self.add2)

        # Output formatting only (slice off lane padding, restore row-major
        # cell order for head 2, match predict_transform's row layout).
        k = self.na * self.attrs                                   # 21
        head1 = h1[:, :, :k].reshape(n, self.g1 * self.g1 * self.na, self.attrs)
        head2 = h2[:, :, :, :k].reshape(n, self.g2 * self.g2, k)[:, self.perm, :]
        head2 = head2.reshape(n, self.g2 * self.g2 * self.na, self.attrs)
        return jnp.concatenate([head1, head2], axis=1)


if __name__ == "__main__":
    key = jax.random.PRNGKey(0)
    key, sub = jax.random.split(key)
    net = DarknetPallas(CFG_BLOCKS, key)
    # PyTorch-style NCHW input: batch=2, channels=3, 16x16 (net height=16)
    x = jax.random.normal(sub, (2, 3, 16, 16), jnp.float32)
    fwd = jax.jit(net.forward)
    out = jax.block_until_ready(fwd(x))
    # two yolo heads: 8*8*3 + 16*16*3 = 960 boxes, 5+2 attrs each
    assert out.shape == (2, 960, 7), out.shape
    assert bool(jnp.all(jnp.isfinite(out)))
    print("KERNEL_OK")
</pallas_src>

<mosaic_0001>
module attributes {stable_mosaic.version = 11 : i64} {
  func.func @_darknet_fused_kernel(%arg0: i32, %arg1: memref<1x9x9x8xf32, #tpu.memory_space<vmem>>, %arg2: memref<1x9x9x8xf32, #tpu.memory_space<vmem>>, %arg3: memref<1x9x9x8xf32, #tpu.memory_space<vmem>>, %arg4: memref<1x9x9x8xf32, #tpu.memory_space<vmem>>, %arg5: memref<9x8x128xbf16, #tpu.memory_space<vmem>>, %arg6: memref<9x128x128xbf16, #tpu.memory_space<vmem>>, %arg7: memref<4x128x128xbf16, #tpu.memory_space<vmem>>, %arg8: memref<8x128xf32, #tpu.memory_space<vmem>>, %arg9: memref<64x128xf32, #tpu.memory_space<vmem>>, %arg10: memref<4x64x128xf32, #tpu.memory_space<vmem>>, %arg11: memref<1x64x128xf32, #tpu.memory_space<vmem>>, %arg12: memref<1x4x64x128xf32, #tpu.memory_space<vmem>>, %arg13: memref<4x9x9x128xf32, #tpu.memory_space<vmem>>) attributes {dimension_semantics = [#tpu.dimension_semantics<parallel>], iteration_bounds = array<i64: 2>, scalar_prefetch = 0 : i64, scratch_operands = 1 : i64, tpu.core_type = #tpu.core_type<tc>, window_params = [{transform_indices = @transform_0, window_bounds = array<i64: 1, 9, 9, 8>}, {transform_indices = @transform_1, window_bounds = array<i64: 1, 9, 9, 8>}, {transform_indices = @transform_2, window_bounds = array<i64: 1, 9, 9, 8>}, {transform_indices = @transform_3, window_bounds = array<i64: 1, 9, 9, 8>}, {pipeline_mode = #tpu.pipeline_mode<synchronous>, transform_indices = @transform_4, window_bounds = array<i64: 9, 8, 128>}, {pipeline_mode = #tpu.pipeline_mode<synchronous>, transform_indices = @transform_5, window_bounds = array<i64: 9, 128, 128>}, {pipeline_mode = #tpu.pipeline_mode<synchronous>, transform_indices = @transform_6, window_bounds = array<i64: 4, 128, 128>}, {pipeline_mode = #tpu.pipeline_mode<synchronous>, transform_indices = @transform_7, window_bounds = array<i64: 8, 128>}, {pipeline_mode = #tpu.pipeline_mode<synchronous>, transform_indices = @transform_8, window_bounds = array<i64: 64, 128>}, {pipeline_mode = #tpu.pipeline_mode<synchronous>, transform_indices = @transform_9, window_bounds = array<i64: 4, 64, 128>}, {transform_indices = @transform_10, window_bounds = array<i64: 1, 64, 128>}, {transform_indices = @transform_11, window_bounds = array<i64: 1, 4, 64, 128>}]} {
    %c0 = arith.constant 0 : index
    %c0_0 = arith.constant 0 : index
    %0 = vector.load %arg8[%c0, %c0_0] : memref<8x128xf32, #tpu.memory_space<vmem>>, vector<1x128xf32>
    %c1 = arith.constant 1 : index
    %c0_1 = arith.constant 0 : index
    %1 = vector.load %arg8[%c1, %c0_1] : memref<8x128xf32, #tpu.memory_space<vmem>>, vector<1x128xf32>
    %c2 = arith.constant 2 : index
    %c0_2 = arith.constant 0 : index
    %2 = vector.load %arg8[%c2, %c0_2] : memref<8x128xf32, #tpu.memory_space<vmem>>, vector<1x128xf32>
    %c3 = arith.constant 3 : index
    %c0_3 = arith.constant 0 : index
    %3 = vector.load %arg8[%c3, %c0_3] : memref<8x128xf32, #tpu.memory_space<vmem>>, vector<1x128xf32>
    %c4 = arith.constant 4 : index
    %c0_4 = arith.constant 0 : index
    %4 = vector.load %arg8[%c4, %c0_4] : memref<8x128xf32, #tpu.memory_space<vmem>>, vector<1x128xf32>
    %c5 = arith.constant 5 : index
    %c0_5 = arith.constant 0 : index
    %5 = vector.load %arg8[%c5, %c0_5] : memref<8x128xf32, #tpu.memory_space<vmem>>, vector<1x128xf32>
    %c6 = arith.constant 6 : index
    %c0_6 = arith.constant 0 : index
    %6 = vector.load %arg8[%c6, %c0_6] : memref<8x128xf32, #tpu.memory_space<vmem>>, vector<1x128xf32>
    %c7 = arith.constant 7 : index
    %c0_7 = arith.constant 0 : index
    %7 = vector.load %arg8[%c7, %c0_7] : memref<8x128xf32, #tpu.memory_space<vmem>>, vector<1x128xf32>
    %cst = arith.constant 0.000000e+00 : f32
    %8 = vector.broadcast %cst : f32 to vector<1x128xf32>
    %9 = arith.cmpf ogt, %7, %8 : vector<1x128xf32>
    %cst_8 = arith.constant 0.000000e+00 : f32
    %10 = vector.broadcast %cst_8 : f32 to vector<4x9x9x128xf32>
    %c0_9 = arith.constant 0 : index
    %c0_10 = arith.constant 0 : index
    %c0_11 = arith.constant 0 : index
    %c0_12 = arith.constant 0 : index
    %11 = vector.load %arg13[%c0_9, %c0_10, %c0_11, %c0_12] : memref<4x9x9x128xf32, #tpu.memory_space<vmem>>, vector<4x9x9x128xf32>
    tpu.vector_store %arg13[%c0_9, %c0_10, %c0_11, %c0_12], %10 {strides = array<i32>} : memref<4x9x9x128xf32, #tpu.memory_space<vmem>>, vector<4x9x9x128xf32>,
    %cst_13 = arith.constant 0.000000e+00 : f32
    %12 = vector.broadcast %cst_13 : f32 to vector<64x128xf32>
    %c0_14 = arith.constant 0 : index
    %c0_15 = arith.constant 0 : index
    %c0_16 = arith.constant 0 : index
    %c0_17 = arith.constant 0 : index
    %13 = vector.load %arg1[%c0_14, %c0_15, %c0_16, %c0_17] : memref<1x9x9x8xf32, #tpu.memory_space<vmem>>, vector<1x8x8x8xf32>
    %14 = vector.shape_cast %13 : vector<1x8x8x8xf32> to vector<8x8x8xf32>
    %15 = vector.shape_cast %14 : vector<8x8x8xf32> to vector<64x8xf32>
    %c0_18 = arith.constant 0 : index
    %c0_19 = arith.constant 0 : index
    %c0_20 = arith.constant 0 : index
    %16 = vector.load %arg5[%c0_18, %c0_19, %c0_20] : memref<9x8x128xbf16, #tpu.memory_space<vmem>>, vector<1x8x128xbf16>
    %17 = vector.shape_cast %16 : vector<1x8x128xbf16> to vector<8x128xbf16>
    %18 = arith.truncf %15 : vector<64x8xf32> to vector<64x8xbf16>
    %cst_21 = arith.constant dense<0.000000e+00> : vector<64x128xf32>
    %19 = tpu.matmul %18, %17, %cst_21 {dimension_numbers = #tpu.dot_dimension_numbers<[1], [0], [0], [1], [0, 0, 1, 1], [], []>} : vector<64x8xbf16>, vector<8x128xbf16>, vector<64x128xf32> -> vector<64x128xf32>
    %20 = arith.addf %12, %19 : vector<64x128xf32>
    %c0_22 = arith.constant 0 : index
    %c0_23 = arith.constant 0 : index
    %c0_24 = arith.constant 0 : index
    %c0_25 = arith.constant 0 : index
    %21 = vector.load %arg2[%c0_22, %c0_23, %c0_24, %c0_25] : memref<1x9x9x8xf32, #tpu.memory_space<vmem>>, vector<1x8x8x8xf32>
    %22 = vector.shape_cast %21 : vector<1x8x8x8xf32> to vector<8x8x8xf32>
    %23 = vector.shape_cast %22 : vector<8x8x8xf32> to vector<64x8xf32>
    %c1_26 = arith.constant 1 : index
    %c0_27 = arith.constant 0 : index
    %c0_28 = arith.constant 0 : index
    %24 = vector.load %arg5[%c1_26, %c0_27, %c0_28] : memref<9x8x128xbf16, #tpu.memory_space<vmem>>, vector<1x8x128xbf16>
    %25 = vector.shape_cast %24 : vector<1x8x128xbf16> to vector<8x128xbf16>
    %26 = arith.truncf %23 : vector<64x8xf32> to vector<64x8xbf16>
    %cst_29 = arith.constant dense<0.000000e+00> : vector<64x128xf32>
    %27 = tpu.matmul %26, %25, %cst_29 {dimension_numbers = #tpu.dot_dimension_numbers<[1], [0], [0], [1], [0, 0, 1, 1], [], []>} : vector<64x8xbf16>, vector<8x128xbf16>, vector<64x128xf32> -> vector<64x128xf32>
    %28 = arith.addf %20, %27 : vector<64x128xf32>
    %c0_30 = arith.constant 0 : index
    %c0_31 = arith.constant 0 : index
    %c1_32 = arith.constant 1 : index
    %c0_33 = arith.constant 0 : index
    %29 = vector.load %arg1[%c0_30, %c0_31, %c1_32, %c0_33] : memref<1x9x9x8xf32, #tpu.memory_space<vmem>>, vector<1x8x8x8xf32>
    %30 = vector.shape_cast %29 : vector<1x8x8x8xf32> to vector<8x8x8xf32>
    %31 = vector.shape_cast %30 : vector<8x8x8xf32> to vector<64x8xf32>
    %c2_34 = arith.constant 2 : index
    %c0_35 = arith.constant 0 : index
    %c0_36 = arith.constant 0 : index
    %32 = vector.load %arg5[%c2_34, %c0_35, %c0_36] : memref<9x8x128xbf16, #tpu.memory_space<vmem>>, vector<1x8x128xbf16>
    %33 = vector.shape_cast %32 : vector<1x8x128xbf16> to vector<8x128xbf16>
    %34 = arith.truncf %31 : vector<64x8xf32> to vector<64x8xbf16>
    %cst_37 = arith.constant dense<0.000000e+00> : vector<64x128xf32>
    %35 = tpu.matmul %34, %33, %cst_37 {dimension_numbers = #tpu.dot_dimension_numbers<[1], [0], [0], [1], [0, 0, 1, 1], [], []>} : vector<64x8xbf16>, vector<8x128xbf16>, vector<64x128xf32> -> vector<64x128xf32>
    %36 = arith.addf %28, %35 : vector<64x128xf32>
    %c0_38 = arith.constant 0 : index
    %c0_39 = arith.constant 0 : index
    %c0_40 = arith.constant 0 : index
    %c0_41 = arith.constant 0 : index
    %37 = vector.load %arg3[%c0_38, %c0_39, %c0_40, %c0_41] : memref<1x9x9x8xf32, #tpu.memory_space<vmem>>, vector<1x8x8x8xf32>
    %38 = vector.shape_cast %37 : vector<1x8x8x8xf32> to vector<8x8x8xf32>
    %39 = vector.shape_cast %38 : vector<8x8x8xf32> to vector<64x8xf32>
    %c3_42 = arith.constant 3 : index
    %c0_43 = arith.constant 0 : index
    %c0_44 = arith.constant 0 : index
    %40 = vector.load %arg5[%c3_42, %c0_43, %c0_44] : memref<9x8x128xbf16, #tpu.memory_space<vmem>>, vector<1x8x128xbf16>
    %41 = vector.shape_cast %40 : vector<1x8x128xbf16> to vector<8x128xbf16>
    %42 = arith.truncf %39 : vector<64x8xf32> to vector<64x8xbf16>
    %cst_45 = arith.constant dense<0.000000e+00> : vector<64x128xf32>
    %43 = tpu.matmul %42, %41, %cst_45 {dimension_numbers = #tpu.dot_dimension_numbers<[1], [0], [0], [1], [0, 0, 1, 1], [], []>} : vector<64x8xbf16>, vector<8x128xbf16>, vector<64x128xf32> -> vector<64x128xf32>
    %44 = arith.addf %36, %43 : vector<64x128xf32>
    %c0_46 = arith.constant 0 : index
    %c0_47 = arith.constant 0 : index
    %c0_48 = arith.constant 0 : index
    %c0_49 = arith.constant 0 : index
    %45 = vector.load %arg4[%c0_46, %c0_47, %c0_48, %c0_49] : memref<1x9x9x8xf32, #tpu.memory_space<vmem>>, vector<1x8x8x8xf32>
    %46 = vector.shape_cast %45 : vector<1x8x8x8xf32> to vector<8x8x8xf32>
    %47 = vector.shape_cast %46 : vector<8x8x8xf32> to vector<64x8xf32>
    %c4_50 = arith.constant 4 : index
    %c0_51 = arith.constant 0 : index
    %c0_52 = arith.constant 0 : index
    %48 = vector.load %arg5[%c4_50, %c0_51, %c0_52] : memref<9x8x128xbf16, #tpu.memory_space<vmem>>, vector<1x8x128xbf16>
    %49 = vector.shape_cast %48 : vector<1x8x128xbf16> to vector<8x128xbf16>
    %50 = arith.truncf %47 : vector<64x8xf32> to vector<64x8xbf16>
    %cst_53 = arith.constant dense<0.000000e+00> : vector<64x128xf32>
    %51 = tpu.matmul %50, %49, %cst_53 {dimension_numbers = #tpu.dot_dimension_numbers<[1], [0], [0], [1], [0, 0, 1, 1], [], []>} : vector<64x8xbf16>, vector<8x128xbf16>, vector<64x128xf32> -> vector<64x128xf32>
    %52 = arith.addf %44, %51 : vector<64x128xf32>
    %c0_54 = arith.constant 0 : index
    %c0_55 = arith.constant 0 : index
    %c1_56 = arith.constant 1 : index
    %c0_57 = arith.constant 0 : index
    %53 = vector.load %arg3[%c0_54, %c0_55, %c1_56, %c0_57] : memref<1x9x9x8xf32, #tpu.memory_space<vmem>>, vector<1x8x8x8xf32>
    %54 = vector.shape_cast %53 : vector<1x8x8x8xf32> to vector<8x8x8xf32>
    %55 = vector.shape_cast %54 : vector<8x8x8xf32> to vector<64x8xf32>
    %c5_58 = arith.constant 5 : index
    %c0_59 = arith.constant 0 : index
    %c0_60 = arith.constant 0 : index
    %56 = vector.load %arg5[%c5_58, %c0_59, %c0_60] : memref<9x8x128xbf16, #tpu.memory_space<vmem>>, vector<1x8x128xbf16>
    %57 = vector.shape_cast %56 : vector<1x8x128xbf16> to vector<8x128xbf16>
    %58 = arith.truncf %55 : vector<64x8xf32> to vector<64x8xbf16>
    %cst_61 = arith.constant dense<0.000000e+00> : vector<64x128xf32>
    %59 = tpu.matmul %58, %57, %cst_61 {dimension_numbers = #tpu.dot_dimension_numbers<[1], [0], [0], [1], [0, 0, 1, 1], [], []>} : vector<64x8xbf16>, vector<8x128xbf16>, vector<64x128xf32> -> vector<64x128xf32>
    %60 = arith.addf %52, %59 : vector<64x128xf32>
    %c0_62 = arith.constant 0 : index
    %c1_63 = arith.constant 1 : index
    %c0_64 = arith.constant 0 : index
    %c0_65 = arith.constant 0 : index
    %61 = vector.load %arg1[%c0_62, %c1_63, %c0_64, %c0_65] : memref<1x9x9x8xf32, #tpu.memory_space<vmem>>, vector<1x8x8x8xf32>
    %62 = vector.shape_cast %61 : vector<1x8x8x8xf32> to vector<8x8x8xf32>
    %63 = vector.shape_cast %62 : vector<8x8x8xf32> to vector<64x8xf32>
    %c6_66 = arith.constant 6 : index
    %c0_67 = arith.constant 0 : index
    %c0_68 = arith.constant 0 : index
    %64 = vector.load %arg5[%c6_66, %c0_67, %c0_68] : memref<9x8x128xbf16, #tpu.memory_space<vmem>>, vector<1x8x128xbf16>
    %65 = vector.shape_cast %64 : vector<1x8x128xbf16> to vector<8x128xbf16>
    %66 = arith.truncf %63 : vector<64x8xf32> to vector<64x8xbf16>
    %cst_69 = arith.constant dense<0.000000e+00> : vector<64x128xf32>
    %67 = tpu.matmul %66, %65, %cst_69 {dimension_numbers = #tpu.dot_dimension_numbers<[1], [0], [0], [1], [0, 0, 1, 1], [], []>} : vector<64x8xbf16>, vector<8x128xbf16>, vector<64x128xf32> -> vector<64x128xf32>
    %68 = arith.addf %60, %67 : vector<64x128xf32>
    %c0_70 = arith.constant 0 : index
    %c1_71 = arith.constant 1 : index
    %c0_72 = arith.constant 0 : index
    %c0_73 = arith.constant 0 : index
    %69 = vector.load %arg2[%c0_70, %c1_71, %c0_72, %c0_73] : memref<1x9x9x8xf32, #tpu.memory_space<vmem>>, vector<1x8x8x8xf32>
    %70 = vector.shape_cast %69 : vector<1x8x8x8xf32> to vector<8x8x8xf32>
    %71 = vector.shape_cast %70 : vector<8x8x8xf32> to vector<64x8xf32>
    %c7_74 = arith.constant 7 : index
    %c0_75 = arith.constant 0 : index
    %c0_76 = arith.constant 0 : index
    %72 = vector.load %arg5[%c7_74, %c0_75, %c0_76] : memref<9x8x128xbf16, #tpu.memory_space<vmem>>, vector<1x8x128xbf16>
    %73 = vector.shape_cast %72 : vector<1x8x128xbf16> to vector<8x128xbf16>
    %74 = arith.truncf %71 : vector<64x8xf32> to vector<64x8xbf16>
    %cst_77 = arith.constant dense<0.000000e+00> : vector<64x128xf32>
    %75 = tpu.matmul %74, %73, %cst_77 {dimension_numbers = #tpu.dot_dimension_numbers<[1], [0], [0], [1], [0, 0, 1, 1], [], []>} : vector<64x8xbf16>, vector<8x128xbf16>, vector<64x128xf32> -> vector<64x128xf32>
    %76 = arith.addf %68, %75 : vector<64x128xf32>
    %c0_78 = arith.constant 0 : index
    %c1_79 = arith.constant 1 : index
    %c1_80 = arith.constant 1 : index
    %c0_81 = arith.constant 0 : index
    %77 = vector.load %arg1[%c0_78, %c1_79, %c1_80, %c0_81] : memref<1x9x9x8xf32, #tpu.memory_space<vmem>>, vector<1x8x8x8xf32>
    %78 = vector.shape_cast %77 : vector<1x8x8x8xf32> to vector<8x8x8xf32>
    %79 = vector.shape_cast %78 : vector<8x8x8xf32> to vector<64x8xf32>
    %c8 = arith.constant 8 : index
    %c0_82 = arith.constant 0 : index
    %c0_83 = arith.constant 0 : index
    %80 = vector.load %arg5[%c8, %c0_82, %c0_83] : memref<9x8x128xbf16, #tpu.memory_space<vmem>>, vector<1x8x128xbf16>
    %81 = vector.shape_cast %80 : vector<1x8x128xbf16> to vector<8x128xbf16>
    %82 = arith.truncf %79 : vector<64x8xf32> to vector<64x8xbf16>
    %cst_84 = arith.constant dense<0.000000e+00> : vector<64x128xf32>
    %83 = tpu.matmul %82, %81, %cst_84 {dimension_numbers = #tpu.dot_dimension_numbers<[1], [0], [0], [1], [0, 0, 1, 1], [], []>} : vector<64x8xbf16>, vector<8x128xbf16>, vector<64x128xf32> -> vector<64x128xf32>
    %84 = arith.addf %76, %83 : vector<64x128xf32>
    %85 = vector.broadcast %0 : vector<1x128xf32> to vector<64x128xf32>
    %86 = arith.addf %84, %85 : vector<64x128xf32>
    %cst_85 = arith.constant 0.000000e+00 : f32
    %87 = vector.broadcast %cst_85 : f32 to vector<64x128xf32>
    %88 = arith.cmpf ogt, %86, %87 : vector<64x128xf32>
    %cst_86 = arith.constant 1.000000e-01 : f32
    %89 = vector.broadcast %cst_86 : f32 to vector<64x128xf32>
    %90 = arith.mulf %89, %86 : vector<64x128xf32>
    %91 = arith.select %88, %86, %90 : vector<64x128xi1>, vector<64x128xf32>
    %92 = vector.shape_cast %91 : vector<64x128xf32> to vector<8x8x128xf32>
    %c0_87 = arith.constant 0 : index
    %c1_88 = arith.constant 1 : index
    %c1_89 = arith.constant 1 : index
    %c0_90 = arith.constant 0 : index
    %93 = vector.load %arg13[%c0_87, %c1_88, %c1_89, %c0_90] : memref<4x9x9x128xf32, #tpu.memory_space<vmem>>, vector<1x8x8x128xf32>
    %94 = vector.shape_cast %93 : vector<1x8x8x128xf32> to vector<8x8x128xf32>
    %95 = vector.shape_cast %92 : vector<8x8x128xf32> to vector<1x8x8x128xf32>
    tpu.vector_store %arg13[%c0_87, %c1_88, %c1_89, %c0_90], %95 {strides = array<i32>} : memref<4x9x9x128xf32, #tpu.memory_space<vmem>>, vector<1x8x8x128xf32>,
    %cst_91 = arith.constant 0.000000e+00 : f32
    %96 = vector.broadcast %cst_91 : f32 to vector<64x128xf32>
    %c0_92 = arith.constant 0 : index
    %c0_93 = arith.constant 0 : index
    %c0_94 = arith.constant 0 : index
    %c0_95 = arith.constant 0 : index
    %97 = vector.load %arg2[%c0_92, %c0_93, %c0_94, %c0_95] : memref<1x9x9x8xf32, #tpu.memory_space<vmem>>, vector<1x8x8x8xf32>
    %98 = vector.shape_cast %97 : vector<1x8x8x8xf32> to vector<8x8x8xf32>
    %99 = vector.shape_cast %98 : vector<8x8x8xf32> to vector<64x8xf32>
    %c0_96 = arith.constant 0 : index
    %c0_97 = arith.constant 0 : index
    %c0_98 = arith.constant 0 : index
    %100 = vector.load %arg5[%c0_96, %c0_97, %c0_98] : memref<9x8x128xbf16, #tpu.memory_space<vmem>>, vector<1x8x128xbf16>
    %101 = vector.shape_cast %100 : vector<1x8x128xbf16> to vector<8x128xbf16>
    %102 = arith.truncf %99 : vector<64x8xf32> to vector<64x8xbf16>
    %cst_99 = arith.constant dense<0.000000e+00> : vector<64x128xf32>
    %103 = tpu.matmul %102, %101, %cst_99 {dimension_numbers = #tpu.dot_dimension_numbers<[1], [0], [0], [1], [0, 0, 1, 1], [], []>} : vector<64x8xbf16>, vector<8x128xbf16>, vector<64x128xf32> -> vector<64x128xf32>
    %104 = arith.addf %96, %103 : vector<64x128xf32>
    %c0_100 = arith.constant 0 : index
    %c0_101 = arith.constant 0 : index
    %c1_102 = arith.constant 1 : index
    %c0_103 = arith.constant 0 : index
    %105 = vector.load %arg1[%c0_100, %c0_101, %c1_102, %c0_103] : memref<1x9x9x8xf32, #tpu.memory_space<vmem>>, vector<1x8x8x8xf32>
    %106 = vector.shape_cast %105 : vector<1x8x8x8xf32> to vector<8x8x8xf32>
    %107 = vector.shape_cast %106 : vector<8x8x8xf32> to vector<64x8xf32>
    %c1_104 = arith.constant 1 : index
    %c0_105 = arith.constant 0 : index
    %c0_106 = arith.constant 0 : index
    %108 = vector.load %arg5[%c1_104, %c0_105, %c0_106] : memref<9x8x128xbf16, #tpu.memory_space<vmem>>, vector<1x8x128xbf16>
    %109 = vector.shape_cast %108 : vector<1x8x128xbf16> to vector<8x128xbf16>
    %110 = arith.truncf %107 : vector<64x8xf32> to vector<64x8xbf16>
    %cst_107 = arith.constant dense<0.000000e+00> : vector<64x128xf32>
    %111 = tpu.matmul %110, %109, %cst_107 {dimension_numbers = #tpu.dot_dimension_numbers<[1], [0], [0], [1], [0, 0, 1, 1], [], []>} : vector<64x8xbf16>, vector<8x128xbf16>, vector<64x128xf32> -> vector<64x128xf32>
    %112 = arith.addf %104, %111 : vector<64x128xf32>
    %c0_108 = arith.constant 0 : index
    %c0_109 = arith.constant 0 : index
    %c1_110 = arith.constant 1 : index
    %c0_111 = arith.constant 0 : index
    %113 = vector.load %arg2[%c0_108, %c0_109, %c1_110, %c0_111] : memref<1x9x9x8xf32, #tpu.memory_space<vmem>>, vector<1x8x8x8xf32>
    %114 = vector.shape_cast %113 : vector<1x8x8x8xf32> to vector<8x8x8xf32>
    %115 = vector.shape_cast %114 : vector<8x8x8xf32> to vector<64x8xf32>
    %c2_112 = arith.constant 2 : index
    %c0_113 = arith.constant 0 : index
    %c0_114 = arith.constant 0 : index
    %116 = vector.load %arg5[%c2_112, %c0_113, %c0_114] : memref<9x8x128xbf16, #tpu.memory_space<vmem>>, vector<1x8x128xbf16>
    %117 = vector.shape_cast %116 : vector<1x8x128xbf16> to vector<8x128xbf16>
    %118 = arith.truncf %115 : vector<64x8xf32> to vector<64x8xbf16>
    %cst_115 = arith.constant dense<0.000000e+00> : vector<64x128xf32>
    %119 = tpu.matmul %118, %117, %cst_115 {dimension_numbers = #tpu.dot_dimension_numbers<[1], [0], [0], [1], [0, 0, 1, 1], [], []>} : vector<64x8xbf16>, vector<8x128xbf16>, vector<64x128xf32> -> vector<64x128xf32>
    %120 = arith.addf %112, %119 : vector<64x128xf32>
    %c0_116 = arith.constant 0 : index
    %c0_117 = arith.constant 0 : index
    %c0_118 = arith.constant 0 : index
    %c0_119 = arith.constant 0 : index
    %121 = vector.load %arg4[%c0_116, %c0_117, %c0_118, %c0_119] : memref<1x9x9x8xf32, #tpu.memory_space<vmem>>, vector<1x8x8x8xf32>
    %122 = vector.shape_cast %121 : vector<1x8x8x8xf32> to vector<8x8x8xf32>
    %123 = vector.shape_cast %122 : vector<8x8x8xf32> to vector<64x8xf32>
    %c3_120 = arith.constant 3 : index
    %c0_121 = arith.constant 0 : index
    %c0_122 = arith.constant 0 : index
    %124 = vector.load %arg5[%c3_120, %c0_121, %c0_122] : memref<9x8x128xbf16, #tpu.memory_space<vmem>>, vector<1x8x128xbf16>
    %125 = vector.shape_cast %124 : vector<1x8x128xbf16> to vector<8x128xbf16>
    %126 = arith.truncf %123 : vector<64x8xf32> to vector<64x8xbf16>
    %cst_123 = arith.constant dense<0.000000e+00> : vector<64x128xf32>
    %127 = tpu.matmul %126, %125, %cst_123 {dimension_numbers = #tpu.dot_dimension_numbers<[1], [0], [0], [1], [0, 0, 1, 1], [], []>} : vector<64x8xbf16>, vector<8x128xbf16>, vector<64x128xf32> -> vector<64x128xf32>
    %128 = arith.addf %120, %127 : vector<64x128xf32>
    %c0_124 = arith.constant 0 : index
    %c0_125 = arith.constant 0 : index
    %c1_126 = arith.constant 1 : index
    %c0_127 = arith.constant 0 : index
    %129 = vector.load %arg3[%c0_124, %c0_125, %c1_126, %c0_127] : memref<1x9x9x8xf32, #tpu.memory_space<vmem>>, vector<1x8x8x8xf32>
    %130 = vector.shape_cast %129 : vector<1x8x8x8xf32> to vector<8x8x8xf32>
    %131 = vector.shape_cast %130 : vector<8x8x8xf32> to vector<64x8xf32>
    %c4_128 = arith.constant 4 : index
    %c0_129 = arith.constant 0 : index
    %c0_130 = arith.constant 0 : index
    %132 = vector.load %arg5[%c4_128, %c0_129, %c0_130] : memref<9x8x128xbf16, #tpu.memory_space<vmem>>, vector<1x8x128xbf16>
    %133 = vector.shape_cast %132 : vector<1x8x128xbf16> to vector<8x128xbf16>
    %134 = arith.truncf %131 : vector<64x8xf32> to vector<64x8xbf16>
    %cst_131 = arith.constant dense<0.000000e+00> : vector<64x128xf32>
    %135 = tpu.matmul %134, %133, %cst_131 {dimension_numbers = #tpu.dot_dimension_numbers<[1], [0], [0], [1], [0, 0, 1, 1], [], []>} : vector<64x8xbf16>, vector<8x128xbf16>, vector<64x128xf32> -> vector<64x128xf32>
    %136 = arith.addf %128, %135 : vector<64x128xf32>
    %c0_132 = arith.constant 0 : index
    %c0_133 = arith.constant 0 : index
    %c1_134 = arith.constant 1 : index
    %c0_135 = arith.constant 0 : index
    %137 = vector.load %arg4[%c0_132, %c0_133, %c1_134, %c0_135] : memref<1x9x9x8xf32, #tpu.memory_space<vmem>>, vector<1x8x8x8xf32>
    %138 = vector.shape_cast %137 : vector<1x8x8x8xf32> to vector<8x8x8xf32>
    %139 = vector.shape_cast %138 : vector<8x8x8xf32> to vector<64x8xf32>
    %c5_136 = arith.constant 5 : index
    %c0_137 = arith.constant 0 : index
    %c0_138 = arith.constant 0 : index
    %140 = vector.load %arg5[%c5_136, %c0_137, %c0_138] : memref<9x8x128xbf16, #tpu.memory_space<vmem>>, vector<1x8x128xbf16>
    %141 = vector.shape_cast %140 : vector<1x8x128xbf16> to vector<8x128xbf16>
    %142 = arith.truncf %139 : vector<64x8xf32> to vector<64x8xbf16>
    %cst_139 = arith.constant dense<0.000000e+00> : vector<64x128xf32>
    %143 = tpu.matmul %142, %141, %cst_139 {dimension_numbers = #tpu.dot_dimension_numbers<[1], [0], [0], [1], [0, 0, 1, 1], [], []>} : vector<64x8xbf16>, vector<8x128xbf16>, vector<64x128xf32> -> vector<64x128xf32>
    %144 = arith.addf %136, %143 : vector<64x128xf32>
    %c0_140 = arith.constant 0 : index
    %c1_141 = arith.constant 1 : index
    %c0_142 = arith.constant 0 : index
    %c0_143 = arith.constant 0 : index
    %145 = vector.load %arg2[%c0_140, %c1_141, %c0_142, %c0_143] : memref<1x9x9x8xf32, #tpu.memory_space<vmem>>, vector<1x8x8x8xf32>
    %146 = vector.shape_cast %145 : vector<1x8x8x8xf32> to vector<8x8x8xf32>
    %147 = vector.shape_cast %146 : vector<8x8x8xf32> to vector<64x8xf32>
    %c6_144 = arith.constant 6 : index
    %c0_145 = arith.constant 0 : index
    %c0_146 = arith.constant 0 : index
    %148 = vector.load %arg5[%c6_144, %c0_145, %c0_146] : memref<9x8x128xbf16, #tpu.memory_space<vmem>>, vector<1x8x128xbf16>
    %149 = vector.shape_cast %148 : vector<1x8x128xbf16> to vector<8x128xbf16>
    %150 = arith.truncf %147 : vector<64x8xf32> to vector<64x8xbf16>
    %cst_147 = arith.constant dense<0.000000e+00> : vector<64x128xf32>
    %151 = tpu.matmul %150, %149, %cst_147 {dimension_numbers = #tpu.dot_dimension_numbers<[1], [0], [0], [1], [0, 0, 1, 1], [], []>} : vector<64x8xbf16>, vector<8x128xbf16>, vector<64x128xf32> -> vector<64x128xf32>
    %152 = arith.addf %144, %151 : vector<64x128xf32>
    %c0_148 = arith.constant 0 : index
    %c1_149 = arith.constant 1 : index
    %c1_150 = arith.constant 1 : index
    %c0_151 = arith.constant 0 : index
    %153 = vector.load %arg1[%c0_148, %c1_149, %c1_150, %c0_151] : memref<1x9x9x8xf32, #tpu.memory_space<vmem>>, vector<1x8x8x8xf32>
    %154 = vector.shape_cast %153 : vector<1x8x8x8xf32> to vector<8x8x8xf32>
    %155 = vector.shape_cast %154 : vector<8x8x8xf32> to vector<64x8xf32>
    %c7_152 = arith.constant 7 : index
    %c0_153 = arith.constant 0 : index
    %c0_154 = arith.constant 0 : index
    %156 = vector.load %arg5[%c7_152, %c0_153, %c0_154] : memref<9x8x128xbf16, #tpu.memory_space<vmem>>, vector<1x8x128xbf16>
    %157 = vector.shape_cast %156 : vector<1x8x128xbf16> to vector<8x128xbf16>
    %158 = arith.truncf %155 : vector<64x8xf32> to vector<64x8xbf16>
    %cst_155 = arith.constant dense<0.000000e+00> : vector<64x128xf32>
    %159 = tpu.matmul %158, %157, %cst_155 {dimension_numbers = #tpu.dot_dimension_numbers<[1], [0], [0], [1], [0, 0, 1, 1], [], []>} : vector<64x8xbf16>, vector<8x128xbf16>, vector<64x128xf32> -> vector<64x128xf32>
    %160 = arith.addf %152, %159 : vector<64x128xf32>
    %c0_156 = arith.constant 0 : index
    %c1_157 = arith.constant 1 : index
    %c1_158 = arith.constant 1 : index
    %c0_159 = arith.constant 0 : index
    %161 = vector.load %arg2[%c0_156, %c1_157, %c1_158, %c0_159] : memref<1x9x9x8xf32, #tpu.memory_space<vmem>>, vector<1x8x8x8xf32>
    %162 = vector.shape_cast %161 : vector<1x8x8x8xf32> to vector<8x8x8xf32>
    %163 = vector.shape_cast %162 : vector<8x8x8xf32> to vector<64x8xf32>
    %c8_160 = arith.constant 8 : index
    %c0_161 = arith.constant 0 : index
    %c0_162 = arith.constant 0 : index
    %164 = vector.load %arg5[%c8_160, %c0_161, %c0_162] : memref<9x8x128xbf16, #tpu.memory_space<vmem>>, vector<1x8x128xbf16>
    %165 = vector.shape_cast %164 : vector<1x8x128xbf16> to vector<8x128xbf16>
    %166 = arith.truncf %163 : vector<64x8xf32> to vector<64x8xbf16>
    %cst_163 = arith.constant dense<0.000000e+00> : vector<64x128xf32>
    %167 = tpu.matmul %166, %165, %cst_163 {dimension_numbers = #tpu.dot_dimension_numbers<[1], [0], [0], [1], [0, 0, 1, 1], [], []>} : vector<64x8xbf16>, vector<8x128xbf16>, vector<64x128xf32> -> vector<64x128xf32>
    %168 = arith.addf %160, %167 : vector<64x128xf32>
    %169 = vector.broadcast %0 : vector<1x128xf32> to vector<64x128xf32>
    %170 = arith.addf %168, %169 : vector<64x128xf32>
    %cst_164 = arith.constant 0.000000e+00 : f32
    %171 = vector.broadcast %cst_164 : f32 to vector<64x128xf32>
    %172 = arith.cmpf ogt, %170, %171 : vector<64x128xf32>
    %cst_165 = arith.constant 1.000000e-01 : f32
    %173 = vector.broadcast %cst_165 : f32 to vector<64x128xf32>
    %174 = arith.mulf %173, %170 : vector<64x128xf32>
    %175 = arith.select %172, %170, %174 : vector<64x128xi1>, vector<64x128xf32>
    %176 = vector.shape_cast %175 : vector<64x128xf32> to vector<8x8x128xf32>
    %c1_166 = arith.constant 1 : index
    %c1_167 = arith.constant 1 : index
    %c1_168 = arith.constant 1 : index
    %c0_169 = arith.constant 0 : index
    %177 = vector.load %arg13[%c1_166, %c1_167, %c1_168, %c0_169] : memref<4x9x9x128xf32, #tpu.memory_space<vmem>>, vector<1x8x8x128xf32>
    %178 = vector.shape_cast %177 : vector<1x8x8x128xf32> to vector<8x8x128xf32>
    %179 = vector.shape_cast %176 : vector<8x8x128xf32> to vector<1x8x8x128xf32>
    tpu.vector_store %arg13[%c1_166, %c1_167, %c1_168, %c0_169], %179 {strides = array<i32>} : memref<4x9x9x128xf32, #tpu.memory_space<vmem>>, vector<1x8x8x128xf32>,
    %cst_170 = arith.constant 0.000000e+00 : f32
    %180 = vector.broadcast %cst_170 : f32 to vector<64x128xf32>
    %c0_171 = arith.constant 0 : index
    %c0_172 = arith.constant 0 : index
    %c0_173 = arith.constant 0 : index
    %c0_174 = arith.constant 0 : index
    %181 = vector.load %arg3[%c0_171, %c0_172, %c0_173, %c0_174] : memref<1x9x9x8xf32, #tpu.memory_space<vmem>>, vector<1x8x8x8xf32>
    %182 = vector.shape_cast %181 : vector<1x8x8x8xf32> to vector<8x8x8xf32>
    %183 = vector.shape_cast %182 : vector<8x8x8xf32> to vector<64x8xf32>
    %c0_175 = arith.constant 0 : index
    %c0_176 = arith.constant 0 : index
    %c0_177 = arith.constant 0 : index
    %184 = vector.load %arg5[%c0_175, %c0_176, %c0_177] : memref<9x8x128xbf16, #tpu.memory_space<vmem>>, vector<1x8x128xbf16>
    %185 = vector.shape_cast %184 : vector<1x8x128xbf16> to vector<8x128xbf16>
    %186 = arith.truncf %183 : vector<64x8xf32> to vector<64x8xbf16>
    %cst_178 = arith.constant dense<0.000000e+00> : vector<64x128xf32>
    %187 = tpu.matmul %186, %185, %cst_178 {dimension_numbers = #tpu.dot_dimension_numbers<[1], [0], [0], [1], [0, 0, 1, 1], [], []>} : vector<64x8xbf16>, vector<8x128xbf16>, vector<64x128xf32> -> vector<64x128xf32>
    %188 = arith.addf %180, %187 : vector<64x128xf32>
    %c0_179 = arith.constant 0 : index
    %c0_180 = arith.constant 0 : index
    %c0_181 = arith.constant 0 : index
    %c0_182 = arith.constant 0 : index
    %189 = vector.load %arg4[%c0_179, %c0_180, %c0_181, %c0_182] : memref<1x9x9x8xf32, #tpu.memory_space<vmem>>, vector<1x8x8x8xf32>
    %190 = vector.shape_cast %189 : vector<1x8x8x8xf32> to vector<8x8x8xf32>
    %191 = vector.shape_cast %190 : vector<8x8x8xf32> to vector<64x8xf32>
    %c1_183 = arith.constant 1 : index
    %c0_184 = arith.constant 0 : index
    %c0_185 = arith.constant 0 : index
    %192 = vector.load %arg5[%c1_183, %c0_184, %c0_185] : memref<9x8x128xbf16, #tpu.memory_space<vmem>>, vector<1x8x128xbf16>
    %193 = vector.shape_cast %192 : vector<1x8x128xbf16> to vector<8x128xbf16>
    %194 = arith.truncf %191 : vector<64x8xf32> to vector<64x8xbf16>
    %cst_186 = arith.constant dense<0.000000e+00> : vector<64x128xf32>
    %195 = tpu.matmul %194, %193, %cst_186 {dimension_numbers = #tpu.dot_dimension_numbers<[1], [0], [0], [1], [0, 0, 1, 1], [], []>} : vector<64x8xbf16>, vector<8x128xbf16>, vector<64x128xf32> -> vector<64x128xf32>
    %196 = arith.addf %188, %195 : vector<64x128xf32>
    %c0_187 = arith.constant 0 : index
    %c0_188 = arith.constant 0 : index
    %c1_189 = arith.constant 1 : index
    %c0_190 = arith.constant 0 : index
    %197 = vector.load %arg3[%c0_187, %c0_188, %c1_189, %c0_190] : memref<1x9x9x8xf32, #tpu.memory_space<vmem>>, vector<1x8x8x8xf32>
    %198 = vector.shape_cast %197 : vector<1x8x8x8xf32> to vector<8x8x8xf32>
    %199 = vector.shape_cast %198 : vector<8x8x8xf32> to vector<64x8xf32>
    %c2_191 = arith.constant 2 : index
    %c0_192 = arith.constant 0 : index
    %c0_193 = arith.constant 0 : index
    %200 = vector.load %arg5[%c2_191, %c0_192, %c0_193] : memref<9x8x128xbf16, #tpu.memory_space<vmem>>, vector<1x8x128xbf16>
    %201 = vector.shape_cast %200 : vector<1x8x128xbf16> to vector<8x128xbf16>
    %202 = arith.truncf %199 : vector<64x8xf32> to vector<64x8xbf16>
    %cst_194 = arith.constant dense<0.000000e+00> : vector<64x128xf32>
    %203 = tpu.matmul %202, %201, %cst_194 {dimension_numbers = #tpu.dot_dimension_numbers<[1], [0], [0], [1], [0, 0, 1, 1], [], []>} : vector<64x8xbf16>, vector<8x128xbf16>, vector<64x128xf32> -> vector<64x128xf32>
    %204 = arith.addf %196, %203 : vector<64x128xf32>
    %c0_195 = arith.constant 0 : index
    %c1_196 = arith.constant 1 : index
    %c0_197 = arith.constant 0 : index
    %c0_198 = arith.constant 0 : index
    %205 = vector.load %arg1[%c0_195, %c1_196, %c0_197, %c0_198] : memref<1x9x9x8xf32, #tpu.memory_space<vmem>>, vector<1x8x8x8xf32>
    %206 = vector.shape_cast %205 : vector<1x8x8x8xf32> to vector<8x8x8xf32>
    %207 = vector.shape_cast %206 : vector<8x8x8xf32> to vector<64x8xf32>
    %c3_199 = arith.constant 3 : index
    %c0_200 = arith.constant 0 : index
    %c0_201 = arith.constant 0 : index
    %208 = vector.load %arg5[%c3_199, %c0_200, %c0_201] : memref<9x8x128xbf16, #tpu.memory_space<vmem>>, vector<1x8x128xbf16>
    %209 = vector.shape_cast %208 : vector<1x8x128xbf16> to vector<8x128xbf16>
    %210 = arith.truncf %207 : vector<64x8xf32> to vector<64x8xbf16>
    %cst_202 = arith.constant dense<0.000000e+00> : vector<64x128xf32>
    %211 = tpu.matmul %210, %209, %cst_202 {dimension_numbers = #tpu.dot_dimension_numbers<[1], [0], [0], [1], [0, 0, 1, 1], [], []>} : vector<64x8xbf16>, vector<8x128xbf16>, vector<64x128xf32> -> vector<64x128xf32>
    %212 = arith.addf %204, %211 : vector<64x128xf32>
    %c0_203 = arith.constant 0 : index
    %c1_204 = arith.constant 1 : index
    %c0_205 = arith.constant 0 : index
    %c0_206 = arith.constant 0 : index
    %213 = vector.load %arg2[%c0_203, %c1_204, %c0_205, %c0_206] : memref<1x9x9x8xf32, #tpu.memory_space<vmem>>, vector<1x8x8x8xf32>
    %214 = vector.shape_cast %213 : vector<1x8x8x8xf32> to vector<8x8x8xf32>
    %215 = vector.shape_cast %214 : vector<8x8x8xf32> to vector<64x8xf32>
    %c4_207 = arith.constant 4 : index
    %c0_208 = arith.constant 0 : index
    %c0_209 = arith.constant 0 : index
    %216 = vector.load %arg5[%c4_207, %c0_208, %c0_209] : memref<9x8x128xbf16, #tpu.memory_space<vmem>>, vector<1x8x128xbf16>
    %217 = vector.shape_cast %216 : vector<1x8x128xbf16> to vector<8x128xbf16>
    %218 = arith.truncf %215 : vector<64x8xf32> to vector<64x8xbf16>
    %cst_210 = arith.constant dense<0.000000e+00> : vector<64x128xf32>
    %219 = tpu.matmul %218, %217, %cst_210 {dimension_numbers = #tpu.dot_dimension_numbers<[1], [0], [0], [1], [0, 0, 1, 1], [], []>} : vector<64x8xbf16>, vector<8x128xbf16>, vector<64x128xf32> -> vector<64x128xf32>
    %220 = arith.addf %212, %219 : vector<64x128xf32>
    %c0_211 = arith.constant 0 : index
    %c1_212 = arith.constant 1 : index
    %c1_213 = arith.constant 1 : index
    %c0_214 = arith.constant 0 : index
    %221 = vector.load %arg1[%c0_211, %c1_212, %c1_213, %c0_214] : memref<1x9x9x8xf32, #tpu.memory_space<vmem>>, vector<1x8x8x8xf32>
    %222 = vector.shape_cast %221 : vector<1x8x8x8xf32> to vector<8x8x8xf32>
    %223 = vector.shape_cast %222 : vector<8x8x8xf32> to vector<64x8xf32>
    %c5_215 = arith.constant 5 : index
    %c0_216 = arith.constant 0 : index
    %c0_217 = arith.constant 0 : index
    %224 = vector.load %arg5[%c5_215, %c0_216, %c0_217] : memref<9x8x128xbf16, #tpu.memory_space<vmem>>, vector<1x8x128xbf16>
    %225 = vector.shape_cast %224 : vector<1x8x128xbf16> to vector<8x128xbf16>
    %226 = arith.truncf %223 : vector<64x8xf32> to vector<64x8xbf16>
    %cst_218 = arith.constant dense<0.000000e+00> : vector<64x128xf32>
    %227 = tpu.matmul %226, %225, %cst_218 {dimension_numbers = #tpu.dot_dimension_numbers<[1], [0], [0], [1], [0, 0, 1, 1], [], []>} : vector<64x8xbf16>, vector<8x128xbf16>, vector<64x128xf32> -> vector<64x128xf32>
    %228 = arith.addf %220, %227 : vector<64x128xf32>
    %c0_219 = arith.constant 0 : index
    %c1_220 = arith.constant 1 : index
    %c0_221 = arith.constant 0 : index
    %c0_222 = arith.constant 0 : index
    %229 = vector.load %arg3[%c0_219, %c1_220, %c0_221, %c0_222] : memref<1x9x9x8xf32, #tpu.memory_space<vmem>>, vector<1x8x8x8xf32>
    %230 = vector.shape_cast %229 : vector<1x8x8x8xf32> to vector<8x8x8xf32>
    %231 = vector.shape_cast %230 : vector<8x8x8xf32> to vector<64x8xf32>
    %c6_223 = arith.constant 6 : index
    %c0_224 = arith.constant 0 : index
    %c0_225 = arith.constant 0 : index
    %232 = vector.load %arg5[%c6_223, %c0_224, %c0_225] : memref<9x8x128xbf16, #tpu.memory_space<vmem>>, vector<1x8x128xbf16>
    %233 = vector.shape_cast %232 : vector<1x8x128xbf16> to vector<8x128xbf16>
    %234 = arith.truncf %231 : vector<64x8xf32> to vector<64x8xbf16>
    %cst_226 = arith.constant dense<0.000000e+00> : vector<64x128xf32>
    %235 = tpu.matmul %234, %233, %cst_226 {dimension_numbers = #tpu.dot_dimension_numbers<[1], [0], [0], [1], [0, 0, 1, 1], [], []>} : vector<64x8xbf16>, vector<8x128xbf16>, vector<64x128xf32> -> vector<64x128xf32>
    %236 = arith.addf %228, %235 : vector<64x128xf32>
    %c0_227 = arith.constant 0 : index
    %c1_228 = arith.constant 1 : index
    %c0_229 = arith.constant 0 : index
    %c0_230 = arith.constant 0 : index
    %237 = vector.load %arg4[%c0_227, %c1_228, %c0_229, %c0_230] : memref<1x9x9x8xf32, #tpu.memory_space<vmem>>, vector<1x8x8x8xf32>
    %238 = vector.shape_cast %237 : vector<1x8x8x8xf32> to vector<8x8x8xf32>
    %239 = vector.shape_cast %238 : vector<8x8x8xf32> to vector<64x8xf32>
    %c7_231 = arith.constant 7 : index
    %c0_232 = arith.constant 0 : index
    %c0_233 = arith.constant 0 : index
    %240 = vector.load %arg5[%c7_231, %c0_232, %c0_233] : memref<9x8x128xbf16, #tpu.memory_space<vmem>>, vector<1x8x128xbf16>
    %241 = vector.shape_cast %240 : vector<1x8x128xbf16> to vector<8x128xbf16>
    %242 = arith.truncf %239 : vector<64x8xf32> to vector<64x8xbf16>
    %cst_234 = arith.constant dense<0.000000e+00> : vector<64x128xf32>
    %243 = tpu.matmul %242, %241, %cst_234 {dimension_numbers = #tpu.dot_dimension_numbers<[1], [0], [0], [1], [0, 0, 1, 1], [], []>} : vector<64x8xbf16>, vector<8x128xbf16>, vector<64x128xf32> -> vector<64x128xf32>
    %244 = arith.addf %236, %243 : vector<64x128xf32>
    %c0_235 = arith.constant 0 : index
    %c1_236 = arith.constant 1 : index
    %c1_237 = arith.constant 1 : index
    %c0_238 = arith.constant 0 : index
    %245 = vector.load %arg3[%c0_235, %c1_236, %c1_237, %c0_238] : memref<1x9x9x8xf32, #tpu.memory_space<vmem>>, vector<1x8x8x8xf32>
    %246 = vector.shape_cast %245 : vector<1x8x8x8xf32> to vector<8x8x8xf32>
    %247 = vector.shape_cast %246 : vector<8x8x8xf32> to vector<64x8xf32>
    %c8_239 = arith.constant 8 : index
    %c0_240 = arith.constant 0 : index
    %c0_241 = arith.constant 0 : index
    %248 = vector.load %arg5[%c8_239, %c0_240, %c0_241] : memref<9x8x128xbf16, #tpu.memory_space<vmem>>, vector<1x8x128xbf16>
    %249 = vector.shape_cast %248 : vector<1x8x128xbf16> to vector<8x128xbf16>
    %250 = arith.truncf %247 : vector<64x8xf32> to vector<64x8xbf16>
    %cst_242 = arith.constant dense<0.000000e+00> : vector<64x128xf32>
    %251 = tpu.matmul %250, %249, %cst_242 {dimension_numbers = #tpu.dot_dimension_numbers<[1], [0], [0], [1], [0, 0, 1, 1], [], []>} : vector<64x8xbf16>, vector<8x128xbf16>, vector<64x128xf32> -> vector<64x128xf32>
    %252 = arith.addf %244, %251 : vector<64x128xf32>
    %253 = vector.broadcast %0 : vector<1x128xf32> to vector<64x128xf32>
    %254 = arith.addf %252, %253 : vector<64x128xf32>
    %cst_243 = arith.constant 0.000000e+00 : f32
    %255 = vector.broadcast %cst_243 : f32 to vector<64x128xf32>
    %256 = arith.cmpf ogt, %254, %255 : vector<64x128xf32>
    %cst_244 = arith.constant 1.000000e-01 : f32
    %257 = vector.broadcast %cst_244 : f32 to vector<64x128xf32>
    %258 = arith.mulf %257, %254 : vector<64x128xf32>
    %259 = arith.select %256, %254, %258 : vector<64x128xi1>, vector<64x128xf32>
    %260 = vector.shape_cast %259 : vector<64x128xf32> to vector<8x8x128xf32>
    %c2_245 = arith.constant 2 : index
    %c1_246 = arith.constant 1 : index
    %c1_247 = arith.constant 1 : index
    %c0_248 = arith.constant 0 : index
    %261 = vector.load %arg13[%c2_245, %c1_246, %c1_247, %c0_248] : memref<4x9x9x128xf32, #tpu.memory_space<vmem>>, vector<1x8x8x128xf32>
    %262 = vector.shape_cast %261 : vector<1x8x8x128xf32> to vector<8x8x128xf32>
    %263 = vector.shape_cast %260 : vector<8x8x128xf32> to vector<1x8x8x128xf32>
    tpu.vector_store %arg13[%c2_245, %c1_246, %c1_247, %c0_248], %263 {strides = array<i32>} : memref<4x9x9x128xf32, #tpu.memory_space<vmem>>, vector<1x8x8x128xf32>,
    %cst_249 = arith.constant 0.000000e+00 : f32
    %264 = vector.broadcast %cst_249 : f32 to vector<64x128xf32>
    %c0_250 = arith.constant 0 : index
    %c0_251 = arith.constant 0 : index
    %c0_252 = arith.constant 0 : index
    %c0_253 = arith.constant 0 : index
    %265 = vector.load %arg4[%c0_250, %c0_251, %c0_252, %c0_253] : memref<1x9x9x8xf32, #tpu.memory_space<vmem>>, vector<1x8x8x8xf32>
    %266 = vector.shape_cast %265 : vector<1x8x8x8xf32> to vector<8x8x8xf32>
    %267 = vector.shape_cast %266 : vector<8x8x8xf32> to vector<64x8xf32>
    %c0_254 = arith.constant 0 : index
    %c0_255 = arith.constant 0 : index
    %c0_256 = arith.constant 0 : index
    %268 = vector.load %arg5[%c0_254, %c0_255, %c0_256] : memref<9x8x128xbf16, #tpu.memory_space<vmem>>, vector<1x8x128xbf16>
    %269 = vector.shape_cast %268 : vector<1x8x128xbf16> to vector<8x128xbf16>
    %270 = arith.truncf %267 : vector<64x8xf32> to vector<64x8xbf16>
    %cst_257 = arith.constant dense<0.000000e+00> : vector<64x128xf32>
    %271 = tpu.matmul %270, %269, %cst_257 {dimension_numbers = #tpu.dot_dimension_numbers<[1], [0], [0], [1], [0, 0, 1, 1], [], []>} : vector<64x8xbf16>, vector<8x128xbf16>, vector<64x128xf32> -> vector<64x128xf32>
    %272 = arith.addf %264, %271 : vector<64x128xf32>
    %c0_258 = arith.constant 0 : index
    %c0_259 = arith.constant 0 : index
    %c1_260 = arith.constant 1 : index
    %c0_261 = arith.constant 0 : index
    %273 = vector.load %arg3[%c0_258, %c0_259, %c1_260, %c0_261] : memref<1x9x9x8xf32, #tpu.memory_space<vmem>>, vector<1x8x8x8xf32>
    %274 = vector.shape_cast %273 : vector<1x8x8x8xf32> to vector<8x8x8xf32>
    %275 = vector.shape_cast %274 : vector<8x8x8xf32> to vector<64x8xf32>
    %c1_262 = arith.constant 1 : index
    %c0_263 = arith.constant 0 : index
    %c0_264 = arith.constant 0 : index
    %276 = vector.load %arg5[%c1_262, %c0_263, %c0_264] : memref<9x8x128xbf16, #tpu.memory_space<vmem>>, vector<1x8x128xbf16>
    %277 = vector.shape_cast %276 : vector<1x8x128xbf16> to vector<8x128xbf16>
    %278 = arith.truncf %275 : vector<64x8xf32> to vector<64x8xbf16>
    %cst_265 = arith.constant dense<0.000000e+00> : vector<64x128xf32>
    %279 = tpu.matmul %278, %277, %cst_265 {dimension_numbers = #tpu.dot_dimension_numbers<[1], [0], [0], [1], [0, 0, 1, 1], [], []>} : vector<64x8xbf16>, vector<8x128xbf16>, vector<64x128xf32> -> vector<64x128xf32>
    %280 = arith.addf %272, %279 : vector<64x128xf32>
    %c0_266 = arith.constant 0 : index
    %c0_267 = arith.constant 0 : index
    %c1_268 = arith.constant 1 : index
    %c0_269 = arith.constant 0 : index
    %281 = vector.load %arg4[%c0_266, %c0_267, %c1_268, %c0_269] : memref<1x9x9x8xf32, #tpu.memory_space<vmem>>, vector<1x8x8x8xf32>
    %282 = vector.shape_cast %281 : vector<1x8x8x8xf32> to vector<8x8x8xf32>
    %283 = vector.shape_cast %282 : vector<8x8x8xf32> to vector<64x8xf32>
    %c2_270 = arith.constant 2 : index
    %c0_271 = arith.constant 0 : index
    %c0_272 = arith.constant 0 : index
    %284 = vector.load %arg5[%c2_270, %c0_271, %c0_272] : memref<9x8x128xbf16, #tpu.memory_space<vmem>>, vector<1x8x128xbf16>
    %285 = vector.shape_cast %284 : vector<1x8x128xbf16> to vector<8x128xbf16>
    %286 = arith.truncf %283 : vector<64x8xf32> to vector<64x8xbf16>
    %cst_273 = arith.constant dense<0.000000e+00> : vector<64x128xf32>
    %287 = tpu.matmul %286, %285, %cst_273 {dimension_numbers = #tpu.dot_dimension_numbers<[1], [0], [0], [1], [0, 0, 1, 1], [], []>} : vector<64x8xbf16>, vector<8x128xbf16>, vector<64x128xf32> -> vector<64x128xf32>
    %288 = arith.addf %280, %287 : vector<64x128xf32>
    %c0_274 = arith.constant 0 : index
    %c1_275 = arith.constant 1 : index
    %c0_276 = arith.constant 0 : index
    %c0_277 = arith.constant 0 : index
    %289 = vector.load %arg2[%c0_274, %c1_275, %c0_276, %c0_277] : memref<1x9x9x8xf32, #tpu.memory_space<vmem>>, vector<1x8x8x8xf32>
    %290 = vector.shape_cast %289 : vector<1x8x8x8xf32> to vector<8x8x8xf32>
    %291 = vector.shape_cast %290 : vector<8x8x8xf32> to vector<64x8xf32>
    %c3_278 = arith.constant 3 : index
    %c0_279 = arith.constant 0 : index
    %c0_280 = arith.constant 0 : index
    %292 = vector.load %arg5[%c3_278, %c0_279, %c0_280] : memref<9x8x128xbf16, #tpu.memory_space<vmem>>, vector<1x8x128xbf16>
    %293 = vector.shape_cast %292 : vector<1x8x128xbf16> to vector<8x128xbf16>
    %294 = arith.truncf %291 : vector<64x8xf32> to vector<64x8xbf16>
    %cst_281 = arith.constant dense<0.000000e+00> : vector<64x128xf32>
    %295 = tpu.matmul %294, %293, %cst_281 {dimension_numbers = #tpu.dot_dimension_numbers<[1], [0], [0], [1], [0, 0, 1, 1], [], []>} : vector<64x8xbf16>, vector<8x128xbf16>, vector<64x128xf32> -> vector<64x128xf32>
    %296 = arith.addf %288, %295 : vector<64x128xf32>
    %c0_282 = arith.constant 0 : index
    %c1_283 = arith.constant 1 : index
    %c1_284 = arith.constant 1 : index
    %c0_285 = arith.constant 0 : index
    %297 = vector.load %arg1[%c0_282, %c1_283, %c1_284, %c0_285] : memref<1x9x9x8xf32, #tpu.memory_space<vmem>>, vector<1x8x8x8xf32>
    %298 = vector.shape_cast %297 : vector<1x8x8x8xf32> to vector<8x8x8xf32>
    %299 = vector.shape_cast %298 : vector<8x8x8xf32> to vector<64x8xf32>
    %c4_286 = arith.constant 4 : index
    %c0_287 = arith.constant 0 : index
    %c0_288 = arith.constant 0 : index
    %300 = vector.load %arg5[%c4_286, %c0_287, %c0_288] : memref<9x8x128xbf16, #tpu.memory_space<vmem>>, vector<1x8x128xbf16>
    %301 = vector.shape_cast %300 : vector<1x8x128xbf16> to vector<8x128xbf16>
    %302 = arith.truncf %299 : vector<64x8xf32> to vector<64x8xbf16>
    %cst_289 = arith.constant dense<0.000000e+00> : vector<64x128xf32>
    %303 = tpu.matmul %302, %301, %cst_289 {dimension_numbers = #tpu.dot_dimension_numbers<[1], [0], [0], [1], [0, 0, 1, 1], [], []>} : vector<64x8xbf16>, vector<8x128xbf16>, vector<64x128xf32> -> vector<64x128xf32>
    %304 = arith.addf %296, %303 : vector<64x128xf32>
    %c0_290 = arith.constant 0 : index
    %c1_291 = arith.constant 1 : index
    %c1_292 = arith.constant 1 : index
    %c0_293 = arith.constant 0 : index
    %305 = vector.load %arg2[%c0_290, %c1_291, %c1_292, %c0_293] : memref<1x9x9x8xf32, #tpu.memory_space<vmem>>, vector<1x8x8x8xf32>
    %306 = vector.shape_cast %305 : vector<1x8x8x8xf32> to vector<8x8x8xf32>
    %307 = vector.shape_cast %306 : vector<8x8x8xf32> to vector<64x8xf32>
    %c5_294 = arith.constant 5 : index
    %c0_295 = arith.constant 0 : index
    %c0_296 = arith.constant 0 : index
    %308 = vector.load %arg5[%c5_294, %c0_295, %c0_296] : memref<9x8x128xbf16, #tpu.memory_space<vmem>>, vector<1x8x128xbf16>
    %309 = vector.shape_cast %308 : vector<1x8x128xbf16> to vector<8x128xbf16>
    %310 = arith.truncf %307 : vector<64x8xf32> to vector<64x8xbf16>
    %cst_297 = arith.constant dense<0.000000e+00> : vector<64x128xf32>
    %311 = tpu.matmul %310, %309, %cst_297 {dimension_numbers = #tpu.dot_dimension_numbers<[1], [0], [0], [1], [0, 0, 1, 1], [], []>} : vector<64x8xbf16>, vector<8x128xbf16>, vector<64x128xf32> -> vector<64x128xf32>
    %312 = arith.addf %304, %311 : vector<64x128xf32>
    %c0_298 = arith.constant 0 : index
    %c1_299 = arith.constant 1 : index
    %c0_300 = arith.constant 0 : index
    %c0_301 = arith.constant 0 : index
    %313 = vector.load %arg4[%c0_298, %c1_299, %c0_300, %c0_301] : memref<1x9x9x8xf32, #tpu.memory_space<vmem>>, vector<1x8x8x8xf32>
    %314 = vector.shape_cast %313 : vector<1x8x8x8xf32> to vector<8x8x8xf32>
    %315 = vector.shape_cast %314 : vector<8x8x8xf32> to vector<64x8xf32>
    %c6_302 = arith.constant 6 : index
    %c0_303 = arith.constant 0 : index
    %c0_304 = arith.constant 0 : index
    %316 = vector.load %arg5[%c6_302, %c0_303, %c0_304] : memref<9x8x128xbf16, #tpu.memory_space<vmem>>, vector<1x8x128xbf16>
    %317 = vector.shape_cast %316 : vector<1x8x128xbf16> to vector<8x128xbf16>
    %318 = arith.truncf %315 : vector<64x8xf32> to vector<64x8xbf16>
    %cst_305 = arith.constant dense<0.000000e+00> : vector<64x128xf32>
    %319 = tpu.matmul %318, %317, %cst_305 {dimension_numbers = #tpu.dot_dimension_numbers<[1], [0], [0], [1], [0, 0, 1, 1], [], []>} : vector<64x8xbf16>, vector<8x128xbf16>, vector<64x128xf32> -> vector<64x128xf32>
    %320 = arith.addf %312, %319 : vector<64x128xf32>
    %c0_306 = arith.constant 0 : index
    %c1_307 = arith.constant 1 : index
    %c1_308 = arith.constant 1 : index
    %c0_309 = arith.constant 0 : index
    %321 = vector.load %arg3[%c0_306, %c1_307, %c1_308, %c0_309] : memref<1x9x9x8xf32, #tpu.memory_space<vmem>>, vector<1x8x8x8xf32>
    %322 = vector.shape_cast %321 : vector<1x8x8x8xf32> to vector<8x8x8xf32>
    %323 = vector.shape_cast %322 : vector<8x8x8xf32> to vector<64x8xf32>
    %c7_310 = arith.constant 7 : index
    %c0_311 = arith.constant 0 : index
    %c0_312 = arith.constant 0 : index
    %324 = vector.load %arg5[%c7_310, %c0_311, %c0_312] : memref<9x8x128xbf16, #tpu.memory_space<vmem>>, vector<1x8x128xbf16>
    %325 = vector.shape_cast %324 : vector<1x8x128xbf16> to vector<8x128xbf16>
    %326 = arith.truncf %323 : vector<64x8xf32> to vector<64x8xbf16>
    %cst_313 = arith.constant dense<0.000000e+00> : vector<64x128xf32>
    %327 = tpu.matmul %326, %325, %cst_313 {dimension_numbers = #tpu.dot_dimension_numbers<[1], [0], [0], [1], [0, 0, 1, 1], [], []>} : vector<64x8xbf16>, vector<8x128xbf16>, vector<64x128xf32> -> vector<64x128xf32>
    %328 = arith.addf %320, %327 : vector<64x128xf32>
    %c0_314 = arith.constant 0 : index
    %c1_315 = arith.constant 1 : index
    %c1_316 = arith.constant 1 : index
    %c0_317 = arith.constant 0 : index
    %329 = vector.load %arg4[%c0_314, %c1_315, %c1_316, %c0_317] : memref<1x9x9x8xf32, #tpu.memory_space<vmem>>, vector<1x8x8x8xf32>
    %330 = vector.shape_cast %329 : vector<1x8x8x8xf32> to vector<8x8x8xf32>
    %331 = vector.shape_cast %330 : vector<8x8x8xf32> to vector<64x8xf32>
    %c8_318 = arith.constant 8 : index
    %c0_319 = arith.constant 0 : index
    %c0_320 = arith.constant 0 : index
    %332 = vector.load %arg5[%c8_318, %c0_319, %c0_320] : memref<9x8x128xbf16, #tpu.memory_space<vmem>>, vector<1x8x128xbf16>
    %333 = vector.shape_cast %332 : vector<1x8x128xbf16> to vector<8x128xbf16>
    %334 = arith.truncf %331 : vector<64x8xf32> to vector<64x8xbf16>
    %cst_321 = arith.constant dense<0.000000e+00> : vector<64x128xf32>
    %335 = tpu.matmul %334, %333, %cst_321 {dimension_numbers = #tpu.dot_dimension_numbers<[1], [0], [0], [1], [0, 0, 1, 1], [], []>} : vector<64x8xbf16>, vector<8x128xbf16>, vector<64x128xf32> -> vector<64x128xf32>
    %336 = arith.addf %328, %335 : vector<64x128xf32>
    %337 = vector.broadcast %0 : vector<1x128xf32> to vector<64x128xf32>
    %338 = arith.addf %336, %337 : vector<64x128xf32>
    %cst_322 = arith.constant 0.000000e+00 : f32
    %339 = vector.broadcast %cst_322 : f32 to vector<64x128xf32>
    %340 = arith.cmpf ogt, %338, %339 : vector<64x128xf32>
    %cst_323 = arith.constant 1.000000e-01 : f32
    %341 = vector.broadcast %cst_323 : f32 to vector<64x128xf32>
    %342 = arith.mulf %341, %338 : vector<64x128xf32>
    %343 = arith.select %340, %338, %342 : vector<64x128xi1>, vector<64x128xf32>
    %344 = vector.shape_cast %343 : vector<64x128xf32> to vector<8x8x128xf32>
    %c3_324 = arith.constant 3 : index
    %c1_325 = arith.constant 1 : index
    %c1_326 = arith.constant 1 : index
    %c0_327 = arith.constant 0 : index
    %345 = vector.load %arg13[%c3_324, %c1_325, %c1_326, %c0_327] : memref<4x9x9x128xf32, #tpu.memory_space<vmem>>, vector<1x8x8x128xf32>
    %346 = vector.shape_cast %345 : vector<1x8x8x128xf32> to vector<8x8x128xf32>
    %347 = vector.shape_cast %344 : vector<8x8x128xf32> to vector<1x8x8x128xf32>
    tpu.vector_store %arg13[%c3_324, %c1_325, %c1_326, %c0_327], %347 {strides = array<i32>} : memref<4x9x9x128xf32, #tpu.memory_space<vmem>>, vector<1x8x8x128xf32>,
    %cst_328 = arith.constant 0.000000e+00 : f32
    %348 = vector.broadcast %cst_328 : f32 to vector<64x128xf32>
    %c3_329 = arith.constant 3 : index
    %c0_330 = arith.constant 0 : index
    %c0_331 = arith.constant 0 : index
    %c0_332 = arith.constant 0 : index
    %349 = vector.load %arg13[%c3_329, %c0_330, %c0_331, %c0_332] : memref<4x9x9x128xf32, #tpu.memory_space<vmem>>, vector<1x8x8x128xf32>
    %350 = vector.shape_cast %349 : vector<1x8x8x128xf32> to vector<8x8x128xf32>
    %351 = vector.shape_cast %350 : vector<8x8x128xf32> to vector<64x128xf32>
    %c0_333 = arith.constant 0 : index
    %c0_334 = arith.constant 0 : index
    %c0_335 = arith.constant 0 : index
    %352 = vector.load %arg6[%c0_333, %c0_334, %c0_335] : memref<9x128x128xbf16, #tpu.memory_space<vmem>>, vector<1x128x128xbf16>
    %353 = vector.shape_cast %352 : vector<1x128x128xbf16> to vector<128x128xbf16>
    %354 = arith.truncf %351 : vector<64x128xf32> to vector<64x128xbf16>
    %cst_336 = arith.constant dense<0.000000e+00> : vector<64x128xf32>
    %355 = tpu.matmul %354, %353, %cst_336 {dimension_numbers = #tpu.dot_dimension_numbers<[1], [0], [0], [1], [0, 0, 1, 1], [], []>} : vector<64x128xbf16>, vector<128x128xbf16>, vector<64x128xf32> -> vector<64x128xf32>
    %356 = arith.addf %348, %355 : vector<64x128xf32>
    %c2_337 = arith.constant 2 : index
    %c0_338 = arith.constant 0 : index
    %c1_339 = arith.constant 1 : index
    %c0_340 = arith.constant 0 : index
    %357 = vector.load %arg13[%c2_337, %c0_338, %c1_339, %c0_340] : memref<4x9x9x128xf32, #tpu.memory_space<vmem>>, vector<1x8x8x128xf32>
    %358 = vector.shape_cast %357 : vector<1x8x8x128xf32> to vector<8x8x128xf32>
    %359 = vector.shape_cast %358 : vector<8x8x128xf32> to vector<64x128xf32>
    %c1_341 = arith.constant 1 : index
    %c0_342 = arith.constant 0 : index
    %c0_343 = arith.constant 0 : index
    %360 = vector.load %arg6[%c1_341, %c0_342, %c0_343] : memref<9x128x128xbf16, #tpu.memory_space<vmem>>, vector<1x128x128xbf16>
    %361 = vector.shape_cast %360 : vector<1x128x128xbf16> to vector<128x128xbf16>
    %362 = arith.truncf %359 : vector<64x128xf32> to vector<64x128xbf16>
    %cst_344 = arith.constant dense<0.000000e+00> : vector<64x128xf32>
    %363 = tpu.matmul %362, %361, %cst_344 {dimension_numbers = #tpu.dot_dimension_numbers<[1], [0], [0], [1], [0, 0, 1, 1], [], []>} : vector<64x128xbf16>, vector<128x128xbf16>, vector<64x128xf32> -> vector<64x128xf32>
    %364 = arith.addf %356, %363 : vector<64x128xf32>
    %c3_345 = arith.constant 3 : index
    %c0_346 = arith.constant 0 : index
    %c1_347 = arith.constant 1 : index
    %c0_348 = arith.constant 0 : index
    %365 = vector.load %arg13[%c3_345, %c0_346, %c1_347, %c0_348] : memref<4x9x9x128xf32, #tpu.memory_space<vmem>>, vector<1x8x8x128xf32>
    %366 = vector.shape_cast %365 : vector<1x8x8x128xf32> to vector<8x8x128xf32>
    %367 = vector.shape_cast %366 : vector<8x8x128xf32> to vector<64x128xf32>
    %c2_349 = arith.constant 2 : index
    %c0_350 = arith.constant 0 : index
    %c0_351 = arith.constant 0 : index
    %368 = vector.load %arg6[%c2_349, %c0_350, %c0_351] : memref<9x128x128xbf16, #tpu.memory_space<vmem>>, vector<1x128x128xbf16>
    %369 = vector.shape_cast %368 : vector<1x128x128xbf16> to vector<128x128xbf16>
    %370 = arith.truncf %367 : vector<64x128xf32> to vector<64x128xbf16>
    %cst_352 = arith.constant dense<0.000000e+00> : vector<64x128xf32>
    %371 = tpu.matmul %370, %369, %cst_352 {dimension_numbers = #tpu.dot_dimension_numbers<[1], [0], [0], [1], [0, 0, 1, 1], [], []>} : vector<64x128xbf16>, vector<128x128xbf16>, vector<64x128xf32> -> vector<64x128xf32>
    %372 = arith.addf %364, %371 : vector<64x128xf32>
    %c1_353 = arith.constant 1 : index
    %c1_354 = arith.constant 1 : index
    %c0_355 = arith.constant 0 : index
    %c0_356 = arith.constant 0 : index
    %373 = vector.load %arg13[%c1_353, %c1_354, %c0_355, %c0_356] : memref<4x9x9x128xf32, #tpu.memory_space<vmem>>, vector<1x8x8x128xf32>
    %374 = vector.shape_cast %373 : vector<1x8x8x128xf32> to vector<8x8x128xf32>
    %375 = vector.shape_cast %374 : vector<8x8x128xf32> to vector<64x128xf32>
    %c3_357 = arith.constant 3 : index
    %c0_358 = arith.constant 0 : index
    %c0_359 = arith.constant 0 : index
    %376 = vector.load %arg6[%c3_357, %c0_358, %c0_359] : memref<9x128x128xbf16, #tpu.memory_space<vmem>>, vector<1x128x128xbf16>
    %377 = vector.shape_cast %376 : vector<1x128x128xbf16> to vector<128x128xbf16>
    %378 = arith.truncf %375 : vector<64x128xf32> to vector<64x128xbf16>
    %cst_360 = arith.constant dense<0.000000e+00> : vector<64x128xf32>
    %379 = tpu.matmul %378, %377, %cst_360 {dimension_numbers = #tpu.dot_dimension_numbers<[1], [0], [0], [1], [0, 0, 1, 1], [], []>} : vector<64x128xbf16>, vector<128x128xbf16>, vector<64x128xf32> -> vector<64x128xf32>
    %380 = arith.addf %372, %379 : vector<64x128xf32>
    %c0_361 = arith.constant 0 : index
    %c1_362 = arith.constant 1 : index
    %c1_363 = arith.constant 1 : index
    %c0_364 = arith.constant 0 : index
    %381 = vector.load %arg13[%c0_361, %c1_362, %c1_363, %c0_364] : memref<4x9x9x128xf32, #tpu.memory_space<vmem>>, vector<1x8x8x128xf32>
    %382 = vector.shape_cast %381 : vector<1x8x8x128xf32> to vector<8x8x128xf32>
    %383 = vector.shape_cast %382 : vector<8x8x128xf32> to vector<64x128xf32>
    %c4_365 = arith.constant 4 : index
    %c0_366 = arith.constant 0 : index
    %c0_367 = arith.constant 0 : index
    %384 = vector.load %arg6[%c4_365, %c0_366, %c0_367] : memref<9x128x128xbf16, #tpu.memory_space<vmem>>, vector<1x128x128xbf16>
    %385 = vector.shape_cast %384 : vector<1x128x128xbf16> to vector<128x128xbf16>
    %386 = arith.truncf %383 : vector<64x128xf32> to vector<64x128xbf16>
    %cst_368 = arith.constant dense<0.000000e+00> : vector<64x128xf32>
    %387 = tpu.matmul %386, %385, %cst_368 {dimension_numbers = #tpu.dot_dimension_numbers<[1], [0], [0], [1], [0, 0, 1, 1], [], []>} : vector<64x128xbf16>, vector<128x128xbf16>, vector<64x128xf32> -> vector<64x128xf32>
    %388 = arith.addf %380, %387 : vector<64x128xf32>
    %c1_369 = arith.constant 1 : index
    %c1_370 = arith.constant 1 : index
    %c1_371 = arith.constant 1 : index
    %c0_372 = arith.constant 0 : index
    %389 = vector.load %arg13[%c1_369, %c1_370, %c1_371, %c0_372] : memref<4x9x9x128xf32, #tpu.memory_space<vmem>>, vector<1x8x8x128xf32>
    %390 = vector.shape_cast %389 : vector<1x8x8x128xf32> to vector<8x8x128xf32>
    %391 = vector.shape_cast %390 : vector<8x8x128xf32> to vector<64x128xf32>
    %c5_373 = arith.constant 5 : index
    %c0_374 = arith.constant 0 : index
    %c0_375 = arith.constant 0 : index
    %392 = vector.load %arg6[%c5_373, %c0_374, %c0_375] : memref<9x128x128xbf16, #tpu.memory_space<vmem>>, vector<1x128x128xbf16>
    %393 = vector.shape_cast %392 : vector<1x128x128xbf16> to vector<128x128xbf16>
    %394 = arith.truncf %391 : vector<64x128xf32> to vector<64x128xbf16>
    %cst_376 = arith.constant dense<0.000000e+00> : vector<64x128xf32>
    %395 = tpu.matmul %394, %393, %cst_376 {dimension_numbers = #tpu.dot_dimension_numbers<[1], [0], [0], [1], [0, 0, 1, 1], [], []>} : vector<64x128xbf16>, vector<128x128xbf16>, vector<64x128xf32> -> vector<64x128xf32>
    %396 = arith.addf %388, %395 : vector<64x128xf32>
    %c3_377 = arith.constant 3 : index
    %c1_378 = arith.constant 1 : index
    %c0_379 = arith.constant 0 : index
    %c0_380 = arith.constant 0 : index
    %397 = vector.load %arg13[%c3_377, %c1_378, %c0_379, %c0_380] : memref<4x9x9x128xf32, #tpu.memory_space<vmem>>, vector<1x8x8x128xf32>
    %398 = vector.shape_cast %397 : vector<1x8x8x128xf32> to vector<8x8x128xf32>
    %399 = vector.shape_cast %398 : vector<8x8x128xf32> to vector<64x128xf32>
    %c6_381 = arith.constant 6 : index
    %c0_382 = arith.constant 0 : index
    %c0_383 = arith.constant 0 : index
    %400 = vector.load %arg6[%c6_381, %c0_382, %c0_383] : memref<9x128x128xbf16, #tpu.memory_space<vmem>>, vector<1x128x128xbf16>
    %401 = vector.shape_cast %400 : vector<1x128x128xbf16> to vector<128x128xbf16>
    %402 = arith.truncf %399 : vector<64x128xf32> to vector<64x128xbf16>
    %cst_384 = arith.constant dense<0.000000e+00> : vector<64x128xf32>
    %403 = tpu.matmul %402, %401, %cst_384 {dimension_numbers = #tpu.dot_dimension_numbers<[1], [0], [0], [1], [0, 0, 1, 1], [], []>} : vector<64x128xbf16>, vector<128x128xbf16>, vector<64x128xf32> -> vector<64x128xf32>
    %404 = arith.addf %396, %403 : vector<64x128xf32>
    %c2_385 = arith.constant 2 : index
    %c1_386 = arith.constant 1 : index
    %c1_387 = arith.constant 1 : index
    %c0_388 = arith.constant 0 : index
    %405 = vector.load %arg13[%c2_385, %c1_386, %c1_387, %c0_388] : memref<4x9x9x128xf32, #tpu.memory_space<vmem>>, vector<1x8x8x128xf32>
    %406 = vector.shape_cast %405 : vector<1x8x8x128xf32> to vector<8x8x128xf32>
    %407 = vector.shape_cast %406 : vector<8x8x128xf32> to vector<64x128xf32>
    %c7_389 = arith.constant 7 : index
    %c0_390 = arith.constant 0 : index
    %c0_391 = arith.constant 0 : index
    %408 = vector.load %arg6[%c7_389, %c0_390, %c0_391] : memref<9x128x128xbf16, #tpu.memory_space<vmem>>, vector<1x128x128xbf16>
    %409 = vector.shape_cast %408 : vector<1x128x128xbf16> to vector<128x128xbf16>
    %410 = arith.truncf %407 : vector<64x128xf32> to vector<64x128xbf16>
    %cst_392 = arith.constant dense<0.000000e+00> : vector<64x128xf32>
    %411 = tpu.matmul %410, %409, %cst_392 {dimension_numbers = #tpu.dot_dimension_numbers<[1], [0], [0], [1], [0, 0, 1, 1], [], []>} : vector<64x128xbf16>, vector<128x128xbf16>, vector<64x128xf32> -> vector<64x128xf32>
    %412 = arith.addf %404, %411 : vector<64x128xf32>
    %c3_393 = arith.constant 3 : index
    %c1_394 = arith.constant 1 : index
    %c1_395 = arith.constant 1 : index
    %c0_396 = arith.constant 0 : index
    %413 = vector.load %arg13[%c3_393, %c1_394, %c1_395, %c0_396] : memref<4x9x9x128xf32, #tpu.memory_space<vmem>>, vector<1x8x8x128xf32>
    %414 = vector.shape_cast %413 : vector<1x8x8x128xf32> to vector<8x8x128xf32>
    %415 = vector.shape_cast %414 : vector<8x8x128xf32> to vector<64x128xf32>
    %c8_397 = arith.constant 8 : index
    %c0_398 = arith.constant 0 : index
    %c0_399 = arith.constant 0 : index
    %416 = vector.load %arg6[%c8_397, %c0_398, %c0_399] : memref<9x128x128xbf16, #tpu.memory_space<vmem>>, vector<1x128x128xbf16>
    %417 = vector.shape_cast %416 : vector<1x128x128xbf16> to vector<128x128xbf16>
    %418 = arith.truncf %415 : vector<64x128xf32> to vector<64x128xbf16>
    %cst_400 = arith.constant dense<0.000000e+00> : vector<64x128xf32>
    %419 = tpu.matmul %418, %417, %cst_400 {dimension_numbers = #tpu.dot_dimension_numbers<[1], [0], [0], [1], [0, 0, 1, 1], [], []>} : vector<64x128xbf16>, vector<128x128xbf16>, vector<64x128xf32> -> vector<64x128xf32>
    %420 = arith.addf %412, %419 : vector<64x128xf32>
    %421 = vector.broadcast %1 : vector<1x128xf32> to vector<64x128xf32>
    %422 = arith.addf %420, %421 : vector<64x128xf32>
    %cst_401 = arith.constant 0.000000e+00 : f32
    %423 = vector.broadcast %cst_401 : f32 to vector<64x128xf32>
    %424 = arith.cmpf ogt, %422, %423 : vector<64x128xf32>
    %cst_402 = arith.constant 1.000000e-01 : f32
    %425 = vector.broadcast %cst_402 : f32 to vector<64x128xf32>
    %426 = arith.mulf %425, %422 : vector<64x128xf32>
    %427 = arith.select %424, %422, %426 : vector<64x128xi1>, vector<64x128xf32>
    %c0_403 = arith.constant 0 : index
    %c0_404 = arith.constant 0 : index
    %c0_405 = arith.constant 0 : index
    %428 = vector.load %arg7[%c0_403, %c0_404, %c0_405] : memref<4x128x128xbf16, #tpu.memory_space<vmem>>, vector<1x128x128xbf16>
    %429 = vector.shape_cast %428 : vector<1x128x128xbf16> to vector<128x128xbf16>
    %430 = arith.truncf %427 : vector<64x128xf32> to vector<64x128xbf16>
    %cst_406 = arith.constant dense<0.000000e+00> : vector<64x128xf32>
    %431 = tpu.matmul %430, %429, %cst_406 {dimension_numbers = #tpu.dot_dimension_numbers<[1], [0], [0], [1], [0, 0, 1, 1], [], []>} : vector<64x128xbf16>, vector<128x128xbf16>, vector<64x128xf32> -> vector<64x128xf32>
    %432 = vector.broadcast %2 : vector<1x128xf32> to vector<64x128xf32>
    %433 = arith.addf %431, %432 : vector<64x128xf32>
    %cst_407 = arith.constant 0.000000e+00 : f32
    %434 = vector.broadcast %cst_407 : f32 to vector<64x128xf32>
    %435 = arith.cmpf ogt, %433, %434 : vector<64x128xf32>
    %cst_408 = arith.constant 1.000000e-01 : f32
    %436 = vector.broadcast %cst_408 : f32 to vector<64x128xf32>
    %437 = arith.mulf %436, %433 : vector<64x128xf32>
    %438 = arith.select %435, %433, %437 : vector<64x128xi1>, vector<64x128xf32>
    %439 = arith.addf %438, %427 : vector<64x128xf32>
    %c1_409 = arith.constant 1 : index
    %c0_410 = arith.constant 0 : index
    %c0_411 = arith.constant 0 : index
    %440 = vector.load %arg7[%c1_409, %c0_410, %c0_411] : memref<4x128x128xbf16, #tpu.memory_space<vmem>>, vector<1x128x128xbf16>
    %441 = vector.shape_cast %440 : vector<1x128x128xbf16> to vector<128x128xbf16>
    %442 = arith.truncf %439 : vector<64x128xf32> to vector<64x128xbf16>
    %cst_412 = arith.constant dense<0.000000e+00> : vector<64x128xf32>
    %443 = tpu.matmul %442, %441, %cst_412 {dimension_numbers = #tpu.dot_dimension_numbers<[1], [0], [0], [1], [0, 0, 1, 1], [], []>} : vector<64x128xbf16>, vector<128x128xbf16>, vector<64x128xf32> -> vector<64x128xf32>
    %444 = vector.broadcast %3 : vector<1x128xf32> to vector<64x128xf32>
    %445 = arith.addf %443, %444 : vector<64x128xf32>
    %446 = math.exp %445 : vector<64x128xf32>
    %447 = arith.negf %445 : vector<64x128xf32>
    %448 = math.exp %447 : vector<64x128xf32>
    %cst_413 = arith.constant 1.000000e+00 : f32
    %449 = vector.broadcast %cst_413 : f32 to vector<64x128xf32>
    %450 = arith.addf %449, %448 : vector<64x128xf32>
    %451 = arith.divf %449, %450 : vector<64x128xf32>
    %452 = vector.shape_cast %9 : vector<1x128xi1> to vector<1x128xi1>
    %453 = vector.broadcast %452 : vector<1x128xi1> to vector<64x128xi1>
    %454 = arith.select %453, %446, %451 : vector<64x128xi1>, vector<64x128xf32>
    %455 = vector.broadcast %5 : vector<1x128xf32> to vector<64x128xf32>
    %456 = arith.mulf %454, %455 : vector<64x128xf32>
    %c0_414 = arith.constant 0 : index
    %c0_415 = arith.constant 0 : index
    %457 = vector.load %arg9[%c0_414, %c0_415] : memref<64x128xf32, #tpu.memory_space<vmem>>, vector<64x128xf32>
    %458 = arith.addf %456, %457 : vector<64x128xf32>
    %c0_416 = arith.constant 0 : index
    %c0_417 = arith.constant 0 : index
    %c0_418 = arith.constant 0 : index
    %459 = vector.load %arg11[%c0_416, %c0_417, %c0_418] : memref<1x64x128xf32, #tpu.memory_space<vmem>>, vector<1x64x128xf32>
    %460 = vector.shape_cast %459 : vector<1x64x128xf32> to vector<64x128xf32>
    %461 = vector.shape_cast %458 : vector<64x128xf32> to vector<1x64x128xf32>
    tpu.vector_store %arg11[%c0_416, %c0_417, %c0_418], %461 {strides = array<i32>} : memref<1x64x128xf32, #tpu.memory_space<vmem>>, vector<1x64x128xf32>,
    %c2_419 = arith.constant 2 : index
    %c0_420 = arith.constant 0 : index
    %c0_421 = arith.constant 0 : index
    %462 = vector.load %arg7[%c2_419, %c0_420, %c0_421] : memref<4x128x128xbf16, #tpu.memory_space<vmem>>, vector<1x128x128xbf16>
    %463 = vector.shape_cast %462 : vector<1x128x128xbf16> to vector<128x128xbf16>
    %464 = arith.truncf %438 : vector<64x128xf32> to vector<64x128xbf16>
    %cst_422 = arith.constant dense<0.000000e+00> : vector<64x128xf32>
    %465 = tpu.matmul %464, %463, %cst_422 {dimension_numbers = #tpu.dot_dimension_numbers<[1], [0], [0], [1], [0, 0, 1, 1], [], []>} : vector<64x128xbf16>, vector<128x128xbf16>, vector<64x128xf32> -> vector<64x128xf32>
    %466 = vector.broadcast %4 : vector<1x128xf32> to vector<64x128xf32>
    %467 = arith.addf %465, %466 : vector<64x128xf32>
    %c3_423 = arith.constant 3 : index
    %c0_424 = arith.constant 0 : index
    %c0_425 = arith.constant 0 : index
    %468 = vector.load %arg7[%c3_423, %c0_424, %c0_425] : memref<4x128x128xbf16, #tpu.memory_space<vmem>>, vector<1x128x128xbf16>
    %469 = vector.shape_cast %468 : vector<1x128x128xbf16> to vector<128x128xbf16>
    %470 = arith.truncf %91 : vector<64x128xf32> to vector<64x128xbf16>
    %cst_426 = arith.constant dense<0.000000e+00> : vector<64x128xf32>
    %471 = tpu.matmul %470, %469, %cst_426 {dimension_numbers = #tpu.dot_dimension_numbers<[1], [0], [0], [1], [0, 0, 1, 1], [], []>} : vector<64x128xbf16>, vector<128x128xbf16>, vector<64x128xf32> -> vector<64x128xf32>
    %472 = arith.addf %467, %471 : vector<64x128xf32>
    %473 = math.exp %472 : vector<64x128xf32>
    %474 = arith.negf %472 : vector<64x128xf32>
    %475 = math.exp %474 : vector<64x128xf32>
    %cst_427 = arith.constant 1.000000e+00 : f32
    %476 = vector.broadcast %cst_427 : f32 to vector<64x128xf32>
    %477 = arith.addf %476, %475 : vector<64x128xf32>
    %478 = arith.divf %476, %477 : vector<64x128xf32>
    %479 = vector.shape_cast %9 : vector<1x128xi1> to vector<1x128xi1>
    %480 = vector.broadcast %479 : vector<1x128xi1> to vector<64x128xi1>
    %481 = arith.select %480, %473, %478 : vector<64x128xi1>, vector<64x128xf32>
    %482 = vector.broadcast %6 : vector<1x128xf32> to vector<64x128xf32>
    %483 = arith.mulf %481, %482 : vector<64x128xf32>
    %c0_428 = arith.constant 0 : index
    %c0_429 = arith.constant 0 : index
    %c0_430 = arith.constant 0 : index
    %484 = vector.load %arg10[%c0_428, %c0_429, %c0_430] : memref<4x64x128xf32, #tpu.memory_space<vmem>>, vector<1x64x128xf32>
    %485 = vector.shape_cast %484 : vector<1x64x128xf32> to vector<64x128xf32>
    %486 = arith.addf %483, %485 : vector<64x128xf32>
    %c0_431 = arith.constant 0 : index
    %c0_432 = arith.constant 0 : index
    %c0_433 = arith.constant 0 : index
    %c0_434 = arith.constant 0 : index
    %487 = vector.load %arg12[%c0_431, %c0_432, %c0_433, %c0_434] : memref<1x4x64x128xf32, #tpu.memory_space<vmem>>, vector<1x1x64x128xf32>
    %488 = vector.shape_cast %487 : vector<1x1x64x128xf32> to vector<64x128xf32>
    %489 = vector.shape_cast %486 : vector<64x128xf32> to vector<1x1x64x128xf32>
    tpu.vector_store %arg12[%c0_431, %c0_432, %c0_433, %c0_434], %489 {strides = array<i32>} : memref<1x4x64x128xf32, #tpu.memory_space<vmem>>, vector<1x1x64x128xf32>,
    %c3_435 = arith.constant 3 : index
    %c0_436 = arith.constant 0 : index
    %c0_437 = arith.constant 0 : index
    %490 = vector.load %arg7[%c3_435, %c0_436, %c0_437] : memref<4x128x128xbf16, #tpu.memory_space<vmem>>, vector<1x128x128xbf16>
    %491 = vector.shape_cast %490 : vector<1x128x128xbf16> to vector<128x128xbf16>
    %492 = arith.truncf %175 : vector<64x128xf32> to vector<64x128xbf16>
    %cst_438 = arith.constant dense<0.000000e+00> : vector<64x128xf32>
    %493 = tpu.matmul %492, %491, %cst_438 {dimension_numbers = #tpu.dot_dimension_numbers<[1], [0], [0], [1], [0, 0, 1, 1], [], []>} : vector<64x128xbf16>, vector<128x128xbf16>, vector<64x128xf32> -> vector<64x128xf32>
    %494 = arith.addf %467, %493 : vector<64x128xf32>
    %495 = math.exp %494 : vector<64x128xf32>
    %496 = arith.negf %494 : vector<64x128xf32>
    %497 = math.exp %496 : vector<64x128xf32>
    %cst_439 = arith.constant 1.000000e+00 : f32
    %498 = vector.broadcast %cst_439 : f32 to vector<64x128xf32>
    %499 = arith.addf %498, %497 : vector<64x128xf32>
    %500 = arith.divf %498, %499 : vector<64x128xf32>
    %501 = vector.shape_cast %9 : vector<1x128xi1> to vector<1x128xi1>
    %502 = vector.broadcast %501 : vector<1x128xi1> to vector<64x128xi1>
    %503 = arith.select %502, %495, %500 : vector<64x128xi1>, vector<64x128xf32>
    %504 = vector.broadcast %6 : vector<1x128xf32> to vector<64x128xf32>
    %505 = arith.mulf %503, %504 : vector<64x128xf32>
    %c1_440 = arith.constant 1 : index
    %c0_441 = arith.constant 0 : index
    %c0_442 = arith.constant 0 : index
    %506 = vector.load %arg10[%c1_440, %c0_441, %c0_442] : memref<4x64x128xf32, #tpu.memory_space<vmem>>, vector<1x64x128xf32>
    %507 = vector.shape_cast %506 : vector<1x64x128xf32> to vector<64x128xf32>
    %508 = arith.addf %505, %507 : vector<64x128xf32>
    %c0_443 = arith.constant 0 : index
    %c1_444 = arith.constant 1 : index
    %c0_445 = arith.constant 0 : index
    %c0_446 = arith.constant 0 : index
    %509 = vector.load %arg12[%c0_443, %c1_444, %c0_445, %c0_446] : memref<1x4x64x128xf32, #tpu.memory_space<vmem>>, vector<1x1x64x128xf32>
    %510 = vector.shape_cast %509 : vector<1x1x64x128xf32> to vector<64x128xf32>
    %511 = vector.shape_cast %508 : vector<64x128xf32> to vector<1x1x64x128xf32>
    tpu.vector_store %arg12[%c0_443, %c1_444, %c0_445, %c0_446], %511 {strides = array<i32>} : memref<1x4x64x128xf32, #tpu.memory_space<vmem>>, vector<1x1x64x128xf32>,
    %c3_447 = arith.constant 3 : index
    %c0_448 = arith.constant 0 : index
    %c0_449 = arith.constant 0 : index
    %512 = vector.load %arg7[%c3_447, %c0_448, %c0_449] : memref<4x128x128xbf16, #tpu.memory_space<vmem>>, vector<1x128x128xbf16>
    %513 = vector.shape_cast %512 : vector<1x128x128xbf16> to vector<128x128xbf16>
    %514 = arith.truncf %259 : vector<64x128xf32> to vector<64x128xbf16>
    %cst_450 = arith.constant dense<0.000000e+00> : vector<64x128xf32>
    %515 = tpu.matmul %514, %513, %cst_450 {dimension_numbers = #tpu.dot_dimension_numbers<[1], [0], [0], [1], [0, 0, 1, 1], [], []>} : vector<64x128xbf16>, vector<128x128xbf16>, vector<64x128xf32> -> vector<64x128xf32>
    %516 = arith.addf %467, %515 : vector<64x128xf32>
    %517 = math.exp %516 : vector<64x128xf32>
    %518 = arith.negf %516 : vector<64x128xf32>
    %519 = math.exp %518 : vector<64x128xf32>
    %cst_451 = arith.constant 1.000000e+00 : f32
    %520 = vector.broadcast %cst_451 : f32 to vector<64x128xf32>
    %521 = arith.addf %520, %519 : vector<64x128xf32>
    %522 = arith.divf %520, %521 : vector<64x128xf32>
    %523 = vector.shape_cast %9 : vector<1x128xi1> to vector<1x128xi1>
    %524 = vector.broadcast %523 : vector<1x128xi1> to vector<64x128xi1>
    %525 = arith.select %524, %517, %522 : vector<64x128xi1>, vector<64x128xf32>
    %526 = vector.broadcast %6 : vector<1x128xf32> to vector<64x128xf32>
    %527 = arith.mulf %525, %526 : vector<64x128xf32>
    %c2_452 = arith.constant 2 : index
    %c0_453 = arith.constant 0 : index
    %c0_454 = arith.constant 0 : index
    %528 = vector.load %arg10[%c2_452, %c0_453, %c0_454] : memref<4x64x128xf32, #tpu.memory_space<vmem>>, vector<1x64x128xf32>
    %529 = vector.shape_cast %528 : vector<1x64x128xf32> to vector<64x128xf32>
    %530 = arith.addf %527, %529 : vector<64x128xf32>
    %c0_455 = arith.constant 0 : index
    %c2_456 = arith.constant 2 : index
    %c0_457 = arith.constant 0 : index
    %c0_458 = arith.constant 0 : index
    %531 = vector.load %arg12[%c0_455, %c2_456, %c0_457, %c0_458] : memref<1x4x64x128xf32, #tpu.memory_space<vmem>>, vector<1x1x64x128xf32>
    %532 = vector.shape_cast %531 : vector<1x1x64x128xf32> to vector<64x128xf32>
    %533 = vector.shape_cast %530 : vector<64x128xf32> to vector<1x1x64x128xf32>
    tpu.vector_store %arg12[%c0_455, %c2_456, %c0_457, %c0_458], %533 {strides = array<i32>} : memref<1x4x64x128xf32, #tpu.memory_space<vmem>>, vector<1x1x64x128xf32>,
    %c3_459 = arith.constant 3 : index
    %c0_460 = arith.constant 0 : index
    %c0_461 = arith.constant 0 : index
    %534 = vector.load %arg7[%c3_459, %c0_460, %c0_461] : memref<4x128x128xbf16, #tpu.memory_space<vmem>>, vector<1x128x128xbf16>
    %535 = vector.shape_cast %534 : vector<1x128x128xbf16> to vector<128x128xbf16>
    %536 = arith.truncf %343 : vector<64x128xf32> to vector<64x128xbf16>
    %cst_462 = arith.constant dense<0.000000e+00> : vector<64x128xf32>
    %537 = tpu.matmul %536, %535, %cst_462 {dimension_numbers = #tpu.dot_dimension_numbers<[1], [0], [0], [1], [0, 0, 1, 1], [], []>} : vector<64x128xbf16>, vector<128x128xbf16>, vector<64x128xf32> -> vector<64x128xf32>
    %538 = arith.addf %467, %537 : vector<64x128xf32>
    %539 = math.exp %538 : vector<64x128xf32>
    %540 = arith.negf %538 : vector<64x128xf32>
    %541 = math.exp %540 : vector<64x128xf32>
    %cst_463 = arith.constant 1.000000e+00 : f32
    %542 = vector.broadcast %cst_463 : f32 to vector<64x128xf32>
    %543 = arith.addf %542, %541 : vector<64x128xf32>
    %544 = arith.divf %542, %543 : vector<64x128xf32>
    %545 = vector.shape_cast %9 : vector<1x128xi1> to vector<1x128xi1>
    %546 = vector.broadcast %545 : vector<1x128xi1> to vector<64x128xi1>
    %547 = arith.select %546, %539, %544 : vector<64x128xi1>, vector<64x128xf32>
    %548 = vector.broadcast %6 : vector<1x128xf32> to vector<64x128xf32>
    %549 = arith.mulf %547, %548 : vector<64x128xf32>
    %c3_464 = arith.constant 3 : index
    %c0_465 = arith.constant 0 : index
    %c0_466 = arith.constant 0 : index
    %550 = vector.load %arg10[%c3_464, %c0_465, %c0_466] : memref<4x64x128xf32, #tpu.memory_space<vmem>>, vector<1x64x128xf32>
    %551 = vector.shape_cast %550 : vector<1x64x128xf32> to vector<64x128xf32>
    %552 = arith.addf %549, %551 : vector<64x128xf32>
    %c0_467 = arith.constant 0 : index
    %c3_468 = arith.constant 3 : index
    %c0_469 = arith.constant 0 : index
    %c0_470 = arith.constant 0 : index
    %553 = vector.load %arg12[%c0_467, %c3_468, %c0_469, %c0_470] : memref<1x4x64x128xf32, #tpu.memory_space<vmem>>, vector<1x1x64x128xf32>
    %554 = vector.shape_cast %553 : vector<1x1x64x128xf32> to vector<64x128xf32>
    %555 = vector.shape_cast %552 : vector<64x128xf32> to vector<1x1x64x128xf32>
    tpu.vector_store %arg12[%c0_467, %c3_468, %c0_469, %c0_470], %555 {strides = array<i32>} : memref<1x4x64x128xf32, #tpu.memory_space<vmem>>, vector<1x1x64x128xf32>,
    return
  }
  func.func @transform_0(%arg0: i32) -> (i32, i32, i32, i32) {
    %c0_i32 = arith.constant 0 : i32
    %c0_i32_0 = arith.constant 0 : i32
    %c0_i32_1 = arith.constant 0 : i32
    %c0_i32_2 = arith.constant 0 : i32
    return %arg0, %c0_i32, %c0_i32_0, %c0_i32_1 : i32, i32, i32, i32
  }
  func.func @transform_1(%arg0: i32) -> (i32, i32, i32, i32) {
    %c0_i32 = arith.constant 0 : i32
    %c0_i32_0 = arith.constant 0 : i32
    %c0_i32_1 = arith.constant 0 : i32
    %c0_i32_2 = arith.constant 0 : i32
    return %arg0, %c0_i32, %c0_i32_0, %c0_i32_1 : i32, i32, i32, i32
  }
  func.func @transform_2(%arg0: i32) -> (i32, i32, i32, i32) {
    %c0_i32 = arith.constant 0 : i32
    %c0_i32_0 = arith.constant 0 : i32
    %c0_i32_1 = arith.constant 0 : i32
    %c0_i32_2 = arith.constant 0 : i32
    return %arg0, %c0_i32, %c0_i32_0, %c0_i32_1 : i32, i32, i32, i32
  }
  func.func @transform_3(%arg0: i32) -> (i32, i32, i32, i32) {
    %c0_i32 = arith.constant 0 : i32
    %c0_i32_0 = arith.constant 0 : i32
    %c0_i32_1 = arith.constant 0 : i32
    %c0_i32_2 = arith.constant 0 : i32
    return %arg0, %c0_i32, %c0_i32_0, %c0_i32_1 : i32, i32, i32, i32
  }
  func.func @transform_4(%arg0: i32) -> (i32, i32, i32) {
    %c0_i32 = arith.constant 0 : i32
    %c0_i32_0 = arith.constant 0 : i32
    %c0_i32_1 = arith.constant 0 : i32
    %c0_i32_2 = arith.constant 0 : i32
    return %c0_i32, %c0_i32_0, %c0_i32_1 : i32, i32, i32
  }
  func.func @transform_5(%arg0: i32) -> (i32, i32, i32) {
    %c0_i32 = arith.constant 0 : i32
    %c0_i32_0 = arith.constant 0 : i32
    %c0_i32_1 = arith.constant 0 : i32
    %c0_i32_2 = arith.constant 0 : i32
    return %c0_i32, %c0_i32_0, %c0_i32_1 : i32, i32, i32
  }
  func.func @transform_6(%arg0: i32) -> (i32, i32, i32) {
    %c0_i32 = arith.constant 0 : i32
    %c0_i32_0 = arith.constant 0 : i32
    %c0_i32_1 = arith.constant 0 : i32
    %c0_i32_2 = arith.constant 0 : i32
    return %c0_i32, %c0_i32_0, %c0_i32_1 : i32, i32, i32
  }
  func.func @transform_7(%arg0: i32) -> (i32, i32) {
    %c0_i32 = arith.constant 0 : i32
    %c0_i32_0 = arith.constant 0 : i32
    %c0_i32_1 = arith.constant 0 : i32
    return %c0_i32, %c0_i32_0 : i32, i32
  }
  func.func @transform_8(%arg0: i32) -> (i32, i32) {
    %c0_i32 = arith.constant 0 : i32
    %c0_i32_0 = arith.constant 0 : i32
    %c0_i32_1 = arith.constant 0 : i32
    return %c0_i32, %c0_i32_0 : i32, i32
  }
  func.func @transform_9(%arg0: i32) -> (i32, i32, i32) {
    %c0_i32 = arith.constant 0 : i32
    %c0_i32_0 = arith.constant 0 : i32
    %c0_i32_1 = arith.constant 0 : i32
    %c0_i32_2 = arith.constant 0 : i32
    return %c0_i32, %c0_i32_0, %c0_i32_1 : i32, i32, i32
  }
  func.func @transform_10(%arg0: i32) -> (i32, i32, i32) {
    %c0_i32 = arith.constant 0 : i32
    %c0_i32_0 = arith.constant 0 : i32
    %c0_i32_1 = arith.constant 0 : i32
    return %arg0, %c0_i32, %c0_i32_0 : i32, i32, i32
  }
  func.func @transform_11(%arg0: i32) -> (i32, i32, i32, i32) {
    %c0_i32 = arith.constant 0 : i32
    %c0_i32_0 = arith.constant 0 : i32
    %c0_i32_1 = arith.constant 0 : i32
    %c0_i32_2 = arith.constant 0 : i32
    return %arg0, %c0_i32, %c0_i32_0, %c0_i32_1 : i32, i32, i32, i32
  }
}

</mosaic_0001>

<bundles_post_ra>
// kernel: forward.1
= control target key start
LH: loop header
LB: loop body
LE: loop exit
PB: predicated region body
PF: predicated region fallthrough
CT: control target
= control target key end

     0   :  { %s7589_s17 = smov 0   ;;  %s10783_s0 = inlined_call_operand.vmem [shape: f32[2,9,9,8], index: 0, kind: input, shape index: {}]   ;;  %s10784_s1 = inlined_call_operand.vmem [shape: f32[2,9,9,8], index: 1, kind: input, shape index: {}]   ;;  %s10785_s2 = inlined_call_operand.vmem [shape: f32[2,9,9,8], index: 2, kind: input, shape index: {}]   ;;  %s10786_s3 = inlined_call_operand.vmem [shape: f32[2,9,9,8], index: 3, kind: input, shape index: {}]   ;;  %s10787_s4 = inlined_call_operand.vmem [shape: bf16[9,8,128], index: 4, kind: input, shape index: {}]   ;;  %s10788_s5 = inlined_call_operand.vmem [shape: bf16[9,128,128], index: 5, kind: input, shape index: {}]   ;;  %s10789_s6 = inlined_call_operand.vmem [shape: bf16[4,128,128], index: 6, kind: input, shape index: {}]   ;;  %s10790_s7 = inlined_call_operand.vmem [shape: f32[8,128], index: 7, kind: input, shape index: {}]   ;;  %s10791_s8 = inlined_call_operand.vmem [shape: f32[64,128], index: 8, kind: input, shape index: {}]   ;;  %s10792_s9 = inlined_call_operand.vmem [shape: f32[4,64,128], index: 9, kind: input, shape index: {}]   ;;  %s10793_s10 = inlined_call_operand.vmem [shape: f32[2,64,128], index: 10, kind: output, shape index: {0}]   ;;  %s10794_s11 = inlined_call_operand.vmem [shape: f32[2,4,64,128], index: 11, kind: output, shape index: {1}]  }
   0x1 LB: > { %s5965_s18 = sadd.s32 4294967295, %s7525_s17   ;;  %p5969_p0 = scmp.ge.s32.totalorder %s7525_s17, 1  ;;  %s7525_s17 = sphi %s7589_s17, %s22_s17  }
   0x2   : > { %p370_p1 = scmp.lt.s32.totalorder %s7525_s17, 3 }
   0x4   : > { %p371_p2 = pnand %p5969_p0, %p370_p1 }
   0x6   : > { %374 = sbr.rel (%p371_p2) target bundleno = 1415 (0x587), region = 60 }
   0xb   : > { %v5978_v0 = vld [vmem:[%s10787_s4 + $0x4] sm:$0xf]  ;;  %vm582_vm0 = vcmask 1043456   ;;  %v550_v1 = vld [vmem:[%s10787_s4] sm:$0xf]  ;;  %p430_p3 = scmp.lt.s32.totalorder %s5965_s18, 1 }
   0xc   : > { %v584_v2 = vsel %vm582_vm0, %v5978_v0, 0  ;;  %v628_v3 = vsel %vm582_vm0, %v550_v1, 0  ;;  %v5987_v4 = vld [vmem:[%s10787_s4 + $0x8] sm:$0xf]  ;;  %v5992_v5 = vld [vmem:[%s10787_s4 + $0xc] sm:$0xf] }
   0xd   : > { %593 = vmatpush.bf16.msra.mxu0 %v584_v2  ;;  %637 = vmatpush.bf16.msra.mxu1 %v628_v3  ;;  %v686_v6 = vsel %vm582_vm0, %v5987_v4, 0  ;;  %v752_v7 = vsel %vm582_vm0, %v5992_v5, 0  ;;  %s10951_s18 = smov (!%p430_p3, %s5965_s18), 1  ;;  %v6015_v8 = vld [vmem:[%s10787_s4 + $0x18] sm:$0xf]  ;;  %vm569_vm1 = vcmask 64512  }
   0xe   : > { %695 = vmatpush.bf16.msra.mxu2 %v686_v6  ;;  %761 = vmatpush.bf16.msra.mxu3 %v752_v7  ;;  %v951_v9 = vsel %vm582_vm0, %v6015_v8, 0  ;;  %v5997_v10 = vld [vmem:[%s10787_s4 + $0x10] sm:$0xf]  ;;  %v6028_v11 = vld [vmem:[%s10787_s4 + $0x1c] sm:$0xf]  ;;  %s7626_s14 = smul.u32 144, %s10951_s18 }
   0xf   : > { %v818_v12 = vsel %vm582_vm0, %v5997_v10, 0  ;;  %v1018_v13 = vsel %vm582_vm0, %v6028_v11, 0  ;;  %v6002_v14 = vld [vmem:[%s10787_s4 + $0x14] sm:$0xf]  ;;  %v1173_v52 = vld [vmem:[%s10787_s4] sm:$0xf] }
  0x10   : > { %v884_v15 = vsel %vm582_vm0, %v6002_v14, 0  ;;  %s7638_s21 = scalar_lea.vmem %s10784_s1, %s7626_s14  ;;  %s7644_s24 = scalar_lea.vmem %s10783_s0, %s7626_s14  ;;  %v6041_v53 = vld [vmem:[%s10787_s4 + $0x20] sm:$0xf]  ;;  %v6055_v54 = vld [vmem:[%s10787_s4 + $0x8] sm:$0xf]  ;;  %v1248_v55 = vsel %vm582_vm0, %v1173_v52, 0 }
  0x11   : > { %827 = vmatpush.bf16.msrb.mxu0 %v818_v12  ;;  %893 = vmatpush.bf16.msrb.mxu1 %v884_v15  ;;  %v555_v16 = vld [vmem:[%s7638_s21] sm:$0xff]  ;;  %v7648_v17 = vld [vmem:[%s7638_s21 + $0x10] sm:$0xff]  ;;  %s7655_s27 = scalar_lea.vmem %s10785_s2, %s7626_s14  ;;  %v1084_v56 = vsel %vm582_vm0, %v6041_v53, 0  ;;  %v1305_v57 = vsel %vm582_vm0, %v6055_v54, 0  ;;  %s7804_s23 = scalar_lea.vmem %s10786_s3, %s7626_s14 }
  0x12   : > { %960 = vmatpush.bf16.msrb.mxu2 %v951_v9  ;;  %1027 = vmatpush.bf16.msrb.mxu3 %v1018_v13  ;;  %v542_v18 = vld [vmem:[%s7644_s24] sm:$0xff]  ;;  %v7658_v19 = vpack.c.bf16 %v7648_v17, %v555_v16  ;;  %v7661_v20 = vld [vmem:[%s7644_s24 + $0x10] sm:$0xff]  ;;  %s7124_s13 = sshll.u32 %s10951_s18, 6 }
  0x13   : > { %v659_v21 = vld [vmem:[%s7644_s24 + $0x1] sm:$0xff]  ;;  %v7665_v22 = vld [vmem:[%s7644_s24 + $0x11] sm:$0xff]  ;;  %v551_v23 = vpack.c.bf16 %v7661_v20, %v542_v18  ;;  %s9871_s19 = scalar_lea.vmem %s10793_s10, %s7124_s13 }
  0x14   : > { %v7669_v24 = vpack.c.bf16 %v7665_v22, %v659_v21  ;;  %v725_v25 = vld [vmem:[%s7655_s27] sm:$0xff]  ;;  %v726_v26 = vld [vmem:[%s7655_s27 + $0x10] sm:$0xff]  ;;  %5979 = vmatmul.msk.bf16.vlgmr.msra.gmra.mxu0 %vm569_vm1, %v7658_v19 }
  0x15   : > { %v7675_v27 = vpack.c.bf16 %v726_v26, %v725_v25  ;;  %5983 = vmatmul.msk.bf16.vlgmr.msra.gmra.mxu1 %vm569_vm1, %v551_v23  ;;  %v7683_v28 = vld [vmem:[%s7638_s21 + $0x20] sm:$0xff]  ;;  %v7686_v29 = vld [vmem:[%s7638_s21 + $0x30] sm:$0xff]  ;;  %1093 = vmatpush.bf16.msra.mxu0 %v1084_v56 }
  0x16   : > { %5988 = vmatmul.msk.bf16.vlgmr.msra.gmra.mxu2 %vm569_vm1, %v7669_v24  ;;  %v7689_v30 = vld [vmem:[%s7644_s24 + $0x20] sm:$0xff]  ;;  %v7692_v31 = vld [vmem:[%s7644_s24 + $0x30] sm:$0xff]  ;;  %v7704_v36 = vpack.c.bf16 %v7686_v29, %v7683_v28  ;;  %v7818_v15 = vpack.c.bf16 %v7683_v28, %v7648_v17 }
  0x17   : > { %5993 = vmatmul.msk.bf16.vlgmr.msra.gmra.mxu3 %vm569_vm1, %v7675_v27  ;;  %v7695_v32 = vld [vmem:[%s7644_s24 + $0x21] sm:$0xff]  ;;  %v7698_v33 = vld [vmem:[%s7644_s24 + $0x31] sm:$0xff]  ;;  %v552_v37 = vpack.c.bf16 %v7692_v31, %v7689_v30  ;;  %1257 = vmatpush.bf16.msra.mxu2 %v1248_v55  ;;  %v934_v14 = vpack.c.bf16 %v7689_v30, %v7661_v20 }
  0x18   : > { %v727_v34 = vld [vmem:[%s7655_s27 + $0x20] sm:$0xff]  ;;  %v728_v35 = vld [vmem:[%s7655_s27 + $0x30] sm:$0xff]  ;;  %v7710_v38 = vpack.c.bf16 %v7698_v33, %v7695_v32  ;;  %1314 = vmatpush.bf16.msra.mxu3 %v1305_v57 }
  0x19   : > { %v736_v39 = vpack.c.bf16 %v728_v35, %v727_v34  ;;  %v7719_v40 = vld [vmem:[%s7638_s21 + $0x40] sm:$0xff]  ;;  %v7722_v41 = vld [vmem:[%s7638_s21 + $0x50] sm:$0xff] }
  0x1a   : > { %v7725_v42 = vld [vmem:[%s7644_s24 + $0x40] sm:$0xff]  ;;  %v7728_v43 = vld [vmem:[%s7644_s24 + $0x50] sm:$0xff]  ;;  %v7740_v48 = vpack.c.bf16 %v7722_v41, %v7719_v40  ;;  %v7839_v26 = vpack.c.bf16 %v7719_v40, %v7686_v29 }
  0x1b   : > { %v7731_v44 = vld [vmem:[%s7644_s24 + $0x41] sm:$0xff]  ;;  %v7734_v45 = vld [vmem:[%s7644_s24 + $0x51] sm:$0xff]  ;;  %v553_v49 = vpack.c.bf16 %v7728_v43, %v7725_v42  ;;  %v935_v25 = vpack.c.bf16 %v7725_v42, %v7692_v31 }
  0x1c   : > { %v729_v46 = vld [vmem:[%s7655_s27 + $0x40] sm:$0xff]  ;;  %v730_v47 = vld [vmem:[%s7655_s27 + $0x50] sm:$0xff]  ;;  %v7746_v50 = vpack.c.bf16 %v7734_v45, %v7731_v44  ;;  %v6083_v42 = vld [vmem:[%s10787_s4 + $0x18] sm:$0xf] }
  0x1d   : > { %v737_v51 = vpack.c.bf16 %v730_v47, %v729_v46  ;;  %v6046_v58 = vld [vmem:[%s10787_s4 + $0x4] sm:$0xf]  ;;  %v7772_v61 = vld [vmem:[%s7638_s21 + $0x70] sm:$0xff]  ;;  %v1565_v47 = vsel %vm582_vm0, %v6083_v42, 0 }
  0x1e   : > { %v1204_v59 = vsel %vm582_vm0, %v6046_v58, 0  ;;  %v561_v60 = vld [vmem:[%s7638_s21 + $0x60] sm:$0xff]  ;;  %v7776_v63 = vld [vmem:[%s7644_s24 + $0x70] sm:$0xff] }
  0x1f   : > { %1213 = vmatpush.bf16.msra.mxu1 %v1204_v59  ;;  %v548_v62 = vld [vmem:[%s7644_s24 + $0x60] sm:$0xff]  ;;  %v7782_v1 = vld [vmem:[%s7644_s24 + $0x71] sm:$0xff]  ;;  %v7787_v4 = vpack.c.bf16 %v7772_v61, %v561_v60 }
  0x20   : > { %v7779_v0 = vld [vmem:[%s7644_s24 + $0x61] sm:$0xff]  ;;  %v732_v3 = vld [vmem:[%s7655_s27 + $0x70] sm:$0xff]  ;;  %v554_v5 = vpack.c.bf16 %v7776_v63, %v548_v62  ;;  %v936_v29 = vpack.c.bf16 %v548_v62, %v7728_v43 }
  0x21   : > { %v731_v2 = vld [vmem:[%s7655_s27 + $0x60] sm:$0xff]  ;;  %v7792_v6 = vpack.c.bf16 %v7782_v1, %v7779_v0  ;;  %v792_v9 = vld [vmem:[%s7804_s23 + $0x10] sm:$0xff] }
  0x22   : > { %v738_v7 = vpack.c.bf16 %v732_v3, %v731_v2  ;;  %v791_v8 = vld [vmem:[%s7804_s23] sm:$0xff]  ;;  %v858_v11 = vld [vmem:[%s7655_s27 + $0x11] sm:$0xff] }
  0x23   : > { %v857_v10 = vld [vmem:[%s7655_s27 + $0x1] sm:$0xff]  ;;  %v7810_v12 = vpack.c.bf16 %v792_v9, %v791_v8  ;;  %v794_v18 = vld [vmem:[%s7804_s23 + $0x30] sm:$0xff] }
  0x24   : > { %5980 = vmatmul.msk.bf16.gmra.mxu0 %vm569_vm1, %v7704_v36  ;;  %v7812_v13 = vpack.c.bf16 %v858_v11, %v857_v10  ;;  %v793_v16 = vld [vmem:[%s7804_s23 + $0x20] sm:$0xff]  ;;  %v860_v17 = vld [vmem:[%s7655_s27 + $0x31] sm:$0xff] }
  0x25   : > { %5984 = vmatmul.msk.bf16.gmra.mxu1 %vm569_vm1, %v552_v37  ;;  %v859_v20 = vld [vmem:[%s7655_s27 + $0x21] sm:$0xff]  ;;  %v7831_v21 = vpack.c.bf16 %v794_v18, %v793_v16  ;;  %v796_v30 = vld [vmem:[%s7804_s23 + $0x50] sm:$0xff] }
  0x26   : > { %5989 = vmatmul.msk.bf16.gmra.mxu2 %vm569_vm1, %v7710_v38  ;;  %v7833_v23 = vpack.c.bf16 %v860_v17, %v859_v20  ;;  %v795_v28 = vld [vmem:[%s7804_s23 + $0x40] sm:$0xff]  ;;  %v862_v35 = vld [vmem:[%s7655_s27 + $0x51] sm:$0xff] }
  0x27   : > { %5994 = vmatmul.msk.bf16.gmra.mxu3 %vm569_vm1, %v736_v39  ;;  %v861_v34 = vld [vmem:[%s7655_s27 + $0x41] sm:$0xff]  ;;  %v7852_v31 = vpack.c.bf16 %v796_v30, %v795_v28  ;;  %v7858_v39 = vpack.c.bf16 %v561_v60, %v7722_v41  ;;  %v6070_v40 = vld [vmem:[%s10787_s4 + $0x14] sm:$0xf]  ;;  %v6060_v41 = vld [vmem:[%s10787_s4 + $0xc] sm:$0xf] }
  0x28   : > { %v7854_v37 = vpack.c.bf16 %v862_v35, %v861_v34  ;;  %v1500_v43 = vsel %vm582_vm0, %v6070_v40, 0  ;;  %v1370_v46 = vsel %vm582_vm0, %v6060_v41, 0  ;;  %v797_v52 = vld [vmem:[%s7804_s23 + $0x60] sm:$0xff]  ;;  %v798_v53 = vld [vmem:[%s7804_s23 + $0x70] sm:$0xff] }
  0x29   : > { %v863_v54 = vld [vmem:[%s7655_s27 + $0x61] sm:$0xff]  ;;  %v864_v55 = vld [vmem:[%s7655_s27 + $0x71] sm:$0xff]  ;;  %v7889_v58 = vpack.c.bf16 %v798_v53, %v797_v52 }
  0x2a   : > { %v6014_v56 = vld [vmem:[%s7644_s24 + $0x80] sm:$0xff]  ;;  %v7891_v59 = vpack.c.bf16 %v864_v55, %v863_v54  ;;  %v7906_v3 = vld [vmem:[%s7638_s21 + $0x11] sm:$0xff] }
  0x2b   : > { %v6027_v57 = vld [vmem:[%s7638_s21 + $0x80] sm:$0xff]  ;;  %v937_v60 = vpack.c.bf16 %v6014_v56, %v7776_v63  ;;  %v7910_v63 = vpack.c.bf16 %v7695_v32, %v7665_v22  ;;  %v7926_v20 = vld [vmem:[%s7638_s21 + $0x31] sm:$0xff] }
  0x2c   : > { %v7895_v62 = vpack.c.bf16 %v6027_v57, %v7772_v61  ;;  %v1279_v2 = vld [vmem:[%s7638_s21 + $0x1] sm:$0xff] }
  0x2d   : > { %v7923_v18 = vld [vmem:[%s7638_s21 + $0x21] sm:$0xff] }
  0x2e   : > { %v1289_v34 = vpack.c.bf16 %v7926_v20, %v7923_v18 }
  0x34   : > { %5981 = vmatmul.msk.bf16.gmra.mxu0 %vm569_vm1, %v7740_v48 }
  0x35   : > { %5985 = vmatmul.msk.bf16.gmra.mxu1 %vm569_vm1, %v553_v49  ;;  %v6065_v49 = vld [vmem:[%s10787_s4 + $0x10] sm:$0xf] }
  0x36   : > { %5990 = vmatmul.msk.bf16.gmra.mxu2 %vm569_vm1, %v7746_v50 }
  0x37   : > { %5995 = vmatmul.msk.bf16.gmra.mxu3 %vm569_vm1, %v737_v51  ;;  %v1435_v51 = vsel %vm582_vm0, %v6065_v49, 0  ;;  %v7943_v49 = vld [vmem:[%s7638_s21 + $0x41] sm:$0xff] }
  0x44   : > { %5982 = vmatmul.msk.bf16.gmra.mxu0 %vm569_vm1, %v7787_v4 }
  0x45   : > { %5986 = vmatmul.msk.bf16.gmra.mxu1 %vm569_vm1, %v554_v5 }
  0x46   : > { %5991 = vmatmul.msk.bf16.gmra.mxu2 %vm569_vm1, %v7792_v6 }
  0x47   : > { %5996 = vmatmul.msk.bf16.gmra.mxu3 %vm569_vm1, %v738_v7  ;;  %v1288_v7 = vpack.c.bf16 %v7906_v3, %v1279_v2  ;;  %v1783_v2 = vld [vmem:[%s10787_s4] sm:$0xf] }
  0x54   : > { %5998 = vmatmul.msk.bf16.vlgmr.msrb.gmra.mxu0 %vm569_vm1, %v7810_v12 }
  0x55   : > { %6003 = vmatmul.msk.bf16.vlgmr.msrb.gmra.mxu1 %vm569_vm1, %v7812_v13  ;;  %1379 = vmatpush.bf16.msrb.mxu0 %v1370_v46 }
  0x56   : > { %6016 = vmatmul.msk.bf16.vlgmr.msrb.gmra.mxu2 %vm569_vm1, %v934_v14  ;;  %1444 = vmatpush.bf16.msrb.mxu1 %v1435_v51  ;;  %v7946_v51 = vld [vmem:[%s7638_s21 + $0x51] sm:$0xff] }
  0x57   : > { %6029 = vmatmul.msk.bf16.vlgmr.msrb.gmra.mxu3 %vm569_vm1, %v7818_v15  ;;  %1509 = vmatpush.bf16.msrb.mxu2 %v1500_v43  ;;  %v1290_v56 = vpack.c.bf16 %v7946_v51, %v7943_v49 }
  0x58   : > { %1574 = vmatpush.bf16.msrb.mxu3 %v1565_v47 }
  0x64   : > { %5999 = vmatmul.msk.bf16.gmra.mxu0 %vm569_vm1, %v7831_v21 }
  0x65   : > { %6004 = vmatmul.msk.bf16.gmra.mxu1 %vm569_vm1, %v7833_v23 }
  0x66   : > { %6017 = vmatmul.msk.bf16.gmra.mxu2 %vm569_vm1, %v935_v25 }
  0x67   : > { %6030 = vmatmul.msk.bf16.gmra.mxu3 %vm569_vm1, %v7839_v26 }
  0x74   : > { %6000 = vmatmul.msk.bf16.gmra.mxu0 %vm569_vm1, %v7852_v31 }
  0x75   : > { %6005 = vmatmul.msk.bf16.gmra.mxu1 %vm569_vm1, %v7854_v37 }
  0x76   : > { %6018 = vmatmul.msk.bf16.gmra.mxu2 %vm569_vm1, %v936_v29 }
  0x77   : > { %6031 = vmatmul.msk.bf16.gmra.mxu3 %vm569_vm1, %v7858_v39 }
  0x84   : > { %6001 = vmatmul.msk.bf16.gmra.mxu0 %vm569_vm1, %v7889_v58 }
  0x85   : > { %6006 = vmatmul.msk.bf16.gmra.mxu1 %vm569_vm1, %v7891_v59 }
  0x86   : > { %6019 = vmatmul.msk.bf16.gmra.mxu2 %vm569_vm1, %v937_v60 }
  0x87   : > { %6032 = vmatmul.msk.bf16.gmra.mxu3 %vm569_vm1, %v7895_v62 }
  0x91   : > { %v595_v61 = vpop.f32.mrf.mxu0 }
  0x92   : > { %v639_v5 = vpop.f32.mrf.mxu1 }
  0x93   : > { %v640_v8 = vadd.f32 %v639_v5, %v595_v61 }
  0x94   : > { %6042 = vmatmul.msk.bf16.vlgmr.msra.gmra.mxu0 %vm569_vm1, %v7910_v63 }
  0x95   : > { %6047 = vmatmul.msk.bf16.vlgmr.msra.gmra.mxu1 %vm569_vm1, %v7669_v24  ;;  %v1068_v24 = vpack.c.bf16 %v7731_v44, %v7698_v33 }
  0x96   : > { %6051 = vmatmul.msk.bf16.vlgmr.msra.gmra.mxu2 %vm569_vm1, %v7658_v19 }
  0x97   : > { %6056 = vmatmul.msk.bf16.vlgmr.msra.gmra.mxu3 %vm569_vm1, %v1288_v7 }
  0x99   : > { %v697_v22 = vpop.f32.mrf.mxu2  ;;  %v597_v10 = vpop.f32.mrf.mxu0 }
  0x9a   : > { %v717_v32 = vadd.f32 %v697_v22, %v640_v8  ;;  %v763_v9 = vpop.f32.mrf.mxu3  ;;  %v641_v11 = vpop.f32.mrf.mxu1 }
  0x9b   : > { %v642_v16 = vadd.f32 %v641_v11, %v597_v10  ;;  %v6109_v11 = vld [vmem:[%s10787_s4 + $0x20] sm:$0xf] }
  0x9c   : > { %v7920_v14 = vadd.f32 %v763_v9, %v717_v32 }
  0xa1   : > { %v699_v17 = vpop.f32.mrf.mxu2  ;;  %v600_v28 = vpop.f32.mrf.mxu0 }
  0xa2   : > { %v718_v25 = vadd.f32 %v699_v17, %v642_v16  ;;  %v765_v19 = vpop.f32.mrf.mxu3  ;;  %v644_v30 = vpop.f32.mrf.mxu1  ;;  %v1695_v16 = vsel %vm582_vm0, %v6109_v11, 0  ;;  %v7979_v17 = vld [vmem:[%s7644_s24 + $0x81] sm:$0xff] }
  0xa3   : > { %v645_v29 = vadd.f32 %v644_v30, %v600_v28  ;;  %1704 = vmatpush.bf16.msra.mxu1 %v1695_v16  ;;  %v1070_v28 = vpack.c.bf16 %v7979_v17, %v7782_v1 }
  0xa4   : > { %v7932_v35 = vadd.f32 %v765_v19, %v718_v25  ;;  %6043 = vmatmul.msk.bf16.gmra.mxu0 %vm569_vm1, %v1068_v24  ;;  %v7982_v24 = vld [vmem:[%s7638_s21 + $0x61] sm:$0xff]  ;;  %v7985_v25 = vld [vmem:[%s7638_s21 + $0x71] sm:$0xff] }
  0xa5   : > { %6048 = vmatmul.msk.bf16.gmra.mxu1 %vm569_vm1, %v7710_v38  ;;  %v1069_v38 = vpack.c.bf16 %v7779_v0, %v7734_v45  ;;  %v6114_v45 = vld [vmem:[%s10787_s4 + $0x4] sm:$0xf]  ;;  %v6096_v0 = vld [vmem:[%s10787_s4 + $0x1c] sm:$0xf] }
  0xa6   : > { %6052 = vmatmul.msk.bf16.gmra.mxu2 %vm569_vm1, %v7704_v36  ;;  %v1630_v61 = vsel %vm582_vm0, %v6096_v0, 0 }
  0xa7   : > { %6057 = vmatmul.msk.bf16.gmra.mxu3 %vm569_vm1, %v1289_v34  ;;  %1639 = vmatpush.bf16.msra.mxu0 %v1630_v61 }
  0xa9   : > { %v702_v33 = vpop.f32.mrf.mxu2  ;;  %v602_v42 = vpop.f32.mrf.mxu0 }
  0xaa   : > { %v719_v40 = vadd.f32 %v702_v33, %v645_v29  ;;  %v768_v41 = vpop.f32.mrf.mxu3  ;;  %v646_v43 = vpop.f32.mrf.mxu1 }
  0xab   : > { %v647_v47 = vadd.f32 %v646_v43, %v602_v42 }
  0xac   : > { %v7940_v46 = vadd.f32 %v768_v41, %v719_v40  ;;  %v1291_v40 = vpack.c.bf16 %v7985_v25, %v7982_v24 }
  0xb1   : > { %v704_v52 = vpop.f32.mrf.mxu2  ;;  %v605_v54 = vpop.f32.mrf.mxu0 }
  0xb2   : > { %v720_v53 = vadd.f32 %v704_v52, %v647_v47  ;;  %v770_v36 = vpop.f32.mrf.mxu3  ;;  %v649_v55 = vpop.f32.mrf.mxu1 }
  0xb3   : > { %v650_v60 = vadd.f32 %v649_v55, %v605_v54  ;;  %v1474_v54 = vld [vmem:[%s7804_s23 + $0x1] sm:$0xff]  ;;  %v1475_v55 = vld [vmem:[%s7804_s23 + $0x11] sm:$0xff] }
  0xb4   : > { %v7952_v57 = vadd.f32 %v770_v36, %v720_v53  ;;  %6044 = vmatmul.msk.bf16.gmra.mxu0 %vm569_vm1, %v1069_v38 }
  0xb5   : > { %6049 = vmatmul.msk.bf16.gmra.mxu1 %vm569_vm1, %v7746_v50  ;;  %v1814_v50 = vsel %vm582_vm0, %v6114_v45, 0 }
  0xb6   : > { %6053 = vmatmul.msk.bf16.gmra.mxu2 %vm569_vm1, %v7740_v48  ;;  %v1858_v48 = vsel %vm582_vm0, %v1783_v2, 0 }
  0xb7   : > { %6058 = vmatmul.msk.bf16.gmra.mxu3 %vm569_vm1, %v1290_v56  ;;  %1823 = vmatpush.bf16.msra.mxu2 %v1814_v50 }
  0xb8   : > { %1867 = vmatpush.bf16.msra.mxu3 %v1858_v48 }
  0xb9   : > { %v707_v5 = vpop.f32.mrf.mxu2  ;;  %v607_v22 = vpop.f32.mrf.mxu0 }
  0xba   : > { %v721_v7 = vadd.f32 %v707_v5, %v650_v60  ;;  %v773_v8 = vpop.f32.mrf.mxu3  ;;  %v651_v32 = vpop.f32.mrf.mxu1 }
  0xbb   : > { %v652_v10 = vadd.f32 %v651_v32, %v607_v22  ;;  %v1476_v22 = vld [vmem:[%s7804_s23 + $0x21] sm:$0xff]  ;;  %v1477_v32 = vld [vmem:[%s7804_s23 + $0x31] sm:$0xff] }
  0xbc   : > { %v7972_v9 = vadd.f32 %v773_v8, %v721_v7 }
  0xc1   : > { %v709_v19 = vpop.f32.mrf.mxu2  ;;  %v610_v29 = vpop.f32.mrf.mxu0 }
  0xc2   : > { %v722_v30 = vadd.f32 %v709_v19, %v652_v10  ;;  %v775_v34 = vpop.f32.mrf.mxu3  ;;  %v654_v33 = vpop.f32.mrf.mxu1  ;;  %v1484_v19 = vpack.c.bf16 %v1477_v32, %v1476_v22 }
  0xc3   : > { %v655_v42 = vadd.f32 %v654_v33, %v610_v29 }
  0xc4   : > { %v7991_v41 = vadd.f32 %v775_v34, %v722_v30  ;;  %6045 = vmatmul.msk.bf16.gmra.mxu0 %vm569_vm1, %v1070_v28 }
  0xc5   : > { %6050 = vmatmul.msk.bf16.gmra.mxu1 %vm569_vm1, %v7792_v6 }
  0xc6   : > { %6054 = vmatmul.msk.bf16.gmra.mxu2 %vm569_vm1, %v7787_v4  ;;  %v1483_v4 = vpack.c.bf16 %v1475_v55, %v1474_v54 }
  0xc7   : > { %6059 = vmatmul.msk.bf16.gmra.mxu3 %vm569_vm1, %v1291_v40 }
  0xc9   : > { %v712_v1 = vpop.f32.mrf.mxu2  ;;  %v612_v52 = vpop.f32.mrf.mxu0 }
  0xca   : > { %v723_v43 = vadd.f32 %v712_v1, %v655_v42  ;;  %v778_v47 = vpop.f32.mrf.mxu3  ;;  %v656_v38 = vpop.f32.mrf.mxu1 }
  0xcb   : > { %v657_v36 = vadd.f32 %v656_v38, %v612_v52  ;;  %v1479_v52 = vld [vmem:[%s7804_s23 + $0x51] sm:$0xff] }
  0xcc   : > { %v7999_v53 = vadd.f32 %v778_v47, %v723_v43  ;;  %v1478_v47 = vld [vmem:[%s7804_s23 + $0x41] sm:$0xff] }
  0xcd   : > { %v1485_v55 = vpack.c.bf16 %v1479_v52, %v1478_v47 }
  0xd1   : > { %v714_v56 = vpop.f32.mrf.mxu2  ;;  %v8003_v6 = vpop.f32.mrf.mxu0 }
  0xd2   : > { %v724_v60 = vadd.f32 %v714_v56, %v657_v36  ;;  %v780_v45 = vpop.f32.mrf.mxu3  ;;  %v8005_v0 = vpop.f32.mrf.mxu1 }
  0xd4   : > { %v8007_v2 = vadd.f32 %v780_v45, %v724_v60  ;;  %6061 = vmatmul.msk.bf16.vlgmr.msrb.gmra.mxu0 %vm569_vm1, %v7810_v12 }
  0xd5   : > { %6066 = vmatmul.msk.bf16.vlgmr.msrb.gmra.mxu1 %vm569_vm1, %v7812_v13 }
  0xd6   : > { %6071 = vmatmul.msk.bf16.vlgmr.msrb.gmra.mxu2 %vm569_vm1, %v1483_v4 }
  0xd7   : > { %6084 = vmatmul.msk.bf16.vlgmr.msrb.gmra.mxu3 %vm569_vm1, %v7818_v15 }
  0xd9   : > { %v8016_v50 = vpop.f32.mrf.mxu2  ;;  %v831_v48 = vpop.f32.mrf.mxu0 }
  0xda   : > { %v8018_v61 = vpop.f32.mrf.mxu3  ;;  %v850_v5 = vadd.f32 %v831_v48, %v7932_v35  ;;  %v897_v7 = vpop.f32.mrf.mxu1 }
  0xdc   : > { %v916_v8 = vadd.f32 %v897_v7, %v850_v5 }
  0xe1   : > { %v964_v10 = vpop.f32.mrf.mxu2  ;;  %v834_v13 = vpop.f32.mrf.mxu0 }
  0xe2   : > { %v983_v11 = vadd.f32 %v964_v10, %v916_v8  ;;  %v1031_v16 = vpop.f32.mrf.mxu3  ;;  %v851_v28 = vadd.f32 %v834_v13, %v7940_v46  ;;  %v900_v15 = vpop.f32.mrf.mxu1  ;;  %v849_v10 = vadd.f32 %v8003_v6, %v7920_v14 }
  0xe4   : > { %v8024_v30 = vadd.f32 %v1031_v16, %v983_v11  ;;  %v917_v34 = vadd.f32 %v900_v15, %v851_v28  ;;  %6062 = vmatmul.msk.bf16.gmra.mxu0 %vm569_vm1, %v7831_v21  ;;  %v915_v13 = vadd.f32 %v8005_v0, %v849_v10  ;;  %v8119_v0 = vld [vmem:[%s10790_s7] ss:$0 sm:$0xff]  ;;  %v1678_v15 = vpack.c.bf16 %v7923_v18, %v7906_v3  ;;  %v8173_v10 = vld [vmem:[%s7655_s27 + $0x30] sm:$0xff] }
  0xe5   : > { %6067 = vmatmul.msk.bf16.gmra.mxu1 %vm569_vm1, %v7833_v23 }
  0xe6   : > { %6072 = vmatmul.msk.bf16.gmra.mxu2 %vm569_vm1, %v1484_v19 }
  0xe7   : > { %6085 = vmatmul.msk.bf16.gmra.mxu3 %vm569_vm1, %v7839_v26 }
  0xe9   : > { %v967_v35 = vpop.f32.mrf.mxu2  ;;  %v836_v33 = vpop.f32.mrf.mxu0 }
  0xea   : > { %v984_v29 = vadd.f32 %v967_v35, %v917_v34  ;;  %v1034_v46 = vpop.f32.mrf.mxu3  ;;  %v852_v40 = vadd.f32 %v836_v33, %v7952_v57  ;;  %v902_v42 = vpop.f32.mrf.mxu1  ;;  %v7527_v57 = vmov 0.0  }
  0xeb   : > { %470 = vst [vmem:[#allocation2] sm:$0xff] %v7527_v57 }
  0xec   : > { %v8034_v1 = vadd.f32 %v1034_v46, %v984_v29  ;;  %v918_v43 = vadd.f32 %v902_v42, %v852_v40  ;;  %472 = vst [vmem:[#allocation2 + $0x10] sm:$0xff] %v7527_v57 }
  0xed   : > { %473 = vst [vmem:[#allocation2 + $0x18] sm:$0x1] %v7527_v57 }
  0xee   : > { %474 = vst [vmem:[#allocation2 + $0x20] sm:$0xff] %v7527_v57 }
  0xef   : > { %475 = vst [vmem:[#allocation2 + $0x28] sm:$0x1] %v7527_v57 }
  0xf0   : > { %476 = vst [vmem:[#allocation2 + $0x30] sm:$0xff] %v7527_v57 }
  0xf1   : > { %v969_v38 = vpop.f32.mrf.mxu2  ;;  %v8038_v54 = vpop.f32.mrf.mxu0  ;;  %477 = vst [vmem:[#allocation2 + $0x38] sm:$0x1] %v7527_v57 }
  0xf2   : > { %v985_v36 = vadd.f32 %v969_v38, %v918_v43  ;;  %v1036_v23 = vpop.f32.mrf.mxu3  ;;  %v8040_v56 = vpop.f32.mrf.mxu1  ;;  %478 = vst [vmem:[#allocation2 + $0x40] sm:$0xff] %v7527_v57  ;;  %v6123_v43 = vld [vmem:[%s10787_s4 + $0x8] sm:$0xf] }
  0xf3   : > { %479 = vst [vmem:[#allocation2 + $0x48] sm:$0x1] %v7527_v57  ;;  %v1915_v38 = vsel %vm582_vm0, %v6123_v43, 0 }
  0xf4   : > { %v8042_v26 = vadd.f32 %v1036_v23, %v985_v36  ;;  %6063 = vmatmul.msk.bf16.gmra.mxu0 %vm569_vm1, %v7852_v31  ;;  %480 = vst [vmem:[#allocation2 + $0x50] sm:$0xff] %v7527_v57  ;;  %v8162_v36 = vld [vmem:[%s7644_s24 + $0x31] sm:$0xff] }
  0xf5   : > { %6068 = vmatmul.msk.bf16.gmra.mxu1 %vm569_vm1, %v7854_v37  ;;  %v1480_v37 = vld [vmem:[%s7804_s23 + $0x61] sm:$0xff]  ;;  %481 = vst [vmem:[#allocation2 + $0x58] sm:$0x1] %v7527_v57  ;;  %1924 = vmatpush.bf16.msrb.mxu0 %v1915_v38 }
  0xf6   : > { %6073 = vmatmul.msk.bf16.gmra.mxu2 %vm569_vm1, %v1485_v55  ;;  %482 = vst [vmem:[#allocation2 + $0x60] sm:$0xff] %v7527_v57  ;;  %v6136_v55 = vld [vmem:[%s10787_s4 + $0xc] sm:$0xf] }
  0xf7   : > { %6086 = vmatmul.msk.bf16.gmra.mxu3 %vm569_vm1, %v7858_v39  ;;  %v1481_v39 = vld [vmem:[%s7804_s23 + $0x71] sm:$0xff]  ;;  %483 = vst [vmem:[#allocation2 + $0x68] sm:$0x1] %v7527_v57 }
  0xf8   : > { %v1486_v22 = vpack.c.bf16 %v1481_v39, %v1480_v37  ;;  %484 = vst [vmem:[#allocation2 + $0x70] sm:$0xff] %v7527_v57  ;;  %v1980_v37 = vsel %vm582_vm0, %v6136_v55, 0 }
  0xf9   : > { %v8054_v60 = vpop.f32.mrf.mxu2  ;;  %v8058_v4 = vpop.f32.mrf.mxu0  ;;  %485 = vst [vmem:[#allocation2 + $0x78] sm:$0x1] %v7527_v57  ;;  %1989 = vmatpush.bf16.msrb.mxu1 %v1980_v37 }
  0xfa   : > { %v8056_v45 = vpop.f32.mrf.mxu3  ;;  %v8060_v48 = vpop.f32.mrf.mxu1  ;;  %486 = vst [vmem:[#allocation2 + $0x80] sm:$0xff] %v7527_v57 }
  0xfb   : > { %487 = vst [vmem:[#allocation2 + $0x88] sm:$0x1] %v7527_v57 }
  0xfc   : > { %490 = vst [vmem:[#allocation2 + $0xa0] sm:$0xff] %v7527_v57 }
  0xfd   : > { %491 = vst [vmem:[#allocation2 + $0xa8] sm:$0x1] %v7527_v57 }
  0xfe   : > { %492 = vst [vmem:[#allocation2 + $0xb0] sm:$0xff] %v7527_v57 }
  0xff   : > { %493 = vst [vmem:[#allocation2 + $0xb8] sm:$0x1] %v7527_v57 }
 0x100   : > { %494 = vst [vmem:[#allocation2 + $0xc0] sm:$0xff] %v7527_v57 }
 0x101   : > { %v8070_v5 = vpop.f32.mrf.mxu2  ;;  %v8075_v8 = vpop.f32.mrf.mxu0  ;;  %495 = vst [vmem:[#allocation2 + $0xc8] sm:$0x1] %v7527_v57 }
 0x102   : > { %v8073_v7 = vpop.f32.mrf.mxu3  ;;  %v8078_v32 = vpop.f32.mrf.mxu1  ;;  %496 = vst [vmem:[#allocation2 + $0xd0] sm:$0xff] %v7527_v57 }
 0x103   : > { %497 = vst [vmem:[#allocation2 + $0xd8] sm:$0x1] %v7527_v57 }
 0x104   : > { %6064 = vmatmul.msk.bf16.gmra.mxu0 %vm569_vm1, %v7889_v58  ;;  %498 = vst [vmem:[#allocation2 + $0xe0] sm:$0xff] %v7527_v57 }
 0x105   : > { %6069 = vmatmul.msk.bf16.gmra.mxu1 %vm569_vm1, %v7891_v59  ;;  %499 = vst [vmem:[#allocation2 + $0xe8] sm:$0x1] %v7527_v57 }
 0x106   : > { %6074 = vmatmul.msk.bf16.gmra.mxu2 %vm569_vm1, %v1486_v22  ;;  %500 = vst [vmem:[#allocation2 + $0xf0] sm:$0xff] %v7527_v57  ;;  %v8170_v22 = vld [vmem:[%s7655_s27 + $0x20] sm:$0xff] }
 0x107   : > { %6087 = vmatmul.msk.bf16.gmra.mxu3 %vm569_vm1, %v7895_v62  ;;  %v982_v62 = vadd.f32 %v8016_v50, %v915_v13  ;;  %501 = vst [vmem:[#allocation2 + $0xf8] sm:$0x1] %v7527_v57 }
 0x108   : > { %502 = vst [vmem:[#allocation2 + $0x100] sm:$0xff] %v7527_v57 }
 0x109   : > { %v8095_v11 = vpop.f32.mrf.mxu2  ;;  %v8100_v59 = vpop.f32.mrf.mxu0  ;;  %v1049_v6 = vadd.f32 %v8018_v61, %v982_v62  ;;  %503 = vst [vmem:[#allocation2 + $0x108] sm:$0x1] %v7527_v57  ;;  %v1614_v62 = vpack.c.bf16 %v7731_v44, %v8162_v36  ;;  %v853_v44 = vadd.f32 %v8038_v54, %v7972_v9 }
 0x10a   : > { %v8098_v16 = vpop.f32.mrf.mxu3  ;;  %v8104_v14 = vpop.f32.mrf.mxu1  ;;  %504 = vst [vmem:[#allocation2 + $0x110] sm:$0xff] %v7527_v57 }
 0x10b   : > { %505 = vst [vmem:[#allocation2 + $0x118] sm:$0x1] %v7527_v57 }
 0x10c   : > { %506 = vst [vmem:[#allocation2 + $0x120] sm:$0xff] %v7527_v57 }
 0x10d   : > { %507 = vst [vmem:[#allocation2 + $0x128] sm:$0x1] %v7527_v57 }
 0x10e   : > { %524 = vst [vmem:[#allocation2 + $0x1b0] sm:$0xff] %v7527_v57 }
 0x10f   : > { %525 = vst [vmem:[#allocation2 + $0x1b8] sm:$0x1] %v7527_v57 }
 0x110   : > { %526 = vst [vmem:[#allocation2 + $0x1c0] sm:$0xff] %v7527_v57 }
 0x111   : > { %v8114_v19 = vpop.f32.mrf.mxu2  ;;  %v1095_v28 = vpop.f32.mrf.mxu0  ;;  %528 = vst [vmem:[#allocation2 + $0x1d0] sm:$0xff] %v7527_v57 }
 0x112   : > { %v8122_v50 = vpop.f32.mrf.mxu3  ;;  %v1115_v34 = vadd.f32 %v1095_v28, %v1049_v6  ;;  %v1215_v61 = vpop.f32.mrf.mxu1  ;;  %530 = vst [vmem:[#allocation2 + $0x1e0] sm:$0xff] %v7527_v57 }
 0x113   : > { %532 = vst [vmem:[#allocation2 + $0x1f0] sm:$0xff] %v7527_v57 }
 0x114   : > { %v1124_v35 = vadd.f32 %v8119_v0, %v1115_v34  ;;  %6097 = vmatmul.msk.bf16.vlgmr.msra.gmra.mxu0 %vm569_vm1, %v7910_v63  ;;  %534 = vst [vmem:[#allocation2 + $0x200] sm:$0xff] %v7527_v57 }
 0x115   : > { %6110 = vmatmul.msk.bf16.vlgmr.msra.gmra.mxu1 %vm569_vm1, %v1678_v15  ;;  %536 = vst [vmem:[#allocation2 + $0x210] sm:$0xff] %v7527_v57 }
 0x116   : > { %6115 = vmatmul.msk.bf16.vlgmr.msra.gmra.mxu2 %vm569_vm1, %v7810_v12  ;;  %vm1132_vm2 = vcmp.gt.f32.partialorder %v1124_v35, 0.0  ;;  %v1140_v3 = vmul.f32 0.1, %v1124_v35  ;;  %538 = vst [vmem:[#allocation2 + $0x220] sm:$0xff] %v7527_v57 }
 0x117   : > { %6119 = vmatmul.msk.bf16.vlgmr.msra.gmra.mxu3 %vm569_vm1, %v7675_v27  ;;  %v6149_v27 = vld [vmem:[%s10787_s4 + $0x10] sm:$0xf]  ;;  %540 = vst [vmem:[#allocation2 + $0x230] sm:$0xff] %v7527_v57  ;;  %v856_v57 = vadd.f32 %v8100_v59, %v8007_v2 }
 0x118   : > { %v8141_v18 = vsel %vm1132_vm2, %v1124_v35, %v1140_v3  ;;  %v2045_v52 = vsel %vm582_vm0, %v6149_v27, 0  ;;  %v2395_v35 = vld [vmem:[%s10787_s4] sm:$0xf] }
 0x119   : > { %10822 = vst [vmem:[#allocation3_spill] sm:$0xff] %v8141_v18  ;;  %v1259_v63 = vpop.f32.mrf.mxu2  ;;  %v1097_v12 = vpop.f32.mrf.mxu0  ;;  %2054 = vmatpush.bf16.msrb.mxu2 %v2045_v52  ;;  %v6093_v52 = vld [vmem:[%s7644_s24 + $0x61] sm:$0xff] }
 0x11a   : > { %1157 = vst [vmem:[#allocation2 + $0x11] sm:$0xff] %v8141_v18  ;;  %v1260_v29 = vadd.f32 %v1259_v63, %v1215_v61  ;;  %v1316_v46 = vpop.f32.mrf.mxu3  ;;  %v1116_v33 = vadd.f32 %v1097_v12, %v8024_v30  ;;  %v1217_v40 = vpop.f32.mrf.mxu1  ;;  %v6162_v30 = vld [vmem:[%s10787_s4 + $0x14] sm:$0xf]  ;;  %v1679_v61 = vpack.c.bf16 %v7943_v49, %v7926_v20  ;;  %v1785_v63 = vpack.c.bf16 %v8173_v10, %v8170_v22  ;;  %v6135_v18 = vld [vmem:[%s7644_s24 + $0x80] sm:$0xff] }
 0x11b   : > { %v2110_v23 = vsel %vm582_vm0, %v6162_v30, 0  ;;  %v8211_v30 = vld [vmem:[%s7655_s27 + $0x40] sm:$0xff] }
 0x11c   : > { %v8147_v42 = vadd.f32 %v1316_v46, %v1260_v29  ;;  %v1125_v47 = vadd.f32 %v8119_v0, %v1116_v33  ;;  %2119 = vmatpush.bf16.msrb.mxu3 %v2110_v23 }
 0x11e   : > { %vm1133_vm3 = vcmp.gt.f32.partialorder %v1125_v47, 0.0  ;;  %v1141_v39 = vmul.f32 0.1, %v1125_v47 }
 0x120   : > { %v8177_v6 = vsel %vm1133_vm3, %v1125_v47, %v1141_v39 }
 0x121   : > { %v1261_v13 = vpop.f32.mrf.mxu2  ;;  %10823 = vst [vmem:[#allocation4_spill] sm:$0xff] %v8177_v6  ;;  %v1100_v34 = vpop.f32.mrf.mxu0 }
 0x122   : > { %v1262_v28 = vadd.f32 %v1261_v13, %v1217_v40  ;;  %v1318_v15 = vpop.f32.mrf.mxu3  ;;  %v1220_v3 = vpop.f32.mrf.mxu1  ;;  %v1117_v46 = vadd.f32 %v1100_v34, %v8034_v1  ;;  %v919_v40 = vadd.f32 %v8040_v56, %v853_v44  ;;  %v6092_v56 = vld [vmem:[%s7644_s24 + $0x51] sm:$0xff]  ;;  %1158 = vst [vmem:[#allocation2 + $0x21] sm:$0xff] %v8177_v6 }
 0x123   : > { %v8221_v13 = vpack.c.bf16 %v6093_v52, %v6092_v56  ;;  %v6147_v6 = vld [vmem:[%s7638_s21 + $0x70] sm:$0xff] }
 0x124   : > { %v8185_v29 = vadd.f32 %v1318_v15, %v1262_v28  ;;  %6098 = vmatmul.msk.bf16.gmra.mxu0 %vm569_vm1, %v1614_v62  ;;  %v1126_v20 = vadd.f32 %v8119_v0, %v1117_v46  ;;  %v986_v9 = vadd.f32 %v8054_v60, %v919_v40  ;;  %v8214_v60 = vld [vmem:[%s7655_s27 + $0x50] sm:$0xff]  ;;  %v1680_v28 = vpack.c.bf16 %v7982_v24, %v7946_v51  ;;  %v6228_v15 = vld [vmem:[%s10787_s4 + $0xc] sm:$0xf] }
 0x125   : > { %6111 = vmatmul.msk.bf16.gmra.mxu1 %vm569_vm1, %v1679_v61  ;;  %10826 = vst [vmem:[#allocation7_spill] sm:$0xff] %v8221_v13  ;;  %v855_v24 = vadd.f32 %v8075_v8, %v7999_v53  ;;  %v6206_v53 = vld [vmem:[%s10787_s4 + $0x4] sm:$0xf] }
 0x126   : > { %6116 = vmatmul.msk.bf16.gmra.mxu2 %vm569_vm1, %v7831_v21  ;;  %v1142_v54 = vmul.f32 0.1, %v1126_v20  ;;  %vm1134_vm4 = vcmp.gt.f32.partialorder %v1126_v20, 0.0  ;;  %v1053_v23 = vadd.f32 %v8056_v45, %v986_v9 }
 0x127   : > { %6120 = vmatmul.msk.bf16.gmra.mxu3 %vm569_vm1, %v1785_v63  ;;  %v921_v40 = vadd.f32 %v8078_v32, %v855_v24 }
 0x128   : > { %v8217_v55 = vsel %vm1134_vm4, %v1126_v20, %v1142_v54  ;;  %v6188_v54 = vld [vmem:[%s10787_s4 + $0x1c] sm:$0xf] }
 0x129   : > { %v1264_v49 = vpop.f32.mrf.mxu2  ;;  %v1102_v1 = vpop.f32.mrf.mxu0  ;;  %10824 = vst [vmem:[#allocation5_spill] sm:$0xff] %v8217_v55  ;;  %v2242_v32 = vsel %vm582_vm0, %v6188_v54, 0  ;;  %v6155_v54 = vld [vmem:[%s7644_s24 + $0x21] sm:$0xff] }
 0x12a   : > { %v1265_v12 = vadd.f32 %v1264_v49, %v1220_v3  ;;  %v1321_v33 = vpop.f32.mrf.mxu3  ;;  %v1118_v27 = vadd.f32 %v1102_v1, %v8042_v26  ;;  %v1222_v43 = vpop.f32.mrf.mxu1  ;;  %v854_v26 = vadd.f32 %v8058_v4, %v7991_v41  ;;  %v1786_v3 = vpack.c.bf16 %v8214_v60, %v8211_v30  ;;  %2251 = vmatpush.bf16.msra.mxu1 %v2242_v32 }
 0x12b   : > { %1159 = vst [vmem:[#allocation2 + $0x31] sm:$0xff] %v8217_v55 }
 0x12c   : > { %v8199_v21 = vadd.f32 %v1321_v33, %v1265_v12  ;;  %v1127_v47 = vadd.f32 %v8119_v0, %v1118_v27  ;;  %v920_v45 = vadd.f32 %v8060_v48, %v854_v26  ;;  %v6201_v48 = vld [vmem:[%s10787_s4 + $0x20] sm:$0xf]  ;;  %v8274_v26 = vld [vmem:[%s7644_s24 + $0x71] sm:$0xff] }
 0x12d   : > { %v1616_v2 = vpack.c.bf16 %v7979_v17, %v8274_v26 }
 0x12e   : > { %vm1135_vm5 = vcmp.gt.f32.partialorder %v1127_v47, 0.0  ;;  %v1143_v38 = vmul.f32 0.1, %v1127_v47  ;;  %v987_v46 = vadd.f32 %v8070_v5, %v920_v45  ;;  %v6175_v5 = vld [vmem:[%s10787_s4 + $0x18] sm:$0xf] }
 0x12f   : > { %v2176_v49 = vsel %vm582_vm0, %v6175_v5, 0 }
 0x130   : > { %v8219_v37 = vsel %vm1135_vm5, %v1127_v47, %v1143_v38  ;;  %v1054_v44 = vadd.f32 %v8073_v7, %v987_v46  ;;  %2185 = vmatpush.bf16.msra.mxu0 %v2176_v49  ;;  %v2426_v7 = vsel %vm582_vm0, %v6206_v53, 0  ;;  %v988_v47 = vadd.f32 %v8095_v11, %v921_v40  ;;  %v8282_v11 = vld [vmem:[%s7655_s27 + $0x60] sm:$0xff]  ;;  %v6141_v40 = vld [vmem:[%s7638_s21 + $0x10] sm:$0xff] }
 0x131   : > { %10825 = vst [vmem:[#allocation6_spill] sm:$0xff] %v8219_v37  ;;  %v1266_v39 = vpop.f32.mrf.mxu2  ;;  %v1105_v62 = vpop.f32.mrf.mxu0  ;;  %2435 = vmatpush.bf16.msra.mxu3 %v2426_v7  ;;  %v6129_v7 = vld [vmem:[%s7644_s24 + $0x20] sm:$0xff] }
 0x132   : > { %v1267_v41 = vadd.f32 %v1266_v39, %v1222_v43  ;;  %v1323_v4 = vpop.f32.mrf.mxu3  ;;  %v1119_v34 = vadd.f32 %v1105_v62, %v1053_v23  ;;  %v1225_v61 = vpop.f32.mrf.mxu1  ;;  %v6108_v23 = vld [vmem:[%s7638_s21 + $0x81] sm:$0xff]  ;;  %1160 = vst [vmem:[#allocation2 + $0x41] sm:$0xff] %v8219_v37  ;;  %v8285_v39 = vld [vmem:[%s7655_s27 + $0x70] sm:$0xff] }
 0x133   : > { %v6215_v37 = vld [vmem:[%s10787_s4 + $0x8] sm:$0xf] }
 0x134   : > { %v8232_v63 = vadd.f32 %v1323_v4, %v1267_v41  ;;  %6099 = vmatmul.msk.bf16.gmra.mxu0 %vm569_vm1, %v8221_v13  ;;  %v1128_v51 = vadd.f32 %v8119_v0, %v1119_v34  ;;  %v1055_v41 = vadd.f32 %v8098_v16, %v988_v47  ;;  %v1681_v34 = vpack.c.bf16 %v6108_v23, %v7985_v25 }
 0x135   : > { %6112 = vmatmul.msk.bf16.gmra.mxu1 %vm569_vm1, %v1680_v28  ;;  %v922_v16 = vadd.f32 %v8104_v14, %v856_v57 }
 0x136   : > { %6117 = vmatmul.msk.bf16.gmra.mxu2 %vm569_vm1, %v7852_v31  ;;  %v2307_v31 = vsel %vm582_vm0, %v6201_v48, 0  ;;  %v1144_v8 = vmul.f32 0.1, %v1128_v51  ;;  %vm1136_vm6 = vcmp.gt.f32.partialorder %v1128_v51, 0.0 }
 0x137   : > { %6121 = vmatmul.msk.bf16.gmra.mxu3 %vm569_vm1, %v1786_v3  ;;  %2316 = vmatpush.bf16.msra.mxu2 %v2307_v31  ;;  %v989_v17 = vadd.f32 %v8114_v19, %v922_v16 }
 0x138   : > { %v8271_v52 = vsel %vm1136_vm6, %v1128_v51, %v1144_v8  ;;  %v1787_v51 = vpack.c.bf16 %v8285_v39, %v8282_v11 }
 0x139   : > { %v1269_v20 = vpop.f32.mrf.mxu2  ;;  %v1107_v1 = vpop.f32.mrf.mxu0  ;;  %10827 = vst [vmem:[#allocation8_spill] sm:$0xff] %v8271_v52  ;;  %v1056_v14 = vadd.f32 %v8122_v50, %v989_v17  ;;  %v1889_v50 = vld [vmem:[%s7655_s27 + $0x1] sm:$0xff]  ;;  %v8363_v17 = vld [vmem:[%s7655_s27 + $0x31] sm:$0xff] }
 0x13a   : > { %v1270_v12 = vadd.f32 %v1269_v20, %v1225_v61  ;;  %v1326_v33 = vpop.f32.mrf.mxu3  ;;  %v1120_v27 = vadd.f32 %v1107_v1, %v1054_v44  ;;  %v1227_v43 = vpop.f32.mrf.mxu1  ;;  %1161 = vst [vmem:[#allocation2 + $0x51] sm:$0xff] %v8271_v52  ;;  %v2592_v52 = vsel %vm582_vm0, %v6228_v15, 0 }
 0x13c   : > { %v8262_v9 = vadd.f32 %v1326_v33, %v1270_v12  ;;  %v1129_v56 = vadd.f32 %v8119_v0, %v1120_v27  ;;  %v8318_v12 = vld [vmem:[%s7655_s27 + $0x11] sm:$0xff]  ;;  %v6142_v27 = vld [vmem:[%s7638_s21 + $0x20] sm:$0xff] }
 0x13d   : > { %v6128_v33 = vld [vmem:[%s7644_s24 + $0x10] sm:$0xff]  ;;  %v8329_v32 = vpack.c.bf16 %v8318_v12, %v1889_v50 }
 0x13e   : > { %vm1137_vm7 = vcmp.gt.f32.partialorder %v1129_v56, 0.0  ;;  %v1145_v38 = vmul.f32 0.1, %v1129_v56 }
 0x140   : > { %v8289_v4 = vsel %vm1137_vm7, %v1129_v56, %v1145_v38 }
 0x141   : > { %10828 = vst [vmem:[#allocation9_spill] sm:$0xff] %v8289_v4  ;;  %v1271_v62 = vpop.f32.mrf.mxu2  ;;  %v1110_v45 = vpop.f32.mrf.mxu0 }
 0x142   : > { %1162 = vst [vmem:[#allocation2 + $0x61] sm:$0xff] %v8289_v4  ;;  %v1272_v59 = vadd.f32 %v1271_v62, %v1227_v43  ;;  %v1328_v28 = vpop.f32.mrf.mxu3  ;;  %v1121_v3 = vadd.f32 %v1110_v45, %v1055_v41  ;;  %v1230_v46 = vpop.f32.mrf.mxu1  ;;  %v6154_v43 = vld [vmem:[%s7644_s24 + $0x11] sm:$0xff]  ;;  %v1963_v41 = vpack.c.bf16 %v6129_v7, %v6128_v33  ;;  %v8334_v62 = vpack.c.bf16 %v6142_v27, %v6141_v40 }
 0x143   : > { %v2470_v4 = vsel %vm582_vm0, %v2395_v35, 0 }
 0x144   : > { %v8300_v24 = vadd.f32 %v1328_v28, %v1272_v59  ;;  %v1130_v48 = vadd.f32 %v8119_v0, %v1121_v3  ;;  %6100 = vmatmul.msk.bf16.gmra.mxu0 %vm569_vm1, %v1616_v2  ;;  %10831 = vst [vmem:[#allocation12_spill] sm:$0xff] %v8334_v62  ;;  %v8340_v28 = vpack.c.bf16 %v6155_v54, %v6154_v43  ;;  %v8406_v54 = vld [vmem:[%s7655_s27 + $0x51] sm:$0xff] }
 0x145   : > { %6113 = vmatmul.msk.bf16.gmra.mxu1 %vm569_vm1, %v1681_v34 }
 0x146   : > { %6118 = vmatmul.msk.bf16.gmra.mxu2 %vm569_vm1, %v7889_v58  ;;  %vm1138_vm8 = vcmp.gt.f32.partialorder %v1130_v48, 0.0  ;;  %v1146_v25 = vmul.f32 0.1, %v1130_v48  ;;  %10832 = vst [vmem:[#allocation13_spill] sm:$0xff] %v8340_v28 }
 0x147   : > { %6122 = vmatmul.msk.bf16.gmra.mxu3 %vm569_vm1, %v1787_v51  ;;  %v8360_v51 = vld [vmem:[%s7655_s27 + $0x21] sm:$0xff] }
 0x148   : > { %v8310_v19 = vsel %vm1138_vm8, %v1130_v48, %v1146_v25  ;;  %v6130_v48 = vld [vmem:[%s7644_s24 + $0x30] sm:$0xff]  ;;  %v6131_v25 = vld [vmem:[%s7644_s24 + $0x40] sm:$0xff] }
 0x149   : > { %10829 = vst [vmem:[#allocation10_spill] sm:$0xff] %v8310_v19  ;;  %v1274_v5 = vpop.f32.mrf.mxu2  ;;  %v1112_v20 = vpop.f32.mrf.mxu0 }
 0x14a   : > { %1163 = vst [vmem:[#allocation2 + $0x71] sm:$0xff] %v8310_v19  ;;  %v1275_v44 = vadd.f32 %v1274_v5, %v1230_v46  ;;  %v1331_v58 = vpop.f32.mrf.mxu3  ;;  %v1122_v31 = vadd.f32 %v1112_v20, %v1056_v14  ;;  %v1232_v49 = vpop.f32.mrf.mxu1  ;;  %v6143_v14 = vld [vmem:[%s7638_s21 + $0x30] sm:$0xff]  ;;  %v6144_v5 = vld [vmem:[%s7638_s21 + $0x40] sm:$0xff]  ;;  %v8374_v20 = vpack.c.bf16 %v8363_v17, %v8360_v51 }
 0x14b   : > { %v8380_v50 = vpack.c.bf16 %v6144_v5, %v6143_v14  ;;  %v6241_v19 = vld [vmem:[%s10787_s4 + $0x10] sm:$0xf] }
 0x14c   : > { %v8313_v53 = vadd.f32 %v1331_v58, %v1275_v44  ;;  %v1131_v8 = vadd.f32 %v8119_v0, %v1122_v31  ;;  %v6157_v44 = vld [vmem:[%s7644_s24 + $0x41] sm:$0xff]  ;;  %v2657_v55 = vsel %vm582_vm0, %v6241_v19, 0 }
 0x14d   : > { %10833 = vst [vmem:[#allocation14_spill] sm:$0xff] %v8380_v50 }
 0x14e   : > { %vm1139_vm9 = vcmp.gt.f32.partialorder %v1131_v8, 0.0  ;;  %v1147_v1 = vmul.f32 0.1, %v1131_v8 }
 0x150   : > { %v8326_v47 = vsel %vm1139_vm9, %v1131_v8, %v1147_v1  ;;  %v1964_v8 = vpack.c.bf16 %v6131_v25, %v6130_v48  ;;  %v8385_v1 = vpack.c.bf16 %v6157_v44, %v8162_v36  ;;  %v8403_v36 = vld [vmem:[%s7655_s27 + $0x41] sm:$0xff] }
 0x151   : > { %10830 = vst [vmem:[#allocation11_spill] sm:$0xff] %v8326_v47  ;;  %v1276_v56 = vpop.f32.mrf.mxu2  ;;  %v8332_v23 = vpop.f32.mrf.mxu0  ;;  %v8416_v25 = vpack.c.bf16 %v8406_v54, %v8403_v36 }
 0x152   : > { %1164 = vst [vmem:[#allocation2 + $0x81] sm:$0xff] %v8326_v47  ;;  %v1277_v57 = vadd.f32 %v1276_v56, %v1232_v49  ;;  %v1333_v38 = vpop.f32.mrf.mxu3  ;;  %v8338_v59 = vpop.f32.mrf.mxu1  ;;  %v6132_v56 = vld [vmem:[%s7644_s24 + $0x50] sm:$0xff] }
 0x153   : > { %10834 = vst [vmem:[#allocation15_spill] sm:$0xff] %v8385_v1  ;;  %v6134_v47 = vld [vmem:[%s7644_s24 + $0x70] sm:$0xff] }
 0x154   : > { %v8342_v45 = vadd.f32 %v1333_v38, %v1277_v57  ;;  %6124 = vmatmul.msk.bf16.vlgmr.msrb.gmra.mxu0 %vm569_vm1, %v8329_v32  ;;  %v6133_v57 = vld [vmem:[%s7644_s24 + $0x60] sm:$0xff]  ;;  %v6145_v38 = vld [vmem:[%s7638_s21 + $0x50] sm:$0xff] }
 0x155   : > { %6137 = vmatmul.msk.bf16.vlgmr.msrb.gmra.mxu1 %vm569_vm1, %v1963_v41  ;;  %v6146_v41 = vld [vmem:[%s7638_s21 + $0x60] sm:$0xff]  ;;  %v1965_v44 = vpack.c.bf16 %v6133_v57, %v6132_v56  ;;  %2479 = vmatpush.bf16.msrb.mxu0 %v2470_v4 }
 0x156   : > { %6150 = vmatmul.msk.bf16.vlgmr.msrb.gmra.mxu2 %vm569_vm1, %v8334_v62 }
 0x157   : > { %6163 = vmatmul.msk.bf16.vlgmr.msrb.gmra.mxu3 %vm569_vm1, %v8340_v28  ;;  %2601 = vmatpush.bf16.msrb.mxu2 %v2592_v52  ;;  %v1966_v28 = vpack.c.bf16 %v6135_v18, %v6134_v47  ;;  %v1401_v18 = vadd.f32 %v8332_v23, %v8147_v42  ;;  %v8508_v42 = vld [vmem:[%s7804_s23 + $0x10] sm:$0xff]  ;;  %v8511_v23 = vld [vmem:[%s7804_s23 + $0x20] sm:$0xff] }
 0x158   : > { %2666 = vmatpush.bf16.msrb.mxu3 %v2657_v55 }
 0x159   : > { %v8351_v34 = vpop.f32.mrf.mxu2  ;;  %v8355_v3 = vpop.f32.mrf.mxu0 }
 0x15a   : > { %v8353_v16 = vpop.f32.mrf.mxu3  ;;  %v8357_v46 = vpop.f32.mrf.mxu1 }
 0x161   : > { %v8370_v58 = vpop.f32.mrf.mxu2  ;;  %v8378_v49 = vpop.f32.mrf.mxu0 }
 0x162   : > { %v8376_v31 = vpop.f32.mrf.mxu3  ;;  %v8382_v33 = vpop.f32.mrf.mxu1 }
 0x164   : > { %6125 = vmatmul.msk.bf16.gmra.mxu0 %vm569_vm1, %v8374_v20 }
 0x165   : > { %6138 = vmatmul.msk.bf16.gmra.mxu1 %vm569_vm1, %v1964_v8  ;;  %v8422_v8 = vpack.c.bf16 %v6146_v41, %v6145_v38  ;;  %v8442_v41 = vld [vmem:[%s7655_s27 + $0x61] sm:$0xff] }
 0x166   : > { %6151 = vmatmul.msk.bf16.gmra.mxu2 %vm569_vm1, %v8380_v50 }
 0x167   : > { %6164 = vmatmul.msk.bf16.gmra.mxu3 %vm569_vm1, %v8385_v1  ;;  %10835 = vst [vmem:[#allocation16_spill] sm:$0xff] %v8422_v8  ;;  %v6161_v1 = vld [vmem:[%s7644_s24 + $0x81] sm:$0xff] }
 0x168   : > { %v8483_v55 = vpack.c.bf16 %v6161_v1, %v8274_v26  ;;  %v1466_v26 = vadd.f32 %v8338_v59, %v1401_v18  ;;  %v1402_v1 = vadd.f32 %v8355_v3, %v8185_v29  ;;  %v8525_v29 = vpack.c.bf16 %v8360_v51, %v8318_v12 }
 0x169   : > { %v8394_v7 = vpop.f32.mrf.mxu2  ;;  %v8398_v27 = vpop.f32.mrf.mxu0 }
 0x16a   : > { %v8396_v40 = vpop.f32.mrf.mxu3  ;;  %v8400_v43 = vpop.f32.mrf.mxu1  ;;  %10838 = vst [vmem:[#allocation19_spill] sm:$0xff] %v8483_v55  ;;  %v1531_v47 = vadd.f32 %v8351_v34, %v1466_v26  ;;  %v8521_v34 = vpack.c.bf16 %v8511_v23, %v8508_v42  ;;  %v1467_v3 = vadd.f32 %v8357_v46, %v1402_v1 }
 0x171   : > { %v8412_v48 = vpop.f32.mrf.mxu2  ;;  %v8420_v5 = vpop.f32.mrf.mxu0 }
 0x172   : > { %v8418_v14 = vpop.f32.mrf.mxu3  ;;  %v8424_v2 = vpop.f32.mrf.mxu1 }
 0x174   : > { %6126 = vmatmul.msk.bf16.gmra.mxu0 %vm569_vm1, %v8416_v25 }
 0x175   : > { %6139 = vmatmul.msk.bf16.gmra.mxu1 %vm569_vm1, %v1965_v44  ;;  %v8445_v44 = vld [vmem:[%s7655_s27 + $0x71] sm:$0xff] }
 0x176   : > { %6152 = vmatmul.msk.bf16.gmra.mxu2 %vm569_vm1, %v8422_v8  ;;  %v2527_v8 = vsel %vm582_vm0, %v6215_v37, 0  ;;  %v8472_v35 = vpack.c.bf16 %v8445_v44, %v8442_v41 }
 0x177   : > { %6165 = vmatmul.msk.bf16.gmra.mxu3 %vm569_vm1, %v8221_v13  ;;  %v6148_v13 = vld [vmem:[%s7638_s21 + $0x80] sm:$0xff]  ;;  %2536 = vmatpush.bf16.msrb.mxu1 %v2527_v8  ;;  %v1596_v8 = vadd.f32 %v8353_v16, %v1531_v47  ;;  %v1532_v16 = vadd.f32 %v8370_v58, %v1467_v3  ;;  %v1404_v3 = vadd.f32 %v8398_v27, %v8232_v63 }
 0x178   : > { %10836 = vst [vmem:[#allocation17_spill] sm:$0xff] %v8472_v35  ;;  %v8478_v62 = vpack.c.bf16 %v6148_v13, %v6147_v6  ;;  %v8565_v63 = vpack.c.bf16 %v8403_v36, %v8363_v17  ;;  %v1405_v17 = vadd.f32 %v8420_v5, %v8262_v9 }
 0x179   : > { %v8433_v61 = vpop.f32.mrf.mxu2  ;;  %v8437_v57 = vpop.f32.mrf.mxu0  ;;  %v1597_v46 = vadd.f32 %v8376_v31, %v1532_v16  ;;  %v8554_v16 = vld [vmem:[%s7804_s23 + $0x40] sm:$0xff]  ;;  %v1469_v27 = vadd.f32 %v8400_v43, %v1404_v3 }
 0x17a   : > { %v8435_v56 = vpop.f32.mrf.mxu3  ;;  %v8439_v38 = vpop.f32.mrf.mxu1  ;;  %10837 = vst [vmem:[#allocation18_spill] sm:$0xff] %v8478_v62 }
 0x181   : > { %v8468_v50 = vpop.f32.mrf.mxu2  ;;  %v8476_v19 = vpop.f32.mrf.mxu0 }
 0x182   : > { %v8474_v15 = vpop.f32.mrf.mxu3  ;;  %v8480_v52 = vpop.f32.mrf.mxu1 }
 0x184   : > { %6127 = vmatmul.msk.bf16.gmra.mxu0 %vm569_vm1, %v8472_v35 }
 0x185   : > { %6140 = vmatmul.msk.bf16.gmra.mxu1 %vm569_vm1, %v1966_v28  ;;  %v6167_v28 = vld [vmem:[%s7655_s27 + $0x10] sm:$0xff] }
 0x186   : > { %6153 = vmatmul.msk.bf16.gmra.mxu2 %vm569_vm1, %v8478_v62  ;;  %v2159_v62 = vpack.c.bf16 %v8170_v22, %v6167_v28  ;;  %v1403_v22 = vadd.f32 %v8378_v49, %v8199_v21 }
 0x187   : > { %6166 = vmatmul.msk.bf16.gmra.mxu3 %vm569_vm1, %v8483_v55 }
 0x188   : > { %v1468_v1 = vadd.f32 %v8382_v33, %v1403_v22 }
 0x189   : > { %v8494_v6 = vpop.f32.mrf.mxu2  ;;  %v8498_v13 = vpop.f32.mrf.mxu0 }
 0x18a   : > { %v8496_v37 = vpop.f32.mrf.mxu3  ;;  %v8501_v4 = vpop.f32.mrf.mxu1 }
 0x191   : > { %v8514_v55 = vpop.f32.mrf.mxu2  ;;  %v1641_v59 = vpop.f32.mrf.mxu0 }
 0x192   : > { %v8517_v35 = vpop.f32.mrf.mxu3  ;;  %v1661_v18 = vadd.f32 %v1641_v59, %v1596_v8  ;;  %v1706_v26 = vpop.f32.mrf.mxu1 }
 0x194   : > { %v1726_v47 = vadd.f32 %v1706_v26, %v1661_v18  ;;  %6176 = vmatmul.msk.bf16.vlgmr.msra.gmra.mxu0 %vm569_vm1, %v2159_v62  ;;  %v8551_v26 = vld [vmem:[%s7804_s23 + $0x30] sm:$0xff] }
 0x195   : > { %6189 = vmatmul.msk.bf16.vlgmr.msra.gmra.mxu1 %vm569_vm1, %v8521_v34 }
 0x196   : > { %6202 = vmatmul.msk.bf16.vlgmr.msra.gmra.mxu2 %vm569_vm1, %v8525_v29  ;;  %v1734_v12 = vadd.f32 %v8119_v0, %v1726_v47 }
 0x197   : > { %6207 = vmatmul.msk.bf16.vlgmr.msra.gmra.mxu3 %vm569_vm1, %v8329_v32  ;;  %v1533_v32 = vadd.f32 %v8394_v7, %v1468_v1 }
 0x198   : > { %vm1742_vm10 = vcmp.gt.f32.partialorder %v1734_v12, 0.0  ;;  %v1750_v62 = vmul.f32 0.1, %v1734_v12 }
 0x199   : > { %v1825_v51 = vpop.f32.mrf.mxu2  ;;  %v1643_v28 = vpop.f32.mrf.mxu0  ;;  %v1598_v33 = vadd.f32 %v8396_v40, %v1533_v32 }
 0x19a   : > { %v1869_v58 = vpop.f32.mrf.mxu3  ;;  %v8541_v8 = vsel %vm1742_vm10, %v1734_v12, %v1750_v62  ;;  %v1662_v21 = vadd.f32 %v1643_v28, %v1597_v46  ;;  %v1708_v49 = vpop.f32.mrf.mxu1  ;;  %v2160_v12 = vpack.c.bf16 %v8211_v30, %v8173_v10  ;;  %v8561_v62 = vpack.c.bf16 %v8554_v16, %v8551_v26 }
 0x19b   : > { %10839 = vst [vmem:[#allocation20_spill] sm:$0xff] %v8541_v8  ;;  %v8543_v59 = vadd.f32 %v1869_v58, %v1825_v51  ;;  %v1534_v30 = vadd.f32 %v8412_v48, %v1469_v27  ;;  %v2161_v27 = vpack.c.bf16 %v8282_v11, %v8214_v60  ;;  %v10857_v60 = vld [vmem:[#allocation19_spill] sm:$0xff] }
 0x19c   : > { %1767 = vst [vmem:[#allocation2 + $0xa1] sm:$0xff] %v8541_v8  ;;  %v1727_v31 = vadd.f32 %v1708_v49, %v1662_v21 }
 0x19d   : > { %v1599_v36 = vadd.f32 %v8418_v14, %v1534_v30 }
 0x19e   : > { %v1735_v18 = vadd.f32 %v8119_v0, %v1727_v31  ;;  %v1470_v31 = vadd.f32 %v8424_v2, %v1405_v17 }
 0x1a0   : > { %vm1743_vm11 = vcmp.gt.f32.partialorder %v1735_v18, 0.0  ;;  %v1751_v47 = vmul.f32 0.1, %v1735_v18 }
 0x1a1   : > { %v1827_v22 = vpop.f32.mrf.mxu2  ;;  %v1646_v7 = vpop.f32.mrf.mxu0 }
 0x1a2   : > { %v1871_v46 = vpop.f32.mrf.mxu3  ;;  %v8568_v51 = vsel %vm1743_vm11, %v1735_v18, %v1751_v47  ;;  %v1663_v58 = vadd.f32 %v1646_v7, %v1598_v33  ;;  %v1711_v28 = vpop.f32.mrf.mxu1  ;;  %v1406_v33 = vadd.f32 %v8437_v57, %v8300_v24  ;;  %v8612_v24 = vpack.c.bf16 %v8442_v41, %v8406_v54  ;;  %v6254_v41 = vld [vmem:[%s10787_s4 + $0x14] sm:$0xf] }
 0x1a3   : > { %10840 = vst [vmem:[#allocation21_spill] sm:$0xff] %v8568_v51  ;;  %v8570_v40 = vadd.f32 %v1871_v46, %v1827_v22  ;;  %v8598_v22 = vld [vmem:[%s7804_s23 + $0x50] sm:$0xff]  ;;  %v1407_v54 = vadd.f32 %v8476_v19, %v8313_v53  ;;  %v2722_v53 = vsel %vm582_vm0, %v6254_v41, 0 }
 0x1a4   : > { %1768 = vst [vmem:[#allocation2 + $0xb1] sm:$0xff] %v8568_v51  ;;  %v1728_v1 = vadd.f32 %v1711_v28, %v1663_v58  ;;  %6177 = vmatmul.msk.bf16.gmra.mxu0 %vm569_vm1, %v2160_v12  ;;  %v8601_v12 = vld [vmem:[%s7804_s23 + $0x60] sm:$0xff]  ;;  %v1471_v57 = vadd.f32 %v8439_v38, %v1406_v33  ;;  %v6267_v33 = vld [vmem:[%s10787_s4 + $0x18] sm:$0xf] }
 0x1a5   : > { %6190 = vmatmul.msk.bf16.gmra.mxu1 %vm569_vm1, %v8561_v62  ;;  %v8608_v28 = vpack.c.bf16 %v8601_v12, %v8598_v22  ;;  %2731 = vmatpush.bf16.msra.mxu0 %v2722_v53 }
 0x1a6   : > { %6203 = vmatmul.msk.bf16.gmra.mxu2 %vm569_vm1, %v8565_v63  ;;  %v1736_v43 = vadd.f32 %v8119_v0, %v1728_v1  ;;  %v1536_v11 = vadd.f32 %v8468_v50, %v1471_v57  ;;  %v6280_v50 = vld [vmem:[%s10787_s4 + $0x1c] sm:$0xf]  ;;  %v6200_v57 = vld [vmem:[%s7655_s27 + $0x81] sm:$0xff] }
 0x1a7   : > { %6208 = vmatmul.msk.bf16.gmra.mxu3 %vm569_vm1, %v8374_v20  ;;  %v1535_v20 = vadd.f32 %v8433_v61, %v1470_v31 }
 0x1a8   : > { %vm1744_vm12 = vcmp.gt.f32.partialorder %v1736_v43, 0.0  ;;  %v1752_v48 = vmul.f32 0.1, %v1736_v43 }
 0x1a9   : > { %v1830_v21 = vpop.f32.mrf.mxu2  ;;  %v1648_v32 = vpop.f32.mrf.mxu0  ;;  %v1600_v2 = vadd.f32 %v8435_v56, %v1535_v20 }
 0x1aa   : > { %v1874_v49 = vpop.f32.mrf.mxu3  ;;  %v8588_v3 = vsel %vm1744_vm12, %v1736_v43, %v1752_v48  ;;  %v1664_v9 = vadd.f32 %v1648_v32, %v1599_v36  ;;  %v1713_v5 = vpop.f32.mrf.mxu1  ;;  %v6293_v36 = vld [vmem:[%s10787_s4 + $0x20] sm:$0xf]  ;;  %v2852_v48 = vsel %vm582_vm0, %v6280_v50, 0 }
 0x1ab   : > { %10841 = vst [vmem:[#allocation22_spill] sm:$0xff] %v8588_v3  ;;  %v8590_v18 = vadd.f32 %v1874_v49, %v1830_v21  ;;  %v2917_v19 = vsel %vm582_vm0, %v6293_v36, 0  ;;  %2861 = vmatpush.bf16.msra.mxu2 %v2852_v48 }
 0x1ac   : > { %1769 = vst [vmem:[#allocation2 + $0xc1] sm:$0xff] %v8588_v3  ;;  %v1729_v14 = vadd.f32 %v1713_v5, %v1664_v9  ;;  %2926 = vmatpush.bf16.msra.mxu3 %v2917_v19  ;;  %v1472_v9 = vadd.f32 %v8480_v52, %v1407_v54  ;;  %v1408_v52 = vadd.f32 %v8498_v13, %v8342_v45 }
 0x1ad   : > { %v8672_v45 = vpack.c.bf16 %v6200_v57, %v8445_v44 }
 0x1ae   : > { %v1737_v47 = vadd.f32 %v8119_v0, %v1729_v14  ;;  %v1473_v13 = vadd.f32 %v8501_v4, %v1408_v52  ;;  %v10847_v4 = vld [vmem:[#allocation17_spill] sm:$0xff] }
 0x1af   : > { %10845 = vst [vmem:[#allocation26_spill] sm:$0xff] %v8672_v45 }
 0x1b0   : > { %vm1745_vm13 = vcmp.gt.f32.partialorder %v1737_v47, 0.0  ;;  %v1753_v46 = vmul.f32 0.1, %v1737_v47  ;;  %v1538_v48 = vadd.f32 %v8514_v55, %v1473_v13 }
 0x1b1   : > { %v1832_v7 = vpop.f32.mrf.mxu2  ;;  %v1651_v61 = vpop.f32.mrf.mxu0 }
 0x1b2   : > { %v1876_v58 = vpop.f32.mrf.mxu3  ;;  %v8615_v30 = vsel %vm1745_vm13, %v1737_v47, %v1753_v46  ;;  %v1665_v1 = vadd.f32 %v1651_v61, %v1600_v2  ;;  %v1716_v17 = vpop.f32.mrf.mxu1  ;;  %v1537_v47 = vadd.f32 %v8494_v6, %v1472_v9  ;;  %v2787_v46 = vsel %vm582_vm0, %v6267_v33, 0  ;;  %v6187_v61 = vld [vmem:[%s7804_s23 + $0x80] sm:$0xff] }
 0x1b3   : > { %10842 = vst [vmem:[#allocation23_spill] sm:$0xff] %v8615_v30  ;;  %v8617_v56 = vadd.f32 %v1876_v58, %v1832_v7  ;;  %v6174_v7 = vld [vmem:[%s7655_s27 + $0x80] sm:$0xff]  ;;  %2796 = vmatpush.bf16.msra.mxu1 %v2787_v46  ;;  %v8662_v58 = vld [vmem:[%s7804_s23 + $0x70] sm:$0xff]  ;;  %v1603_v19 = vadd.f32 %v8517_v35, %v1538_v48 }
 0x1b4   : > { %1770 = vst [vmem:[#allocation2 + $0xd1] sm:$0xff] %v8615_v30  ;;  %v1730_v43 = vadd.f32 %v1716_v17, %v1665_v1  ;;  %6178 = vmatmul.msk.bf16.gmra.mxu0 %vm569_vm1, %v2161_v27  ;;  %v1602_v1 = vadd.f32 %v8496_v37, %v1537_v47  ;;  %v2162_v6 = vpack.c.bf16 %v6174_v7, %v8285_v39  ;;  %v2387_v33 = vld [vmem:[%s7804_s23] sm:$0xff]  ;;  %v8701_v46 = vld [vmem:[%s7804_s23 + $0x11] sm:$0xff] }
 0x1b5   : > { %6191 = vmatmul.msk.bf16.gmra.mxu1 %vm569_vm1, %v8608_v28  ;;  %v2396_v52 = vpack.c.bf16 %v8508_v42, %v2387_v33  ;;  %v10850_v42 = vld [vmem:[#allocation12_spill] sm:$0xff]  ;;  %v8722_v48 = vld [vmem:[%s7804_s23 + $0x31] sm:$0xff] }
 0x1b6   : > { %6204 = vmatmul.msk.bf16.gmra.mxu2 %vm569_vm1, %v8612_v24  ;;  %v1738_v38 = vadd.f32 %v8119_v0, %v1730_v43  ;;  %v8752_v33 = vld [vmem:[%s7804_s23 + $0x51] sm:$0xff] }
 0x1b7   : > { %6209 = vmatmul.msk.bf16.gmra.mxu3 %vm569_vm1, %v8416_v25  ;;  %v1601_v25 = vadd.f32 %v8474_v15, %v1536_v11  ;;  %v10856_v39 = vld [vmem:[#allocation18_spill] sm:$0xff] }
 0x1b8   : > { %vm1746_vm14 = vcmp.gt.f32.partialorder %v1738_v38, 0.0  ;;  %v1754_v21 = vmul.f32 0.1, %v1738_v38 }
 0x1b9   : > { %v1835_v49 = vpop.f32.mrf.mxu2  ;;  %v1653_v31 = vpop.f32.mrf.mxu0 }
 0x1ba   : > { %v1879_v32 = vpop.f32.mrf.mxu3  ;;  %v8647_v5 = vsel %vm1746_vm14, %v1738_v38, %v1754_v21  ;;  %v1666_v14 = vadd.f32 %v1653_v31, %v1601_v25  ;;  %v1718_v15 = vpop.f32.mrf.mxu1  ;;  %v8669_v38 = vpack.c.bf16 %v6187_v61, %v8662_v58 }
 0x1bb   : > { %10843 = vst [vmem:[#allocation24_spill] sm:$0xff] %v8647_v5  ;;  %v8649_v20 = vadd.f32 %v1879_v32, %v1835_v49 }
 0x1bc   : > { %1771 = vst [vmem:[#allocation2 + $0xe1] sm:$0xff] %v8647_v5  ;;  %v1731_v2 = vadd.f32 %v1718_v15, %v1666_v14 }
 0x1bd   : > { %10844 = vst [vmem:[#allocation25_spill] sm:$0xff] %v8669_v38 }
 0x1be   : > { %v1739_v27 = vadd.f32 %v8119_v0, %v1731_v2  ;;  %v2501_v2 = vld [vmem:[%s7804_s23 + $0x1] sm:$0xff] }
 0x1bf   : > { %v2510_v57 = vpack.c.bf16 %v8701_v46, %v2501_v2  ;;  %v2398_v2 = vpack.c.bf16 %v8598_v22, %v8554_v16 }
 0x1c0   : > { %vm1747_vm15 = vcmp.gt.f32.partialorder %v1739_v27, 0.0  ;;  %v1755_v17 = vmul.f32 0.1, %v1739_v27 }
 0x1c1   : > { %v1837_v11 = vpop.f32.mrf.mxu2  ;;  %v1656_v54 = vpop.f32.mrf.mxu0 }
 0x1c2   : > { %v1881_v43 = vpop.f32.mrf.mxu3  ;;  %v8675_v50 = vsel %vm1747_vm15, %v1739_v27, %v1755_v17  ;;  %v1667_v37 = vadd.f32 %v1656_v54, %v1602_v1  ;;  %v1721_v36 = vpop.f32.mrf.mxu1 }
 0x1c3   : > { %10846 = vst [vmem:[#allocation27_spill] sm:$0xff] %v8675_v50  ;;  %v8677_v41 = vadd.f32 %v1881_v43, %v1837_v11 }
 0x1c4   : > { %1772 = vst [vmem:[#allocation2 + $0xf1] sm:$0xff] %v8675_v50  ;;  %v1732_v53 = vadd.f32 %v1721_v36, %v1667_v37  ;;  %6179 = vmatmul.msk.bf16.gmra.mxu0 %vm569_vm1, %v2162_v6  ;;  %v10851_v6 = vld [vmem:[#allocation13_spill] sm:$0xff]  ;;  %v8719_v36 = vld [vmem:[%s7804_s23 + $0x21] sm:$0xff] }
 0x1c5   : > { %6192 = vmatmul.msk.bf16.gmra.mxu1 %vm569_vm1, %v8669_v38  ;;  %v6246_v50 = vld [vmem:[%s7638_s21 + $0x11] sm:$0xff]  ;;  %v2900_v51 = vpack.c.bf16 %v8719_v36, %v8701_v46 }
 0x1c6   : > { %6205 = vmatmul.msk.bf16.gmra.mxu2 %vm569_vm1, %v8672_v45  ;;  %v1740_v44 = vadd.f32 %v8119_v0, %v1732_v53 }
 0x1c7   : > { %6210 = vmatmul.msk.bf16.gmra.mxu3 %vm569_vm1, %v10847_v4 }
 0x1c8   : > { %vm1748_vm0 = vcmp.gt.f32.partialorder %v1740_v44, 0.0  ;;  %v1756_v55 = vmul.f32 0.1, %v1740_v44 }
 0x1c9   : > { %v1840_v25 = vpop.f32.mrf.mxu2  ;;  %v1658_v49 = vpop.f32.mrf.mxu0 }
 0x1ca   : > { %v1884_v21 = vpop.f32.mrf.mxu3  ;;  %v8692_v32 = vsel %vm1748_vm0, %v1740_v44, %v1756_v55  ;;  %v1668_v9 = vadd.f32 %v1658_v49, %v1603_v19  ;;  %v1723_v14 = vpop.f32.mrf.mxu1  ;;  %v2397_v44 = vpack.c.bf16 %v8551_v26, %v8511_v23  ;;  %v2511_v55 = vpack.c.bf16 %v8722_v48, %v8719_v36  ;;  %v10853_v49 = vld [vmem:[#allocation15_spill] sm:$0xff]  ;;  %v6248_v36 = vld [vmem:[%s7638_s21 + $0x31] sm:$0xff] }
 0x1cb   : > { %10848 = vst [vmem:[#allocation17_spill] sm:$0xff] %v8692_v32  ;;  %v8694_v31 = vadd.f32 %v1884_v21, %v1840_v25  ;;  %v10852_v21 = vld [vmem:[#allocation14_spill] sm:$0xff] }
 0x1cc   : > { %1773 = vst [vmem:[#allocation2 + $0x101] sm:$0xff] %v8692_v32  ;;  %v1733_v15 = vadd.f32 %v1723_v14, %v1668_v9 }
 0x1ce   : > { %v1741_v47 = vadd.f32 %v8119_v0, %v1733_v15  ;;  %v8749_v15 = vld [vmem:[%s7804_s23 + $0x41] sm:$0xff] }
 0x1d0   : > { %vm1749_vm2 = vcmp.gt.f32.partialorder %v1741_v47, 0.0  ;;  %v1757_v35 = vmul.f32 0.1, %v1741_v47 }
 0x1d1   : > { %v1842_v7 = vpop.f32.mrf.mxu2  ;;  %v1926_v61 = vpop.f32.mrf.mxu0 }
 0x1d2   : > { %v1886_v27 = vpop.f32.mrf.mxu3  ;;  %v8705_v1 = vsel %vm1749_vm2, %v1741_v47, %v1757_v35  ;;  %v1991_v11 = vpop.f32.mrf.mxu1 }
 0x1d3   : > { %10849 = vst [vmem:[#allocation28_spill] sm:$0xff] %v8705_v1  ;;  %v8707_v17 = vadd.f32 %v1886_v27, %v1842_v7 }
 0x1d4   : > { %1774 = vst [vmem:[#allocation2 + $0x111] sm:$0xff] %v8705_v1  ;;  %6211 = vmatmul.msk.bf16.vlgmr.msrb.gmra.mxu0 %vm569_vm1, %v2396_v52  ;;  %v2512_v52 = vpack.c.bf16 %v8752_v33, %v8749_v15 }
 0x1d5   : > { %6216 = vmatmul.msk.bf16.vlgmr.msrb.gmra.mxu1 %vm569_vm1, %v2510_v57  ;;  %v10854_v57 = vld [vmem:[#allocation16_spill] sm:$0xff] }
 0x1d6   : > { %6229 = vmatmul.msk.bf16.vlgmr.msrb.gmra.mxu2 %vm569_vm1, %v10850_v42  ;;  %v10855_v42 = vld [vmem:[#allocation7_spill] sm:$0xff] }
 0x1d7   : > { %6242 = vmatmul.msk.bf16.vlgmr.msrb.gmra.mxu3 %vm569_vm1, %v10851_v6 }
 0x1d9   : > { %v2056_v43 = vpop.f32.mrf.mxu2  ;;  %v1928_v13 = vpop.f32.mrf.mxu0 }
 0x1da   : > { %v2121_v54 = vpop.f32.mrf.mxu3  ;;  %v1993_v37 = vpop.f32.mrf.mxu1  ;;  %v1947_v3 = vadd.f32 %v1928_v13, %v8570_v40 }
 0x1dc   : > { %v2012_v45 = vadd.f32 %v1993_v37, %v1947_v3  ;;  %v7141_v3 = vld [vmem:[%s10788_s5 + $0x78] sm:$0xff] }
 0x1dd   : > { %3104 = vmatpush.bf16.msrb.mxu0 %v7141_v3 }
 0x1e1   : > { %v2058_v53 = vpop.f32.mrf.mxu2  ;;  %v8728_v19 = vpop.f32.mrf.mxu0 }
 0x1e2   : > { %v8726_v4 = vpop.f32.mrf.mxu3  ;;  %v8732_v25 = vpop.f32.mrf.mxu1  ;;  %v1948_v40 = vadd.f32 %v8728_v19, %v8590_v18 }
 0x1e4   : > { %6212 = vmatmul.msk.bf16.gmra.mxu0 %vm569_vm1, %v2397_v44  ;;  %v2013_v18 = vadd.f32 %v8732_v25, %v1948_v40  ;;  %v7139_v40 = vld [vmem:[%s10788_s5 + $0x68] sm:$0xff] }
 0x1e5   : > { %6217 = vmatmul.msk.bf16.gmra.mxu1 %vm569_vm1, %v2511_v55  ;;  %v8781_v55 = vld [vmem:[%s7804_s23 + $0x61] sm:$0xff] }
 0x1e6   : > { %6230 = vmatmul.msk.bf16.gmra.mxu2 %vm569_vm1, %v10852_v21  ;;  %v8784_v21 = vld [vmem:[%s7804_s23 + $0x71] sm:$0xff] }
 0x1e7   : > { %6243 = vmatmul.msk.bf16.gmra.mxu3 %vm569_vm1, %v10853_v49 }
 0x1e9   : > { %v8740_v23 = vpop.f32.mrf.mxu2  ;;  %v8744_v9 = vpop.f32.mrf.mxu0 }
 0x1ea   : > { %v8742_v26 = vpop.f32.mrf.mxu3  ;;  %v8746_v14 = vpop.f32.mrf.mxu1  ;;  %v2078_v13 = vadd.f32 %v8740_v23, %v2013_v18  ;;  %v7156_v23 = vld [vmem:[%s10788_s5 + $0xf0] sm:$0xff] }
 0x1f1   : > { %v8754_v47 = vpop.f32.mrf.mxu2  ;;  %v8760_v7 = vpop.f32.mrf.mxu0 }
 0x1f2   : > { %v8758_v35 = vpop.f32.mrf.mxu3  ;;  %v8764_v27 = vpop.f32.mrf.mxu1 }
 0x1f4   : > { %6213 = vmatmul.msk.bf16.gmra.mxu0 %vm569_vm1, %v2398_v2  ;;  %v2399_v2 = vpack.c.bf16 %v8662_v58, %v8601_v12  ;;  %v1946_v12 = vadd.f32 %v1926_v61, %v8543_v59 }
 0x1f5   : > { %6218 = vmatmul.msk.bf16.gmra.mxu1 %vm569_vm1, %v2512_v52 }
 0x1f6   : > { %6231 = vmatmul.msk.bf16.gmra.mxu2 %vm569_vm1, %v10854_v57  ;;  %v2011_v5 = vadd.f32 %v1991_v11, %v1946_v12 }
 0x1f7   : > { %6244 = vmatmul.msk.bf16.gmra.mxu3 %vm569_vm1, %v10855_v42  ;;  %v2513_v42 = vpack.c.bf16 %v8784_v21, %v8781_v55 }
 0x1f9   : > { %v8772_v16 = vpop.f32.mrf.mxu2  ;;  %v8776_v6 = vpop.f32.mrf.mxu0 }
 0x1fa   : > { %v8774_v22 = vpop.f32.mrf.mxu3  ;;  %v8778_v44 = vpop.f32.mrf.mxu1 }
 0x201   : > { %v8786_v49 = vpop.f32.mrf.mxu2  ;;  %v8792_v57 = vpop.f32.mrf.mxu0 }
 0x202   : > { %v8790_v52 = vpop.f32.mrf.mxu3  ;;  %v8796_v0 = vpop.f32.mrf.mxu1 }
 0x204   : > { %6214 = vmatmul.msk.bf16.gmra.mxu0 %vm569_vm1, %v2399_v2  ;;  %v2076_v2 = vadd.f32 %v2056_v43, %v2011_v5  ;;  %v2077_v5 = vadd.f32 %v2058_v53, %v2012_v45  ;;  %v6249_v53 = vld [vmem:[%s7638_s21 + $0x41] sm:$0xff] }
 0x205   : > { %6219 = vmatmul.msk.bf16.gmra.mxu1 %vm569_vm1, %v2513_v42  ;;  %v6247_v42 = vld [vmem:[%s7638_s21 + $0x21] sm:$0xff] }
 0x206   : > { %6232 = vmatmul.msk.bf16.gmra.mxu2 %vm569_vm1, %v10856_v39  ;;  %v2705_v30 = vpack.c.bf16 %v6247_v42, %v6246_v50  ;;  %v7140_v42 = vld [vmem:[%s10788_s5 + $0x70] sm:$0xff] }
 0x207   : > { %6245 = vmatmul.msk.bf16.gmra.mxu3 %vm569_vm1, %v10857_v60  ;;  %v2141_v60 = vadd.f32 %v2121_v54, %v2076_v2  ;;  %v2706_v2 = vpack.c.bf16 %v6249_v53, %v6248_v36  ;;  %3105 = vmatpush.bf16.msrb.mxu0 %v7140_v42 }
 0x209   : > { %v8805_v58 = vpop.f32.mrf.mxu2  ;;  %v8809_v32 = vpop.f32.mrf.mxu0 }
 0x20a   : > { %v8807_v10 = vpop.f32.mrf.mxu3  ;;  %v8811_v1 = vpop.f32.mrf.mxu1 }
 0x20b   : > { %3106 = vmatpush.bf16.msrb.mxu0 %v7139_v40  ;;  %v2902_v40 = vpack.c.bf16 %v8781_v55, %v8752_v33 }
 0x211   : > { %v8816_v39 = vpop.f32.mrf.mxu2  ;;  %v2187_v59 = vpop.f32.mrf.mxu0 }
 0x212   : > { %v8818_v8 = vpop.f32.mrf.mxu3  ;;  %v2253_v61 = vpop.f32.mrf.mxu1  ;;  %v2207_v38 = vadd.f32 %v2187_v59, %v2141_v60  ;;  %v2143_v60 = vadd.f32 %v8742_v26, %v2078_v13  ;;  %v7155_v26 = vld [vmem:[%s10788_s5 + $0xe8] sm:$0xff] }
 0x214   : > { %6255 = vmatmul.msk.bf16.vlgmr.msra.gmra.mxu0 %vm569_vm1, %v2705_v30  ;;  %v2273_v50 = vadd.f32 %v2253_v61, %v2207_v38  ;;  %v2142_v30 = vadd.f32 %v8726_v4, %v2077_v5  ;;  %v8843_v38 = vld [vmem:[%s10790_s7] ss:$0 sm:$0xff]  ;;  %v1949_v4 = vadd.f32 %v8744_v9, %v8617_v56  ;;  %v2901_v9 = vpack.c.bf16 %v8749_v15, %v8722_v48 }
 0x215   : > { %6268 = vmatmul.msk.bf16.vlgmr.msra.gmra.mxu1 %vm569_vm1, %v8521_v34 }
 0x216   : > { %6281 = vmatmul.msk.bf16.vlgmr.msra.gmra.mxu2 %vm569_vm1, %v8525_v29  ;;  %v7157_v29 = vld [vmem:[%s10788_s5 + $0xf8] sm:$0xff] }
 0x217   : > { %6294 = vmatmul.msk.bf16.vlgmr.msra.gmra.mxu3 %vm569_vm1, %v2900_v51 }
 0x218   : > { %3401 = vmatpush.bf16.msrb.mxu3 %v7157_v29 }
 0x219   : > { %v2318_v11 = vpop.f32.mrf.mxu2  ;;  %v2189_v46 = vpop.f32.mrf.mxu0 }
 0x21a   : > { %v2338_v45 = vadd.f32 %v2318_v11, %v2273_v50  ;;  %v8834_v34 = vpop.f32.mrf.mxu3  ;;  %v2255_v51 = vpop.f32.mrf.mxu1  ;;  %v2208_v54 = vadd.f32 %v2189_v46, %v2142_v30  ;;  %v2014_v50 = vadd.f32 %v8746_v14, %v1949_v4  ;;  %v1950_v14 = vadd.f32 %v8760_v7, %v8649_v20  ;;  %v6250_v4 = vld [vmem:[%s7638_s21 + $0x51] sm:$0xff] }
 0x21c   : > { %v2346_v43 = vadd.f32 %v8843_v38, %v2338_v45  ;;  %v2274_v25 = vadd.f32 %v2255_v51, %v2208_v54  ;;  %3402 = vmatpush.bf16.msrb.mxu3 %v7156_v23  ;;  %v2079_v30 = vadd.f32 %v8754_v47, %v2014_v50  ;;  %v2015_v54 = vadd.f32 %v8764_v27, %v1950_v14  ;;  %v7135_v50 = vld [vmem:[%s10788_s5 + $0x48] sm:$0xff] }
 0x21e   : > { %vm2354_vm3 = vcmp.gt.f32.partialorder %v2346_v43, 0.0  ;;  %v2362_v37 = vmul.f32 0.1, %v2346_v43  ;;  %v2144_v20 = vadd.f32 %v8758_v35, %v2079_v30  ;;  %v7153_v35 = vld [vmem:[%s10788_s5 + $0xd8] sm:$0xff]  ;;  %v2080_v36 = vadd.f32 %v8772_v16, %v2015_v54  ;;  %v7152_v16 = vld [vmem:[%s10788_s5 + $0xd0] sm:$0xff]  ;;  %v6253_v54 = vld [vmem:[%s7638_s21 + $0x81] sm:$0xff] }
 0x220   : > { %v8851_v19 = vsel %vm2354_vm3, %v2346_v43, %v2362_v37  ;;  %3403 = vmatpush.bf16.msrb.mxu3 %v7155_v26  ;;  %v7137_v43 = vld [vmem:[%s10788_s5 + $0x58] sm:$0xff] }
 0x221   : > { %v2320_v12 = vpop.f32.mrf.mxu2  ;;  %v2192_v5 = vpop.f32.mrf.mxu0 }
 0x222   : > { %v2339_v59 = vadd.f32 %v2320_v12, %v2274_v25  ;;  %v8860_v61 = vpop.f32.mrf.mxu3  ;;  %v2258_v56 = vpop.f32.mrf.mxu1  ;;  %v2209_v3 = vadd.f32 %v2192_v5, %v2143_v60  ;;  %v6251_v25 = vld [vmem:[%s7638_s21 + $0x61] sm:$0xff]  ;;  %v1951_v12 = vadd.f32 %v8776_v6, %v8677_v41  ;;  %v7136_v60 = vld [vmem:[%s10788_s5 + $0x50] sm:$0xff]  ;;  %v2145_v5 = vadd.f32 %v8774_v22, %v2080_v36 }
 0x223   : > { %v2707_v23 = vpack.c.bf16 %v6251_v25, %v6250_v4  ;;  %v7151_v22 = vld [vmem:[%s10788_s5 + $0xc8] sm:$0xff] }
 0x224   : > { %v2347_v11 = vadd.f32 %v8843_v38, %v2339_v59  ;;  %6256 = vmatmul.msk.bf16.gmra.mxu0 %vm569_vm1, %v2706_v2  ;;  %v2275_v45 = vadd.f32 %v2258_v56, %v2209_v3 }
 0x225   : > { %6269 = vmatmul.msk.bf16.gmra.mxu1 %vm569_vm1, %v8561_v62  ;;  %v7138_v62 = vld [vmem:[%s10788_s5 + $0x60] sm:$0xff] }
 0x226   : > { %vm2355_vm4 = vcmp.gt.f32.partialorder %v2347_v11, 0.0  ;;  %v2363_v48 = vmul.f32 0.1, %v2347_v11  ;;  %6282 = vmatmul.msk.bf16.gmra.mxu2 %vm569_vm1, %v8565_v63  ;;  %v7154_v63 = vld [vmem:[%s10788_s5 + $0xe0] sm:$0xff]  ;;  %3107 = vmatpush.bf16.msrb.mxu0 %v7138_v62 }
 0x227   : > { %6295 = vmatmul.msk.bf16.gmra.mxu3 %vm569_vm1, %v2901_v9 }
 0x228   : > { %v8881_v15 = vsel %vm2355_vm4, %v2347_v11, %v2363_v48  ;;  %3404 = vmatpush.bf16.msrb.mxu3 %v7154_v63  ;;  %v2016_v11 = vadd.f32 %v8778_v44, %v1951_v12  ;;  %v1952_v44 = vadd.f32 %v8792_v57, %v8694_v31 }
 0x229   : > { %v8885_v47 = vpack.c.bf16 %v8881_v15, %v8851_v19  ;;  %v2323_v46 = vpop.f32.mrf.mxu2  ;;  %v2194_v51 = vpop.f32.mrf.mxu0 }
 0x22a   : > { %v2340_v7 = vadd.f32 %v2323_v46, %v2275_v45  ;;  %v8894_v29 = vpop.f32.mrf.mxu3  ;;  %v2260_v18 = vpop.f32.mrf.mxu1  ;;  %v2210_v37 = vadd.f32 %v2194_v51, %v2144_v20  ;;  %3108 = vmatpush.bf16.msrb.mxu0 %v7137_v43  ;;  %v2081_v30 = vadd.f32 %v8786_v49, %v2016_v11  ;;  %v7134_v49 = vld [vmem:[%s10788_s5 + $0x40] sm:$0xff]  ;;  %v2017_v63 = vadd.f32 %v8796_v0, %v1952_v44  ;;  %v6252_v43 = vld [vmem:[%s7638_s21 + $0x71] sm:$0xff]  ;;  %s7125_s21 = sshll.u32 %s10951_s18, 8 }
 0x22b   : > { %s9827_s29 = scalar_lea.vmem %s10794_s11, %s7125_s21 }
 0x22c   : > { %v2348_v13 = vadd.f32 %v8843_v38, %v2340_v7  ;;  %v2276_v27 = vadd.f32 %v2260_v18, %v2210_v37  ;;  %3405 = vmatpush.bf16.msrb.mxu3 %v7153_v35  ;;  %v2146_v31 = vadd.f32 %v8790_v52, %v2081_v30  ;;  %v2082_v51 = vadd.f32 %v8805_v58, %v2017_v63  ;;  %v6292_v35 = vld [vmem:[%s7804_s23 + $0x81] sm:$0xff] }
 0x22d   : > { %v1953_v52 = vadd.f32 %v8809_v32, %v8707_v17 }
 0x22e   : > { %vm2356_vm5 = vcmp.gt.f32.partialorder %v2348_v13, 0.0  ;;  %v2364_v53 = vmul.f32 0.1, %v2348_v13  ;;  %3109 = vmatpush.bf16.msrb.mxu0 %v7136_v60  ;;  %v2147_v4 = vadd.f32 %v8807_v10, %v2082_v51  ;;  %v10859_v10 = vld [vmem:[#allocation26_spill] sm:$0xff] }
 0x22f   : > { %v2018_v32 = vadd.f32 %v8811_v1, %v1953_v52 }
 0x230   : > { %v8909_v2 = vsel %vm2356_vm5, %v2348_v13, %v2364_v53  ;;  %3406 = vmatpush.bf16.msrb.mxu3 %v7152_v16  ;;  %v2708_v53 = vpack.c.bf16 %v6253_v54, %v6252_v43  ;;  %v7189_v54 = vld [vmem:[%s10788_s5 + $0x1f8] sm:$0xff] }
 0x231   : > { %v2325_v42 = vpop.f32.mrf.mxu2  ;;  %v3053_v59 = vpack.c.bf16 %v8909_v2, %v8881_v15  ;;  %v2197_v56 = vpop.f32.mrf.mxu0  ;;  %v2083_v60 = vadd.f32 %v8816_v39, %v2018_v32  ;;  %v7163_v32 = vld [vmem:[%s10788_s5 + $0x128] sm:$0xff]  ;;  %v7161_v15 = vld [vmem:[%s10788_s5 + $0x118] sm:$0xff] }
 0x232   : > { %v2341_v41 = vadd.f32 %v2325_v42, %v2276_v27  ;;  %v8920_v6 = vpop.f32.mrf.mxu3  ;;  %v2263_v9 = vpop.f32.mrf.mxu1  ;;  %v2211_v26 = vadd.f32 %v2197_v56, %v2145_v5  ;;  %3110 = vmatpush.bf16.msrb.mxu0 %v7135_v50  ;;  %v2903_v42 = vpack.c.bf16 %v6292_v35, %v8784_v21  ;;  %v10858_v5 = vld [vmem:[#allocation25_spill] sm:$0xff] }
 0x233   : > { %v2148_v39 = vadd.f32 %v8818_v8, %v2083_v60 }
 0x234   : > { %v2349_v3 = vadd.f32 %v8843_v38, %v2341_v41  ;;  %6257 = vmatmul.msk.bf16.gmra.mxu0 %vm569_vm1, %v2707_v23  ;;  %v2277_v48 = vadd.f32 %v2263_v9, %v2211_v26  ;;  %3407 = vmatpush.bf16.msrb.mxu3 %v7151_v22  ;;  %v7149_v22 = vld [vmem:[%s10788_s5 + $0xb8] sm:$0xff] }
 0x235   : > { %6270 = vmatmul.msk.bf16.gmra.mxu1 %vm569_vm1, %v8608_v28  ;;  %v7150_v28 = vld [vmem:[%s10788_s5 + $0xc0] sm:$0xff]  ;;  %3287 = vmatpush.bf16.msrb.mxu2 %v7149_v22 }
 0x236   : > { %vm2357_vm6 = vcmp.gt.f32.partialorder %v2349_v3, 0.0  ;;  %v2365_v33 = vmul.f32 0.1, %v2349_v3  ;;  %6283 = vmatmul.msk.bf16.gmra.mxu2 %vm569_vm1, %v8612_v24  ;;  %3111 = vmatpush.bf16.msrb.mxu0 %v7134_v49 }
 0x237   : > { %6296 = vmatmul.msk.bf16.gmra.mxu3 %vm569_vm1, %v2902_v40 }
 0x238   : > { %v8941_v55 = vsel %vm2357_vm6, %v2349_v3, %v2365_v33  ;;  %3408 = vmatpush.bf16.msrb.mxu3 %v7150_v28 }
 0x239   : > { %v2328_v14 = vpop.f32.mrf.mxu2  ;;  %v8951_v24 = vpack.c.bf16 %v8941_v55, %v8909_v2  ;;  %v2199_v46 = vpop.f32.mrf.mxu0  ;;  %v7185_v2 = vld [vmem:[%s10788_s5 + $0x1d8] sm:$0xff] }
 0x23a   : > { %v2342_v57 = vadd.f32 %v2328_v14, %v2277_v48  ;;  %v8954_v45 = vpop.f32.mrf.mxu3  ;;  %v2265_v62 = vpop.f32.mrf.mxu1  ;;  %v2212_v7 = vadd.f32 %v2199_v46, %v2146_v31  ;;  %v3027_v48 = vld [vmem:[#allocation2 + $0x121] sm:$0xff] }
 0x23c   : > { %v2350_v20 = vadd.f32 %v8843_v38, %v2342_v57  ;;  %v2278_v37 = vadd.f32 %v2265_v62, %v2212_v7  ;;  %v3325_v57 = vld [vmem:[#allocation2 + $0xb0] sm:$0xff]  ;;  %v3052_v62 = vpack.c.bf16 %v8851_v19, %v3027_v48  ;;  %v7133_v7 = vld [vmem:[%s10788_s5 + $0x38] sm:$0xff]  ;;  %3857 = vmatpush.bf16.msra.mxu3 %v7189_v54  ;;  %v7158_v54 = vld [vmem:[%s10788_s5 + $0x100] sm:$0xff] }
 0x23d   : > { %3181 = vmatpush.bf16.msrb.mxu1 %v7133_v7  ;;  %v7165_v19 = vld [vmem:[%s10788_s5 + $0x138] sm:$0xff]  ;;  %v7184_v48 = vld [vmem:[%s10788_s5 + $0x1d0] sm:$0xff] }
 0x23e   : > { %vm2358_vm7 = vcmp.gt.f32.partialorder %v2350_v20, 0.0  ;;  %v2366_v18 = vmul.f32 0.1, %v2350_v20  ;;  %3515 = vmatpush.bf16.msra.mxu0 %v7165_v19  ;;  %v3329_v7 = vld [vmem:[#allocation2 + $0xf0] sm:$0xff] }
 0x240   : > { %v8963_v13 = vsel %vm2358_vm7, %v2350_v20, %v2366_v18  ;;  %v3324_v20 = vld [vmem:[#allocation2 + $0xa0] sm:$0xff]  ;;  %v7148_v18 = vld [vmem:[%s10788_s5 + $0xb0] sm:$0xff] }
 0x241   : > { %v2330_v36 = vpop.f32.mrf.mxu2  ;;  %v3054_v0 = vpack.c.bf16 %v8963_v13, %v8941_v55  ;;  %v2202_v12 = vpop.f32.mrf.mxu0  ;;  %v3349_v51 = vpack.c.bf16 %v3325_v57, %v3324_v20  ;;  %3288 = vmatpush.bf16.msrb.mxu2 %v7148_v18  ;;  %v7183_v57 = vld [vmem:[%s10788_s5 + $0x1c8] sm:$0xff]  ;;  %v3328_v18 = vld [vmem:[#allocation2 + $0xe0] sm:$0xff] }
 0x242   : > { %v2343_v25 = vadd.f32 %v2330_v36, %v2278_v37  ;;  %v8969_v58 = vpop.f32.mrf.mxu3  ;;  %v2268_v27 = vpop.f32.mrf.mxu1  ;;  %v2213_v23 = vadd.f32 %v2202_v12, %v2147_v4  ;;  %v7164_v12 = vld [vmem:[%s10788_s5 + $0x130] sm:$0xff]  ;;  %v3351_v19 = vpack.c.bf16 %v3329_v7, %v3328_v18 }
 0x243   : > { %3516 = vmatpush.bf16.msra.mxu0 %v7164_v12  ;;  %v3438_v7 = vld [vmem:[#allocation2 + $0x11] sm:$0xff] }
 0x244   : > { %v2351_v17 = vadd.f32 %v8843_v38, %v2343_v25  ;;  %6258 = vmatmul.msk.bf16.gmra.mxu0 %vm569_vm1, %v2708_v53  ;;  %v2279_v1 = vadd.f32 %v2268_v27, %v2213_v23  ;;  %v7132_v25 = vld [vmem:[%s10788_s5 + $0x30] sm:$0xff] }
 0x245   : > { %6271 = vmatmul.msk.bf16.gmra.mxu1 %vm569_vm1, %v10858_v5  ;;  %v7188_v27 = vld [vmem:[%s10788_s5 + $0x1f0] sm:$0xff] }
 0x246   : > { %vm2359_vm8 = vcmp.gt.f32.partialorder %v2351_v17, 0.0  ;;  %v2367_v16 = vmul.f32 0.1, %v2351_v17  ;;  %6284 = vmatmul.msk.bf16.gmra.mxu2 %vm569_vm1, %v10859_v10  ;;  %3182 = vmatpush.bf16.msrb.mxu1 %v7132_v25  ;;  %v3327_v5 = vld [vmem:[#allocation2 + $0xd0] sm:$0xff] }
 0x247   : > { %6297 = vmatmul.msk.bf16.gmra.mxu3 %vm569_vm1, %v2903_v42  ;;  %v7147_v42 = vld [vmem:[%s10788_s5 + $0xa8] sm:$0xff]  ;;  %3517 = vmatpush.bf16.msra.mxu0 %v7163_v32  ;;  %v7144_v25 = vld [vmem:[%s10788_s5 + $0x90] sm:$0xff] }
 0x248   : > { %v8981_v21 = vsel %vm2359_vm8, %v2351_v17, %v2367_v16  ;;  %3858 = vmatpush.bf16.msra.mxu3 %v7188_v27  ;;  %v7187_v17 = vld [vmem:[%s10788_s5 + $0x1e8] sm:$0xff]  ;;  %3289 = vmatpush.bf16.msrb.mxu2 %v7147_v42 }
 0x249   : > { %v2333_v41 = vpop.f32.mrf.mxu2  ;;  %v8985_v56 = vpack.c.bf16 %v8981_v21, %v8963_v13  ;;  %v2204_v50 = vpop.f32.mrf.mxu0 }
 0x24a   : > { %v2344_v9 = vadd.f32 %v2333_v41, %v2279_v1  ;;  %v8988_v40 = vpop.f32.mrf.mxu3  ;;  %v2270_v11 = vpop.f32.mrf.mxu1  ;;  %v2214_v26 = vadd.f32 %v2204_v50, %v2148_v39  ;;  %v3326_v1 = vld [vmem:[#allocation2 + $0xc0] sm:$0xff]  ;;  %v7131_v41 = vld [vmem:[%s10788_s5 + $0x28] sm:$0xff] }
 0x24b   : > { %v3350_v39 = vpack.c.bf16 %v3327_v5, %v3326_v1  ;;  %v7186_v50 = vld [vmem:[%s10788_s5 + $0x1e0] sm:$0xff]  ;;  %3183 = vmatpush.bf16.msrb.mxu1 %v7131_v41  ;;  %v7128_v1 = vld [vmem:[%s10788_s5 + $0x10] sm:$0xff]  ;;  %v7143_v41 = vld [vmem:[%s10788_s5 + $0x88] sm:$0xff] }
 0x24c   : > { %v2352_v3 = vadd.f32 %v8843_v38, %v2344_v9  ;;  %v2280_v44 = vadd.f32 %v2270_v11, %v2214_v26  ;;  %3859 = vmatpush.bf16.msra.mxu3 %v7187_v17  ;;  %v7162_v9 = vld [vmem:[%s10788_s5 + $0x120] sm:$0xff]  ;;  %v3331_v17 = vld [vmem:[#allocation2 + $0x110] sm:$0xff] }
 0x24d   : > { %v7146_v11 = vld [vmem:[%s10788_s5 + $0xa0] sm:$0xff]  ;;  %3518 = vmatpush.bf16.msra.mxu0 %v7162_v9 }
 0x24e   : > { %vm2360_vm1 = vcmp.gt.f32.partialorder %v2352_v3, 0.0  ;;  %v2368_v30 = vmul.f32 0.1, %v2352_v3  ;;  %3290 = vmatpush.bf16.msrb.mxu2 %v7146_v11 }
 0x250   : > { %v8994_v33 = vsel %vm2360_vm1, %v2352_v3, %v2368_v30  ;;  %3860 = vmatpush.bf16.msra.mxu3 %v7186_v50  ;;  %v7130_v30 = vld [vmem:[%s10788_s5 + $0x20] sm:$0xff] }
 0x251   : > { %v2335_v8 = vpop.f32.mrf.mxu2  ;;  %v3055_v14 = vpack.c.bf16 %v8994_v33, %v8981_v21  ;;  %v9000_v31 = vpop.f32.mrf.mxu0  ;;  %3519 = vmatpush.bf16.msra.mxu0 %v7161_v15  ;;  %3184 = vmatpush.bf16.msrb.mxu1 %v7130_v30  ;;  %v7127_v21 = vld [vmem:[%s10788_s5 + $0x8] sm:$0xff] }
 0x252   : > { %v2345_v49 = vadd.f32 %v2335_v8, %v2280_v44  ;;  %v8998_v28 = vpop.f32.mrf.mxu3  ;;  %v9002_v46 = vpop.f32.mrf.mxu1  ;;  %v7160_v44 = vld [vmem:[%s10788_s5 + $0x110] sm:$0xff]  ;;  %v7145_v8 = vld [vmem:[%s10788_s5 + $0x98] sm:$0xff]  ;;  %v2482_v50 = vadd.f32 %v9000_v31, %v8834_v34 }
 0x253   : > { %3291 = vmatpush.bf16.msrb.mxu2 %v7145_v8 }
 0x254   : > { %v2353_v63 = vadd.f32 %v8843_v38, %v2345_v49  ;;  %3112 = vmatmul.bf16.vlgmr.msrb.gmra.mxu0 %v3052_v62  ;;  %3861 = vmatpush.bf16.msra.mxu3 %v7185_v2  ;;  %v7159_v49 = vld [vmem:[%s10788_s5 + $0x108] sm:$0xff] }
 0x255   : > { %3520 = vmatpush.bf16.msra.mxu0 %v7160_v44  ;;  %v3439_v44 = vld [vmem:[#allocation2 + $0x21] sm:$0xff] }
 0x256   : > { %vm2361_vm9 = vcmp.gt.f32.partialorder %v2353_v63, 0.0  ;;  %v2369_v43 = vmul.f32 0.1, %v2353_v63 }
 0x257   : > { %3409 = vmatmul.bf16.vlgmr.msrb.gmra.mxu3 %v3349_v51  ;;  %3292 = vmatpush.bf16.msrb.mxu2 %v7144_v25 }
 0x258   : > { %v2377_v52 = vsel %vm2361_vm9, %v2353_v63, %v2369_v43  ;;  %3862 = vmatpush.bf16.msra.mxu3 %v7184_v48  ;;  %v7129_v43 = vld [vmem:[%s10788_s5 + $0x18] sm:$0xff] }
 0x259   : > { %v9018_v37 = vpop.f32.mrf.mxu2  ;;  %v9021_v35 = vpack.c.bf16 %v2377_v52, %v8994_v33  ;;  %v9025_v53 = vpop.f32.mrf.mxu0  ;;  %3521 = vmatpush.bf16.msra.mxu0 %v7159_v49  ;;  %v7182_v52 = vld [vmem:[%s10788_s5 + $0x1c0] sm:$0xff]  ;;  %3185 = vmatpush.bf16.msrb.mxu1 %v7129_v43  ;;  %v3463_v43 = vpack.c.bf16 %v3439_v44, %v3438_v7  ;;  %v3210_v44 = vld [vmem:[#allocation2 + $0x1b1] sm:$0xff] }
 0x25a   : > { %v9023_v36 = vpop.f32.mrf.mxu3  ;;  %v9027_v4 = vpop.f32.mrf.mxu1  ;;  %v7142_v33 = vld [vmem:[%s10788_s5 + $0x80] sm:$0xff]  ;;  %v2484_v31 = vadd.f32 %v9025_v53, %v8860_v61 }
 0x25b   : > { %3293 = vmatpush.bf16.msrb.mxu2 %v7143_v41 }
 0x25c   : > { %3863 = vmatpush.bf16.msra.mxu3 %v7183_v57  ;;  %v2559_v61 = vadd.f32 %v9027_v4, %v2484_v31  ;;  %v7173_v4 = vld [vmem:[%s10788_s5 + $0x178] sm:$0xff]  ;;  %v3441_v31 = vld [vmem:[#allocation2 + $0x41] sm:$0xff] }
 0x25d   : > { %3522 = vmatpush.bf16.msra.mxu0 %v7158_v54  ;;  %3186 = vmatpush.bf16.msrb.mxu1 %v7128_v1 }
 0x25f   : > { %3294 = vmatpush.bf16.msrb.mxu2 %v7142_v33 }
 0x260   : > { %3864 = vmatpush.bf16.msra.mxu3 %v7182_v52 }
 0x261   : > { %v9047_v23 = vpop.f32.mrf.mxu2  ;;  %v9051_v16 = vpop.f32.mrf.mxu0  ;;  %3187 = vmatpush.bf16.msrb.mxu1 %v7127_v21 }
 0x262   : > { %v9049_v60 = vpop.f32.mrf.mxu3  ;;  %v9053_v10 = vpop.f32.mrf.mxu1 }
 0x264   : > { %3117 = vmatmul.bf16.gmra.mxu0 %v3053_v59 }
 0x267   : > { %3414 = vmatmul.bf16.gmra.mxu3 %v3350_v39  ;;  %v3330_v39 = vld [vmem:[#allocation2 + $0x100] sm:$0xff] }
 0x268   : > { %v3352_v9 = vpack.c.bf16 %v3331_v17, %v3330_v39 }
 0x269   : > { %v9076_v59 = vpop.f32.mrf.mxu2  ;;  %v9080_v26 = vpop.f32.mrf.mxu0 }
 0x26a   : > { %v9078_v3 = vpop.f32.mrf.mxu3  ;;  %v9082_v22 = vpop.f32.mrf.mxu1  ;;  %v2489_v33 = vadd.f32 %v9080_v26, %v8920_v6  ;;  %v7172_v6 = vld [vmem:[%s10788_s5 + $0x170] sm:$0xff] }
 0x26b   : > { %v7196_v26 = vld [vmem:[%s10788_s5 + $0x230] sm:$0xff] }
 0x271   : > { %v9102_v62 = vpop.f32.mrf.mxu2  ;;  %v9106_v20 = vpop.f32.mrf.mxu0 }
 0x272   : > { %v9104_v63 = vpop.f32.mrf.mxu3  ;;  %v9108_v51 = vpop.f32.mrf.mxu1 }
 0x274   : > { %3122 = vmatmul.bf16.gmra.mxu0 %v3054_v0 }
 0x277   : > { %3419 = vmatmul.bf16.gmra.mxu3 %v3351_v19  ;;  %v2487_v19 = vadd.f32 %v9051_v16, %v8894_v29  ;;  %v7197_v29 = vld [vmem:[%s10788_s5 + $0x238] sm:$0xff] }
 0x278   : > { %3971 = vmatpush.bf16.msrb.mxu0 %v7197_v29 }
 0x279   : > { %v9125_v55 = vpop.f32.mrf.mxu2  ;;  %v9129_v0 = vpop.f32.mrf.mxu0  ;;  %v2560_v16 = vadd.f32 %v9053_v10, %v2487_v19 }
 0x27a   : > { %v9127_v13 = vpop.f32.mrf.mxu3  ;;  %v9131_v12 = vpop.f32.mrf.mxu1 }
 0x27c   : > { %3972 = vmatpush.bf16.msrb.mxu0 %v7196_v26 }
 0x281   : > { %v9133_v27 = vpop.f32.mrf.mxu2  ;;  %v9137_v32 = vpop.f32.mrf.mxu0 }
 0x282   : > { %v9135_v42 = vpop.f32.mrf.mxu3  ;;  %v9139_v5 = vpop.f32.mrf.mxu1 }
 0x284   : > { %3127 = vmatmul.bf16.gmra.mxu0 %v3055_v14  ;;  %v2558_v14 = vadd.f32 %v9002_v46, %v2482_v50  ;;  %v7126_v46 = vld [vmem:[%s10788_s5] sm:$0xff]  ;;  %v2625_v50 = vadd.f32 %v9076_v59, %v2560_v16 }
 0x285   : > { %3188 = vmatpush.bf16.msrb.mxu1 %v7126_v46  ;;  %v3440_v46 = vld [vmem:[#allocation2 + $0x31] sm:$0xff] }
 0x286   : > { %v2623_v34 = vadd.f32 %v9018_v37, %v2558_v14  ;;  %v7181_v37 = vld [vmem:[%s10788_s5 + $0x1b8] sm:$0xff]  ;;  %v2690_v10 = vadd.f32 %v9078_v3, %v2625_v50  ;;  %v7179_v3 = vld [vmem:[%s10788_s5 + $0x1a8] sm:$0xff]  ;;  %v7513_v50 = vld [vmem:[#allocation2] sm:$0xff] }
 0x287   : > { %3424 = vmatmul.bf16.gmra.mxu3 %v3352_v9  ;;  %3743 = vmatpush.bf16.msra.mxu2 %v7181_v37  ;;  %v3464_v37 = vpack.c.bf16 %v3441_v31, %v3440_v46 }
 0x288   : > { %v2688_v8 = vadd.f32 %v9023_v36, %v2623_v34  ;;  %v2624_v36 = vadd.f32 %v9047_v23, %v2559_v61  ;;  %v7180_v23 = vld [vmem:[%s10788_s5 + $0x1b0] sm:$0xff] }
 0x289   : > { %v9152_v11 = vpop.f32.mrf.mxu2  ;;  %v9156_v2 = vpop.f32.mrf.mxu0  ;;  %3629 = vmatpush.bf16.msra.mxu1 %v7173_v4 }
 0x28a   : > { %v9154_v15 = vpop.f32.mrf.mxu3  ;;  %v9158_v30 = vpop.f32.mrf.mxu1  ;;  %v2689_v25 = vadd.f32 %v9049_v60, %v2624_v36 }
 0x28b   : > { %3744 = vmatpush.bf16.msra.mxu2 %v7180_v23 }
 0x28d   : > { %3630 = vmatpush.bf16.msra.mxu1 %v7172_v6 }
 0x28f   : > { %3745 = vmatpush.bf16.msra.mxu2 %v7179_v3 }
 0x291   : > { %v9170_v48 = vpop.f32.mrf.mxu2  ;;  %v2733_v57 = vpop.f32.mrf.mxu0 }
 0x292   : > { %v9173_v49 = vpop.f32.mrf.mxu3  ;;  %v2798_v18 = vpop.f32.mrf.mxu1  ;;  %v2753_v53 = vadd.f32 %v2733_v57, %v2688_v8 }
 0x294   : > { %3523 = vmatmul.bf16.vlgmr.msra.gmra.mxu0 %v3463_v43  ;;  %v2818_v54 = vadd.f32 %v2798_v18, %v2753_v53  ;;  %v2561_v53 = vadd.f32 %v9082_v22, %v2489_v33  ;;  %v2492_v22 = vadd.f32 %v9106_v20, %v8954_v45  ;;  %v7171_v20 = vld [vmem:[%s10788_s5 + $0x168] sm:$0xff] }
 0x295   : > { %3631 = vmatpush.bf16.msra.mxu1 %v7171_v20 }
 0x296   : > { %v2562_v33 = vadd.f32 %v9108_v51, %v2492_v22 }
 0x297   : > { %3865 = vmatmul.bf16.vlgmr.msra.gmra.mxu3 %v8885_v47 }
 0x298   : > { %v2627_v31 = vadd.f32 %v9125_v55, %v2562_v33  ;;  %v7175_v33 = vld [vmem:[%s10788_s5 + $0x188] sm:$0xff] }
 0x299   : > { %v2863_v52 = vpop.f32.mrf.mxu2  ;;  %v2735_v41 = vpop.f32.mrf.mxu0 }
 0x29a   : > { %v2883_v17 = vadd.f32 %v2863_v52, %v2818_v54  ;;  %v2928_v1 = vpop.f32.mrf.mxu3  ;;  %v2800_v39 = vpop.f32.mrf.mxu1  ;;  %v2754_v60 = vadd.f32 %v2735_v41, %v2689_v25  ;;  %v2626_v54 = vadd.f32 %v9102_v62, %v2561_v53  ;;  %v7195_v25 = vld [vmem:[%s10788_s5 + $0x228] sm:$0xff] }
 0x29b   : > { %3973 = vmatpush.bf16.msrb.mxu0 %v7195_v25  ;;  %v7191_v25 = vld [vmem:[%s10788_s5 + $0x208] sm:$0xff] }
 0x29c   : > { %v2948_v9 = vadd.f32 %v2928_v1, %v2883_v17  ;;  %v2819_v34 = vadd.f32 %v2800_v39, %v2754_v60  ;;  %v2691_v62 = vadd.f32 %v9104_v63, %v2626_v54  ;;  %v7194_v63 = vld [vmem:[%s10788_s5 + $0x220] sm:$0xff] }
 0x29e   : > { %v2956_v21 = vadd.f32 %v8843_v38, %v2948_v9 }
 0x29f   : > { %3974 = vmatpush.bf16.msrb.mxu0 %v7194_v63 }
 0x2a0   : > { %vm2964_vm10 = vcmp.gt.f32.partialorder %v2956_v21, 0.0  ;;  %v2972_v14 = vmul.f32 0.1, %v2956_v21 }
 0x2a1   : > { %v2865_v8 = vpop.f32.mrf.mxu2  ;;  %v2738_v43 = vpop.f32.mrf.mxu0 }
 0x2a2   : > { %v2980_v57 = vsel %vm2964_vm10, %v2956_v21, %v2972_v14  ;;  %v2884_v7 = vadd.f32 %v2865_v8, %v2819_v34  ;;  %v2930_v18 = vpop.f32.mrf.mxu3  ;;  %v2803_v59 = vpop.f32.mrf.mxu1  ;;  %v2755_v19 = vadd.f32 %v2738_v43, %v2690_v10  ;;  %v7178_v21 = vld [vmem:[%s10788_s5 + $0x1a0] sm:$0xff]  ;;  %v7193_v8 = vld [vmem:[%s10788_s5 + $0x218] sm:$0xff]  ;;  %v2494_v10 = vadd.f32 %v9129_v0, %v8969_v58  ;;  %v7192_v0 = vld [vmem:[%s10788_s5 + $0x210] sm:$0xff] }
 0x2a3   : > { %2989 = vst [vmem:[#allocation2 + $0x1c1] sm:$0xff] %v2980_v57  ;;  %v3235_v61 = vpack.c.bf16 %v2980_v57, %v3210_v44  ;;  %3746 = vmatpush.bf16.msra.mxu2 %v7178_v21  ;;  %v2692_v43 = vadd.f32 %v9127_v13, %v2627_v31  ;;  %3975 = vmatpush.bf16.msrb.mxu0 %v7193_v8  ;;  %v7170_v58 = vld [vmem:[%s10788_s5 + $0x160] sm:$0xff]  ;;  %v7177_v13 = vld [vmem:[%s10788_s5 + $0x198] sm:$0xff]  ;;  %v7168_v31 = vld [vmem:[%s10788_s5 + $0x150] sm:$0xff] }
 0x2a4   : > { %v2949_v36 = vadd.f32 %v2930_v18, %v2884_v7  ;;  %3528 = vmatmul.bf16.gmra.mxu0 %v3464_v37  ;;  %v2820_v1 = vadd.f32 %v2803_v59, %v2755_v19  ;;  %v3443_v7 = vld [vmem:[#allocation2 + $0x61] sm:$0xff]  ;;  %v2563_v53 = vadd.f32 %v9131_v12, %v2494_v10  ;;  %3632 = vmatpush.bf16.msra.mxu1 %v7170_v58 }
 0x2a5   : > { %3295 = vmatmul.bf16.vlgmr.msrb.gmra.mxu2 %v3235_v61  ;;  %v3442_v61 = vld [vmem:[#allocation2 + $0x51] sm:$0xff]  ;;  %v2497_v12 = vadd.f32 %v9137_v32, %v8988_v40  ;;  %v3445_v10 = vld [vmem:[#allocation2 + $0x81] sm:$0xff] }
 0x2a6   : > { %v2957_v52 = vadd.f32 %v8843_v38, %v2949_v36  ;;  %v3465_v26 = vpack.c.bf16 %v3443_v7, %v3442_v61  ;;  %v2628_v54 = vadd.f32 %v9133_v27, %v2563_v53  ;;  %v7169_v32 = vld [vmem:[%s10788_s5 + $0x158] sm:$0xff] }
 0x2a7   : > { %3870 = vmatmul.bf16.gmra.mxu3 %v8951_v24  ;;  %3976 = vmatpush.bf16.msrb.mxu0 %v7192_v0  ;;  %v2564_v20 = vadd.f32 %v9139_v5, %v2497_v12  ;;  %v2499_v5 = vadd.f32 %v9156_v2, %v8998_v28  ;;  %v7174_v28 = vld [vmem:[%s10788_s5 + $0x180] sm:$0xff] }
 0x2a8   : > { %vm2965_vm11 = vcmp.gt.f32.partialorder %v2957_v52, 0.0  ;;  %v2973_v17 = vmul.f32 0.1, %v2957_v52  ;;  %3747 = vmatpush.bf16.msra.mxu2 %v7177_v13  ;;  %v2693_v27 = vadd.f32 %v9135_v42, %v2628_v54  ;;  %v7190_v42 = vld [vmem:[%s10788_s5 + $0x200] sm:$0xff]  ;;  %3633 = vmatpush.bf16.msra.mxu1 %v7169_v32 }
 0x2a9   : > { %v2868_v41 = vpop.f32.mrf.mxu2  ;;  %v2740_v29 = vpop.f32.mrf.mxu0 }
 0x2aa   : > { %v2981_v39 = vsel %vm2965_vm11, %v2957_v52, %v2973_v17  ;;  %v2885_v4 = vadd.f32 %v2868_v41, %v2820_v1  ;;  %v2933_v23 = vpop.f32.mrf.mxu3  ;;  %v9221_v16 = vld [vmem:[#allocation2 + $0x1c0] sm:$0xff]  ;;  %v2805_v60 = vpop.f32.mrf.mxu1  ;;  %v2756_v34 = vadd.f32 %v2740_v29, %v2691_v62 }
 0x2ab   : > { %2990 = vst [vmem:[#allocation2 + $0x1d1] sm:$0xff] %v2981_v39  ;;  %v9223_v9 = vpack.c.bf16 %v2981_v39, %v2980_v57  ;;  %v3022_v45 = vpack.c.bf16 %v9221_v16, %v7513_v50  ;;  %3977 = vmatpush.bf16.msrb.mxu0 %v7191_v25  ;;  %v7176_v50 = vld [vmem:[%s10788_s5 + $0x190] sm:$0xff] }
 0x2ac   : > { %v2950_v14 = vadd.f32 %v2933_v23, %v2885_v4  ;;  %v2821_v51 = vadd.f32 %v2805_v60, %v2756_v34  ;;  %3748 = vmatpush.bf16.msra.mxu2 %v7176_v50  ;;  %3634 = vmatpush.bf16.msra.mxu1 %v7168_v31 }
 0x2ad   : > { %3189 = vmatmul.bf16.vlgmr.msrb.gmra.mxu1 %v3022_v45 }
 0x2ae   : > { %v2958_v44 = vadd.f32 %v8843_v38, %v2950_v14  ;;  %v2629_v14 = vadd.f32 %v9152_v11, %v2564_v20  ;;  %v7514_v20 = vld [vmem:[%s10790_s7] ss:$0 sm:$0xff] }
 0x2af   : > { %3978 = vmatpush.bf16.msrb.mxu0 %v7190_v42 }
 0x2b0   : > { %vm2966_vm12 = vcmp.gt.f32.partialorder %v2958_v44, 0.0  ;;  %v2974_v57 = vmul.f32 0.1, %v2958_v44  ;;  %3749 = vmatpush.bf16.msra.mxu2 %v7175_v33 }
 0x2b1   : > { %v2870_v18 = vpop.f32.mrf.mxu2  ;;  %v2743_v37 = vpop.f32.mrf.mxu0 }
 0x2b2   : > { %v2982_v46 = vsel %vm2966_vm12, %v2958_v44, %v2974_v57  ;;  %v2886_v55 = vadd.f32 %v2870_v18, %v2821_v51  ;;  %v2935_v59 = vpop.f32.mrf.mxu3  ;;  %v2808_v6 = vpop.f32.mrf.mxu1  ;;  %v2757_v19 = vadd.f32 %v2743_v37, %v2692_v43  ;;  %v9263_v23 = vld [vmem:[#allocation2 + $0x1d0] sm:$0xff]  ;;  %v2694_v51 = vadd.f32 %v9154_v15, %v2629_v14 }
 0x2b3   : > { %2991 = vst [vmem:[#allocation2 + $0x1e1] sm:$0xff] %v2982_v46  ;;  %v3236_v3 = vpack.c.bf16 %v2982_v46, %v2981_v39  ;;  %v2565_v37 = vadd.f32 %v9158_v30, %v2499_v5  ;;  %v7228_v5 = vld [vmem:[%s10789_s6 + $0xf0] sm:$0xff] }
 0x2b4   : > { %v2951_v36 = vadd.f32 %v2935_v59, %v2886_v55  ;;  %3533 = vmatmul.bf16.gmra.mxu0 %v3465_v26  ;;  %v2822_v17 = vadd.f32 %v2808_v6, %v2757_v19  ;;  %v7167_v55 = vld [vmem:[%s10788_s5 + $0x148] sm:$0xff]  ;;  %3750 = vmatpush.bf16.msra.mxu2 %v7174_v28 }
 0x2b5   : > { %3300 = vmatmul.bf16.gmra.mxu2 %v3236_v3  ;;  %v2630_v26 = vadd.f32 %v9170_v48, %v2565_v37  ;;  %3635 = vmatpush.bf16.msra.mxu1 %v7167_v55  ;;  %v7166_v48 = vld [vmem:[%s10788_s5 + $0x140] sm:$0xff]  ;;  %v7224_v55 = vld [vmem:[%s10789_s6 + $0xd0] sm:$0xff] }
 0x2b6   : > { %v2959_v52 = vadd.f32 %v8843_v38, %v2951_v36  ;;  %v3555_v37 = vld [vmem:[#allocation2 + $0xd1] sm:$0xff] }
 0x2b7   : > { %3875 = vmatmul.bf16.gmra.mxu3 %v8985_v56  ;;  %v2695_v53 = vadd.f32 %v9173_v49, %v2630_v26 }
 0x2b8   : > { %vm2967_vm13 = vcmp.gt.f32.partialorder %v2959_v52, 0.0  ;;  %v2975_v22 = vmul.f32 0.1, %v2959_v52 }
 0x2b9   : > { %v2873_v1 = vpop.f32.mrf.mxu2  ;;  %v2745_v4 = vpop.f32.mrf.mxu0  ;;  %3636 = vmatpush.bf16.msra.mxu1 %v7166_v48 }
 0x2ba   : > { %v2983_v41 = vsel %vm2967_vm13, %v2959_v52, %v2975_v22  ;;  %v2887_v62 = vadd.f32 %v2873_v1, %v2822_v17  ;;  %v2938_v39 = vpop.f32.mrf.mxu3  ;;  %v9265_v29 = vld [vmem:[#allocation2 + $0x1e0] sm:$0xff]  ;;  %v2810_v60 = vpop.f32.mrf.mxu1  ;;  %v2758_v21 = vadd.f32 %v2745_v4, %v2693_v27 }
 0x2bb   : > { %2992 = vst [vmem:[#allocation2 + $0x1f1] sm:$0xff] %v2983_v41  ;;  %v3023_v40 = vpack.c.bf16 %v9265_v29, %v9263_v23  ;;  %v9278_v45 = vpack.c.bf16 %v2983_v41, %v2982_v46  ;;  %v3444_v46 = vld [vmem:[#allocation2 + $0x71] sm:$0xff] }
 0x2bc   : > { %v2952_v63 = vadd.f32 %v2938_v39, %v2887_v62  ;;  %v2823_v8 = vadd.f32 %v2810_v60, %v2758_v21  ;;  %v3466_v2 = vpack.c.bf16 %v3445_v10, %v3444_v46  ;;  %v7227_v10 = vld [vmem:[%s10789_s6 + $0xe8] sm:$0xff] }
 0x2bd   : > { %3194 = vmatmul.bf16.gmra.mxu1 %v3023_v40  ;;  %v3552_v46 = vld [vmem:[#allocation2 + $0xa1] sm:$0xff] }
 0x2be   : > { %v2960_v34 = vadd.f32 %v8843_v38, %v2952_v63 }
 0x2c0   : > { %vm2968_vm14 = vcmp.gt.f32.partialorder %v2960_v34, 0.0  ;;  %v2976_v44 = vmul.f32 0.1, %v2960_v34 }
 0x2c1   : > { %v2875_v57 = vpop.f32.mrf.mxu2  ;;  %v2748_v43 = vpop.f32.mrf.mxu0 }
 0x2c2   : > { %v2984_v11 = vsel %vm2968_vm14, %v2960_v34, %v2976_v44  ;;  %v2888_v7 = vadd.f32 %v2875_v57, %v2823_v8  ;;  %v2940_v18 = vpop.f32.mrf.mxu3  ;;  %v2759_v61 = vadd.f32 %v2748_v43, %v2694_v51  ;;  %v2813_v6 = vpop.f32.mrf.mxu1  ;;  %v9303_v52 = vld [vmem:[#allocation2 + $0x1f0] sm:$0xff]  ;;  %v7226_v51 = vld [vmem:[%s10789_s6 + $0xe0] sm:$0xff] }
 0x2c3   : > { %2993 = vst [vmem:[#allocation2 + $0x201] sm:$0xff] %v2984_v11  ;;  %v3237_v59 = vpack.c.bf16 %v2984_v11, %v2983_v41 }
 0x2c4   : > { %v2953_v15 = vadd.f32 %v2940_v18, %v2888_v7  ;;  %3538 = vmatmul.bf16.gmra.mxu0 %v3466_v2  ;;  %v2824_v0 = vadd.f32 %v2813_v6, %v2759_v61  ;;  %v7225_v7 = vld [vmem:[%s10789_s6 + $0xd8] sm:$0xff]  ;;  %v7222_v2 = vld [vmem:[%s10789_s6 + $0xc0] sm:$0xff] }
 0x2c5   : > { %3305 = vmatmul.bf16.gmra.mxu2 %v3237_v59  ;;  %v3553_v18 = vld [vmem:[#allocation2 + $0xb1] sm:$0xff]  ;;  %v3692_v59 = vpack.c.bf16 %v9303_v52, %v9265_v29  ;;  %v3554_v61 = vld [vmem:[#allocation2 + $0xc1] sm:$0xff] }
 0x2c6   : > { %v2961_v3 = vadd.f32 %v8843_v38, %v2953_v15  ;;  %v3577_v28 = vpack.c.bf16 %v3553_v18, %v3552_v46  ;;  %v3578_v6 = vpack.c.bf16 %v3555_v37, %v3554_v61  ;;  %v3556_v29 = vld [vmem:[#allocation2 + $0xe1] sm:$0xff] }
 0x2c7   : > { %3880 = vmatmul.bf16.gmra.mxu3 %v9021_v35 }
 0x2c8   : > { %vm2969_vm15 = vcmp.gt.f32.partialorder %v2961_v3, 0.0  ;;  %v2977_v58 = vmul.f32 0.1, %v2961_v3 }
 0x2c9   : > { %v2878_v13 = vpop.f32.mrf.mxu2  ;;  %v2750_v54 = vpop.f32.mrf.mxu0 }
 0x2ca   : > { %v2985_v30 = vsel %vm2969_vm15, %v2961_v3, %v2977_v58  ;;  %v2889_v36 = vadd.f32 %v2878_v13, %v2824_v0  ;;  %v2943_v19 = vpop.f32.mrf.mxu3  ;;  %v9305_v25 = vld [vmem:[#allocation2 + $0x200] sm:$0xff]  ;;  %v2760_v49 = vadd.f32 %v2750_v54, %v2695_v53  ;;  %v2815_v27 = vpop.f32.mrf.mxu1  ;;  %v3557_v58 = vld [vmem:[#allocation2 + $0xf1] sm:$0xff]  ;;  %v10860_v54 = vld [vmem:[#allocation4_spill] sm:$0xff] }
 0x2cb   : > { %2994 = vst [vmem:[#allocation2 + $0x211] sm:$0xff] %v2985_v30  ;;  %v3024_v12 = vpack.c.bf16 %v9305_v25, %v9303_v52  ;;  %v9312_v22 = vpack.c.bf16 %v2985_v30, %v2984_v11  ;;  %v3691_v11 = vpack.c.bf16 %v9263_v23, %v9221_v16  ;;  %v7223_v16 = vld [vmem:[%s10789_s6 + $0xc8] sm:$0xff]  ;;  %v3579_v13 = vpack.c.bf16 %v3557_v58, %v3556_v29  ;;  %v10861_v52 = vld [vmem:[#allocation3_spill] sm:$0xff]  ;;  %v10870_v29 = vld [vmem:[#allocation10_spill] sm:$0xff] }
 0x2cc   : > { %v2954_v17 = vadd.f32 %v2943_v19, %v2889_v36  ;;  %v2825_v62 = vadd.f32 %v2815_v27, %v2760_v49  ;;  %v10862_v48 = vpack.c.bf16 %v10860_v54, %v10861_v52  ;;  %v7205_v27 = vld [vmem:[%s10789_s6 + $0x38] sm:$0xff] }
 0x2cd   : > { %3199 = vmatmul.bf16.gmra.mxu1 %v3024_v12  ;;  %v3559_v12 = vld [vmem:[#allocation2 + $0x111] sm:$0xff] }
 0x2ce   : > { %v2962_v1 = vadd.f32 %v8843_v38, %v2954_v17  ;;  %v7229_v38 = vld [vmem:[%s10789_s6 + $0xf8] sm:$0xff]  ;;  %v3558_v17 = vld [vmem:[#allocation2 + $0x101] sm:$0xff]  ;;  %4110 = vmatpush.bf16.msrb.mxu1 %v7205_v27 }
 0x2cf   : > { %4650 = vmatpush.bf16.msra.mxu0 %v7229_v38  ;;  %v3580_v49 = vpack.c.bf16 %v3559_v12, %v3558_v17  ;;  %v7204_v38 = vld [vmem:[%s10789_s6 + $0x30] sm:$0xff] }
 0x2d0   : > { %vm2970_vm0 = vcmp.gt.f32.partialorder %v2962_v1, 0.0  ;;  %v2978_v41 = vmul.f32 0.1, %v2962_v1 }
 0x2d1   : > { %v2880_v39 = vpop.f32.mrf.mxu2  ;;  %v9315_v40 = vpop.f32.mrf.mxu0 }
 0x2d2   : > { %v2986_v4 = vsel %vm2970_vm0, %v2962_v1, %v2978_v41  ;;  %v2890_v60 = vadd.f32 %v2880_v39, %v2825_v62  ;;  %v2945_v32 = vpop.f32.mrf.mxu3  ;;  %v3004_v34 = vld [vmem:[#allocation2 + $0x210] sm:$0xff]  ;;  %v10863_v62 = vld [vmem:[#allocation6_spill] sm:$0xff]  ;;  %4111 = vmatpush.bf16.msrb.mxu1 %v7204_v38 }
 0x2d3   : > { %2995 = vst [vmem:[#allocation2 + $0x221] sm:$0xff] %v2986_v4  ;;  %v3238_v42 = vpack.c.bf16 %v2986_v4, %v2985_v30  ;;  %4651 = vmatpush.bf16.msra.mxu0 %v7228_v5  ;;  %v3693_v3 = vpack.c.bf16 %v3004_v34, %v9305_v25  ;;  %v10864_v39 = vld [vmem:[#allocation5_spill] sm:$0xff] }
 0x2d4   : > { %v2955_v50 = vadd.f32 %v2945_v32, %v2890_v60  ;;  %3979 = vmatmul.bf16.vlgmr.msrb.gmra.mxu0 %v9223_v9 }
 0x2d5   : > { %3310 = vmatmul.bf16.gmra.mxu2 %v3238_v42 }
 0x2d6   : > { %v2963_v63 = vadd.f32 %v7514_v20, %v2955_v50 }
 0x2d7   : > { %4652 = vmatpush.bf16.msra.mxu0 %v7227_v10  ;;  %v10866_v10 = vld [vmem:[#allocation9_spill] sm:$0xff] }
 0x2d8   : > { %vm2971_vm2 = vcmp.gt.f32.partialorder %v2963_v63, 0.0  ;;  %v2979_v21 = vmul.f32 0.1, %v2963_v63 }
 0x2d9   : > { %v9324_v14 = vpop.f32.mrf.mxu0 }
 0x2da   : > { %v2987_v33 = vsel %vm2971_vm2, %v2963_v63, %v2979_v21  ;;  %v3005_v31 = vld [vmem:[#allocation2 + $0x220] sm:$0xff]  ;;  %v3410_v53 = vpop.f32.mrf.mxu3 }
 0x2db   : > { %2996 = vst [vmem:[#allocation2 + $0x231] sm:$0xff] %v2987_v33  ;;  %v3025_v44 = vpack.c.bf16 %v3005_v31, %v3004_v34  ;;  %v9329_v8 = vpack.c.bf16 %v2987_v33, %v2986_v4  ;;  %4653 = vmatpush.bf16.msra.mxu0 %v7226_v51  ;;  %v10865_v4 = vpack.c.bf16 %v10863_v62, %v10864_v39 }
 0x2dd   : > { %3204 = vmatmul.bf16.gmra.mxu1 %v3025_v44  ;;  %v7203_v44 = vld [vmem:[%s10789_s6 + $0x28] sm:$0xff] }
 0x2de   : > { %4112 = vmatpush.bf16.msrb.mxu1 %v7203_v44 }
 0x2df   : > { %4654 = vmatpush.bf16.msra.mxu0 %v7225_v7 }
 0x2e1   : > { %v9334_v57 = vpop.f32.mrf.mxu0 }
 0x2e2   : > { %v3673_v30 = vld [vmem:[#allocation2 + $0x230] sm:$0xff]  ;;  %v9372_v25 = vpop.f32.mrf.mxu3 }
 0x2e3   : > { %4655 = vmatpush.bf16.msra.mxu0 %v7224_v55  ;;  %v3694_v19 = vpack.c.bf16 %v3673_v30, %v3005_v31 }
 0x2e4   : > { %3984 = vmatmul.bf16.gmra.mxu0 %v9278_v45 }
 0x2e5   : > { %3751 = vmatmul.bf16.vlgmr.msra.gmra.mxu2 %v3691_v11 }
 0x2e7   : > { %4656 = vmatpush.bf16.msra.mxu0 %v7223_v16 }
 0x2e9   : > { %v9345_v43 = vpop.f32.mrf.mxu0 }
 0x2ea   : > { %v3415_v41 = vpop.f32.mrf.mxu3 }
 0x2eb   : > { %4657 = vmatpush.bf16.msra.mxu0 %v7222_v2 }
 0x2ed   : > { %3637 = vmatmul.bf16.vlgmr.msra.gmra.mxu1 %v3577_v28  ;;  %v7202_v28 = vld [vmem:[%s10789_s6 + $0x20] sm:$0xff] }
 0x2ee   : > { %4113 = vmatpush.bf16.msrb.mxu1 %v7202_v28 }
 0x2f1   : > { %v9353_v23 = vpop.f32.mrf.mxu0 }
 0x2f2   : > { %v9386_v63 = vpop.f32.mrf.mxu3 }
 0x2f4   : > { %3989 = vmatmul.bf16.gmra.mxu0 %v9312_v22 }
 0x2f5   : > { %3756 = vmatmul.bf16.gmra.mxu2 %v3692_v59 }
 0x2f9   : > { %v9361_v15 = vpop.f32.mrf.mxu0 }
 0x2fa   : > { %v3420_v11 = vpop.f32.mrf.mxu3 }
 0x2fd   : > { %3642 = vmatmul.bf16.gmra.mxu1 %v3578_v6 }
 0x301   : > { %v9363_v26 = vpop.f32.mrf.mxu0 }
 0x302   : > { %v9402_v61 = vpop.f32.mrf.mxu3 }
 0x304   : > { %3994 = vmatmul.bf16.gmra.mxu0 %v9329_v8 }
 0x305   : > { %3761 = vmatmul.bf16.gmra.mxu2 %v3693_v3  ;;  %v7201_v3 = vld [vmem:[%s10789_s6 + $0x18] sm:$0xff] }
 0x306   : > { %4114 = vmatpush.bf16.msrb.mxu1 %v7201_v3 }
 0x309   : > { %v9367_v0 = vpop.f32.mrf.mxu0 }
 0x30a   : > { %v3425_v54 = vpop.f32.mrf.mxu3 }
 0x30d   : > { %3647 = vmatmul.bf16.gmra.mxu1 %v3579_v13 }
 0x311   : > { %v3524_v36 = vpop.f32.mrf.mxu0 }
 0x314   : > { %4658 = vmatmul.bf16.vlgmr.msra.gmra.mxu0 %v10862_v48 }
 0x315   : > { %3766 = vmatmul.bf16.gmra.mxu2 %v3694_v19  ;;  %v7200_v19 = vld [vmem:[%s10789_s6 + $0x10] sm:$0xff] }
 0x316   : > { %4115 = vmatpush.bf16.msrb.mxu1 %v7200_v19 }
 0x319   : > { %v9374_v1 = vpop.f32.mrf.mxu0 }
 0x31d   : > { %3652 = vmatmul.bf16.gmra.mxu1 %v3580_v49 }
 0x321   : > { %v3529_v60 = vpop.f32.mrf.mxu0 }
 0x324   : > { %4663 = vmatmul.bf16.gmra.mxu0 %v10865_v4 }
 0x328   : > { %v3296_v32 = vpop.f32.mrf.mxu2 }
 0x329   : > { %v9388_v33 = vpop.f32.mrf.mxu0 }
 0x32a   : > { %v3190_v42 = vpop.f32.mrf.mxu1 }
 0x32b   : > { %v3191_v50 = vadd.f32 %v3190_v42, %v9315_v40  ;;  %v10867_v40 = vld [vmem:[#allocation8_spill] sm:$0xff] }
 0x32c   : > { %v10868_v51 = vpack.c.bf16 %v10866_v10, %v10867_v40 }
 0x32d   : > { %v3316_v20 = vadd.f32 %v3296_v32, %v3191_v50  ;;  %v7198_v50 = vld [vmem:[%s10789_s6] sm:$0xff] }
 0x32f   : > { %v3430_v21 = vadd.f32 %v3410_v53, %v3316_v20 }
 0x330   : > { %v3298_v34 = vpop.f32.mrf.mxu2 }
 0x331   : > { %v3544_v31 = vadd.f32 %v3524_v36, %v3430_v21  ;;  %v3534_v18 = vpop.f32.mrf.mxu0 }
 0x332   : > { %v3192_v5 = vpop.f32.mrf.mxu1 }
 0x333   : > { %v3193_v40 = vadd.f32 %v3192_v5, %v9324_v14 }
 0x334   : > { %4668 = vmatmul.bf16.gmra.mxu0 %v10868_v51 }
 0x338   : > { %v3301_v7 = vpop.f32.mrf.mxu2 }
 0x339   : > { %v9407_v58 = vpop.f32.mrf.mxu0 }
 0x33a   : > { %v3195_v46 = vpop.f32.mrf.mxu1 }
 0x33b   : > { %v3196_v55 = vadd.f32 %v3195_v46, %v9334_v57  ;;  %v10869_v57 = vld [vmem:[#allocation11_spill] sm:$0xff] }
 0x33c   : > { %v10871_v13 = vpack.c.bf16 %v10869_v57, %v10870_v29 }
 0x33d   : > { %v3318_v16 = vadd.f32 %v3301_v7, %v3196_v55 }
 0x33f   : > { %v3432_v2 = vadd.f32 %v3415_v41, %v3318_v16  ;;  %v9422_v41 = vpop.f32.mrf.mxu3 }
 0x340   : > { %v3303_v59 = vpop.f32.mrf.mxu2 }
 0x341   : > { %v9400_v37 = vadd.f32 %v3529_v60, %v3432_v2  ;;  %v3539_v48 = vpop.f32.mrf.mxu0 }
 0x342   : > { %v3197_v6 = vpop.f32.mrf.mxu1 }
 0x343   : > { %v3198_v5 = vadd.f32 %v3197_v6, %v9345_v43 }
 0x344   : > { %4673 = vmatmul.bf16.gmra.mxu0 %v10871_v13  ;;  %v9445_v13 = vld [vmem:[%s10790_s7 + $0x1] ss:$0 sm:$0xff] }
 0x345   : > { %v3319_v19 = vadd.f32 %v3303_v59, %v3198_v5 }
 0x347   : > { %v3866_v38 = vpop.f32.mrf.mxu3 }
 0x348   : > { %v3306_v53 = vpop.f32.mrf.mxu2 }
 0x349   : > { %v9427_v62 = vpop.f32.mrf.mxu0 }
 0x34a   : > { %v3200_v30 = vpop.f32.mrf.mxu1 }
 0x34b   : > { %v3201_v36 = vadd.f32 %v3200_v30, %v9353_v23  ;;  %v7199_v23 = vld [vmem:[%s10789_s6 + $0x8] sm:$0xff] }
 0x34c   : > { %4116 = vmatpush.bf16.msrb.mxu1 %v7199_v23  ;;  %v3433_v23 = vadd.f32 %v9386_v63, %v3319_v19 }
 0x34d   : > { %v3320_v52 = vadd.f32 %v3306_v53, %v3201_v36 }
 0x34f   : > { %v3434_v12 = vadd.f32 %v3420_v11, %v3320_v52  ;;  %v3317_v11 = vadd.f32 %v3298_v34, %v3193_v40  ;;  %v7237_v40 = vld [vmem:[%s10789_s6 + $0xf8] sm:$0xff] }
 0x350   : > { %v9416_v17 = vpop.f32.mrf.mxu2  ;;  %4117 = vmatpush.bf16.msrb.mxu1 %v7198_v50 }
 0x351   : > { %v9418_v49 = vadd.f32 %v3534_v18, %v3434_v12  ;;  %v3980_v44 = vpop.f32.mrf.mxu0  ;;  %v3431_v55 = vadd.f32 %v9372_v25, %v3317_v11 }
 0x352   : > { %v9420_v27 = vpop.f32.mrf.mxu1 }
 0x353   : > { %v3545_v3 = vadd.f32 %v9374_v1, %v3431_v55 }
 0x354   : > { %4964 = vmatpush.bf16.msra.mxu1 %v7237_v40 }
 0x358   : > { %v3311_v39 = vpop.f32.mrf.mxu2 }
 0x359   : > { %v3982_v46 = vpop.f32.mrf.mxu0 }
 0x35a   : > { %v3205_v4 = vpop.f32.mrf.mxu1 }
 0x35b   : > { %v3206_v60 = vadd.f32 %v3205_v4, %v9363_v26  ;;  %v3868_v26 = vpop.f32.mrf.mxu3 }
 0x35d   : > { %v3322_v32 = vadd.f32 %v3311_v39, %v3206_v60 }
 0x35f   : > { %v3436_v42 = vadd.f32 %v3425_v54, %v3322_v32 }
 0x360   : > { %v9433_v20 = vpop.f32.mrf.mxu2 }
 0x361   : > { %v9435_v21 = vadd.f32 %v3539_v48, %v3436_v42  ;;  %v3985_v53 = vpop.f32.mrf.mxu0 }
 0x362   : > { %v9437_v10 = vpop.f32.mrf.mxu1 }
 0x363   : > { %v3871_v34 = vpop.f32.mrf.mxu3 }
 0x368   : > { %v3752_v51 = vpop.f32.mrf.mxu2 }
 0x369   : > { %v3987_v59 = vpop.f32.mrf.mxu0 }
 0x36a   : > { %v3638_v7 = vpop.f32.mrf.mxu1 }
 0x36b   : > { %v3658_v18 = vadd.f32 %v3638_v7, %v3544_v31  ;;  %v3873_v6 = vpop.f32.mrf.mxu3 }
 0x36d   : > { %v3772_v28 = vadd.f32 %v3752_v51, %v3658_v18  ;;  %v3203_v51 = vadd.f32 %v9420_v27, %v9361_v15  ;;  %v7236_v15 = vld [vmem:[%s10789_s6 + $0xf0] sm:$0xff] }
 0x36e   : > { %4965 = vmatpush.bf16.msra.mxu1 %v7236_v15 }
 0x36f   : > { %v3886_v16 = vadd.f32 %v3866_v38, %v3772_v28  ;;  %v3547_v38 = vadd.f32 %v9388_v33, %v3433_v23  ;;  %v3321_v33 = vadd.f32 %v9416_v17, %v3203_v51  ;;  %v7235_v17 = vld [vmem:[%s10789_s6 + $0xe8] sm:$0xff] }
 0x370   : > { %v3754_v2 = vpop.f32.mrf.mxu2 }
 0x371   : > { %v4000_v29 = vadd.f32 %v3980_v44, %v3886_v16  ;;  %v3990_v28 = vpop.f32.mrf.mxu0  ;;  %v3435_v27 = vadd.f32 %v9402_v61, %v3321_v33 }
 0x372   : > { %v3640_v57 = vpop.f32.mrf.mxu1  ;;  %4966 = vmatpush.bf16.msra.mxu1 %v7235_v17 }
 0x373   : > { %v3659_v14 = vadd.f32 %v3640_v57, %v3545_v3  ;;  %v4009_v25 = vadd.f32 %v9445_v13, %v4000_v29  ;;  %v3876_v18 = vpop.f32.mrf.mxu3 }
 0x375   : > { %v3773_v31 = vadd.f32 %v3754_v2, %v3659_v14  ;;  %v4025_v52 = vmul.f32 0.1, %v4009_v25  ;;  %vm4017_vm3 = vcmp.gt.f32.partialorder %v4009_v25, 0.0 }
 0x377   : > { %v3887_v30 = vadd.f32 %v3868_v26, %v3773_v31  ;;  %v9452_v4 = vsel %vm4017_vm3, %v4009_v25, %v4025_v52  ;;  %v3549_v25 = vadd.f32 %v9407_v58, %v3435_v27  ;;  %v3208_v52 = vadd.f32 %v9437_v10, %v9367_v0  ;;  %v7233_v58 = vld [vmem:[%s10789_s6 + $0xd8] sm:$0xff]  ;;  %v7232_v10 = vld [vmem:[%s10789_s6 + $0xd0] sm:$0xff] }
 0x378   : > { %v3757_v36 = vpop.f32.mrf.mxu2  ;;  %v7213_v27 = vld [vmem:[%s10789_s6 + $0x78] sm:$0xff] }
 0x379   : > { %v4001_v54 = vadd.f32 %v3982_v46, %v3887_v30  ;;  %4241 = vmatpush.bf16.msrb.mxu2 %v7213_v27 }
 0x37a   : > { %v3643_v1 = vpop.f32.mrf.mxu1 }
 0x37b   : > { %v4010_v48 = vadd.f32 %v9445_v13, %v4001_v54  ;;  %v3660_v12 = vadd.f32 %v3643_v1, %v9400_v37  ;;  %v3878_v61 = vpop.f32.mrf.mxu3  ;;  %v7234_v54 = vld [vmem:[%s10789_s6 + $0xe0] sm:$0xff]  ;;  %v3992_v1 = vpop.f32.mrf.mxu0 }
 0x37c   : > { %4967 = vmatpush.bf16.msra.mxu1 %v7234_v54  ;;  %v7210_v54 = vld [vmem:[%s10789_s6 + $0x60] sm:$0xff] }
 0x37d   : > { %vm4018_vm4 = vcmp.gt.f32.partialorder %v4010_v48, 0.0  ;;  %v4026_v39 = vmul.f32 0.1, %v4010_v48  ;;  %v3774_v43 = vadd.f32 %v3757_v36, %v3660_v12 }
 0x37f   : > { %v9454_v60 = vsel %vm4018_vm4, %v4010_v48, %v4026_v39  ;;  %v3888_v32 = vadd.f32 %v3871_v34, %v3774_v43  ;;  %v3323_v39 = vadd.f32 %v9433_v20, %v3208_v52  ;;  %v7209_v52 = vld [vmem:[%s10789_s6 + $0x58] sm:$0xff] }
 0x380   : > { %v4057_v42 = vpack.c.bf16 %v9454_v60, %v9452_v4  ;;  %v3759_v50 = vpop.f32.mrf.mxu2  ;;  %4968 = vmatpush.bf16.msra.mxu1 %v7233_v58  ;;  %v10875_v58 = vld [vmem:[#allocation23_spill] sm:$0xff] }
 0x381   : > { %v4002_v44 = vadd.f32 %v3985_v53, %v3888_v32 }
 0x382   : > { %v3645_v37 = vpop.f32.mrf.mxu1  ;;  %4118 = vmatmul.bf16.vlgmr.msrb.gmra.mxu1 %v4057_v42 }
 0x383   : > { %v3661_v63 = vadd.f32 %v3645_v37, %v3547_v38  ;;  %v4011_v26 = vadd.f32 %v9445_v13, %v4002_v44  ;;  %v3437_v38 = vadd.f32 %v9422_v41, %v3323_v39  ;;  %v7231_v44 = vld [vmem:[%s10789_s6 + $0xc8] sm:$0xff]  ;;  %v7208_v39 = vld [vmem:[%s10789_s6 + $0x50] sm:$0xff] }
 0x384   : > { %4969 = vmatpush.bf16.msra.mxu1 %v7232_v10  ;;  %v7206_v10 = vld [vmem:[%s10789_s6 + $0x40] sm:$0xff] }
 0x385   : > { %v3775_v11 = vadd.f32 %v3759_v50, %v3661_v63  ;;  %v4027_v57 = vmul.f32 0.1, %v4011_v26  ;;  %vm4019_vm5 = vcmp.gt.f32.partialorder %v4011_v26, 0.0  ;;  %v3881_v50 = vpop.f32.mrf.mxu3  ;;  %v3995_v63 = vpop.f32.mrf.mxu0 }
 0x387   : > { %v3889_v7 = vadd.f32 %v3873_v6, %v3775_v11  ;;  %v9475_v5 = vsel %vm4019_vm5, %v4011_v26, %v4027_v57  ;;  %v3551_v26 = vadd.f32 %v9427_v62, %v3437_v38  ;;  %v10881_v38 = vld [vmem:[#allocation28_spill] sm:$0xff] }
 0x388   : > { %v3762_v46 = vpop.f32.mrf.mxu2  ;;  %4970 = vmatpush.bf16.msra.mxu1 %v7231_v44  ;;  %v7245_v44 = vld [vmem:[%s10789_s6 + $0xf8] sm:$0xff] }
 0x389   : > { %v4003_v55 = vadd.f32 %v3987_v59, %v3889_v7 }
 0x38a   : > { %v3648_v16 = vpop.f32.mrf.mxu1 }
 0x38b   : > { %v4012_v2 = vadd.f32 %v9445_v13, %v4003_v55  ;;  %v3662_v3 = vadd.f32 %v3648_v16, %v9418_v49 }
 0x38d   : > { %v3776_v29 = vadd.f32 %v3762_v46, %v3662_v3  ;;  %vm4020_vm6 = vcmp.gt.f32.partialorder %v4012_v2, 0.0  ;;  %v4028_v14 = vmul.f32 0.1, %v4012_v2  ;;  %v7230_v46 = vld [vmem:[%s10789_s6 + $0xc0] sm:$0xff]  ;;  %v3997_v3 = vpop.f32.mrf.mxu0 }
 0x38e   : > { %4971 = vmatpush.bf16.msra.mxu1 %v7230_v46  ;;  %v7251_v46 = vld [vmem:[%s10789_s6 + $0xe8] sm:$0xff] }
 0x38f   : > { %v3890_v34 = vadd.f32 %v3876_v18, %v3776_v29  ;;  %v9477_v49 = vsel %vm4020_vm6, %v4012_v2, %v4028_v14  ;;  %v7221_v29 = vld [vmem:[%s10789_s6 + $0xb8] sm:$0xff] }
 0x390   : > { %v4058_v31 = vpack.c.bf16 %v9477_v49, %v9475_v5  ;;  %v3764_v53 = vpop.f32.mrf.mxu2  ;;  %4552 = vmatpush.bf16.msrb.mxu3 %v7221_v29 }
 0x391   : > { %v4004_v36 = vadd.f32 %v3990_v28, %v3890_v34  ;;  %v3883_v28 = vpop.f32.mrf.mxu3 }
 0x392   : > { %v3650_v30 = vpop.f32.mrf.mxu1  ;;  %4123 = vmatmul.bf16.gmra.mxu1 %v4058_v31  ;;  %v7212_v31 = vld [vmem:[%s10789_s6 + $0x70] sm:$0xff] }
 0x393   : > { %v3663_v19 = vadd.f32 %v3650_v30, %v3549_v25  ;;  %v4013_v12 = vadd.f32 %v9445_v13, %v4004_v36  ;;  %4242 = vmatpush.bf16.msrb.mxu2 %v7212_v31  ;;  %v7211_v25 = vld [vmem:[%s10789_s6 + $0x68] sm:$0xff]  ;;  %v10872_v30 = vld [vmem:[#allocation21_spill] sm:$0xff] }
 0x394   : > { %v10873_v36 = vld [vmem:[#allocation20_spill] sm:$0xff] }
 0x395   : > { %v3777_v48 = vadd.f32 %v3764_v53, %v3663_v19  ;;  %v4029_v0 = vmul.f32 0.1, %v4013_v12  ;;  %vm4021_vm7 = vcmp.gt.f32.partialorder %v4013_v12, 0.0  ;;  %v7220_v53 = vld [vmem:[%s10789_s6 + $0xb0] sm:$0xff]  ;;  %v10874_v19 = vpack.c.bf16 %v10872_v30, %v10873_v36 }
 0x396   : > { %4553 = vmatpush.bf16.msrb.mxu3 %v7220_v53  ;;  %v7241_v53 = vld [vmem:[%s10789_s6 + $0xd8] sm:$0xff] }
 0x397   : > { %v3891_v23 = vadd.f32 %v3878_v61, %v3777_v48  ;;  %v7219_v61 = vld [vmem:[%s10789_s6 + $0xa8] sm:$0xff]  ;;  %4243 = vmatpush.bf16.msrb.mxu2 %v7211_v25  ;;  %v7217_v48 = vld [vmem:[%s10789_s6 + $0x98] sm:$0xff] }
 0x398   : > { %v3767_v32 = vpop.f32.mrf.mxu2  ;;  %v7249_v25 = vld [vmem:[%s10789_s6 + $0xd8] sm:$0xff] }
 0x399   : > { %v4005_v43 = vadd.f32 %v3992_v1, %v3891_v23  ;;  %v7218_v1 = vld [vmem:[%s10789_s6 + $0xa0] sm:$0xff] }
 0x39a   : > { %v3653_v6 = vpop.f32.mrf.mxu1  ;;  %4554 = vmatpush.bf16.msrb.mxu3 %v7219_v61 }
 0x39b   : > { %v4014_v59 = vadd.f32 %v9445_v13, %v4005_v43  ;;  %v3664_v42 = vadd.f32 %v3653_v6, %v9435_v21  ;;  %v9501_v21 = vsel %vm4021_vm7, %v4013_v12, %v4029_v0  ;;  %4244 = vmatpush.bf16.msrb.mxu2 %v7210_v54  ;;  %v10876_v12 = vld [vmem:[#allocation22_spill] sm:$0xff]  ;;  %v7216_v43 = vld [vmem:[%s10789_s6 + $0x90] sm:$0xff]  ;;  %v10878_v6 = vld [vmem:[#allocation27_spill] sm:$0xff] }
 0x39c   : > { %v10877_v23 = vpack.c.bf16 %v10875_v58, %v10876_v12  ;;  %v7215_v0 = vld [vmem:[%s10789_s6 + $0x88] sm:$0xff]  ;;  %v7248_v54 = vld [vmem:[%s10789_s6 + $0xd0] sm:$0xff] }
 0x39d   : > { %v3778_v37 = vadd.f32 %v3767_v32, %v3664_v42  ;;  %vm4022_vm8 = vcmp.gt.f32.partialorder %v4014_v59, 0.0  ;;  %v4030_v20 = vmul.f32 0.1, %v4014_v59  ;;  %v10879_v32 = vld [vmem:[#allocation24_spill] sm:$0xff] }
 0x39e   : > { %4555 = vmatpush.bf16.msrb.mxu3 %v7218_v1  ;;  %v7207_v42 = vld [vmem:[%s10789_s6 + $0x48] sm:$0xff] }
 0x39f   : > { %v3892_v40 = vadd.f32 %v3881_v50, %v3778_v37  ;;  %v9503_v51 = vsel %vm4022_vm8, %v4014_v59, %v4030_v20  ;;  %4245 = vmatpush.bf16.msrb.mxu2 %v7209_v52  ;;  %v10880_v59 = vpack.c.bf16 %v10878_v6, %v10879_v32  ;;  %v7214_v50 = vld [vmem:[%s10789_s6 + $0x80] sm:$0xff]  ;;  %v10882_v37 = vld [vmem:[#allocation17_spill] sm:$0xff] }
 0x3a0   : > { %v4059_v11 = vpack.c.bf16 %v9503_v51, %v9501_v21  ;;  %v3769_v33 = vpop.f32.mrf.mxu2  ;;  %v10883_v20 = vpack.c.bf16 %v10881_v38, %v10882_v37 }
 0x3a1   : > { %v4006_v7 = vadd.f32 %v3995_v63, %v3892_v40  ;;  %v7253_v63 = vld [vmem:[%s10789_s6 + $0xf8] sm:$0xff]  ;;  %v7244_v40 = vld [vmem:[%s10789_s6 + $0xf0] sm:$0xff] }
 0x3a2   : > { %v3655_v41 = vpop.f32.mrf.mxu1  ;;  %4128 = vmatmul.bf16.gmra.mxu1 %v4059_v11  ;;  %4556 = vmatpush.bf16.msrb.mxu3 %v7217_v48  ;;  %v7252_v11 = vld [vmem:[%s10789_s6 + $0xf0] sm:$0xff] }
 0x3a3   : > { %v3665_v18 = vadd.f32 %v3655_v41, %v3551_v26  ;;  %v4015_v16 = vadd.f32 %v9445_v13, %v4006_v7  ;;  %4246 = vmatpush.bf16.msrb.mxu2 %v7208_v39  ;;  %v9594_v26 = vld [vmem:[%s10790_s7 + $0x2] ss:$0 sm:$0xff]  ;;  %v7239_v39 = vld [vmem:[%s10789_s6 + $0xc8] sm:$0xff] }
 0x3a5   : > { %v3779_v55 = vadd.f32 %v3769_v33, %v3665_v18  ;;  %v4031_v15 = vmul.f32 0.1, %v4015_v16  ;;  %vm4023_vm1 = vcmp.gt.f32.partialorder %v4015_v16, 0.0  ;;  %v7243_v18 = vld [vmem:[%s10789_s6 + $0xe8] sm:$0xff] }
 0x3a6   : > { %4557 = vmatpush.bf16.msrb.mxu3 %v7216_v43  ;;  %v7247_v43 = vld [vmem:[%s10789_s6 + $0xc8] sm:$0xff] }
 0x3a7   : > { %v3893_v2 = vadd.f32 %v3883_v28, %v3779_v55  ;;  %v9519_v17 = vsel %vm4023_vm1, %v4015_v16, %v4031_v15  ;;  %4247 = vmatpush.bf16.msrb.mxu2 %v7207_v42 }
 0x3a9   : > { %v4007_v57 = vadd.f32 %v3997_v3, %v3893_v2  ;;  %v7242_v3 = vld [vmem:[%s10789_s6 + $0xe0] sm:$0xff] }
 0x3aa   : > { %4558 = vmatpush.bf16.msrb.mxu3 %v7215_v0 }
 0x3ab   : > { %v4016_v62 = vadd.f32 %v9445_v13, %v4007_v57  ;;  %4248 = vmatpush.bf16.msrb.mxu2 %v7206_v10  ;;  %v7250_v57 = vld [vmem:[%s10789_s6 + $0xe0] sm:$0xff] }
 0x3ad   : > { %vm4024_vm9 = vcmp.gt.f32.partialorder %v4016_v62, 0.0  ;;  %v4032_v14 = vmul.f32 0.1, %v4016_v62 }
 0x3ae   : > { %4559 = vmatpush.bf16.msrb.mxu3 %v7214_v50 }
 0x3af   : > { %v9521_v34 = vsel %vm4024_vm9, %v4016_v62, %v4032_v14  ;;  %5279 = vmatpush.bf16.msra.mxu2 %v7245_v44 }
 0x3b0   : > { %v4060_v13 = vpack.c.bf16 %v9521_v34, %v9519_v17 }
 0x3b2   : > { %4133 = vmatmul.bf16.gmra.mxu1 %v4060_v13  ;;  %5594 = vmatpush.bf16.msra.mxu3 %v7253_v63 }
 0x3b3   : > { %5280 = vmatpush.bf16.msra.mxu2 %v7244_v40 }
 0x3b6   : > { %5595 = vmatpush.bf16.msra.mxu3 %v7252_v11 }
 0x3b7   : > { %5281 = vmatpush.bf16.msra.mxu2 %v7243_v18 }
 0x3ba   : > { %5596 = vmatpush.bf16.msra.mxu3 %v7251_v46 }
 0x3bb   : > { %5282 = vmatpush.bf16.msra.mxu2 %v7242_v3 }
 0x3be   : > { %5597 = vmatpush.bf16.msra.mxu3 %v7250_v57 }
 0x3bf   : > { %5283 = vmatpush.bf16.msra.mxu2 %v7241_v53 }
 0x3c2   : > { %4972 = vmatmul.bf16.vlgmr.msra.gmra.mxu1 %v10874_v19  ;;  %5598 = vmatpush.bf16.msra.mxu3 %v7249_v25  ;;  %v7240_v19 = vld [vmem:[%s10789_s6 + $0xd0] sm:$0xff] }
 0x3c3   : > { %5284 = vmatpush.bf16.msra.mxu2 %v7240_v19 }
 0x3c6   : > { %5599 = vmatpush.bf16.msra.mxu3 %v7248_v54  ;;  %v7528_v54 = vmov 0  }
 0x3c7   : > { %5285 = vmatpush.bf16.msra.mxu2 %v7239_v39 }
 0x3ca   : > { %5600 = vmatpush.bf16.msra.mxu3 %v7247_v43 }
 0x3d2   : > { %4977 = vmatmul.bf16.gmra.mxu1 %v10877_v23 }
 0x3e2   : > { %4982 = vmatmul.bf16.gmra.mxu1 %v10880_v59  ;;  %v7246_v59 = vld [vmem:[%s10789_s6 + $0xc0] sm:$0xff] }
 0x3e3   : > { %5601 = vmatpush.bf16.msra.mxu3 %v7246_v59 }
 0x3f2   : > { %4987 = vmatmul.bf16.gmra.mxu1 %v10883_v20 }
 0x3ff   : > { %v4119_v41 = vpop.f32.mrf.mxu1 }
 0x400   : > { %v4120_v7 = vadd.f32 %v9594_v26, %v4119_v41 }
 0x402   : > { %v4147_v33 = vmul.f32 0.1, %v4120_v7  ;;  %vm4139_vm10 = vcmp.gt.f32.partialorder %v4120_v7, 0.0 }
 0x404   : > { %v4155_v16 = vsel %vm4139_vm10, %v4120_v7, %v4147_v33 }
 0x405   : > { %v4163_v15 = vadd.f32 %v4155_v16, %v9452_v4 }
 0x407   : > { %v4121_v55 = vpop.f32.mrf.mxu1 }
 0x408   : > { %v4122_v28 = vadd.f32 %v9594_v26, %v4121_v55 }
 0x40a   : > { %vm4140_vm11 = vcmp.gt.f32.partialorder %v4122_v28, 0.0  ;;  %v4148_v2 = vmul.f32 0.1, %v4122_v28 }
 0x40c   : > { %v4156_v62 = vsel %vm4140_vm11, %v4122_v28, %v4148_v2 }
 0x40d   : > { %v4164_v27 = vadd.f32 %v4156_v62, %v9454_v60  ;;  %v4499_v29 = vpack.c.bf16 %v4156_v62, %v4155_v16 }
 0x40f   : > { %v4188_v14 = vpack.c.bf16 %v4164_v27, %v4163_v15  ;;  %v4124_v13 = vpop.f32.mrf.mxu1  ;;  %4560 = vmatmul.bf16.vlgmr.msrb.gmra.mxu3 %v4499_v29  ;;  %v468_v27 = vld [vmem:[%s10790_s7 + $0x7] sm:$0x1] }
 0x410   : > { %v4125_v31 = vadd.f32 %v9594_v26, %v4124_v13  ;;  %vm469_vm3 = vcmp.gt.f32.partialorder %v468_v27, 0.0 }
 0x411   : > { %4249 = vmatmul.bf16.vlgmr.msrb.gmra.mxu2 %v4188_v14 }
 0x412   : > { %v4149_v4 = vmul.f32 0.1, %v4125_v31  ;;  %vm4141_vm12 = vcmp.gt.f32.partialorder %v4125_v31, 0.0 }
 0x414   : > { %v4157_v36 = vsel %vm4141_vm12, %v4125_v31, %v4149_v4 }
 0x415   : > { %v4165_v48 = vadd.f32 %v4157_v36, %v9475_v5 }
 0x417   : > { %v4126_v60 = vpop.f32.mrf.mxu1 }
 0x418   : > { %v4127_v61 = vadd.f32 %v9594_v26, %v4126_v60 }
 0x41a   : > { %vm4142_vm13 = vcmp.gt.f32.partialorder %v4127_v61, 0.0  ;;  %v4150_v30 = vmul.f32 0.1, %v4127_v61 }
 0x41c   : > { %v4158_v1 = vsel %vm4142_vm13, %v4127_v61, %v4150_v30 }
 0x41d   : > { %v4500_v52 = vpack.c.bf16 %v4158_v1, %v4157_v36  ;;  %v4166_v58 = vadd.f32 %v4158_v1, %v9477_v49  ;;  %v7238_v49 = vld [vmem:[%s10789_s6 + $0xc0] sm:$0xff]  ;;  %v4438_v1 = vsel %vm469_vm3, 1, %v7528_v54 }
 0x41e   : > { %5286 = vmatpush.bf16.msra.mxu2 %v7238_v49  ;;  %v4439_v39 = vperm.slane %v4438_v1, 0 }
 0x41f   : > { %v4129_v12 = vpop.f32.mrf.mxu1  ;;  %4565 = vmatmul.bf16.gmra.mxu3 %v4500_v52  ;;  %v4189_v23 = vpack.c.bf16 %v4166_v58, %v4165_v48 }
 0x420   : > { %v4130_v6 = vadd.f32 %v9594_v26, %v4129_v12  ;;  %vm9701_vm4 = vcmp.eq.s32.totalorder %v4439_v39, 1 }
 0x421   : > { %4254 = vmatmul.bf16.gmra.mxu2 %v4189_v23 }
 0x422   : > { %v4151_v32 = vmul.f32 0.1, %v4130_v6  ;;  %vm4143_vm14 = vcmp.gt.f32.partialorder %v4130_v6, 0.0 }
 0x424   : > { %v4159_v10 = vsel %vm4143_vm14, %v4130_v6, %v4151_v32 }
 0x425   : > { %v4167_v37 = vadd.f32 %v4159_v10, %v9501_v21 }
 0x427   : > { %v4131_v5 = vpop.f32.mrf.mxu1 }
 0x428   : > { %v4132_v42 = vadd.f32 %v9594_v26, %v4131_v5 }
 0x42a   : > { %vm4144_vm15 = vcmp.gt.f32.partialorder %v4132_v42, 0.0  ;;  %v4152_v0 = vmul.f32 0.1, %v4132_v42 }
 0x42c   : > { %v4160_v50 = vsel %vm4144_vm15, %v4132_v42, %v4152_v0 }
 0x42d   : > { %v4501_v38 = vpack.c.bf16 %v4160_v50, %v4159_v10  ;;  %v4168_v20 = vadd.f32 %v4160_v50, %v9503_v51 }
 0x42f   : > { %v4134_v44 = vpop.f32.mrf.mxu1  ;;  %4570 = vmatmul.bf16.gmra.mxu3 %v4501_v38  ;;  %v4190_v63 = vpack.c.bf16 %v4168_v20, %v4167_v37 }
 0x430   : > { %v4135_v40 = vadd.f32 %v9594_v26, %v4134_v44 }
 0x431   : > { %4259 = vmatmul.bf16.gmra.mxu2 %v4190_v63 }
 0x432   : > { %v4153_v11 = vmul.f32 0.1, %v4135_v40  ;;  %vm4145_vm0 = vcmp.gt.f32.partialorder %v4135_v40, 0.0 }
 0x434   : > { %v4161_v46 = vsel %vm4145_vm0, %v4135_v40, %v4153_v11 }
 0x435   : > { %v4169_v21 = vadd.f32 %v4161_v46, %v9519_v17  ;;  %v9659_v17 = vld [vmem:[%s10790_s7 + $0x4] ss:$0 sm:$0xff] }
 0x437   : > { %v4136_v41 = vpop.f32.mrf.mxu1 }
 0x438   : > { %v4137_v7 = vadd.f32 %v9594_v26, %v4136_v41 }
 0x43a   : > { %vm4146_vm2 = vcmp.gt.f32.partialorder %v4137_v7, 0.0  ;;  %v4154_v18 = vmul.f32 0.1, %v4137_v7 }
 0x43c   : > { %v4162_v33 = vsel %vm4146_vm2, %v4137_v7, %v4154_v18 }
 0x43d   : > { %v4502_v55 = vpack.c.bf16 %v4162_v33, %v4161_v46  ;;  %v4170_v51 = vadd.f32 %v4162_v33, %v9521_v34 }
 0x43f   : > { %4575 = vmatmul.bf16.gmra.mxu3 %v4502_v55  ;;  %v4191_v28 = vpack.c.bf16 %v4170_v51, %v4169_v21  ;;  %v4973_v34 = vpop.f32.mrf.mxu1 }
 0x441   : > { %4264 = vmatmul.bf16.gmra.mxu2 %v4191_v28 }
 0x447   : > { %v4975_v15 = vpop.f32.mrf.mxu1 }
 0x44f   : > { %5602 = vmatmul.bf16.vlgmr.msra.gmra.mxu3 %v9223_v9  ;;  %v4659_v9 = vpop.f32.mrf.mxu0 }
 0x451   : > { %5287 = vmatmul.bf16.vlgmr.msra.gmra.mxu2 %v8885_v47 }
 0x457   : > { %v4661_v62 = vpop.f32.mrf.mxu0 }
 0x45f   : > { %5607 = vmatmul.bf16.gmra.mxu3 %v9278_v45  ;;  %v4664_v0 = vpop.f32.mrf.mxu0 }
 0x461   : > { %5292 = vmatmul.bf16.gmra.mxu2 %v8951_v24  ;;  %v9664_v24 = vld [vmem:[%s10790_s7 + $0x3] ss:$0 sm:$0xff] }
 0x46f   : > { %5612 = vmatmul.bf16.gmra.mxu3 %v9312_v22 }
 0x471   : > { %5297 = vmatmul.bf16.gmra.mxu2 %v8985_v56 }
 0x47f   : > { %5617 = vmatmul.bf16.gmra.mxu3 %v9329_v8 }
 0x481   : > { %5302 = vmatmul.bf16.gmra.mxu2 %v9021_v35 }
 0x492   : > { %v4561_v47 = vpop.f32.mrf.mxu3 }
 0x493   : > { %v9667_v45 = vadd.f32 %v9659_v17, %v4561_v47 }
 0x494   : > { %v4250_v56 = vpop.f32.mrf.mxu2 }
 0x495   : > { %v4679_v22 = vadd.f32 %v4659_v9, %v9667_v45  ;;  %v4993_v35 = vadd.f32 %v4973_v34, %v9667_v45  ;;  %v4251_v8 = vadd.f32 %v9664_v24, %v4250_v56 }
 0x497   : > { %v6898_v26 = vmul.f32 -1.442695, %v4679_v22  ;;  %v6954_v16 = vmul.f32 -1.442695, %v4993_v35  ;;  %v6794_v2 = vmul.f32 -1.442695, %v4251_v8 }
 0x498   : > { %v4687_v29 = vmul.f32 1.442695, %v4679_v22  ;;  %v5001_v14 = vmul.f32 1.442695, %v4993_v35  ;;  %v4270_v60 = vmul.f32 1.442695, %v4251_v8 }
 0x499   : > { %7272 = vpow2.f32 %v6898_v26  ;;  %v4458_v35 = vld [vmem:[%s10791_s8] sm:$0xff] }
 0x49a   : > { %v4563_v3 = vpop.f32.mrf.mxu3  ;;  %7274 = vpow2.f32 %v6954_v16 }
 0x49b   : > { %v9673_v57 = vadd.f32 %v9659_v17, %v4563_v3  ;;  %7276 = vpow2.f32 %v6794_v2 }
 0x49c   : > { %v4252_v53 = vpop.f32.mrf.mxu2  ;;  %7278 = vpow2.f32 %v4687_v29 }
 0x49d   : > { %v4680_v13 = vadd.f32 %v4661_v62, %v9673_v57  ;;  %v4994_v31 = vadd.f32 %v4975_v15, %v9673_v57  ;;  %7280 = vpow2.f32 %v5001_v14  ;;  %v4253_v36 = vadd.f32 %v9664_v24, %v4252_v53 }
 0x49f   : > { %v6899_v25 = vmul.f32 -1.442695, %v4680_v13  ;;  %v7273_v4 = vpop.eup %7272  ;;  %v6955_v30 = vmul.f32 -1.442695, %v4994_v31  ;;  %v4689_v12 = vmul.f32 1.442695, %v4680_v13  ;;  %v4978_v13 = vpop.f32.mrf.mxu1 }
 0x4a0   : > { %v9680_v61 = vadd.f32 1.0, %v7273_v4  ;;  %v7275_v19 = vpop.eup %7274  ;;  %v6795_v6 = vmul.f32 -1.442695, %v4253_v36  ;;  %v5003_v59 = vmul.f32 1.442695, %v4994_v31 }
 0x4a1   : > { %7282 = vpow2.f32 %v6899_v25  ;;  %v7277_v48 = vpop.eup %7276  ;;  %v9684_v58 = vadd.f32 1.0, %v7275_v19  ;;  %v4272_v38 = vmul.f32 1.442695, %v4253_v36 }
 0x4a2   : > { %v4566_v52 = vpop.f32.mrf.mxu3  ;;  %7284 = vrcp.f32 %v9680_v61  ;;  %v9689_v43 = vadd.f32 1.0, %v7277_v48  ;;  %v9691_v32 = vpop.eup %7278  ;;  %v4744_v5 = vand.u32 2147483647, %v9680_v61  ;;  %v4746_v49 = vand.u32 2147483648, %v9680_v61 }
 0x4a3   : > { %7286 = vpow2.f32 %v4270_v60  ;;  %v9687_v23 = vadd.f32 %v9659_v17, %v4566_v52  ;;  %v9696_v42 = vpop.eup %7280  ;;  %v5060_v50 = vand.u32 2147483648, %v9684_v58  ;;  %vm4740_vm5 = vweird.f32 %v9680_v61  ;;  %v9759_v60 = vld [vmem:[%s10790_s7 + $0x6] ss:$0 sm:$0xff] }
 0x4a4   : > { %7288 = vpow2.f32 %v6955_v30  ;;  %v5058_v63 = vand.u32 2147483647, %v9684_v58  ;;  %vm9712_vm6 = vcmp.eq.f32.partialorder %v4744_v5, 8.507059e+37  ;;  %v4747_v18 = vor.u32 1.1754944e-38, %v4746_v49  ;;  %v4872_v49 = vld [vmem:[%s10792_s9] sm:$0xff] }
 0x4a5   : > { %7290 = vrcp.f32 %v9684_v58  ;;  %v4681_v37 = vadd.f32 %v4664_v0, %v9687_v23  ;;  %vm5054_vm7 = vweird.f32 %v9684_v58  ;;  %v4327_v33 = vand.u32 2147483647, %v9689_v43 }
 0x4a6   : > { %7292 = vrcp.f32 %v9689_v43  ;;  %v4329_v55 = vand.u32 2147483648, %v9689_v43  ;;  %v9722_v9 = vor.u32 1.1754944e-38, %v5060_v50  ;;  %vm4323_vm8 = vweird.f32 %v9689_v43 }
 0x4a7   : > { %v7283_v10 = vpop.eup %7282  ;;  %7294 = vpow2.f32 %v4689_v12  ;;  %v4691_v21 = vmul.f32 1.442695, %v4681_v37  ;;  %v6900_v47 = vmul.f32 -1.442695, %v4681_v37  ;;  %vm9731_vm9 = vcmp.eq.f32.partialorder %v5058_v63, 8.507059e+37 }
 0x4a8   : > { %v7285_v20 = vpop.eup %7284  ;;  %v9707_v40 = vadd.f32 1.0, %v7283_v10  ;;  %7296 = vpow2.f32 %v6795_v6  ;;  %vm9742_vm10 = vcmp.eq.f32.partialorder %v4327_v33, 8.507059e+37  ;;  %v4330_v29 = vor.u32 1.1754944e-38, %v4329_v55  ;;  %v9817_v63 = vld [vmem:[%s10790_s7 + $0x5] ss:$0 sm:$0xff] }
 0x4a9   : > { %v9709_v11 = vpop.eup %7286  ;;  %v4736_v41 = vmul.f32 %v7285_v20, %v9680_v61  ;;  %7298 = vpow2.f32 %v5003_v59  ;;  %vm4741_vm1 = vweird.f32 %v7285_v20  ;;  %v9764_v19 = vadd.f32 %v4978_v13, %v9687_v23  ;;  %v4980_v59 = vpop.f32.mrf.mxu1 }
 0x4aa   : > { %v7289_v46 = vpop.eup %7288  ;;  %7300 = vrcp.f32 %v9707_v40  ;;  %v4761_v8 = vand.u32 2147483648, %v9707_v40  ;;  %v4759_v3 = vand.u32 2147483647, %v9707_v40  ;;  %vm4755_vm11 = vweird.f32 %v9707_v40  ;;  %vm4742_vm12 = vmor %vm4740_vm5, %vm4741_vm1 }
 0x4ab   : > { %v9720_v51 = vpop.eup %7290  ;;  %v4737_v28 = vsub.f32 1.0, %v4736_v41  ;;  %v9725_v34 = vadd.f32 1.0, %v7289_v46  ;;  %7302 = vpow2.f32 %v4272_v38  ;;  %v4255_v38 = vpop.f32.mrf.mxu2 }
 0x4ac   : > { %v9727_v56 = vpop.eup %7292  ;;  %v5050_v22 = vmul.f32 %v9720_v51, %v9684_v58  ;;  %vm5055_vm13 = vweird.f32 %v9720_v51  ;;  %v4762_v36 = vor.u32 1.1754944e-38, %v4761_v8  ;;  %vm9770_vm15 = vcmp.eq.f32.partialorder %v4759_v3, 8.507059e+37 }
 0x4ad   : > { %v9736_v26 = vpop.eup %7294  ;;  %v4738_v16 = vmul.f32 %v7285_v20, %v4737_v28  ;;  %v4319_v2 = vmul.f32 %v9727_v56, %v9689_v43  ;;  %7304 = vrcp.f32 %v9725_v34  ;;  %vm4324_vm14 = vweird.f32 %v9727_v56  ;;  %vm9794_vm2 = vmor %vm5054_vm7, %vm5055_vm13  ;;  %v6962_v28 = vld [vmem:[%s10792_s9 + $0x40] sm:$0xff] }
 0x4ae   : > { %v7297_v62 = vpop.eup %7296  ;;  %v5051_v15 = vsub.f32 1.0, %v5050_v22  ;;  %7306 = vpow2.f32 %v4691_v21  ;;  %vm5069_vm0 = vweird.f32 %v9725_v34  ;;  %v5073_v50 = vand.u32 2147483647, %v9725_v34  ;;  %vm9810_vm3 = vmor %vm4323_vm8, %vm4324_vm14 }
 0x4af   : > { %v9746_v14 = vpop.eup %7298  ;;  %v4739_v31 = vadd.f32 %v7285_v20, %v4738_v16  ;;  %v4320_v53 = vsub.f32 1.0, %v4319_v2  ;;  %v9749_v25 = vadd.f32 1.0, %v7297_v62  ;;  %7308 = vpow2.f32 %v6900_v47 }
 0x4b0   : > { %v9751_v4 = vpop.eup %7300  ;;  %v5052_v30 = vmul.f32 %v9720_v51, %v5051_v15  ;;  %v5075_v7 = vand.u32 2147483648, %v9725_v34 }
 0x4b1   : > { %v4743_v54 = vsel %vm4742_vm12, %v7285_v20, %v4739_v31  ;;  %v4321_v1 = vmul.f32 %v9727_v56, %v4320_v53  ;;  %v4751_v61 = vmul.f32 %v9751_v4, %v9707_v40  ;;  %v9774_v48 = vpop.eup %7302  ;;  %7310 = vrcp.f32 %v9749_v25  ;;  %v4666_v40 = vpop.f32.mrf.mxu0 }
 0x4b2   : > { %v4748_v12 = vsel %vm9712_vm6, %v4747_v18, %v4743_v54  ;;  %v5053_v39 = vadd.f32 %v9720_v51, %v5052_v30  ;;  %v9822_v18 = vpop.f32.mrf.mxu3  ;;  %vm4756_vm5 = vweird.f32 %v9751_v4  ;;  %vm9854_vm6 = vcmp.eq.f32.partialorder %v5073_v50, 8.507059e+37 }
 0x4b3   : > { %v9782_v6 = vpop.eup %7304  ;;  %v4855_v5 = vsel %vm9701_vm4, %v9691_v32, %v4748_v12  ;;  %v4322_v0 = vadd.f32 %v9727_v56, %v4321_v1  ;;  %v4752_v10 = vsub.f32 1.0, %v4751_v61  ;;  %vm4757_vm7 = vmor %vm4755_vm11, %vm4756_vm5  ;;  %v5076_v27 = vor.u32 1.1754944e-38, %v5075_v7 }
 0x4b4   : > { %v9800_v37 = vpop.eup %7306  ;;  %v4864_v32 = vmul.f32 %v9759_v60, %v4855_v5  ;;  %v5057_v20 = vsel %vm9794_vm2, %v9720_v51, %v5053_v39  ;;  %v5065_v41 = vmul.f32 %v9782_v6, %v9725_v34  ;;  %vm5070_vm8 = vweird.f32 %v9782_v6 }
 0x4b5   : > { %v7309_v46 = vpop.eup %7308  ;;  %v5062_v43 = vsel %vm9731_vm9, %v9722_v9, %v5057_v20  ;;  %v4326_v33 = vsel %vm9810_vm3, %v9727_v56, %v4322_v0  ;;  %v4753_v55 = vmul.f32 %v9751_v4, %v4752_v10  ;;  %v5005_v30 = vmul.f32 1.442695, %v9764_v19  ;;  %vm5071_vm1 = vmor %vm5069_vm0, %vm5070_vm8 }
 0x4b6   : > { %v4880_v21 = vadd.f32 %v4872_v49, %v4864_v32  ;;  %v5169_v51 = vsel %vm9701_vm4, %v9696_v42, %v5062_v43  ;;  %v4331_v9 = vsel %vm9742_vm10, %v4330_v29, %v4326_v33  ;;  %v5066_v47 = vsub.f32 1.0, %v5065_v41  ;;  %v4257_v49 = vpop.f32.mrf.mxu2 }
 0x4b7   : > { %v5177_v56 = vmul.f32 %v9759_v60, %v5169_v51  ;;  %v4441_v22 = vsel %vm9701_vm4, %v9709_v11, %v4331_v9  ;;  %v4754_v42 = vadd.f32 %v9751_v4, %v4753_v55  ;;  %v7311_v16 = vpop.eup %7310  ;;  %v9866_v3 = vadd.f32 1.0, %v7309_v46 }
 0x4b8   : > { %4888 = vst [vmem:[%s9827_s29] sm:$0xff] %v4880_v21  ;;  %v4450_v2 = vmul.f32 %v9817_v63, %v4441_v22  ;;  %v5067_v11 = vmul.f32 %v9782_v6, %v5066_v47  ;;  %v4334_v29 = vmul.f32 %v7311_v16, %v9749_v25  ;;  %vm4339_vm9 = vweird.f32 %v7311_v16 }
 0x4b9   : > { %v5194_v62 = vadd.f32 %v6962_v28, %v5177_v56  ;;  %v4758_v15 = vsel %vm4757_vm7, %v9751_v4, %v4754_v42  ;;  %v4873_v4 = vld [vmem:[%s10792_s9 + $0x8] sm:$0xff]  ;;  %7312 = vrcp.f32 %v9866_v3  ;;  %v6956_v34 = vmul.f32 -1.442695, %v9764_v19  ;;  %v4669_v56 = vpop.f32.mrf.mxu0 }
 0x4ba   : > { %v4466_v13 = vadd.f32 %v4458_v35, %v4450_v2  ;;  %v4763_v31 = vsel %vm9770_vm15, %v4762_v36, %v4758_v15  ;;  %v5068_v53 = vadd.f32 %v9782_v6, %v5067_v11  ;;  %v4335_v1 = vsub.f32 1.0, %v4334_v29  ;;  %v4571_v50 = vpop.f32.mrf.mxu3 }
 0x4bb   : > { %6970 = vst [vmem:[%s9827_s29 + $0x40] sm:$0xff] %v5194_v62  ;;  %v4856_v54 = vsel %vm9701_vm4, %v9736_v26, %v4763_v31  ;;  %v4342_v36 = vand.u32 2147483647, %v9749_v25  ;;  %v4344_v26 = vand.u32 2147483648, %v9749_v25  ;;  %v4256_v5 = vadd.f32 %v9664_v24, %v4255_v38 }
 0x4bc   : > { %4474 = vst [vmem:[%s9871_s19] sm:$0xff] %v4466_v13  ;;  %v4865_v61 = vmul.f32 %v9759_v60, %v4856_v54  ;;  %v5072_v52 = vsel %vm5071_vm1, %v9782_v6, %v5068_v53  ;;  %v4336_v39 = vmul.f32 %v7311_v16, %v4335_v1  ;;  %v6963_v6 = vld [vmem:[%s10792_s9 + $0x48] sm:$0xff]  ;;  %vm4338_vm10 = vweird.f32 %v9749_v25  ;;  %v4983_v13 = vpop.f32.mrf.mxu1 }
 0x4bd   : > { %v5077_v12 = vsel %vm9854_vm6, %v5076_v27, %v5072_v52  ;;  %7314 = vpow2.f32 %v5005_v30  ;;  %vm4343_vm11 = vcmp.eq.f32.partialorder %v4342_v36, 8.507059e+37  ;;  %vm4340_vm12 = vmor %vm4338_vm10, %vm4339_vm9  ;;  %v4345_v38 = vor.u32 1.1754944e-38, %v4344_v26 }
 0x4be   : > { %v4881_v0 = vadd.f32 %v4873_v4, %v4865_v61  ;;  %v5170_v10 = vsel %vm9701_vm4, %v9746_v14, %v5077_v12  ;;  %v4337_v19 = vadd.f32 %v7311_v16, %v4336_v39  ;;  %7316 = vpow2.f32 %v6956_v34  ;;  %v4260_v52 = vpop.f32.mrf.mxu2 }
 0x4bf   : > { %v5178_v32 = vmul.f32 %v9759_v60, %v5170_v10  ;;  %v6796_v20 = vmul.f32 -1.442695, %v4256_v5  ;;  %v9912_v14 = vadd.f32 %v9659_v17, %v9822_v18  ;;  %v4258_v58 = vadd.f32 %v9664_v24, %v4257_v49  ;;  %v7313_v25 = vpop.eup %7312  ;;  %v4459_v18 = vld [vmem:[%s10791_s8 + $0x8] sm:$0xff]  ;;  %v4874_v49 = vld [vmem:[%s10792_s9 + $0x10] sm:$0xff] }
 0x4c0   : > { %4889 = vst [vmem:[%s9827_s29 + $0x8] sm:$0xff] %v4881_v0  ;;  %v4341_v7 = vsel %vm4340_vm12, %v7311_v16, %v4337_v19  ;;  %v4274_v46 = vmul.f32 1.442695, %v4256_v5  ;;  %v9916_v43 = vadd.f32 %v9659_v17, %v4571_v50  ;;  %v4766_v55 = vmul.f32 %v7313_v25, %v9866_v3 }
 0x4c1   : > { %v5195_v41 = vadd.f32 %v6963_v6, %v5178_v32  ;;  %v4346_v33 = vsel %vm4343_vm11, %v4345_v38, %v4341_v7  ;;  %7318 = vpow2.f32 %v6796_v20  ;;  %v4774_v51 = vand.u32 2147483647, %v9866_v3 }
 0x4c2   : > { %v4442_v21 = vsel %vm9701_vm4, %v9774_v48, %v4346_v33  ;;  %v4682_v28 = vadd.f32 %v4666_v40, %v9912_v14  ;;  %v4276_v9 = vmul.f32 1.442695, %v4258_v58  ;;  %v4767_v35 = vsub.f32 1.0, %v4766_v55  ;;  %v4573_v32 = vpop.f32.mrf.mxu3 }
 0x4c3   : > { %6971 = vst [vmem:[%s9827_s29 + $0x48] sm:$0xff] %v5195_v41  ;;  %v9928_v47 = vpop.eup %7314  ;;  %v4451_v22 = vmul.f32 %v9817_v63, %v4442_v21  ;;  %v4776_v42 = vand.u32 2147483648, %v9866_v3  ;;  %v4996_v48 = vadd.f32 %v4980_v59, %v9912_v14  ;;  %vm4771_vm13 = vweird.f32 %v7313_v25 }
 0x4c4   : > { %v7317_v8 = vpop.eup %7316  ;;  %7320 = vpow2.f32 %v4274_v46  ;;  %v6901_v16 = vmul.f32 -1.442695, %v4682_v28  ;;  %v4683_v2 = vadd.f32 %v4669_v56, %v9916_v43  ;;  %v4768_v62 = vmul.f32 %v7313_v25, %v4767_v35 }
 0x4c5   : > { %v4467_v11 = vadd.f32 %v4459_v18, %v4451_v22  ;;  %v9934_v15 = vadd.f32 1.0, %v7317_v8  ;;  %v4693_v27 = vmul.f32 1.442695, %v4682_v28  ;;  %vm4770_vm14 = vweird.f32 %v9866_v3 }
 0x4c6   : > { %vm9937_vm15 = vcmp.eq.f32.partialorder %v4774_v51, 8.507059e+37  ;;  %7322 = vpow2.f32 %v4276_v9  ;;  %v4769_v31 = vadd.f32 %v7313_v25, %v4768_v62  ;;  %v4777_v53 = vor.u32 1.1754944e-38, %v4776_v42  ;;  %vm4772_vm0 = vmor %vm4770_vm14, %vm4771_vm13 }
 0x4c7   : > { %v7319_v40 = vpop.eup %7318  ;;  %4475 = vst [vmem:[%s9871_s19 + $0x8] sm:$0xff] %v4467_v11  ;;  %7324 = vrcp.f32 %v9934_v15  ;;  %v6957_v30 = vmul.f32 -1.442695, %v4996_v48  ;;  %v6797_v4 = vmul.f32 -1.442695, %v4258_v58  ;;  %v4997_v3 = vadd.f32 %v4983_v13, %v9916_v43 }
 0x4c8   : > { %v9944_v54 = vadd.f32 1.0, %v7319_v40  ;;  %7326 = vpow2.f32 %v6901_v16  ;;  %v4773_v1 = vsel %vm4772_vm0, %v7313_v25, %v4769_v31  ;;  %v5007_v36 = vmul.f32 1.442695, %v4996_v48  ;;  %v4671_v48 = vpop.f32.mrf.mxu0  ;;  %v4262_v40 = vpop.f32.mrf.mxu2 }
 0x4c9   : > { %7328 = vpow2.f32 %v4693_v27  ;;  %v4695_v61 = vmul.f32 1.442695, %v4683_v2  ;;  %v4778_v12 = vsel %vm9937_vm15, %v4777_v53, %v4773_v1  ;;  %v5088_v39 = vand.u32 2147483647, %v9934_v15  ;;  %v4985_v31 = vpop.f32.mrf.mxu1 }
 0x4ca   : > { %v9947_v26 = vpop.eup %7320  ;;  %v5090_v34 = vand.u32 2147483648, %v9934_v15  ;;  %7330 = vrcp.f32 %v9944_v54  ;;  %v4857_v5 = vsel %vm9701_vm4, %v9800_v37, %v4778_v12  ;;  %v6902_v59 = vmul.f32 -1.442695, %v4683_v2 }
 0x4cb   : > { %7332 = vpow2.f32 %v6957_v30  ;;  %v4866_v10 = vmul.f32 %v9759_v60, %v4857_v5  ;;  %v5009_v6 = vmul.f32 1.442695, %v4997_v3  ;;  %v4261_v50 = vadd.f32 %v9664_v24, %v4260_v52 }
 0x4cc   : > { %v9960_v0 = vpop.eup %7322  ;;  %7334 = vpow2.f32 %v6797_v4  ;;  %vm5084_vm2 = vweird.f32 %v9934_v15  ;;  %v4357_v37 = vand.u32 2147483647, %v9944_v54  ;;  %v6958_v38 = vmul.f32 -1.442695, %v4997_v3 }
 0x4cd   : > { %v7325_v19 = vpop.eup %7324  ;;  %7336 = vpow2.f32 %v5007_v36  ;;  %v4882_v58 = vadd.f32 %v4874_v49, %v4866_v10  ;;  %vm9967_vm3 = vcmp.eq.f32.partialorder %v5088_v39, 8.507059e+37  ;;  %v5091_v7 = vor.u32 1.1754944e-38, %v5090_v34 }
 0x4ce   : > { %v7327_v20 = vpop.eup %7326  ;;  %v5080_v25 = vmul.f32 %v7325_v19, %v9934_v15  ;;  %7338 = vpow2.f32 %v4695_v61  ;;  %vm4353_vm5 = vweird.f32 %v9944_v54  ;;  %v9977_v55 = vadd.f32 %v9659_v17, %v4573_v32 }
 0x4cf   : > { %v9971_v46 = vpop.eup %7328  ;;  %v9974_v33 = vadd.f32 1.0, %v7327_v20  ;;  %7340 = vpow2.f32 %v6902_v59  ;;  %4890 = vst [vmem:[%s9827_s29 + $0x10] sm:$0xff] %v4882_v58  ;;  %v4359_v51 = vand.u32 2147483648, %v9944_v54  ;;  %v4278_v28 = vmul.f32 1.442695, %v4261_v50 }
 0x4d0   : > { %v7331_v21 = vpop.eup %7330  ;;  %v5081_v18 = vsub.f32 1.0, %v5080_v25  ;;  %7342 = vpow2.f32 %v5009_v6  ;;  %vm9982_vm6 = vcmp.eq.f32.partialorder %v4357_v37, 8.507059e+37  ;;  %v6798_v35 = vmul.f32 -1.442695, %v4261_v50  ;;  %v6964_v6 = vld [vmem:[%s10792_s9 + $0x50] sm:$0xff] }
 0x4d1   : > { %v7333_v9 = vpop.eup %7332  ;;  %v4349_v56 = vmul.f32 %v7331_v21, %v9944_v54  ;;  %7344 = vrcp.f32 %v9974_v33  ;;  %vm5085_vm7 = vweird.f32 %v7325_v19  ;;  %v4791_v62 = vand.u32 2147483648, %v9974_v33 }
 0x4d2   : > { %v7335_v42 = vpop.eup %7334  ;;  %v5082_v8 = vmul.f32 %v7325_v19, %v5081_v18  ;;  %v9987_v16 = vadd.f32 1.0, %v7333_v9  ;;  %7346 = vpow2.f32 %v6958_v38  ;;  %v9995_v29 = vadd.f32 %v4671_v48, %v9977_v55  ;;  %vm5086_vm8 = vmor %vm5084_vm2, %vm5085_vm7 }
 0x4d3   : > { %v9989_v2 = vpop.eup %7336  ;;  %v4350_v11 = vsub.f32 1.0, %v4349_v56  ;;  %v9992_v27 = vadd.f32 1.0, %v7335_v42  ;;  %v4360_v30 = vor.u32 1.1754944e-38, %v4359_v51  ;;  %v4789_v4 = vand.u32 2147483647, %v9974_v33 }
 0x4d4   : > { %v9997_v13 = vpop.eup %7338  ;;  %v5083_v53 = vadd.f32 %v7325_v19, %v5082_v8  ;;  %7348 = vrcp.f32 %v9987_v16  ;;  %vm4354_vm1 = vweird.f32 %v7331_v21  ;;  %v10005_v36 = vadd.f32 %v4985_v31, %v9977_v55 }
 0x4d5   : > { %v7341_v3 = vpop.eup %7340  ;;  %v4351_v1 = vmul.f32 %v7331_v21, %v4350_v11  ;;  %7350 = vpow2.f32 %v4278_v28  ;;  %vm4785_vm9 = vweird.f32 %v9974_v33  ;;  %v10012_v12 = vadd.f32 %v9664_v24, %v4262_v40  ;;  %vm4355_vm10 = vmor %vm4353_vm5, %vm4354_vm1 }
 0x4d6   : > { %v10007_v61 = vpop.eup %7342  ;;  %v5087_v52 = vsel %vm5086_vm8, %v7325_v19, %v5083_v53  ;;  %7352 = vrcp.f32 %v9992_v27  ;;  %v4792_v5 = vor.u32 1.1754944e-38, %v4791_v62  ;;  %v10017_v49 = vmul.f32 1.442695, %v9995_v29 }
 0x4d7   : > { %v7345_v39 = vpop.eup %7344  ;;  %v5092_v15 = vsel %vm9967_vm3, %v5091_v7, %v5087_v52  ;;  %v4352_v34 = vadd.f32 %v7331_v21, %v4351_v1  ;;  %vm10029_vm11 = vcmp.eq.f32.partialorder %v4789_v4, 8.507059e+37  ;;  %v5103_v19 = vand.u32 2147483647, %v9987_v16 }
 0x4d8   : > { %v7347_v59 = vpop.eup %7346  ;;  %v5171_v10 = vsel %vm9701_vm4, %v9928_v47, %v5092_v15  ;;  %v4781_v50 = vmul.f32 %v7345_v39, %v9974_v33  ;;  %v5105_v37 = vand.u32 2147483648, %v9987_v16  ;;  %v4372_v20 = vand.u32 2147483647, %v9992_v27 }
 0x4d9   : > { %v5179_v47 = vmul.f32 %v9759_v60, %v5171_v10  ;;  %v4356_v38 = vsel %vm4355_vm10, %v7331_v21, %v4352_v34  ;;  %v10037_v58 = vadd.f32 1.0, %v7341_v3  ;;  %vm4786_vm12 = vweird.f32 %v7345_v39  ;;  %v4460_v21 = vld [vmem:[%s10791_s8 + $0x10] sm:$0xff] }
 0x4da   : > { %v7349_v25 = vpop.eup %7348  ;;  %v4361_v54 = vsel %vm9982_vm6, %v4360_v30, %v4356_v38  ;;  %v4782_v41 = vsub.f32 1.0, %v4781_v50  ;;  %7354 = vpow2.f32 %v6798_v35  ;;  %v10050_v9 = vadd.f32 1.0, %v7347_v59  ;;  %vm4787_vm0 = vmor %vm4785_vm9, %vm4786_vm12 }
 0x4db   : > { %v10041_v7 = vpop.eup %7350  ;;  %v5196_v18 = vadd.f32 %v6964_v6, %v5179_v47  ;;  %v4443_v51 = vsel %vm9701_vm4, %v9947_v26, %v4361_v54  ;;  %v5095_v28 = vmul.f32 %v7349_v25, %v9987_v16  ;;  %v4374_v35 = vand.u32 2147483648, %v9992_v27  ;;  %v6965_v54 = vld [vmem:[%s10792_s9 + $0x58] sm:$0xff] }
 0x4dc   : > { %v7353_v56 = vpop.eup %7352  ;;  %v4452_v22 = vmul.f32 %v9817_v63, %v4443_v51  ;;  %v4783_v42 = vmul.f32 %v7345_v39, %v4782_v41  ;;  %7356 = vrcp.f32 %v10037_v58  ;;  %vm5099_vm13 = vweird.f32 %v9987_v16 }
 0x4dd   : > { %6972 = vst [vmem:[%s9827_s29 + $0x50] sm:$0xff] %v5196_v18  ;;  %v5096_v48 = vsub.f32 1.0, %v5095_v28  ;;  %v4364_v26 = vmul.f32 %v7353_v56, %v9992_v27  ;;  %vm4368_vm14 = vweird.f32 %v9992_v27  ;;  %vm10059_vm15 = vcmp.eq.f32.partialorder %v5103_v19, 8.507059e+37  ;;  %v4461_v28 = vld [vmem:[%s10791_s8 + $0x18] sm:$0xff] }
 0x4de   : > { %v4468_v8 = vadd.f32 %v4460_v21, %v4452_v22  ;;  %v4784_v11 = vadd.f32 %v7345_v39, %v4783_v42  ;;  %v5106_v40 = vor.u32 1.1754944e-38, %v5105_v37  ;;  %vm5100_vm2 = vweird.f32 %v7349_v25 }
 0x4df   : > { %v5097_v31 = vmul.f32 %v7349_v25, %v5096_v48  ;;  %v4365_v53 = vsub.f32 1.0, %v4364_v26  ;;  %7358 = vrcp.f32 %v10050_v9  ;;  %vm4369_vm3 = vweird.f32 %v7353_v56  ;;  %vm5101_vm7 = vmor %vm5099_vm13, %vm5100_vm2 }
 0x4e0   : > { %v7355_v30 = vpop.eup %7354  ;;  %4476 = vst [vmem:[%s9871_s19 + $0x10] sm:$0xff] %v4468_v8  ;;  %v4788_v4 = vsel %vm4787_vm0, %v7345_v39, %v4784_v11  ;;  %vm10068_vm5 = vcmp.eq.f32.partialorder %v4372_v20, 8.507059e+37  ;;  %v4375_v1 = vor.u32 1.1754944e-38, %v4374_v35  ;;  %vm4800_vm6 = vweird.f32 %v10037_v58  ;;  %v4875_v39 = vld [vmem:[%s10792_s9 + $0x18] sm:$0xff]  ;;  %vm4370_vm8 = vmor %vm4368_vm14, %vm4369_vm3  ;;  %v4576_v8 = vpop.f32.mrf.mxu3 }
 0x4e1   : > { %v4793_v52 = vsel %vm10029_vm11, %v4792_v5, %v4788_v4  ;;  %v5098_v15 = vadd.f32 %v7349_v25, %v5097_v31  ;;  %v4366_v33 = vmul.f32 %v7353_v56, %v4365_v53  ;;  %v4804_v10 = vand.u32 2147483647, %v10037_v58 }
 0x4e2   : > { %v7357_v34 = vpop.eup %7356  ;;  %v4858_v59 = vsel %vm9701_vm4, %v9971_v46, %v4793_v52  ;;  %v4806_v5 = vand.u32 2147483648, %v10037_v58  ;;  %v10086_v6 = vadd.f32 1.0, %v7355_v30  ;;  %v5118_v16 = vand.u32 2147483647, %v10050_v9 }
 0x4e3   : > { %v4867_v50 = vmul.f32 %v9759_v60, %v4858_v59  ;;  %v5102_v32 = vsel %vm5101_vm7, %v7349_v25, %v5098_v15  ;;  %v4367_v19 = vadd.f32 %v7353_v56, %v4366_v33  ;;  %v4796_v46 = vmul.f32 %v7357_v34, %v10037_v58 }
 0x4e4   : > { %v5107_v37 = vsel %vm10059_vm15, %v5106_v40, %v5102_v32  ;;  %v5120_v47 = vand.u32 2147483648, %v10050_v9  ;;  %7360 = vrcp.f32 %v10086_v6  ;;  %vm5114_vm1 = vweird.f32 %v10050_v9  ;;  %v4674_v32 = vpop.f32.mrf.mxu0 }
 0x4e5   : > { %v7359_v38 = vpop.eup %7358  ;;  %v4883_v20 = vadd.f32 %v4875_v39, %v4867_v50  ;;  %v5172_v25 = vsel %vm9701_vm4, %v9989_v2, %v5107_v37  ;;  %v4371_v41 = vsel %vm4370_vm8, %v7353_v56, %v4367_v19  ;;  %v4797_v18 = vsub.f32 1.0, %v4796_v46 }
 0x4e6   : > { %v5180_v27 = vmul.f32 %v9759_v60, %v5172_v25  ;;  %v4376_v51 = vsel %vm10068_vm5, %v4375_v1, %v4371_v41  ;;  %v5110_v21 = vmul.f32 %v7359_v38, %v10050_v9  ;;  %vm4801_vm9 = vweird.f32 %v7357_v34  ;;  %v4265_v41 = vpop.f32.mrf.mxu2 }
 0x4e7   : > { %4891 = vst [vmem:[%s9827_s29 + $0x18] sm:$0xff] %v4883_v20  ;;  %v4444_v2 = vsel %vm9701_vm4, %v9960_v0, %v4376_v51  ;;  %v4798_v56 = vmul.f32 %v7357_v34, %v4797_v18  ;;  %vm10116_vm10 = vcmp.eq.f32.partialorder %v4804_v10, 8.507059e+37  ;;  %v4807_v48 = vor.u32 1.1754944e-38, %v4806_v5  ;;  %vm4802_vm12 = vmor %vm4800_vm6, %vm4801_vm9  ;;  %v4988_v20 = vpop.f32.mrf.mxu1 }
 0x4e8   : > { %v5197_v42 = vadd.f32 %v6965_v54, %v5180_v27  ;;  %v4453_v35 = vmul.f32 %v9817_v63, %v4444_v2  ;;  %v5111_v26 = vsub.f32 1.0, %v5110_v21  ;;  %vm10121_vm11 = vcmp.eq.f32.partialorder %v5118_v16, 8.507059e+37  ;;  %v6966_v16 = vld [vmem:[%s10792_s9 + $0x60] sm:$0xff]  ;;  %v4578_v27 = vpop.f32.mrf.mxu3 }
 0x4e9   : > { %v4799_v11 = vadd.f32 %v7357_v34, %v4798_v56  ;;  %v5121_v62 = vor.u32 1.1754944e-38, %v5120_v47  ;;  %v6903_v40 = vmul.f32 -1.442695, %v9995_v29  ;;  %vm5115_vm13 = vweird.f32 %v7359_v38 }
 0x4ea   : > { %v7361_v31 = vpop.eup %7360  ;;  %6973 = vst [vmem:[%s9827_s29 + $0x58] sm:$0xff] %v5197_v42  ;;  %v4469_v53 = vadd.f32 %v4461_v28, %v4453_v35  ;;  %v5112_v30 = vmul.f32 %v7359_v38, %v5111_v26  ;;  %v6959_v4 = vmul.f32 -1.442695, %v10005_v36  ;;  %v4387_v52 = vand.u32 2147483647, %v10086_v6  ;;  %vm5116_vm14 = vmor %vm5114_vm1, %vm5115_vm13  ;;  %v4462_v42 = vld [vmem:[%s10791_s8 + $0x20] sm:$0xff] }
 0x4eb   : > { %v4803_v3 = vsel %vm4802_vm12, %v7357_v34, %v4799_v11  ;;  %v4379_v1 = vmul.f32 %v7361_v31, %v10086_v6  ;;  %7362 = vpow2.f32 %v6903_v40  ;;  %v4389_v33 = vand.u32 2147483648, %v10086_v6  ;;  %v4876_v34 = vld [vmem:[%s10792_s9 + $0x20] sm:$0xff] }
 0x4ec   : > { %4477 = vst [vmem:[%s9871_s19 + $0x18] sm:$0xff] %v4469_v53  ;;  %v4808_v29 = vsel %vm10116_vm10, %v4807_v48, %v4803_v3  ;;  %v5113_v15 = vadd.f32 %v7359_v38, %v5112_v30  ;;  %v5011_v58 = vmul.f32 1.442695, %v10005_v36  ;;  %7364 = vpow2.f32 %v6959_v4  ;;  %v4676_v4 = vpop.f32.mrf.mxu0 }
 0x4ed   : > { %v4859_v59 = vsel %vm9701_vm4, %v9997_v13, %v4808_v29  ;;  %v4380_v39 = vsub.f32 1.0, %v4379_v1  ;;  %v6799_v10 = vmul.f32 -1.442695, %v10012_v12  ;;  %vm4384_vm15 = vweird.f32 %v7361_v31 }
 0x4ee   : > { %v4868_v5 = vmul.f32 %v9759_v60, %v4859_v59  ;;  %v5117_v50 = vsel %vm5116_vm14, %v7359_v38, %v5113_v15  ;;  %v10148_v36 = vadd.f32 %v9659_v17, %v4576_v8  ;;  %v4280_v9 = vmul.f32 1.442695, %v10012_v12 }
 0x4ef   : > { %v5122_v13 = vsel %vm10121_vm11, %v5121_v62, %v5117_v50  ;;  %v4381_v19 = vmul.f32 %v7361_v31, %v4380_v39  ;;  %7366 = vpow2.f32 %v6799_v10  ;;  %vm4383_vm0 = vweird.f32 %v10086_v6 }
 0x4f0   : > { %v4884_v46 = vadd.f32 %v4876_v34, %v4868_v5  ;;  %v5173_v37 = vsel %vm9701_vm4, %v10007_v61, %v5122_v13  ;;  %7368 = vpow2.f32 %v10017_v49  ;;  %v4685_v47 = vadd.f32 %v4674_v32, %v10148_v36  ;;  %vm4385_vm2 = vmor %vm4383_vm0, %vm4384_vm15 }
 0x4f1   : > { %v7363_v38 = vpop.eup %7362  ;;  %v5181_v25 = vmul.f32 %v9759_v60, %v5173_v37  ;;  %v4382_v54 = vadd.f32 %v7361_v31, %v4381_v19  ;;  %v4390_v12 = vor.u32 1.1754944e-38, %v4389_v33  ;;  %7370 = vpow2.f32 %v5011_v58  ;;  %v4990_v33 = vpop.f32.mrf.mxu1 }
 0x4f2   : > { %4892 = vst [vmem:[%s9827_s29 + $0x20] sm:$0xff] %v4884_v46  ;;  %v10165_v61 = vadd.f32 1.0, %v7363_v38  ;;  %v6904_v18 = vmul.f32 -1.442695, %v4685_v47  ;;  %v4999_v49 = vadd.f32 %v4988_v20, %v10148_v36  ;;  %v7365_v51 = vpop.eup %7364  ;;  %vm4388_vm3 = vcmp.eq.f32.partialorder %v4387_v52, 8.507059e+37 }
 0x4f3   : > { %v5198_v21 = vadd.f32 %v6966_v16, %v5181_v25  ;;  %v4386_v2 = vsel %vm4385_vm2, %v7361_v31, %v4382_v54  ;;  %7372 = vpow2.f32 %v4280_v9  ;;  %v4266_v6 = vadd.f32 %v9664_v24, %v4265_v41 }
 0x4f4   : > { %v4391_v28 = vsel %vm4388_vm3, %v4390_v12, %v4386_v2  ;;  %7374 = vrcp.f32 %v10165_v61  ;;  %v10177_v35 = vadd.f32 1.0, %v7365_v51  ;;  %v4699_v48 = vmul.f32 1.442695, %v4685_v47 }
 0x4f5   : > { %v7367_v56 = vpop.eup %7366  ;;  %6974 = vst [vmem:[%s9827_s29 + $0x60] sm:$0xff] %v5198_v21  ;;  %v4445_v22 = vsel %vm9701_vm4, %v10041_v7, %v4391_v28  ;;  %v10180_v26 = vadd.f32 %v9659_v17, %v4578_v27  ;;  %7376 = vpow2.f32 %v6904_v18  ;;  %v6960_v0 = vmul.f32 -1.442695, %v4999_v49  ;;  %v4267_v18 = vpop.f32.mrf.mxu2 }
 0x4f6   : > { %v10182_v8 = vpop.eup %7368  ;;  %v4454_v24 = vmul.f32 %v9817_v63, %v4445_v22  ;;  %v10185_v11 = vadd.f32 1.0, %v7367_v56  ;;  %v4819_v7 = vand.u32 2147483647, %v10165_v61  ;;  %v4821_v62 = vand.u32 2147483648, %v10165_v61 }
 0x4f7   : > { %7378 = vrcp.f32 %v10177_v35  ;;  %v10190_v40 = vpop.eup %7370  ;;  %v5135_v17 = vand.u32 2147483648, %v10177_v35  ;;  %v5013_v53 = vmul.f32 1.442695, %v4999_v49  ;;  %v4282_v3 = vmul.f32 1.442695, %v4266_v6 }
 0x4f8   : > { %v4470_v31 = vadd.f32 %v4462_v42, %v4454_v24  ;;  %7380 = vrcp.f32 %v10185_v11  ;;  %v6800_v1 = vmul.f32 -1.442695, %v4266_v6  ;;  %vm4815_vm5 = vweird.f32 %v10165_v61 }
 0x4f9   : > { %v10194_v30 = vpop.eup %7372  ;;  %7382 = vpow2.f32 %v4699_v48  ;;  %v5133_v29 = vand.u32 2147483647, %v10177_v35  ;;  %v4686_v15 = vadd.f32 %v4676_v4, %v10180_v26  ;;  %vm10201_vm6 = vcmp.eq.f32.partialorder %v4819_v7, 8.507059e+37 }
 0x4fa   : > { %v7375_v52 = vpop.eup %7374  ;;  %4478 = vst [vmem:[%s9871_s19 + $0x20] sm:$0xff] %v4470_v31  ;;  %7384 = vpow2.f32 %v6960_v0  ;;  %v4822_v34 = vor.u32 1.1754944e-38, %v4821_v62  ;;  %v4402_v39 = vand.u32 2147483647, %v10185_v11  ;;  %v4404_v10 = vand.u32 2147483648, %v10185_v11 }
 0x4fb   : > { %v4811_v58 = vmul.f32 %v7375_v52, %v10165_v61  ;;  %v7377_v5 = vpop.eup %7376  ;;  %vm5129_vm7 = vweird.f32 %v10177_v35  ;;  %v5136_v50 = vor.u32 1.1754944e-38, %v5135_v17  ;;  %7386 = vpow2.f32 %v5013_v53  ;;  %v7515_v61 = vld [vmem:[%s10790_s7 + $0x3] ss:$0 sm:$0xff] }
 0x4fc   : > { %v5000_v32 = vadd.f32 %v4990_v33, %v10180_v26  ;;  %vm4398_vm8 = vweird.f32 %v10185_v11  ;;  %v10210_v9 = vadd.f32 1.0, %v7377_v5  ;;  %7388 = vpow2.f32 %v6800_v1  ;;  %v4877_v1 = vld [vmem:[%s10792_s9 + $0x28] sm:$0xff] }
 0x4fd   : > { %v7379_v13 = vpop.eup %7378  ;;  %v4812_v19 = vsub.f32 1.0, %v4811_v58  ;;  %v4701_v46 = vmul.f32 1.442695, %v4686_v15  ;;  %vm4816_vm1 = vweird.f32 %v7375_v52  ;;  %vm10213_vm9 = vcmp.eq.f32.partialorder %v5133_v29, 8.507059e+37 }
 0x4fe   : > { %v7381_v37 = vpop.eup %7380  ;;  %v5125_v16 = vmul.f32 %v7379_v13, %v10177_v35  ;;  %7390 = vpow2.f32 %v4282_v3  ;;  %v6905_v38 = vmul.f32 -1.442695, %v4686_v15  ;;  %vm10220_vm10 = vcmp.eq.f32.partialorder %v4402_v39, 8.507059e+37  ;;  %vm4817_vm12 = vmor %vm4815_vm5, %vm4816_vm1 }
 0x4ff   : > { %v10217_v20 = vpop.eup %7382  ;;  %v4813_v25 = vmul.f32 %v7375_v52, %v4812_v19  ;;  %v4394_v54 = vmul.f32 %v7381_v37, %v10185_v11  ;;  %v4405_v41 = vor.u32 1.1754944e-38, %v4404_v10  ;;  %7392 = vrcp.f32 %v10210_v9 }
 0x500   : > { %v7385_v49 = vpop.eup %7384  ;;  %v5126_v27 = vsub.f32 1.0, %v5125_v16  ;;  %vm5130_vm11 = vweird.f32 %v7379_v13  ;;  %v5015_v51 = vmul.f32 1.442695, %v5000_v32  ;;  %v6961_v21 = vmul.f32 -1.442695, %v5000_v32 }
 0x501   : > { %v4814_v2 = vadd.f32 %v7375_v52, %v4813_v25  ;;  %v4395_v28 = vsub.f32 1.0, %v4394_v54  ;;  %v10225_v6 = vadd.f32 1.0, %v7385_v49  ;;  %7394 = vpow2.f32 %v4701_v46  ;;  %v10227_v56 = vpop.eup %7386  ;;  %vm5131_vm15 = vmor %vm5129_vm7, %vm5130_vm11  ;;  %v10287_v25 = vpop.f32.mrf.mxu2 }
 0x502   : > { %v5127_v22 = vmul.f32 %v7379_v13, %v5126_v27  ;;  %vm4399_vm13 = vweird.f32 %v7381_v37  ;;  %v4834_v42 = vand.u32 2147483647, %v10210_v9  ;;  %7396 = vpow2.f32 %v6905_v38  ;;  %v7389_v48 = vpop.eup %7388 }
 0x503   : > { %v4818_v24 = vsel %vm4817_vm12, %v7375_v52, %v4814_v2  ;;  %v4396_v0 = vmul.f32 %v7381_v37, %v4395_v28  ;;  %v4836_v7 = vand.u32 2147483648, %v10210_v9  ;;  %7398 = vrcp.f32 %v10225_v6  ;;  %vm4400_vm0 = vmor %vm4398_vm8, %vm4399_vm13 }
 0x504   : > { %v10235_v62 = vpop.eup %7390  ;;  %v4823_v31 = vsel %vm10201_vm6, %v4822_v34, %v4818_v24  ;;  %v5128_v17 = vadd.f32 %v7379_v13, %v5127_v22  ;;  %vm4830_vm14 = vweird.f32 %v10210_v9  ;;  %v10243_v53 = vadd.f32 %v7515_v61, %v4267_v18 }
 0x505   : > { %v7393_v4 = vpop.eup %7392  ;;  %v4860_v3 = vsel %vm9701_vm4, %v10182_v8, %v4823_v31  ;;  %v4397_v52 = vadd.f32 %v7381_v37, %v4396_v0  ;;  %v10254_v29 = vadd.f32 1.0, %v7389_v48  ;;  %7400 = vpow2.f32 %v6961_v21  ;;  %v4878_v31 = vld [vmem:[%s10792_s9 + $0x30] sm:$0xff] }
 0x506   : > { %v4869_v15 = vmul.f32 %v9759_v60, %v4860_v3  ;;  %v5132_v33 = vsel %vm5131_vm15, %v7379_v13, %v5128_v17  ;;  %v4826_v8 = vmul.f32 %v7393_v4, %v10210_v9  ;;  %vm10261_vm2 = vcmp.eq.f32.partialorder %v4834_v42, 8.507059e+37  ;;  %v6967_v13 = vld [vmem:[%s10792_s9 + $0x68] sm:$0xff] }
 0x507   : > { %v10265_v59 = vpop.eup %7394  ;;  %v5137_v35 = vsel %vm10213_vm9, %v5136_v50, %v5132_v33  ;;  %v4401_v34 = vsel %vm4400_vm0, %v7381_v37, %v4397_v52  ;;  %v4837_v39 = vor.u32 1.1754944e-38, %v4836_v7  ;;  %v5148_v10 = vand.u32 2147483647, %v10225_v6  ;;  %v5603_v50 = vpop.f32.mrf.mxu3 }
 0x508   : > { %v7397_v5 = vpop.eup %7396  ;;  %v4885_v32 = vadd.f32 %v4877_v1, %v4869_v15  ;;  %v5174_v11 = vsel %vm9701_vm4, %v10190_v40, %v5137_v35  ;;  %v4406_v19 = vsel %vm10220_vm10, %v4405_v41, %v4401_v34  ;;  %v4827_v46 = vsub.f32 1.0, %v4826_v8  ;;  %v4463_v40 = vld [vmem:[%s10791_s8 + $0x28] sm:$0xff]  ;;  %v10326_v1 = vld [vmem:[%s10790_s7 + $0x6] ss:$0 sm:$0xff] }
 0x509   : > { %v7399_v37 = vpop.eup %7398  ;;  %v5182_v16 = vmul.f32 %v9759_v60, %v5174_v11  ;;  %v4446_v47 = vsel %vm9701_vm4, %v10194_v30, %v4406_v19  ;;  %v5150_v38 = vand.u32 2147483648, %v10225_v6  ;;  %7402 = vrcp.f32 %v10254_v29  ;;  %v5290_v11 = vpop.f32.mrf.mxu2  ;;  %v6968_v19 = vld [vmem:[%s10792_s9 + $0x70] sm:$0xff] }
 0x50a   : > { %4893 = vst [vmem:[%s9827_s29 + $0x28] sm:$0xff] %v4885_v32  ;;  %v4455_v54 = vmul.f32 %v9817_v63, %v4446_v47  ;;  %v4828_v12 = vmul.f32 %v7393_v4, %v4827_v46  ;;  %vm4831_vm3 = vweird.f32 %v7393_v4  ;;  %v5140_v60 = vmul.f32 %v7399_v37, %v10225_v6 }
 0x50b   : > { %v7401_v30 = vpop.eup %7400  ;;  %v5199_v41 = vadd.f32 %v6967_v13, %v5182_v16  ;;  %vm5144_vm5 = vweird.f32 %v10225_v6  ;;  %v10293_v18 = vadd.f32 1.0, %v7397_v5  ;;  %7404 = vpow2.f32 %v5015_v51  ;;  %vm4832_vm6 = vmor %vm4830_vm14, %vm4831_vm3 }
 0x50c   : > { %v4471_v49 = vadd.f32 %v4463_v40, %v4455_v54  ;;  %v4829_v27 = vadd.f32 %v7393_v4, %v4828_v12  ;;  %v5141_v21 = vsub.f32 1.0, %v5140_v60  ;;  %v10295_v2 = vadd.f32 1.0, %v7401_v30 }
 0x50d   : > { %6975 = vst [vmem:[%s9827_s29 + $0x68] sm:$0xff] %v5199_v41  ;;  %vm10300_vm7 = vcmp.eq.f32.partialorder %v5148_v10, 8.507059e+37  ;;  %v4417_v28 = vand.u32 2147483647, %v10254_v29  ;;  %v4419_v22 = vand.u32 2147483648, %v10254_v29  ;;  %7406 = vrcp.f32 %v10293_v18 }
 0x50e   : > { %4479 = vst [vmem:[%s9871_s19 + $0x28] sm:$0xff] %v4471_v49  ;;  %v4833_v51 = vsel %vm4832_vm6, %v7393_v4, %v4829_v27  ;;  %v5142_v42 = vmul.f32 %v7399_v37, %v5141_v21  ;;  %vm5145_vm8 = vweird.f32 %v7399_v37  ;;  %v5151_v48 = vor.u32 1.1754944e-38, %v5150_v38 }
 0x50f   : > { %v7403_v24 = vpop.eup %7402  ;;  %v4838_v9 = vsel %vm10261_vm2, %v4837_v39, %v4833_v51  ;;  %vm4413_vm1 = vweird.f32 %v10254_v29  ;;  %v4849_v0 = vand.u32 2147483647, %v10293_v18  ;;  %7408 = vrcp.f32 %v10295_v2  ;;  %vm5146_vm9 = vmor %vm5144_vm5, %vm5145_vm8  ;;  %v5605_v34 = vpop.f32.mrf.mxu3  ;;  %v4464_v51 = vld [vmem:[%s10791_s8 + $0x30] sm:$0xff] }
 0x510   : > { %v4861_v7 = vsel %vm9701_vm4, %v10217_v20, %v4838_v9  ;;  %v5143_v17 = vadd.f32 %v7399_v37, %v5142_v42  ;;  %v4409_v61 = vmul.f32 %v7403_v24, %v10254_v29  ;;  %v4851_v4 = vand.u32 2147483648, %v10293_v18 }
 0x511   : > { %v10321_v3 = vpop.eup %7404  ;;  %v4870_v52 = vmul.f32 %v10326_v1, %v4861_v7  ;;  %vm10332_vm10 = vcmp.eq.f32.partialorder %v4417_v28, 8.507059e+37  ;;  %v4420_v15 = vor.u32 1.1754944e-38, %v4419_v22  ;;  %v5163_v33 = vand.u32 2147483647, %v10295_v2 }
 0x512   : > { %v5147_v8 = vsel %vm5146_vm9, %v7399_v37, %v5143_v17  ;;  %v4410_v58 = vsub.f32 1.0, %v4409_v61  ;;  %vm4414_vm11 = vweird.f32 %v7403_v24  ;;  %vm4845_vm12 = vweird.f32 %v10293_v18 }
 0x513   : > { %v4284_v35 = vmul.f32 1.442695, %v10243_v53  ;;  %v7407_v39 = vpop.eup %7406  ;;  %v4886_v10 = vadd.f32 %v4878_v31, %v4870_v52  ;;  %v5152_v6 = vsel %vm10300_vm7, %v5151_v48, %v5147_v8  ;;  %v6801_v5 = vmul.f32 -1.442695, %v10243_v53  ;;  %vm4415_vm0 = vmor %vm4413_vm1, %vm4414_vm11 }
 0x514   : > { %v5623_v32 = vadd.f32 %v5603_v50, %v9667_v45  ;;  %v5175_v13 = vsel %vm9701_vm4, %v10227_v56, %v5152_v6  ;;  %v4411_v46 = vmul.f32 %v7403_v24, %v4410_v58  ;;  %v4841_v37 = vmul.f32 %v7407_v39, %v10293_v18  ;;  %v6969_v6 = vld [vmem:[%s10792_s9 + $0x78] sm:$0xff] }
 0x515   : > { %vm10350_vm13 = vcmp.eq.f32.partialorder %v4849_v0, 8.507059e+37  ;;  %v4852_v47 = vor.u32 1.1754944e-38, %v4851_v4  ;;  %vm5159_vm14 = vweird.f32 %v10295_v2  ;;  %v7409_v53 = vpop.eup %7408  ;;  %4894 = vst [vmem:[%s9827_s29 + $0x30] sm:$0xff] %v4886_v10  ;;  %v5183_v50 = vmul.f32 %v10326_v1, %v5175_v13 }
 0x516   : > { %vm4846_vm15 = vweird.f32 %v7407_v39  ;;  %v5165_v56 = vand.u32 2147483648, %v10295_v2  ;;  %7410 = vpow2.f32 %v4284_v35  ;;  %v4412_v40 = vadd.f32 %v7403_v24, %v4411_v46 }
 0x517   : > { %v4842_v38 = vsub.f32 1.0, %v4841_v37  ;;  %v5155_v54 = vmul.f32 %v7409_v53, %v10295_v2  ;;  %v5631_v12 = vmul.f32 1.442695, %v5623_v32  ;;  %v5200_v60 = vadd.f32 %v6968_v19, %v5183_v50  ;;  %vm4847_vm3 = vmor %vm4845_vm12, %vm4846_vm15  ;;  %v5608_v61 = vpop.f32.mrf.mxu3 }
 0x518   : > { %7412 = vpow2.f32 %v6801_v5  ;;  %v7098_v30 = vmul.f32 -1.442695, %v5623_v32  ;;  %v5308_v41 = vadd.f32 %v10287_v25, %v9667_v45  ;;  %v4416_v49 = vsel %vm4415_vm0, %v7403_v24, %v4412_v40  ;;  %v10379_v24 = vld [vmem:[%s10790_s7 + $0x5] ss:$0 sm:$0xff] }
 0x519   : > { %v4843_v27 = vmul.f32 %v7407_v39, %v4842_v38  ;;  %v5156_v21 = vsub.f32 1.0, %v5155_v54  ;;  %vm5160_vm2 = vweird.f32 %v7409_v53  ;;  %6976 = vst [vmem:[%s9827_s29 + $0x70] sm:$0xff] %v5200_v60  ;;  %v4421_v63 = vsel %vm10332_vm10, %v4420_v15, %v4416_v49  ;;  %v5293_v15 = vpop.f32.mrf.mxu2 }
 0x51a   : > { %7414 = vpow2.f32 %v7098_v30  ;;  %v5316_v28 = vmul.f32 1.442695, %v5308_v41  ;;  %v7026_v22 = vmul.f32 -1.442695, %v5308_v41  ;;  %v4447_v29 = vsel %vm9701_vm4, %v10235_v62, %v4421_v63  ;;  %vm5161_vm6 = vmor %vm5159_vm14, %vm5160_vm2  ;;  %v7034_v62 = vld [vmem:[%s10792_s9 + $0x80] sm:$0xff] }
 0x51b   : > { %v4844_v45 = vadd.f32 %v7407_v39, %v4843_v27  ;;  %v5157_v25 = vmul.f32 %v7409_v53, %v5156_v21  ;;  %v5624_v42 = vadd.f32 %v5605_v34, %v9673_v57  ;;  %v4456_v9 = vmul.f32 %v10379_v24, %v4447_v29 }
 0x51c   : > { %v10374_v48 = vpop.eup %7410  ;;  %vm10385_vm5 = vcmp.eq.f32.partialorder %v5163_v33, 8.507059e+37  ;;  %v5166_v0 = vor.u32 1.1754944e-38, %v5165_v56  ;;  %7416 = vpow2.f32 %v5631_v12  ;;  %v5309_v17 = vadd.f32 %v5290_v11, %v9673_v57  ;;  %v4879_v57 = vld [vmem:[%s10792_s9 + $0x38] sm:$0xff] }
 0x51d   : > { %v4848_v7 = vsel %vm4847_vm3, %v7407_v39, %v4844_v45  ;;  %v5158_v31 = vadd.f32 %v7409_v53, %v5157_v25  ;;  %7418 = vpow2.f32 %v7026_v22  ;;  %v4472_v52 = vadd.f32 %v4464_v51, %v4456_v9 }
 0x51e   : > { %v7413_v4 = vpop.eup %7412  ;;  %v4853_v20 = vsel %vm10350_vm13, %v4852_v47, %v4848_v7  ;;  %7420 = vpow2.f32 %v5316_v28  ;;  %v7099_v18 = vmul.f32 -1.442695, %v5624_v42  ;;  %v5633_v35 = vmul.f32 1.442695, %v5624_v42 }
 0x51f   : > { %v4862_v33 = vsel %vm9701_vm4, %v10265_v59, %v4853_v20  ;;  %v5162_v8 = vsel %vm5161_vm6, %v7409_v53, %v5158_v31  ;;  %v10401_v58 = vadd.f32 1.0, %v7413_v4  ;;  %4480 = vst [vmem:[%s9871_s19 + $0x30] sm:$0xff] %v4472_v52  ;;  %v5625_v10 = vadd.f32 %v5608_v61, %v9687_v23  ;;  %v5610_v60 = vpop.f32.mrf.mxu3 }
 0x520   : > { %v7415_v34 = vpop.eup %7414  ;;  %v4871_v2 = vmul.f32 %v10326_v1, %v4862_v33  ;;  %v5167_v39 = vsel %vm10385_vm5, %v5166_v0, %v5162_v8  ;;  %7422 = vpow2.f32 %v7099_v18  ;;  %v7027_v5 = vmul.f32 -1.442695, %v5309_v17 }
 0x521   : > { %v5176_v59 = vsel %vm9701_vm4, %v10321_v3, %v5167_v39  ;;  %7424 = vrcp.f32 %v10401_v58  ;;  %v10418_v19 = vadd.f32 1.0, %v7415_v34  ;;  %v5318_v46 = vmul.f32 1.442695, %v5309_v17  ;;  %v5295_v21 = vpop.f32.mrf.mxu2 }
 0x522   : > { %v10415_v32 = vpop.eup %7416  ;;  %v4887_v11 = vadd.f32 %v4879_v57, %v4871_v2  ;;  %v5184_v13 = vmul.f32 %v10326_v1, %v5176_v59  ;;  %v4432_v16 = vand.u32 2147483647, %v10401_v58  ;;  %7426 = vpow2.f32 %v5633_v35 }
 0x523   : > { %v7419_v37 = vpop.eup %7418  ;;  %v4434_v53 = vand.u32 2147483648, %v10401_v58  ;;  %7428 = vrcp.f32 %v10418_v19  ;;  %v5635_v50 = vmul.f32 1.442695, %v5625_v10  ;;  %v7100_v40 = vmul.f32 -1.442695, %v5625_v10 }
 0x524   : > { %v10421_v3 = vpop.eup %7420  ;;  %4895 = vst [vmem:[%s9827_s29 + $0x38] sm:$0xff] %v4887_v11  ;;  %v5201_v47 = vadd.f32 %v6969_v6, %v5184_v13  ;;  %v10426_v56 = vadd.f32 1.0, %v7419_v37  ;;  %7430 = vpow2.f32 %v7027_v5  ;;  %vm4428_vm7 = vweird.f32 %v10401_v58  ;;  %v4465_v37 = vld [vmem:[%s10791_s8 + $0x38] sm:$0xff] }
 0x525   : > { %7432 = vpow2.f32 %v5318_v46  ;;  %v5688_v12 = vand.u32 2147483647, %v10418_v19  ;;  %vm10433_vm8 = vcmp.eq.f32.partialorder %v4432_v16, 8.507059e+37  ;;  %v4435_v49 = vor.u32 1.1754944e-38, %v4434_v53 }
 0x526   : > { %v7423_v38 = vpop.eup %7422  ;;  %6977 = vst [vmem:[%s9827_s29 + $0x78] sm:$0xff] %v5201_v47  ;;  %7434 = vrcp.f32 %v10426_v56  ;;  %v5310_v27 = vadd.f32 %v5293_v15, %v9687_v23  ;;  %vm5684_vm1 = vweird.f32 %v10418_v19  ;;  %v5690_v28 = vand.u32 2147483648, %v10418_v19 }
 0x527   : > { %v7425_v54 = vpop.eup %7424  ;;  %7436 = vpow2.f32 %v5635_v50  ;;  %v10442_v22 = vadd.f32 1.0, %v7423_v38  ;;  %v5373_v45 = vand.u32 2147483647, %v10426_v56  ;;  %v5375_v25 = vand.u32 2147483648, %v10426_v56 }
 0x528   : > { %v4424_v30 = vmul.f32 %v7425_v54, %v10401_v58  ;;  %v10438_v63 = vpop.eup %7426  ;;  %7438 = vpow2.f32 %v7100_v40  ;;  %v5626_v42 = vadd.f32 %v5610_v60, %v9912_v14  ;;  %vm10448_vm9 = vcmp.eq.f32.partialorder %v5688_v12, 8.507059e+37 }
 0x529   : > { %v7429_v29 = vpop.eup %7428  ;;  %7440 = vrcp.f32 %v10442_v22  ;;  %v10454_v0 = vadd.f32 %v5295_v21, %v9912_v14  ;;  %vm4429_vm10 = vweird.f32 %v7425_v54  ;;  %v5320_v61 = vmul.f32 1.442695, %v5310_v27 }
 0x52a   : > { %v4425_v51 = vsub.f32 1.0, %v4424_v30  ;;  %v7431_v9 = vpop.eup %7430  ;;  %v5680_v23 = vmul.f32 %v7429_v29, %v10418_v19  ;;  %v5691_v20 = vor.u32 1.1754944e-38, %v5690_v28  ;;  %vm5369_vm11 = vweird.f32 %v10426_v56  ;;  %vm4430_vm13 = vmor %vm4428_vm7, %vm4429_vm10 }
 0x52b   : > { %v10456_v7 = vpop.eup %7432  ;;  %v10458_v17 = vadd.f32 1.0, %v7431_v9  ;;  %v7028_v18 = vmul.f32 -1.442695, %v5310_v27  ;;  %vm10464_vm12 = vcmp.eq.f32.partialorder %v5373_v45, 8.507059e+37  ;;  %v5376_v8 = vor.u32 1.1754944e-38, %v5375_v25 }
 0x52c   : > { %v4426_v31 = vmul.f32 %v7425_v54, %v4425_v51  ;;  %v7435_v4 = vpop.eup %7434  ;;  %v5681_v52 = vsub.f32 1.0, %v5680_v23  ;;  %v10468_v35 = vmul.f32 1.442695, %v5626_v42  ;;  %vm5685_vm14 = vweird.f32 %v7429_v29 }
 0x52d   : > { %v10461_v15 = vpop.eup %7436  ;;  %v5365_v57 = vmul.f32 %v7435_v4, %v10426_v56  ;;  %v5703_v39 = vand.u32 2147483647, %v10442_v22  ;;  %7442 = vrcp.f32 %v10458_v17  ;;  %vm5699_vm15 = vweird.f32 %v10442_v22  ;;  %vm5686_vm0 = vmor %vm5684_vm1, %vm5685_vm14 }
 0x52e   : > { %v4427_v33 = vadd.f32 %v7425_v54, %v4426_v31  ;;  %v7439_v34 = vpop.eup %7438  ;;  %v5682_v2 = vmul.f32 %v7429_v29, %v5681_v52  ;;  %v5705_v6 = vand.u32 2147483648, %v10442_v22  ;;  %7444 = vpow2.f32 %v5320_v61 }
 0x52f   : > { %v5366_v59 = vsub.f32 1.0, %v5365_v57  ;;  %v7441_v5 = vpop.eup %7440  ;;  %v10479_v58 = vadd.f32 1.0, %v7439_v34  ;;  %7446 = vpow2.f32 %v7028_v18  ;;  %vm5370_vm2 = vweird.f32 %v7435_v4  ;;  %v5298_v34 = vpop.f32.mrf.mxu2 }
 0x530   : > { %v4431_v10 = vsel %vm4430_vm13, %v7425_v54, %v4427_v33  ;;  %v5683_v13 = vadd.f32 %v7429_v29, %v5682_v2  ;;  %v5695_v47 = vmul.f32 %v7441_v5, %v10442_v22  ;;  %v7101_v40 = vmul.f32 -1.442695, %v5626_v42  ;;  %vm5371_vm3 = vmor %vm5369_vm11, %vm5370_vm2  ;;  %v5613_v42 = vpop.f32.mrf.mxu3 }
 0x531   : > { %v4436_v11 = vsel %vm10433_vm8, %v4435_v49, %v4431_v10  ;;  %v5367_v16 = vmul.f32 %v7435_v4, %v5366_v59  ;;  %v10493_v38 = vmul.f32 1.442695, %v10454_v0  ;;  %7448 = vrcp.f32 %v10479_v58 }
 0x532   : > { %v4448_v46 = vsel %vm9701_vm4, %v10374_v48, %v4436_v11  ;;  %v5687_v50 = vsel %vm5686_vm0, %v7429_v29, %v5683_v13  ;;  %v5696_v12 = vsub.f32 1.0, %v5695_v47  ;;  %vm5700_vm5 = vweird.f32 %v7441_v5 }
 0x533   : > { %v4457_v53 = vmul.f32 %v10379_v24, %v4448_v46  ;;  %v5692_v48 = vsel %vm10448_vm9, %v5691_v20, %v5687_v50  ;;  %v5368_v54 = vadd.f32 %v7435_v4, %v5367_v16  ;;  %v7443_v19 = vpop.eup %7442  ;;  %v7106_v24 = vld [vmem:[%s10792_s9 + $0xc0] sm:$0xff]  ;;  %v5388_v41 = vand.u32 2147483647, %v10458_v17  ;;  %vm5701_vm7 = vmor %vm5699_vm15, %vm5700_vm5  ;;  %v7035_v50 = vld [vmem:[%s10792_s9 + $0x88] sm:$0xff] }
 0x534   : > { %v5799_v30 = vsel %vm9701_vm4, %v10415_v32, %v5692_v48  ;;  %v10507_v49 = vpop.eup %7444  ;;  %v5697_v28 = vmul.f32 %v7441_v5, %v5696_v12  ;;  %v5380_v29 = vmul.f32 %v7443_v19, %v10458_v17  ;;  %vm10514_vm6 = vcmp.eq.f32.partialorder %v5703_v39, 8.507059e+37  ;;  %v7107_v39 = vld [vmem:[%s10792_s9 + $0xc8] sm:$0xff] }
 0x535   : > { %v4473_v60 = vadd.f32 %v4465_v37, %v4457_v53  ;;  %v5807_v27 = vmul.f32 %v10326_v1, %v5799_v30  ;;  %v5372_v21 = vsel %vm5371_vm3, %v7435_v4, %v5368_v54  ;;  %v7447_v51 = vpop.eup %7446  ;;  %v5706_v45 = vor.u32 1.1754944e-38, %v5705_v6 }
 0x536   : > { %v5377_v32 = vsel %vm10464_vm12, %v5376_v8, %v5372_v21  ;;  %v5390_v25 = vand.u32 2147483648, %v10458_v17  ;;  %v5698_v31 = vadd.f32 %v7441_v5, %v5697_v28  ;;  %v5381_v61 = vsub.f32 1.0, %v5380_v29 }
 0x537   : > { %4481 = vst [vmem:[%s9871_s19 + $0x38] sm:$0xff] %v4473_v60  ;;  %v5824_v9 = vadd.f32 %v7106_v24, %v5807_v27  ;;  %v5484_v23 = vsel %vm9701_vm4, %v10421_v3, %v5377_v32  ;;  %vm5384_vm8 = vweird.f32 %v10458_v17  ;;  %vm10530_vm1 = vcmp.eq.f32.partialorder %v5388_v41, 8.507059e+37  ;;  %v7449_v3 = vpop.eup %7448 }
 0x538   : > { %v5492_v4 = vmul.f32 %v10326_v1, %v5484_v23  ;;  %v10534_v20 = vadd.f32 1.0, %v7447_v51  ;;  %v5702_v18 = vsel %vm5701_vm7, %v7441_v5, %v5698_v31  ;;  %v5382_v33 = vmul.f32 %v7443_v19, %v5381_v61  ;;  %v5300_v51 = vpop.f32.mrf.mxu2 }
 0x539   : > { %7114 = vst [vmem:[%s9827_s29 + $0xc0] sm:$0xff] %v5824_v9  ;;  %vm5385_vm9 = vweird.f32 %v7443_v19  ;;  %7450 = vpow2.f32 %v7101_v40  ;;  %v5707_v22 = vsel %vm10514_vm6, %v5706_v45, %v5702_v18  ;;  %v5391_v14 = vor.u32 1.1754944e-38, %v5390_v25 }
 0x53a   : > { %v5509_v57 = vadd.f32 %v7034_v62, %v5492_v4  ;;  %v5710_v8 = vmul.f32 %v7449_v3, %v10479_v58  ;;  %v5800_v2 = vsel %vm9701_vm4, %v10438_v63, %v5707_v22  ;;  %v5383_v10 = vadd.f32 %v7443_v19, %v5382_v33  ;;  %vm5386_vm10 = vmor %vm5384_vm8, %vm5385_vm9 }
 0x53b   : > { %7452 = vrcp.f32 %v10534_v20  ;;  %v7029_v59 = vmul.f32 -1.442695, %v10454_v0  ;;  %v5808_v6 = vmul.f32 %v10326_v1, %v5800_v2  ;;  %v5718_v11 = vand.u32 2147483647, %v10479_v58 }
 0x53c   : > { %7042 = vst [vmem:[%s9827_s29 + $0x80] sm:$0xff] %v5509_v57  ;;  %v5711_v5 = vsub.f32 1.0, %v5710_v8  ;;  %v5720_v63 = vand.u32 2147483648, %v10479_v58  ;;  %v5387_v13 = vsel %vm5386_vm10, %v7443_v19, %v5383_v10  ;;  %vm5715_vm11 = vweird.f32 %v7449_v3 }
 0x53d   : > { %7454 = vpow2.f32 %v10468_v35  ;;  %v5627_v46 = vadd.f32 %v5613_v42, %v9916_v43  ;;  %v5825_v37 = vadd.f32 %v7107_v39, %v5808_v6  ;;  %v5392_v0 = vsel %vm10530_vm1, %v5391_v14, %v5387_v13 }
 0x53e   : > { %v5712_v16 = vmul.f32 %v7449_v3, %v5711_v5  ;;  %v5312_v17 = vadd.f32 %v5298_v34, %v9916_v43  ;;  %v5485_v53 = vsel %vm9701_vm4, %v10456_v7, %v5392_v0  ;;  %vm5714_vm12 = vweird.f32 %v10479_v58  ;;  %v5615_v43 = vpop.f32.mrf.mxu3 }
 0x53f   : > { %v7451_v47 = vpop.eup %7450  ;;  %7456 = vpow2.f32 %v7029_v59  ;;  %7115 = vst [vmem:[%s9827_s29 + $0xc8] sm:$0xff] %v5825_v37  ;;  %v5493_v35 = vmul.f32 %v10326_v1, %v5485_v53  ;;  %v7102_v54 = vmul.f32 -1.442695, %v5627_v46  ;;  %vm5716_vm13 = vmor %vm5714_vm12, %vm5715_vm11  ;;  %vm5719_vm14 = vcmp.eq.f32.partialorder %v5718_v11, 8.507059e+37  ;;  %v7036_v59 = vld [vmem:[%s10792_s9 + $0x90] sm:$0xff] }
 0x540   : > { %v5713_v40 = vadd.f32 %v7449_v3, %v5712_v16  ;;  %v10568_v48 = vadd.f32 1.0, %v7451_v47  ;;  %v5721_v7 = vor.u32 1.1754944e-38, %v5720_v63  ;;  %7458 = vpow2.f32 %v10493_v38  ;;  %v7108_v38 = vld [vmem:[%s10792_s9 + $0xd0] sm:$0xff] }
 0x541   : > { %v7453_v12 = vpop.eup %7452  ;;  %v5639_v19 = vmul.f32 1.442695, %v5627_v46  ;;  %v5510_v60 = vadd.f32 %v7035_v50, %v5493_v35  ;;  %v7030_v24 = vmul.f32 -1.442695, %v5312_v17  ;;  %v5628_v21 = vadd.f32 %v5615_v43, %v9977_v55 }
 0x542   : > { %v5717_v58 = vsel %vm5716_vm13, %v7449_v3, %v5713_v40  ;;  %v5395_v30 = vmul.f32 %v7453_v12, %v10534_v20  ;;  %7460 = vrcp.f32 %v10568_v48  ;;  %v5403_v45 = vand.u32 2147483647, %v10534_v20 }
 0x543   : > { %v10573_v41 = vpop.eup %7454  ;;  %v5722_v27 = vsel %vm5719_vm14, %v5721_v7, %v5717_v58  ;;  %7043 = vst [vmem:[%s9827_s29 + $0x88] sm:$0xff] %v5510_v60  ;;  %7462 = vpow2.f32 %v7102_v54  ;;  %v5405_v25 = vand.u32 2147483648, %v10534_v20  ;;  %vm5400_vm15 = vweird.f32 %v7453_v12 }
 0x544   : > { %v5801_v28 = vsel %vm9701_vm4, %v10461_v15, %v5722_v27  ;;  %v5396_v29 = vsub.f32 1.0, %v5395_v30  ;;  %7464 = vpow2.f32 %v5639_v19  ;;  %v5324_v62 = vmul.f32 1.442695, %v5312_v17 }
 0x545   : > { %v7457_v32 = vpop.eup %7456  ;;  %v5809_v56 = vmul.f32 %v10326_v1, %v5801_v28  ;;  %7466 = vpow2.f32 %v7030_v24  ;;  %v7103_v31 = vmul.f32 -1.442695, %v5628_v21  ;;  %v5313_v61 = vadd.f32 %v5300_v51, %v9977_v55 }
 0x546   : > { %v5397_v42 = vmul.f32 %v7453_v12, %v5396_v29  ;;  %v10587_v9 = vadd.f32 1.0, %v7457_v32  ;;  %v10589_v15 = vpop.eup %7458  ;;  %vm5399_vm0 = vweird.f32 %v10534_v20  ;;  %vm5404_vm3 = vcmp.eq.f32.partialorder %v5403_v45, 8.507059e+37  ;;  %v5618_v2 = vpop.f32.mrf.mxu3 }
 0x547   : > { %v5826_v23 = vadd.f32 %v7108_v38, %v5809_v56  ;;  %vm5401_vm2 = vmor %vm5399_vm0, %vm5400_vm15  ;;  %v5406_v3 = vor.u32 1.1754944e-38, %v5405_v25  ;;  %v7031_v18 = vmul.f32 -1.442695, %v5313_v61  ;;  %vm5729_vm5 = vweird.f32 %v10568_v48  ;;  %v7109_v38 = vld [vmem:[%s10792_s9 + $0xd8] sm:$0xff] }
 0x548   : > { %v5398_v4 = vadd.f32 %v7453_v12, %v5397_v42  ;;  %7468 = vrcp.f32 %v10587_v9  ;;  %v7461_v52 = vpop.eup %7460  ;;  %v5733_v55 = vand.u32 2147483647, %v10568_v48  ;;  %v5641_v34 = vmul.f32 1.442695, %v5628_v21 }
 0x549   : > { %7116 = vst [vmem:[%s9827_s29 + $0xd0] sm:$0xff] %v5826_v23  ;;  %7470 = vpow2.f32 %v7103_v31  ;;  %v7463_v33 = vpop.eup %7462  ;;  %v5725_v22 = vmul.f32 %v7461_v52, %v10568_v48  ;;  %v5735_v5 = vand.u32 2147483648, %v10568_v48  ;;  %v5418_v63 = vand.u32 2147483647, %v10587_v9 }
 0x54a   : > { %v5402_v57 = vsel %vm5401_vm2, %v7453_v12, %v5398_v4  ;;  %v10598_v14 = vpop.eup %7464  ;;  %v10600_v8 = vadd.f32 1.0, %v7463_v33  ;;  %7472 = vpow2.f32 %v5324_v62  ;;  %v5420_v13 = vand.u32 2147483648, %v10587_v9 }
 0x54b   : > { %v5407_v20 = vsel %vm5404_vm3, %v5406_v3, %v5402_v57  ;;  %v7467_v39 = vpop.eup %7466  ;;  %v5726_v6 = vsub.f32 1.0, %v5725_v22  ;;  %7474 = vpow2.f32 %v7031_v18  ;;  %vm5730_vm6 = vweird.f32 %v7461_v52  ;;  %v5303_v3 = vpop.f32.mrf.mxu2 }
 0x54c   : > { %v5486_v10 = vsel %vm9701_vm4, %v10507_v49, %v5407_v20  ;;  %7476 = vrcp.f32 %v10600_v8  ;;  %v10613_v49 = vadd.f32 1.0, %v7467_v39  ;;  %v10616_v0 = vadd.f32 %v5618_v2, %v10148_v36  ;;  %vm5731_vm8 = vmor %vm5729_vm5, %vm5730_vm6 }
 0x54d   : > { %v5494_v11 = vmul.f32 %v10326_v1, %v5486_v10  ;;  %v5727_v37 = vmul.f32 %v7461_v52, %v5726_v6  ;;  %7478 = vpow2.f32 %v5641_v34  ;;  %v5326_v53 = vmul.f32 1.442695, %v5313_v61 }
 0x54e   : > { %v7469_v46 = vpop.eup %7468  ;;  %vm10619_vm7 = vcmp.eq.f32.partialorder %v5733_v55, 8.507059e+37  ;;  %v5736_v40 = vor.u32 1.1754944e-38, %v5735_v5  ;;  %7480 = vrcp.f32 %v10613_v49  ;;  %vm5414_vm1 = vweird.f32 %v10587_v9  ;;  %v7037_v55 = vld [vmem:[%s10792_s9 + $0x98] sm:$0xff] }
 0x54f   : > { %v7471_v16 = vpop.eup %7470  ;;  %v5511_v17 = vadd.f32 %v7036_v59, %v5494_v11  ;;  %v5410_v47 = vmul.f32 %v7469_v46, %v10587_v9  ;;  %v5728_v50 = vadd.f32 %v7461_v52, %v5727_v37  ;;  %v5748_v12 = vand.u32 2147483647, %v10600_v8  ;;  %v5620_v11 = vpop.f32.mrf.mxu3 }
 0x550   : > { %v10624_v54 = vpop.eup %7472  ;;  %v10631_v7 = vadd.f32 1.0, %v7471_v16  ;;  %vm10633_vm9 = vcmp.eq.f32.partialorder %v5418_v63, 8.507059e+37  ;;  %v5421_v30 = vor.u32 1.1754944e-38, %v5420_v13  ;;  %v7104_v24 = vmul.f32 -1.442695, %v10616_v0 }
 0x551   : > { %7044 = vst [vmem:[%s9827_s29 + $0x90] sm:$0xff] %v5511_v17  ;;  %v5411_v43 = vsub.f32 1.0, %v5410_v47  ;;  %v7475_v19 = vpop.eup %7474  ;;  %v5732_v60 = vsel %vm5731_vm8, %v7461_v52, %v5728_v50  ;;  %vm5415_vm10 = vweird.f32 %v7469_v46  ;;  %7482 = vpow2.f32 %v5326_v53  ;;  %v7110_v50 = vld [vmem:[%s10792_s9 + $0xe0] sm:$0xff] }
 0x552   : > { %v7477_v27 = vpop.eup %7476  ;;  %v5737_v48 = vsel %vm10619_vm7, %v5736_v40, %v5732_v60  ;;  %v5750_v51 = vand.u32 2147483648, %v10600_v8  ;;  %7484 = vrcp.f32 %v10631_v7  ;;  %vm5744_vm11 = vweird.f32 %v10600_v8  ;;  %vm5416_vm13 = vmor %vm5414_vm1, %vm5415_vm10 }
 0x553   : > { %v5412_v21 = vmul.f32 %v7469_v46, %v5411_v43  ;;  %v5802_v28 = vsel %vm9701_vm4, %v10573_v41, %v5737_v48  ;;  %v5740_v29 = vmul.f32 %v7477_v27, %v10600_v8  ;;  %v10649_v32 = vpop.eup %7478  ;;  %vm10653_vm12 = vcmp.eq.f32.partialorder %v5748_v12, 8.507059e+37 }
 0x554   : > { %v5810_v56 = vmul.f32 %v10326_v1, %v5802_v28  ;;  %v7481_v41 = vpop.eup %7480  ;;  %v5433_v23 = vand.u32 2147483647, %v10613_v49  ;;  %v10660_v62 = vadd.f32 1.0, %v7475_v19  ;;  %7486 = vpow2.f32 %v7104_v24 }
 0x555   : > { %v5413_v45 = vadd.f32 %v7469_v46, %v5412_v21  ;;  %v5741_v42 = vsub.f32 1.0, %v5740_v29  ;;  %v5425_v4 = vmul.f32 %v7481_v41, %v10613_v49  ;;  %v5435_v52 = vand.u32 2147483648, %v10613_v49 }
 0x556   : > { %v5827_v31 = vadd.f32 %v7109_v38, %v5810_v56  ;;  %vm5745_vm14 = vweird.f32 %v7477_v27  ;;  %v5751_v9 = vor.u32 1.1754944e-38, %v5750_v51  ;;  %vm5429_vm15 = vweird.f32 %v10613_v49 }
 0x557   : > { %v5417_v61 = vsel %vm5416_vm13, %v7469_v46, %v5413_v45  ;;  %v5742_v33 = vmul.f32 %v7477_v27, %v5741_v42  ;;  %v10666_v57 = vpop.eup %7482  ;;  %v5426_v20 = vsub.f32 1.0, %v5425_v4  ;;  %7488 = vrcp.f32 %v10660_v62  ;;  %vm5746_vm2 = vmor %vm5744_vm11, %vm5745_vm14 }
 0x558   : > { %v5422_v18 = vsel %vm10633_vm9, %v5421_v30, %v5417_v61  ;;  %7117 = vst [vmem:[%s9827_s29 + $0xd8] sm:$0xff] %v5827_v31  ;;  %v7485_v34 = vpop.eup %7484  ;;  %vm10678_vm0 = vcmp.eq.f32.partialorder %v5433_v23, 8.507059e+37  ;;  %v10683_v59 = vadd.f32 %v5303_v3, %v10148_v36  ;;  %vm5430_vm3 = vweird.f32 %v7481_v41  ;;  %v7111_v23 = vld [vmem:[%s10792_s9 + $0xe8] sm:$0xff] }
 0x559   : > { %v5487_v22 = vsel %vm9701_vm4, %v10589_v15, %v5422_v18  ;;  %v5743_v39 = vadd.f32 %v7477_v27, %v5742_v33  ;;  %v5427_v15 = vmul.f32 %v7481_v41, %v5426_v20  ;;  %v5436_v6 = vor.u32 1.1754944e-38, %v5435_v52  ;;  %vm5431_vm5 = vmor %vm5429_vm15, %vm5430_vm3 }
 0x55a   : > { %v5495_v2 = vmul.f32 %v10326_v1, %v5487_v22  ;;  %v5755_v5 = vmul.f32 %v7485_v34, %v10631_v7  ;;  %v7487_v63 = vpop.eup %7486  ;;  %v5763_v37 = vand.u32 2147483647, %v10631_v7  ;;  %v5765_v16 = vand.u32 2147483648, %v10631_v7 }
 0x55b   : > { %v5747_v46 = vsel %vm5746_vm2, %v7477_v27, %v5743_v39  ;;  %v5428_v17 = vadd.f32 %v7481_v41, %v5427_v15  ;;  %v10692_v47 = vadd.f32 1.0, %v7487_v63  ;;  %vm5760_vm6 = vweird.f32 %v7485_v34  ;;  %v7038_v27 = vld [vmem:[%s10792_s9 + $0xa0] sm:$0xff] }
 0x55c   : > { %v5512_v13 = vadd.f32 %v7037_v55, %v5495_v2  ;;  %v5752_v36 = vsel %vm10653_vm12, %v5751_v9, %v5747_v46  ;;  %v5756_v8 = vsub.f32 1.0, %v5755_v5  ;;  %v7032_v35 = vmul.f32 -1.442695, %v10683_v59  ;;  %v7039_v2 = vld [vmem:[%s10792_s9 + $0xa8] sm:$0xff] }
 0x55d   : > { %v5803_v53 = vsel %vm9701_vm4, %v10598_v14, %v5752_v36  ;;  %v10706_v40 = vadd.f32 %v5620_v11, %v10180_v26  ;;  %v7489_v43 = vpop.eup %7488  ;;  %v5432_v19 = vsel %vm5431_vm5, %v7481_v41, %v5428_v17  ;;  %7490 = vrcp.f32 %v10692_v47  ;;  %v7112_v36 = vld [vmem:[%s10792_s9 + $0xf0] sm:$0xff] }
 0x55e   : > { %7045 = vst [vmem:[%s9827_s29 + $0x98] sm:$0xff] %v5512_v13  ;;  %v5811_v12 = vmul.f32 %v10326_v1, %v5803_v53  ;;  %v5757_v60 = vmul.f32 %v7485_v34, %v5756_v8  ;;  %v5437_v14 = vsel %vm10678_vm0, %v5436_v6, %v5432_v19  ;;  %vm5759_vm7 = vweird.f32 %v10631_v7 }
 0x55f   : > { %v5440_v49 = vmul.f32 %v7489_v43, %v10660_v62  ;;  %v5643_v58 = vmul.f32 1.442695, %v10616_v0  ;;  %v5488_v24 = vsel %vm9701_vm4, %v10624_v54, %v5437_v14  ;;  %vm5764_vm8 = vcmp.eq.f32.partialorder %v5763_v37, 8.507059e+37  ;;  %vm5761_vm1 = vmor %vm5759_vm7, %vm5760_vm6  ;;  %v5305_v0 = vpop.f32.mrf.mxu2 }
 0x560   : > { %v5828_v30 = vadd.f32 %v7110_v50, %v5811_v12  ;;  %v5758_v48 = vadd.f32 %v7485_v34, %v5757_v60  ;;  %v5496_v21 = vmul.f32 %v10326_v1, %v5488_v24  ;;  %v5766_v7 = vor.u32 1.1754944e-38, %v5765_v16 }
 0x561   : > { %v5441_v28 = vsub.f32 1.0, %v5440_v49  ;;  %7492 = vpow2.f32 %v7032_v35  ;;  %v5448_v29 = vand.u32 2147483647, %v10660_v62  ;;  %v5450_v54 = vand.u32 2147483648, %v10660_v62 }
 0x562   : > { %7118 = vst [vmem:[%s9827_s29 + $0xe0] sm:$0xff] %v5828_v30  ;;  %v5762_v38 = vsel %vm5761_vm1, %v7485_v34, %v5758_v48  ;;  %v7105_v51 = vmul.f32 -1.442695, %v10706_v40  ;;  %v5513_v56 = vadd.f32 %v7038_v27, %v5496_v21  ;;  %vm5445_vm9 = vweird.f32 %v7489_v43 }
 0x563   : > { %v5767_v45 = vsel %vm5764_vm8, %v5766_v7, %v5762_v38  ;;  %v5442_v25 = vmul.f32 %v7489_v43, %v5441_v28  ;;  %v7491_v41 = vpop.eup %7490  ;;  %7494 = vpow2.f32 %v5643_v58  ;;  %v5315_v31 = vadd.f32 %v5305_v0, %v10180_v26 }
 0x564   : > { %v5804_v42 = vsel %vm9701_vm4, %v10649_v32, %v5767_v45  ;;  %7046 = vst [vmem:[%s9827_s29 + $0xa0] sm:$0xff] %v5513_v56  ;;  %vm5444_vm10 = vweird.f32 %v10660_v62  ;;  %v5770_v52 = vmul.f32 %v7491_v41, %v10692_v47  ;;  %v5451_v3 = vor.u32 1.1754944e-38, %v5450_v54  ;;  %v7040_v54 = vld [vmem:[%s10792_s9 + $0xb0] sm:$0xff]  ;;  %v7518_v56 = vld [vmem:[%s10790_s7 + $0x6] ss:$0 sm:$0xff] }
 0x565   : > { %v5812_v61 = vmul.f32 %v10326_v1, %v5804_v42  ;;  %v5443_v4 = vadd.f32 %v7489_v43, %v5442_v25  ;;  %vm5446_vm11 = vmor %vm5444_vm10, %vm5445_vm9  ;;  %7496 = vpow2.f32 %v7105_v51  ;;  %v7033_v32 = vmul.f32 -1.442695, %v5315_v31 }
 0x566   : > { %vm5449_vm12 = vcmp.eq.f32.partialorder %v5448_v29, 8.507059e+37  ;;  %v5771_v22 = vsub.f32 1.0, %v5770_v52  ;;  %v5778_v26 = vand.u32 2147483647, %v10692_v47  ;;  %v5780_v20 = vand.u32 2147483648, %v10692_v47 }
 0x567   : > { %v7493_v18 = vpop.eup %7492  ;;  %v5829_v33 = vadd.f32 %v7111_v23, %v5812_v61  ;;  %v5447_v9 = vsel %vm5446_vm11, %v7489_v43, %v5443_v4  ;;  %vm5775_vm13 = vweird.f32 %v7491_v41  ;;  %7498 = vpow2.f32 %v7033_v32 }
 0x568   : > { %v5452_v55 = vsel %vm5449_vm12, %v5451_v3, %v5447_v9  ;;  %v5362_v34 = vadd.f32 1.0, %v7493_v18  ;;  %v5772_v39 = vmul.f32 %v7491_v41, %v5771_v22  ;;  %vm5774_vm14 = vweird.f32 %v10692_v47 }
 0x569   : > { %7119 = vst [vmem:[%s9827_s29 + $0xe8] sm:$0xff] %v5829_v33  ;;  %v5489_v62 = vsel %vm9701_vm4, %v10666_v57, %v5452_v55  ;;  %v7495_v10 = vpop.eup %7494  ;;  %vm5776_vm15 = vmor %vm5774_vm14, %vm5775_vm13  ;;  %v5781_v63 = vor.u32 1.1754944e-38, %v5780_v20  ;;  %vm5779_vm0 = vcmp.eq.f32.partialorder %v5778_v26, 8.507059e+37  ;;  %v5328_v47 = vmul.f32 1.442695, %v10683_v59  ;;  %v7113_v33 = vld [vmem:[%s10792_s9 + $0xf8] sm:$0xff] }
 0x56a   : > { %v5497_v15 = vmul.f32 %v10326_v1, %v5489_v62  ;;  %7500 = vrcp.f32 %v5362_v34  ;;  %v5773_v6 = vadd.f32 %v7491_v41, %v5772_v39  ;;  %v5465_v12 = vand.u32 2147483648, %v5362_v34 }
 0x56b   : > { %v7497_v5 = vpop.eup %7496  ;;  %v5645_v19 = vmul.f32 1.442695, %v10706_v40  ;;  %v5463_v49 = vand.u32 2147483647, %v5362_v34  ;;  %vm5459_vm3 = vweird.f32 %v5362_v34 }
 0x56c   : > { %v5514_v11 = vadd.f32 %v7039_v2, %v5497_v15  ;;  %v5777_v57 = vsel %vm5776_vm15, %v7491_v41, %v5773_v6  ;;  %v5678_v13 = vadd.f32 1.0, %v7497_v5  ;;  %v5466_v59 = vor.u32 1.1754944e-38, %v5465_v12  ;;  %v7041_v2 = vld [vmem:[%s10792_s9 + $0xb8] sm:$0xff] }
 0x56d   : > { %v5782_v46 = vsel %vm5779_vm0, %v5781_v63, %v5777_v57  ;;  %v7499_v37 = vpop.eup %7498  ;;  %vm5464_vm6 = vcmp.eq.f32.partialorder %v5463_v49, 8.507059e+37 }
 0x56e   : > { %7047 = vst [vmem:[%s9827_s29 + $0xa8] sm:$0xff] %v5514_v11  ;;  %v5805_v16 = vsel %vm9701_vm4, %v7495_v10, %v5782_v46  ;;  %7502 = vrcp.f32 %v5678_v13  ;;  %v5363_v53 = vadd.f32 1.0, %v7499_v37  ;;  %v5795_v21 = vand.u32 2147483648, %v5678_v13 }
 0x56f   : > { %v5813_v8 = vmul.f32 %v10326_v1, %v5805_v16  ;;  %v5330_v1 = vmul.f32 1.442695, %v5315_v31  ;;  %v5793_v38 = vand.u32 2147483647, %v5678_v13  ;;  %vm5789_vm8 = vweird.f32 %v5678_v13 }
 0x570   : > { %v7501_v17 = vpop.eup %7500  ;;  %7504 = vrcp.f32 %v5363_v53  ;;  %v5480_v41 = vand.u32 2147483648, %v5363_v53  ;;  %v5796_v42 = vor.u32 1.1754944e-38, %v5795_v21  ;;  %v5478_v31 = vand.u32 2147483647, %v5363_v53 }
 0x571   : > { %v5455_v50 = vmul.f32 %v7501_v17, %v5362_v34  ;;  %v5830_v35 = vadd.f32 %v7112_v36, %v5813_v8  ;;  %7506 = vpow2.f32 %v5328_v47  ;;  %vm5460_vm2 = vweird.f32 %v7501_v17 }
 0x572   : > { %vm5461_vm5 = vmor %vm5459_vm3, %vm5460_vm2  ;;  %7508 = vpow2.f32 %v5645_v19  ;;  %vm5794_vm10 = vcmp.eq.f32.partialorder %v5793_v38, 8.507059e+37  ;;  %vm5474_vm11 = vweird.f32 %v5363_v53  ;;  %v5481_v9 = vor.u32 1.1754944e-38, %v5480_v41 }
 0x573   : > { %v5456_v43 = vsub.f32 1.0, %v5455_v50  ;;  %7120 = vst [vmem:[%s9827_s29 + $0xf0] sm:$0xff] %v5830_v35  ;;  %7510 = vpow2.f32 %v5330_v1  ;;  %vm5479_vm13 = vcmp.eq.f32.partialorder %v5478_v31, 8.507059e+37 }
 0x574   : > { %v7503_v60 = vpop.eup %7502 }
 0x575   : > { %v5457_v14 = vmul.f32 %v7501_v17, %v5456_v43  ;;  %v5785_v58 = vmul.f32 %v7503_v60, %v5678_v13  ;;  %vm5790_vm7 = vweird.f32 %v7503_v60 }
 0x576   : > { %v7505_v24 = vpop.eup %7504  ;;  %vm5791_vm1 = vmor %vm5789_vm8, %vm5790_vm7 }
 0x577   : > { %v5458_v30 = vadd.f32 %v7501_v17, %v5457_v14  ;;  %v5786_v27 = vsub.f32 1.0, %v5785_v58  ;;  %v5470_v7 = vmul.f32 %v7505_v24, %v5363_v53  ;;  %v7507_v28 = vpop.eup %7506  ;;  %vm5475_vm9 = vweird.f32 %v7505_v24 }
 0x578   : > { %v7509_v61 = vpop.eup %7508  ;;  %vm5476_vm12 = vmor %vm5474_vm11, %vm5475_vm9 }
 0x579   : > { %v5462_v48 = vsel %vm5461_vm5, %v7501_v17, %v5458_v30  ;;  %v5787_v40 = vmul.f32 %v7503_v60, %v5786_v27  ;;  %v5471_v51 = vsub.f32 1.0, %v5470_v7  ;;  %v7511_v22 = vpop.eup %7510 }
 0x57a   : > { %v5467_v0 = vsel %vm5464_vm6, %v5466_v59, %v5462_v48 }
 0x57b   : > { %v5490_v29 = vsel %vm9701_vm4, %v7507_v28, %v5467_v0  ;;  %v5788_v25 = vadd.f32 %v7503_v60, %v5787_v40  ;;  %v5472_v23 = vmul.f32 %v7505_v24, %v5471_v51 }
 0x57c   : > { %v5498_v45 = vmul.f32 %v7518_v56, %v5490_v29 }
 0x57d   : > { %v5792_v52 = vsel %vm5791_vm1, %v7503_v60, %v5788_v25  ;;  %v5473_v32 = vadd.f32 %v7505_v24, %v5472_v23 }
 0x57e   : > { %v5515_v4 = vadd.f32 %v7040_v54, %v5498_v45  ;;  %v5797_v3 = vsel %vm5794_vm10, %v5796_v42, %v5792_v52 }
 0x57f   : > { %v5806_v18 = vsel %vm9701_vm4, %v7509_v61, %v5797_v3  ;;  %v5477_v26 = vsel %vm5476_vm12, %v7505_v24, %v5473_v32 }
 0x580   : > { %7048 = vst [vmem:[%s9827_s29 + $0xb0] sm:$0xff] %v5515_v4  ;;  %v5814_v55 = vmul.f32 %v7518_v56, %v5806_v18  ;;  %v5482_v20 = vsel %vm5479_vm13, %v5481_v9, %v5477_v26 }
 0x581   : > { %v5491_v62 = vsel %vm9701_vm4, %v7511_v22, %v5482_v20 }
 0x582   : > { %v5831_v34 = vadd.f32 %v7113_v33, %v5814_v55  ;;  %v5499_v39 = vmul.f32 %v7518_v56, %v5491_v62 }
 0x584   : > { %7121 = vst [vmem:[%s9827_s29 + $0xf8] sm:$0xff] %v5831_v34  ;;  %v5516_v10 = vadd.f32 %v7041_v2, %v5499_v39 }
 0x586   : > { %7049 = vst [vmem:[%s9827_s29 + $0xb8] sm:$0xff] %v5516_v10 }
 0x587 PF: > { %s22_s17 = sadd.s32 1, %s7525_s17  }
 0x588   : > { %p19_p4 = scmp.ge.s32.totalorder %s22_s17, 4  }
 0x58a   :  { %21 = sbr.rel (!%p19_p4) target bundleno = 1 (0x1), region = 146 }

</bundles_post_ra>
